<compile_context>
chip_gen: v7x
topology: tpu7x:2x2x1
jax: 0.10.0
libtpu: 0.0.40
codegen_flags: <defaults>
</compile_context>

<pallas_src>
import jax
import jax.numpy as jnp
from jax.experimental import pallas as pl
from jax.experimental.pallas import tpu as pltpu


# -----------------------------------------------------------------------------
# helpers
# -----------------------------------------------------------------------------
def _round_up(x, m):
    return ((x + m - 1) // m) * m


def _largest_divisor_leq(n, cap):
    for d in range(max(1, min(n, cap)), 0, -1):
        if n % d == 0:
            return d
    return 1


# -----------------------------------------------------------------------------
# UNet_Encoder config (mirrors the PyTorch args object)
# -----------------------------------------------------------------------------
class Args:
    pool_window = 3
    num_blocks = 2
    num_channels = 4
    num_kernels = 8
    kernel_size = 3
    padding = 1
    bias = True
    num_enc_conv = 2
    dropout = False      # dropout layers not instantiated (identity at eval)
    dropout_p = 0.0
    n_bins = 16


def block_layer_specs(b, args):
    """Mirror of init_encoder_block: list of (cin, cout, has_bn)."""
    specs = []
    if b == 0:
        specs.append((args.num_channels, args.num_kernels, False))
        for _ in range(1, args.num_enc_conv):
            specs.append((args.num_kernels, args.num_kernels, True))
    else:
        for l in range(args.num_enc_conv):
            cin = args.num_kernels * 2 ** (b - 1) if l == 0 else args.num_kernels * 2 ** b
            specs.append((cin, args.num_kernels * 2 ** b, True))
    return specs


def encoder_stages(args, H, W):
    """Static geometry of every stage (conv / pool) of the encoder."""
    K = args.kernel_size
    p_conv = args.padding
    k_pool = args.pool_window
    p_pool = (k_pool - 1) // 2
    s_pool = 2
    stages = []
    h, w, c = H, W, args.num_channels
    for b in range(args.num_blocks):
        for (ci, co, has_bn) in block_layer_specs(b, args):
            ho = h + 2 * p_conv - K + 1
            wo = w + 2 * p_conv - K + 1
            stages.append(dict(kind="conv", cin=ci, cout=co, hin=h, win=w,
                               hout=ho, wout=wo, pad=p_conv, has_bn=has_bn))
            h, w, c = ho, wo, co
        ho = (h + 2 * p_pool - k_pool) // s_pool + 1
        wo = (w + 2 * p_pool - k_pool) // s_pool + 1
        stages.append(dict(kind="pool", c=c, hin=h, win=w, hout=ho, wout=wo,
                           pad=p_pool, k=k_pool, stride=s_pool))
        h, w = ho, wo
    return stages, (h, w, c)


# -----------------------------------------------------------------------------
# Parameter init (synthetic, deterministic).  Conv bias is folded into the
# affine shift; the fc weight is generated in torch NCHW-flatten row order and
# then row-permuted to NHWC flatten order so the kernel needs no transpose.
# -----------------------------------------------------------------------------
def init_params(key, args, H, W):
    eps = 1e-5
    stages, (hf, wf, cf) = encoder_stages(args, H, W)
    keys = iter(jax.random.split(key, 8 * len(stages) + 8))
    convs = []
    for st in stages:
        if st["kind"] != "conv":
            continue
        ci, co = st["cin"], st["cout"]
        kw_, kb_, kg_, kbe_, km_, kv_ = (next(keys) for _ in range(6))
        fan_in = ci * args.kernel_size ** 2
        wgt = jax.random.normal(
            kw_, (args.kernel_size, args.kernel_size, ci, co), jnp.float32
        ) / jnp.sqrt(float(fan_in))
        bias = (0.1 * jax.random.normal(kb_, (co,), jnp.float32)
                if args.bias else jnp.zeros((co,), jnp.float32))
        if st["has_bn"]:
            # eval-mode BatchNorm folded to per-channel scale / shift
            gamma = 1.0 + 0.1 * jax.random.normal(kg_, (co,), jnp.float32)
            beta = 0.1 * jax.random.normal(kbe_, (co,), jnp.float32)
            rmean = 0.1 * jax.random.normal(km_, (co,), jnp.float32)
            rvar = jnp.abs(1.0 + 0.1 * jax.random.normal(kv_, (co,), jnp.float32))
            scale = gamma / jnp.sqrt(rvar + eps)
            shift = beta - rmean * scale
        else:
            scale = jnp.ones((co,), jnp.float32)
            shift = jnp.zeros((co,), jnp.float32)
        # BN(conv(x) + b) = scale*conv(x) + (shift + scale*b)  -> fold the bias
        shift = shift + scale * bias
        convs.append({"w": wgt,
                      "scale": scale.reshape(1, co),
                      "shift": shift.reshape(1, co)})

    flat = cf * hf * wf
    kfw, kfb = next(keys), next(keys)
    # torch layout: rows indexed by NCHW flatten (c*hf*wf + h*wf + w)
    fc_w_torch = jax.random.normal(kfw, (flat, args.n_bins), jnp.float32) / jnp.sqrt(float(flat))
    # permute rows to NHWC flatten order (h, w, c) -> (hf*wf*cf, n_bins)
    fc_w = (fc_w_torch.reshape(cf, hf, wf, args.n_bins)
            .transpose(1, 2, 0, 3)
            .reshape(hf * wf * cf, args.n_bins))
    fc_b = (0.1 * jax.random.normal(kfb, (args.n_bins,), jnp.float32)).reshape(1, args.n_bins)
    return {"convs": convs, "fc_w": fc_w, "fc_b": fc_b}


# -----------------------------------------------------------------------------
# Fused forward pass: one pallas_call, grid=(N,) ("parallel" -> v7x megacore)
# -----------------------------------------------------------------------------
def unet_encoder_forward(x_nchw, params, args):
    N, C, H, W = x_nchw.shape
    x = jnp.transpose(x_nchw, (0, 2, 3, 1))  # NCHW -> NHWC (channels on lanes)

    stages, (hf, wf, cf) = encoder_stages(args, H, W)
    assert stages[-1]["kind"] == "pool"
    n_conv = sum(1 for st in stages if st["kind"] == "conv")
    K = args.kernel_size
    k_pool = args.pool_window
    s_pool = 2
    n_bins = args.n_bins

    # One zero-halo VMEM buffer per stage input (per sample).  The W halo is
    # LEFT-padded to a multiple of 8 so every interior store is sublane aligned.
    scratch_shapes = []
    padded_bytes = 0
    for st in stages:
        pad = st["pad"]
        st["lpw"] = _round_up(pad, 8) if pad > 0 else 0
        cin = st["cin"] if st["kind"] == "conv" else st["c"]
        hp = st["hin"] + 2 * pad
        wp = st["lpw"] + st["win"] + pad
        scratch_shapes.append(pltpu.VMEM((hp, wp, cin), jnp.float32))
        padded_bytes += hp * _round_up(wp, 8) * _round_up(cin, 128) * 4
    # VMEM budget guard (~1.2 MiB per core at 16x16).
    # TODO(synk): for large images (e.g. 256x256) this single-block design
    #             exceeds VMEM; add an H-row grid tiling / emit_pipeline path.
    assert padded_bytes < 24 * 1024 * 1024, padded_bytes

    # Pack parameters: one (K*K*cin, cout) bf16 weight and one (2, cout) f32
    # affine (scale; shift) per conv; fc weight in bf16, rows in NHWC order.
    conv_inputs = []
    for cp in params["convs"]:
        ci, co = cp["w"].shape[2], cp["w"].shape[3]
        w_packed = cp["w"].reshape(K * K * ci, co).astype(jnp.bfloat16)
        affine = jnp.concatenate([cp["scale"], cp["shift"]], axis=0)  # (2, co)
        conv_inputs += [w_packed, affine]
    fc_w = params["fc_w"].astype(jnp.bfloat16)      # (hf*wf*cf, n_bins)
    fc_b = params["fc_b"]                            # (1, n_bins) f32

    def kernel(*refs):
        x_ref = refs[0]
        conv_refs = refs[1:1 + 2 * n_conv]
        fc_w_ref = refs[1 + 2 * n_conv]
        fc_b_ref = refs[2 + 2 * n_conv]
        o_ref = refs[3 + 2 * n_conv]
        bufs = refs[4 + 2 * n_conv:]

        # -- zero ONLY the halo rings (interiors are overwritten before read) --
        for si, st in enumerate(stages):
            buf = bufs[si]
            pad, lpw = st["pad"], st["lpw"]
            cin = st["cin"] if st["kind"] == "conv" else st["c"]
            hp = st["hin"] + 2 * pad
            wp = lpw + st["win"] + pad
            if pad > 0:
                buf[0:pad, :, :] = jnp.zeros((pad, wp, cin), jnp.float32)
                buf[hp - pad:hp, :, :] = jnp.zeros((pad, wp, cin), jnp.float32)
                buf[:, lpw - pad:lpw, :] = jnp.zeros((hp, pad, cin), jnp.float32)
                buf[:, lpw + st["win"]:wp, :] = jnp.zeros((hp, pad, cin), jnp.float32)

        # -- stage-0 input: copy this sample into the first buffer interior --
        st0 = stages[0]
        bufs[0][st0["pad"]:st0["pad"] + st0["hin"],
                st0["lpw"]:st0["lpw"] + st0["win"], :] = x_ref[0]

        conv_i = 0
        pooled = None
        for si, st in enumerate(stages):
            in_buf = bufs[si]
            is_last = si == len(stages) - 1
            if not is_last:
                nxt = stages[si + 1]
                out_buf = bufs[si + 1]
                opad, olpw = nxt["pad"], nxt["lpw"]

            if st["kind"] == "conv":
                w_ref = conv_refs[2 * conv_i]
                a_ref = conv_refs[2 * conv_i + 1]
                conv_i += 1
                ho, wo = st["hout"], st["wout"]
                ci, co = st["cin"], st["cout"]
                c0 = st["lpw"] - st["pad"]          # buffer col of window dx=0
                w_mat = w_ref[...]                  # (K*K*ci, co) bf16, hoisted
                scale = a_ref[0:1, :]
                shift = a_ref[1:2, :]
                # chunk output rows so acc/patch stay within the vreg file
                ch = _largest_divisor_leq(ho, max(1, 128 // max(wo, 1)))
                for r0 in range(0, ho, ch):
                    # packed-K im2col: concat the K*K tap slices along lanes
                    taps = []
                    for dy in range(K):
                        for dx in range(K):
                            t = in_buf[r0 + dy:r0 + dy + ch,
                                       c0 + dx:c0 + dx + wo, :]
                            taps.append(t.reshape(ch * wo, ci))
                    patch = jnp.concatenate(taps, axis=1).astype(jnp.bfloat16)
                    acc = jnp.dot(patch, w_mat,
                                  preferred_element_type=jnp.float32)
                    y = jnp.maximum(acc * scale + shift, 0.0)   # BN + ReLU (f32)
                    out_buf[opad + r0:opad + r0 + ch,
                            olpw:olpw + wo, :] = y.reshape(ch, wo, co)

            else:  # avg pool, count_include_pad=True -> divisor k*k
                ho, wo, c = st["hout"], st["wout"], st["c"]
                c0 = st["lpw"] - st["pad"]
                acc = jnp.zeros((ho, wo, c), jnp.float32)
                for dy in range(k_pool):
                    for dx in range(k_pool):
                        acc = acc + in_buf[pl.ds(dy, ho, s_pool),
                                           pl.ds(c0 + dx, wo, s_pool), :]
                pooled_v = acc * (1.0 / (k_pool * k_pool))
                if is_last:
                    pooled = pooled_v
                else:
                    out_buf[opad:opad + ho, olpw:olpw + wo, :] = pooled_v

        # -- final Linear as ONE matmul: lane-concat the pooled activation into
        #    a (1, hf*wf*cf) row; fc rows are already permuted to NHWC order. --
        flat2d = pooled.reshape(hf * wf, cf)
        flat = jnp.concatenate([flat2d[p:p + 1, :] for p in range(hf * wf)],
                               axis=1).astype(jnp.bfloat16)          # (1, flat)
        logits = jnp.dot(flat, fc_w_ref[...],
                         preferred_element_type=jnp.float32) + fc_b_ref[...]
        o_ref[...] = logits[None].astype(o_ref.dtype)                # (1,1,nb)

    inputs = [x] + conv_inputs + [fc_w, fc_b]
    in_specs = [pl.BlockSpec((1, H, W, C), lambda n: (n, 0, 0, 0))]
    for a in conv_inputs + [fc_w, fc_b]:
        in_specs.append(pl.BlockSpec(a.shape, lambda n, nd=a.ndim: (0,) * nd))

    out = pl.pallas_call(
        kernel,
        out_shape=jax.ShapeDtypeStruct((N, 1, n_bins), jnp.float32),
        grid=(N,),
        in_specs=in_specs,
        out_specs=pl.BlockSpec((1, 1, n_bins), lambda n: (n, 0, 0)),
        scratch_shapes=scratch_shapes,
        compiler_params=pltpu.CompilerParams(dimension_semantics=("parallel",)),
    )(*inputs)
    return out.reshape(N, n_bins)


# -----------------------------------------------------------------------------
# Pure-JAX reference (same folded params / same flatten convention, f32)
# -----------------------------------------------------------------------------
def unet_encoder_reference(x_nchw, params, args):
    x = jnp.transpose(x_nchw, (0, 2, 3, 1))
    stages, _ = encoder_stages(args, x_nchw.shape[2], x_nchw.shape[3])
    ci = 0
    for st in stages:
        if st["kind"] == "conv":
            cp = params["convs"][ci]
            ci += 1
            y = jax.lax.conv_general_dilated(
                x, cp["w"], window_strides=(1, 1),
                padding=[(st["pad"], st["pad"]), (st["pad"], st["pad"])],
                dimension_numbers=("NHWC", "HWIO", "NHWC"),
                precision=jax.lax.Precision.HIGHEST)
            x = jnp.maximum(y * cp["scale"].reshape(1, 1, 1, -1)
                            + cp["shift"].reshape(1, 1, 1, -1), 0.0)
        else:
            s = jax.lax.reduce_window(
                x, 0.0, jax.lax.add,
                window_dimensions=(1, st["k"], st["k"], 1),
                window_strides=(1, st["stride"], st["stride"], 1),
                padding=((0, 0), (st["pad"], st["pad"]),
                         (st["pad"], st["pad"]), (0, 0)))
            x = s / float(st["k"] * st["k"])
    flat = x.reshape(x.shape[0], -1)                       # NHWC flatten
    return jax.lax.dot(flat, params["fc_w"],
                       precision=jax.lax.Precision.HIGHEST) + params["fc_b"]


# -----------------------------------------------------------------------------
if __name__ == "__main__":
    args = Args()
    key = jax.random.PRNGKey(0)
    kx, kp = jax.random.split(key)

    N, H, W = 2, 16, 16
    x = jax.random.normal(kx, (N, args.num_channels, H, W), jnp.float32)
    params = init_params(kp, args, H, W)

    out = jax.block_until_ready(unet_encoder_forward(x, params, args))
    assert out.shape == (N, args.n_bins), out.shape
    assert out.dtype == jnp.float32

    ref = jax.block_until_ready(unet_encoder_reference(x, params, args))
    assert jnp.allclose(out, ref, rtol=2e-2, atol=2e-2), (
        "max abs diff vs reference: %f" % float(jnp.max(jnp.abs(out - ref))))
    print("KERNEL_OK")
</pallas_src>

<mosaic_0001>
module attributes {stable_mosaic.version = 11 : i64} {
  func.func @kernel(%arg0: i32, %arg1: memref<1x16x16x4xf32, #tpu.memory_space<vmem>>, %arg2: memref<36x8xbf16, #tpu.memory_space<vmem>>, %arg3: memref<2x8xf32, #tpu.memory_space<vmem>>, %arg4: memref<72x8xbf16, #tpu.memory_space<vmem>>, %arg5: memref<2x8xf32, #tpu.memory_space<vmem>>, %arg6: memref<72x16xbf16, #tpu.memory_space<vmem>>, %arg7: memref<2x16xf32, #tpu.memory_space<vmem>>, %arg8: memref<144x16xbf16, #tpu.memory_space<vmem>>, %arg9: memref<2x16xf32, #tpu.memory_space<vmem>>, %arg10: memref<256x16xbf16, #tpu.memory_space<vmem>>, %arg11: memref<1x16xf32, #tpu.memory_space<vmem>>, %arg12: memref<1x1x16xf32, #tpu.memory_space<vmem>>, %arg13: memref<18x25x4xf32, #tpu.memory_space<vmem>>, %arg14: memref<18x25x8xf32, #tpu.memory_space<vmem>>, %arg15: memref<18x25x8xf32, #tpu.memory_space<vmem>>, %arg16: memref<10x17x8xf32, #tpu.memory_space<vmem>>, %arg17: memref<10x17x16xf32, #tpu.memory_space<vmem>>, %arg18: memref<10x17x16xf32, #tpu.memory_space<vmem>>) attributes {dimension_semantics = [#tpu.dimension_semantics<parallel>], iteration_bounds = array<i64: 2>, scalar_prefetch = 0 : i64, scratch_operands = 6 : i64, tpu.core_type = #tpu.core_type<tc>, window_params = [{transform_indices = @transform_0, window_bounds = array<i64: 1, 16, 16, 4>}, {pipeline_mode = #tpu.pipeline_mode<synchronous>, transform_indices = @transform_1, window_bounds = array<i64: 36, 8>}, {pipeline_mode = #tpu.pipeline_mode<synchronous>, transform_indices = @transform_2, window_bounds = array<i64: 2, 8>}, {pipeline_mode = #tpu.pipeline_mode<synchronous>, transform_indices = @transform_3, window_bounds = array<i64: 72, 8>}, {pipeline_mode = #tpu.pipeline_mode<synchronous>, transform_indices = @transform_4, window_bounds = array<i64: 2, 8>}, {pipeline_mode = #tpu.pipeline_mode<synchronous>, transform_indices = @transform_5, window_bounds = array<i64: 72, 16>}, {pipeline_mode = #tpu.pipeline_mode<synchronous>, transform_indices = @transform_6, window_bounds = array<i64: 2, 16>}, {pipeline_mode = #tpu.pipeline_mode<synchronous>, transform_indices = @transform_7, window_bounds = array<i64: 144, 16>}, {pipeline_mode = #tpu.pipeline_mode<synchronous>, transform_indices = @transform_8, window_bounds = array<i64: 2, 16>}, {pipeline_mode = #tpu.pipeline_mode<synchronous>, transform_indices = @transform_9, window_bounds = array<i64: 256, 16>}, {pipeline_mode = #tpu.pipeline_mode<synchronous>, transform_indices = @transform_10, window_bounds = array<i64: 1, 16>}, {transform_indices = @transform_11, window_bounds = array<i64: 1, 1, 16>}]} {
    %cst = arith.constant 0.000000e+00 : f32
    %0 = vector.broadcast %cst : f32 to vector<1x25x4xf32>
    %c0 = arith.constant 0 : index
    %c0_0 = arith.constant 0 : index
    %c0_1 = arith.constant 0 : index
    %1 = vector.load %arg13[%c0, %c0_0, %c0_1] : memref<18x25x4xf32, #tpu.memory_space<vmem>>, vector<1x25x4xf32>
    tpu.vector_store %arg13[%c0, %c0_0, %c0_1], %0 {strides = array<i32>} : memref<18x25x4xf32, #tpu.memory_space<vmem>>, vector<1x25x4xf32>,
    %cst_2 = arith.constant 0.000000e+00 : f32
    %2 = vector.broadcast %cst_2 : f32 to vector<1x25x4xf32>
    %c17 = arith.constant 17 : index
    %c0_3 = arith.constant 0 : index
    %c0_4 = arith.constant 0 : index
    %3 = vector.load %arg13[%c17, %c0_3, %c0_4] : memref<18x25x4xf32, #tpu.memory_space<vmem>>, vector<1x25x4xf32>
    tpu.vector_store %arg13[%c17, %c0_3, %c0_4], %2 {strides = array<i32>} : memref<18x25x4xf32, #tpu.memory_space<vmem>>, vector<1x25x4xf32>,
    %cst_5 = arith.constant 0.000000e+00 : f32
    %4 = vector.broadcast %cst_5 : f32 to vector<18x1x4xf32>
    %c0_6 = arith.constant 0 : index
    %c7 = arith.constant 7 : index
    %c0_7 = arith.constant 0 : index
    %5 = vector.load %arg13[%c0_6, %c7, %c0_7] : memref<18x25x4xf32, #tpu.memory_space<vmem>>, vector<18x1x4xf32>
    tpu.vector_store %arg13[%c0_6, %c7, %c0_7], %4 {strides = array<i32>} : memref<18x25x4xf32, #tpu.memory_space<vmem>>, vector<18x1x4xf32>,
    %cst_8 = arith.constant 0.000000e+00 : f32
    %6 = vector.broadcast %cst_8 : f32 to vector<18x1x4xf32>
    %c0_9 = arith.constant 0 : index
    %c24 = arith.constant 24 : index
    %c0_10 = arith.constant 0 : index
    %7 = vector.load %arg13[%c0_9, %c24, %c0_10] : memref<18x25x4xf32, #tpu.memory_space<vmem>>, vector<18x1x4xf32>
    tpu.vector_store %arg13[%c0_9, %c24, %c0_10], %6 {strides = array<i32>} : memref<18x25x4xf32, #tpu.memory_space<vmem>>, vector<18x1x4xf32>,
    %cst_11 = arith.constant 0.000000e+00 : f32
    %8 = vector.broadcast %cst_11 : f32 to vector<1x25x8xf32>
    %c0_12 = arith.constant 0 : index
    %c0_13 = arith.constant 0 : index
    %c0_14 = arith.constant 0 : index
    %9 = vector.load %arg14[%c0_12, %c0_13, %c0_14] : memref<18x25x8xf32, #tpu.memory_space<vmem>>, vector<1x25x8xf32>
    tpu.vector_store %arg14[%c0_12, %c0_13, %c0_14], %8 {strides = array<i32>} : memref<18x25x8xf32, #tpu.memory_space<vmem>>, vector<1x25x8xf32>,
    %cst_15 = arith.constant 0.000000e+00 : f32
    %10 = vector.broadcast %cst_15 : f32 to vector<1x25x8xf32>
    %c17_16 = arith.constant 17 : index
    %c0_17 = arith.constant 0 : index
    %c0_18 = arith.constant 0 : index
    %11 = vector.load %arg14[%c17_16, %c0_17, %c0_18] : memref<18x25x8xf32, #tpu.memory_space<vmem>>, vector<1x25x8xf32>
    tpu.vector_store %arg14[%c17_16, %c0_17, %c0_18], %10 {strides = array<i32>} : memref<18x25x8xf32, #tpu.memory_space<vmem>>, vector<1x25x8xf32>,
    %cst_19 = arith.constant 0.000000e+00 : f32
    %12 = vector.broadcast %cst_19 : f32 to vector<18x1x8xf32>
    %c0_20 = arith.constant 0 : index
    %c7_21 = arith.constant 7 : index
    %c0_22 = arith.constant 0 : index
    %13 = vector.load %arg14[%c0_20, %c7_21, %c0_22] : memref<18x25x8xf32, #tpu.memory_space<vmem>>, vector<18x1x8xf32>
    tpu.vector_store %arg14[%c0_20, %c7_21, %c0_22], %12 {strides = array<i32>} : memref<18x25x8xf32, #tpu.memory_space<vmem>>, vector<18x1x8xf32>,
    %cst_23 = arith.constant 0.000000e+00 : f32
    %14 = vector.broadcast %cst_23 : f32 to vector<18x1x8xf32>
    %c0_24 = arith.constant 0 : index
    %c24_25 = arith.constant 24 : index
    %c0_26 = arith.constant 0 : index
    %15 = vector.load %arg14[%c0_24, %c24_25, %c0_26] : memref<18x25x8xf32, #tpu.memory_space<vmem>>, vector<18x1x8xf32>
    tpu.vector_store %arg14[%c0_24, %c24_25, %c0_26], %14 {strides = array<i32>} : memref<18x25x8xf32, #tpu.memory_space<vmem>>, vector<18x1x8xf32>,
    %cst_27 = arith.constant 0.000000e+00 : f32
    %16 = vector.broadcast %cst_27 : f32 to vector<1x25x8xf32>
    %c0_28 = arith.constant 0 : index
    %c0_29 = arith.constant 0 : index
    %c0_30 = arith.constant 0 : index
    %17 = vector.load %arg15[%c0_28, %c0_29, %c0_30] : memref<18x25x8xf32, #tpu.memory_space<vmem>>, vector<1x25x8xf32>
    tpu.vector_store %arg15[%c0_28, %c0_29, %c0_30], %16 {strides = array<i32>} : memref<18x25x8xf32, #tpu.memory_space<vmem>>, vector<1x25x8xf32>,
    %cst_31 = arith.constant 0.000000e+00 : f32
    %18 = vector.broadcast %cst_31 : f32 to vector<1x25x8xf32>
    %c17_32 = arith.constant 17 : index
    %c0_33 = arith.constant 0 : index
    %c0_34 = arith.constant 0 : index
    %19 = vector.load %arg15[%c17_32, %c0_33, %c0_34] : memref<18x25x8xf32, #tpu.memory_space<vmem>>, vector<1x25x8xf32>
    tpu.vector_store %arg15[%c17_32, %c0_33, %c0_34], %18 {strides = array<i32>} : memref<18x25x8xf32, #tpu.memory_space<vmem>>, vector<1x25x8xf32>,
    %cst_35 = arith.constant 0.000000e+00 : f32
    %20 = vector.broadcast %cst_35 : f32 to vector<18x1x8xf32>
    %c0_36 = arith.constant 0 : index
    %c7_37 = arith.constant 7 : index
    %c0_38 = arith.constant 0 : index
    %21 = vector.load %arg15[%c0_36, %c7_37, %c0_38] : memref<18x25x8xf32, #tpu.memory_space<vmem>>, vector<18x1x8xf32>
    tpu.vector_store %arg15[%c0_36, %c7_37, %c0_38], %20 {strides = array<i32>} : memref<18x25x8xf32, #tpu.memory_space<vmem>>, vector<18x1x8xf32>,
    %cst_39 = arith.constant 0.000000e+00 : f32
    %22 = vector.broadcast %cst_39 : f32 to vector<18x1x8xf32>
    %c0_40 = arith.constant 0 : index
    %c24_41 = arith.constant 24 : index
    %c0_42 = arith.constant 0 : index
    %23 = vector.load %arg15[%c0_40, %c24_41, %c0_42] : memref<18x25x8xf32, #tpu.memory_space<vmem>>, vector<18x1x8xf32>
    tpu.vector_store %arg15[%c0_40, %c24_41, %c0_42], %22 {strides = array<i32>} : memref<18x25x8xf32, #tpu.memory_space<vmem>>, vector<18x1x8xf32>,
    %cst_43 = arith.constant 0.000000e+00 : f32
    %24 = vector.broadcast %cst_43 : f32 to vector<1x17x8xf32>
    %c0_44 = arith.constant 0 : index
    %c0_45 = arith.constant 0 : index
    %c0_46 = arith.constant 0 : index
    %25 = vector.load %arg16[%c0_44, %c0_45, %c0_46] : memref<10x17x8xf32, #tpu.memory_space<vmem>>, vector<1x17x8xf32>
    tpu.vector_store %arg16[%c0_44, %c0_45, %c0_46], %24 {strides = array<i32>} : memref<10x17x8xf32, #tpu.memory_space<vmem>>, vector<1x17x8xf32>,
    %cst_47 = arith.constant 0.000000e+00 : f32
    %26 = vector.broadcast %cst_47 : f32 to vector<1x17x8xf32>
    %c9 = arith.constant 9 : index
    %c0_48 = arith.constant 0 : index
    %c0_49 = arith.constant 0 : index
    %27 = vector.load %arg16[%c9, %c0_48, %c0_49] : memref<10x17x8xf32, #tpu.memory_space<vmem>>, vector<1x17x8xf32>
    tpu.vector_store %arg16[%c9, %c0_48, %c0_49], %26 {strides = array<i32>} : memref<10x17x8xf32, #tpu.memory_space<vmem>>, vector<1x17x8xf32>,
    %cst_50 = arith.constant 0.000000e+00 : f32
    %28 = vector.broadcast %cst_50 : f32 to vector<10x1x8xf32>
    %c0_51 = arith.constant 0 : index
    %c7_52 = arith.constant 7 : index
    %c0_53 = arith.constant 0 : index
    %29 = vector.load %arg16[%c0_51, %c7_52, %c0_53] : memref<10x17x8xf32, #tpu.memory_space<vmem>>, vector<10x1x8xf32>
    tpu.vector_store %arg16[%c0_51, %c7_52, %c0_53], %28 {strides = array<i32>} : memref<10x17x8xf32, #tpu.memory_space<vmem>>, vector<10x1x8xf32>,
    %cst_54 = arith.constant 0.000000e+00 : f32
    %30 = vector.broadcast %cst_54 : f32 to vector<10x1x8xf32>
    %c0_55 = arith.constant 0 : index
    %c16 = arith.constant 16 : index
    %c0_56 = arith.constant 0 : index
    %31 = vector.load %arg16[%c0_55, %c16, %c0_56] : memref<10x17x8xf32, #tpu.memory_space<vmem>>, vector<10x1x8xf32>
    tpu.vector_store %arg16[%c0_55, %c16, %c0_56], %30 {strides = array<i32>} : memref<10x17x8xf32, #tpu.memory_space<vmem>>, vector<10x1x8xf32>,
    %cst_57 = arith.constant 0.000000e+00 : f32
    %32 = vector.broadcast %cst_57 : f32 to vector<1x17x16xf32>
    %c0_58 = arith.constant 0 : index
    %c0_59 = arith.constant 0 : index
    %c0_60 = arith.constant 0 : index
    %33 = vector.load %arg17[%c0_58, %c0_59, %c0_60] : memref<10x17x16xf32, #tpu.memory_space<vmem>>, vector<1x17x16xf32>
    tpu.vector_store %arg17[%c0_58, %c0_59, %c0_60], %32 {strides = array<i32>} : memref<10x17x16xf32, #tpu.memory_space<vmem>>, vector<1x17x16xf32>,
    %cst_61 = arith.constant 0.000000e+00 : f32
    %34 = vector.broadcast %cst_61 : f32 to vector<1x17x16xf32>
    %c9_62 = arith.constant 9 : index
    %c0_63 = arith.constant 0 : index
    %c0_64 = arith.constant 0 : index
    %35 = vector.load %arg17[%c9_62, %c0_63, %c0_64] : memref<10x17x16xf32, #tpu.memory_space<vmem>>, vector<1x17x16xf32>
    tpu.vector_store %arg17[%c9_62, %c0_63, %c0_64], %34 {strides = array<i32>} : memref<10x17x16xf32, #tpu.memory_space<vmem>>, vector<1x17x16xf32>,
    %cst_65 = arith.constant 0.000000e+00 : f32
    %36 = vector.broadcast %cst_65 : f32 to vector<10x1x16xf32>
    %c0_66 = arith.constant 0 : index
    %c7_67 = arith.constant 7 : index
    %c0_68 = arith.constant 0 : index
    %37 = vector.load %arg17[%c0_66, %c7_67, %c0_68] : memref<10x17x16xf32, #tpu.memory_space<vmem>>, vector<10x1x16xf32>
    tpu.vector_store %arg17[%c0_66, %c7_67, %c0_68], %36 {strides = array<i32>} : memref<10x17x16xf32, #tpu.memory_space<vmem>>, vector<10x1x16xf32>,
    %cst_69 = arith.constant 0.000000e+00 : f32
    %38 = vector.broadcast %cst_69 : f32 to vector<10x1x16xf32>
    %c0_70 = arith.constant 0 : index
    %c16_71 = arith.constant 16 : index
    %c0_72 = arith.constant 0 : index
    %39 = vector.load %arg17[%c0_70, %c16_71, %c0_72] : memref<10x17x16xf32, #tpu.memory_space<vmem>>, vector<10x1x16xf32>
    tpu.vector_store %arg17[%c0_70, %c16_71, %c0_72], %38 {strides = array<i32>} : memref<10x17x16xf32, #tpu.memory_space<vmem>>, vector<10x1x16xf32>,
    %cst_73 = arith.constant 0.000000e+00 : f32
    %40 = vector.broadcast %cst_73 : f32 to vector<1x17x16xf32>
    %c0_74 = arith.constant 0 : index
    %c0_75 = arith.constant 0 : index
    %c0_76 = arith.constant 0 : index
    %41 = vector.load %arg18[%c0_74, %c0_75, %c0_76] : memref<10x17x16xf32, #tpu.memory_space<vmem>>, vector<1x17x16xf32>
    tpu.vector_store %arg18[%c0_74, %c0_75, %c0_76], %40 {strides = array<i32>} : memref<10x17x16xf32, #tpu.memory_space<vmem>>, vector<1x17x16xf32>,
    %cst_77 = arith.constant 0.000000e+00 : f32
    %42 = vector.broadcast %cst_77 : f32 to vector<1x17x16xf32>
    %c9_78 = arith.constant 9 : index
    %c0_79 = arith.constant 0 : index
    %c0_80 = arith.constant 0 : index
    %43 = vector.load %arg18[%c9_78, %c0_79, %c0_80] : memref<10x17x16xf32, #tpu.memory_space<vmem>>, vector<1x17x16xf32>
    tpu.vector_store %arg18[%c9_78, %c0_79, %c0_80], %42 {strides = array<i32>} : memref<10x17x16xf32, #tpu.memory_space<vmem>>, vector<1x17x16xf32>,
    %cst_81 = arith.constant 0.000000e+00 : f32
    %44 = vector.broadcast %cst_81 : f32 to vector<10x1x16xf32>
    %c0_82 = arith.constant 0 : index
    %c7_83 = arith.constant 7 : index
    %c0_84 = arith.constant 0 : index
    %45 = vector.load %arg18[%c0_82, %c7_83, %c0_84] : memref<10x17x16xf32, #tpu.memory_space<vmem>>, vector<10x1x16xf32>
    tpu.vector_store %arg18[%c0_82, %c7_83, %c0_84], %44 {strides = array<i32>} : memref<10x17x16xf32, #tpu.memory_space<vmem>>, vector<10x1x16xf32>,
    %cst_85 = arith.constant 0.000000e+00 : f32
    %46 = vector.broadcast %cst_85 : f32 to vector<10x1x16xf32>
    %c0_86 = arith.constant 0 : index
    %c16_87 = arith.constant 16 : index
    %c0_88 = arith.constant 0 : index
    %47 = vector.load %arg18[%c0_86, %c16_87, %c0_88] : memref<10x17x16xf32, #tpu.memory_space<vmem>>, vector<10x1x16xf32>
    tpu.vector_store %arg18[%c0_86, %c16_87, %c0_88], %46 {strides = array<i32>} : memref<10x17x16xf32, #tpu.memory_space<vmem>>, vector<10x1x16xf32>,
    %c0_89 = arith.constant 0 : index
    %c0_90 = arith.constant 0 : index
    %c0_91 = arith.constant 0 : index
    %c0_92 = arith.constant 0 : index
    %48 = vector.load %arg1[%c0_89, %c0_90, %c0_91, %c0_92] : memref<1x16x16x4xf32, #tpu.memory_space<vmem>>, vector<1x16x16x4xf32>
    %49 = vector.shape_cast %48 : vector<1x16x16x4xf32> to vector<16x16x4xf32>
    %c1 = arith.constant 1 : index
    %c8 = arith.constant 8 : index
    %c0_93 = arith.constant 0 : index
    %50 = vector.load %arg13[%c1, %c8, %c0_93] : memref<18x25x4xf32, #tpu.memory_space<vmem>>, vector<16x16x4xf32>
    tpu.vector_store %arg13[%c1, %c8, %c0_93], %49 {strides = array<i32>} : memref<18x25x4xf32, #tpu.memory_space<vmem>>, vector<16x16x4xf32>,
    %c0_94 = arith.constant 0 : index
    %c0_95 = arith.constant 0 : index
    %51 = vector.load %arg2[%c0_94, %c0_95] : memref<36x8xbf16, #tpu.memory_space<vmem>>, vector<36x8xbf16>
    %c0_96 = arith.constant 0 : index
    %c0_97 = arith.constant 0 : index
    %52 = vector.load %arg3[%c0_96, %c0_97] : memref<2x8xf32, #tpu.memory_space<vmem>>, vector<1x8xf32>
    %c1_98 = arith.constant 1 : index
    %c0_99 = arith.constant 0 : index
    %53 = vector.load %arg3[%c1_98, %c0_99] : memref<2x8xf32, #tpu.memory_space<vmem>>, vector<1x8xf32>
    %c0_100 = arith.constant 0 : index
    %c7_101 = arith.constant 7 : index
    %c0_102 = arith.constant 0 : index
    %54 = vector.load %arg13[%c0_100, %c7_101, %c0_102] : memref<18x25x4xf32, #tpu.memory_space<vmem>>, vector<8x16x4xf32>
    %55 = vector.shape_cast %54 : vector<8x16x4xf32> to vector<128x4xf32>
    %c0_103 = arith.constant 0 : index
    %c8_104 = arith.constant 8 : index
    %c0_105 = arith.constant 0 : index
    %56 = vector.load %arg13[%c0_103, %c8_104, %c0_105] : memref<18x25x4xf32, #tpu.memory_space<vmem>>, vector<8x16x4xf32>
    %57 = vector.shape_cast %56 : vector<8x16x4xf32> to vector<128x4xf32>
    %c0_106 = arith.constant 0 : index
    %c9_107 = arith.constant 9 : index
    %c0_108 = arith.constant 0 : index
    %58 = vector.load %arg13[%c0_106, %c9_107, %c0_108] : memref<18x25x4xf32, #tpu.memory_space<vmem>>, vector<8x16x4xf32>
    %59 = vector.shape_cast %58 : vector<8x16x4xf32> to vector<128x4xf32>
    %c1_109 = arith.constant 1 : index
    %c7_110 = arith.constant 7 : index
    %c0_111 = arith.constant 0 : index
    %60 = vector.load %arg13[%c1_109, %c7_110, %c0_111] : memref<18x25x4xf32, #tpu.memory_space<vmem>>, vector<8x16x4xf32>
    %61 = vector.shape_cast %60 : vector<8x16x4xf32> to vector<128x4xf32>
    %c1_112 = arith.constant 1 : index
    %c8_113 = arith.constant 8 : index
    %c0_114 = arith.constant 0 : index
    %62 = vector.load %arg13[%c1_112, %c8_113, %c0_114] : memref<18x25x4xf32, #tpu.memory_space<vmem>>, vector<8x16x4xf32>
    %63 = vector.shape_cast %62 : vector<8x16x4xf32> to vector<128x4xf32>
    %c1_115 = arith.constant 1 : index
    %c9_116 = arith.constant 9 : index
    %c0_117 = arith.constant 0 : index
    %64 = vector.load %arg13[%c1_115, %c9_116, %c0_117] : memref<18x25x4xf32, #tpu.memory_space<vmem>>, vector<8x16x4xf32>
    %65 = vector.shape_cast %64 : vector<8x16x4xf32> to vector<128x4xf32>
    %c2 = arith.constant 2 : index
    %c7_118 = arith.constant 7 : index
    %c0_119 = arith.constant 0 : index
    %66 = vector.load %arg13[%c2, %c7_118, %c0_119] : memref<18x25x4xf32, #tpu.memory_space<vmem>>, vector<8x16x4xf32>
    %67 = vector.shape_cast %66 : vector<8x16x4xf32> to vector<128x4xf32>
    %c2_120 = arith.constant 2 : index
    %c8_121 = arith.constant 8 : index
    %c0_122 = arith.constant 0 : index
    %68 = vector.load %arg13[%c2_120, %c8_121, %c0_122] : memref<18x25x4xf32, #tpu.memory_space<vmem>>, vector<8x16x4xf32>
    %69 = vector.shape_cast %68 : vector<8x16x4xf32> to vector<128x4xf32>
    %c2_123 = arith.constant 2 : index
    %c9_124 = arith.constant 9 : index
    %c0_125 = arith.constant 0 : index
    %70 = vector.load %arg13[%c2_123, %c9_124, %c0_125] : memref<18x25x4xf32, #tpu.memory_space<vmem>>, vector<8x16x4xf32>
    %71 = vector.shape_cast %70 : vector<8x16x4xf32> to vector<128x4xf32>
    %72 = tpu.concatenate %55, %57, %59, %61, %63, %65, %67, %69, %71 in 1 : vector<128x4xf32>, vector<128x4xf32>, vector<128x4xf32>, vector<128x4xf32>, vector<128x4xf32>, vector<128x4xf32>, vector<128x4xf32>, vector<128x4xf32>, vector<128x4xf32> -> vector<128x36xf32>
    %73 = arith.truncf %72 : vector<128x36xf32> to vector<128x36xbf16>
    %cst_126 = arith.constant dense<0.000000e+00> : vector<128x8xf32>
    %74 = tpu.matmul %73, %51, %cst_126 {dimension_numbers = #tpu.dot_dimension_numbers<[1], [0], [0], [1], [0, 0, 1, 1], [], []>} : vector<128x36xbf16>, vector<36x8xbf16>, vector<128x8xf32> -> vector<128x8xf32>
    %75 = vector.broadcast %52 : vector<1x8xf32> to vector<128x8xf32>
    %76 = arith.mulf %74, %75 : vector<128x8xf32>
    %77 = vector.broadcast %53 : vector<1x8xf32> to vector<128x8xf32>
    %78 = arith.addf %76, %77 : vector<128x8xf32>
    %cst_127 = arith.constant 0.000000e+00 : f32
    %79 = vector.broadcast %cst_127 : f32 to vector<128x8xf32>
    %80 = arith.maximumf %78, %79 : vector<128x8xf32>
    %81 = vector.shape_cast %80 : vector<128x8xf32> to vector<8x16x8xf32>
    %c1_128 = arith.constant 1 : index
    %c8_129 = arith.constant 8 : index
    %c0_130 = arith.constant 0 : index
    %82 = vector.load %arg14[%c1_128, %c8_129, %c0_130] : memref<18x25x8xf32, #tpu.memory_space<vmem>>, vector<8x16x8xf32>
    tpu.vector_store %arg14[%c1_128, %c8_129, %c0_130], %81 {strides = array<i32>} : memref<18x25x8xf32, #tpu.memory_space<vmem>>, vector<8x16x8xf32>,
    %c8_131 = arith.constant 8 : index
    %c7_132 = arith.constant 7 : index
    %c0_133 = arith.constant 0 : index
    %83 = vector.load %arg13[%c8_131, %c7_132, %c0_133] : memref<18x25x4xf32, #tpu.memory_space<vmem>>, vector<8x16x4xf32>
    %84 = vector.shape_cast %83 : vector<8x16x4xf32> to vector<128x4xf32>
    %c8_134 = arith.constant 8 : index
    %c8_135 = arith.constant 8 : index
    %c0_136 = arith.constant 0 : index
    %85 = vector.load %arg13[%c8_134, %c8_135, %c0_136] : memref<18x25x4xf32, #tpu.memory_space<vmem>>, vector<8x16x4xf32>
    %86 = vector.shape_cast %85 : vector<8x16x4xf32> to vector<128x4xf32>
    %c8_137 = arith.constant 8 : index
    %c9_138 = arith.constant 9 : index
    %c0_139 = arith.constant 0 : index
    %87 = vector.load %arg13[%c8_137, %c9_138, %c0_139] : memref<18x25x4xf32, #tpu.memory_space<vmem>>, vector<8x16x4xf32>
    %88 = vector.shape_cast %87 : vector<8x16x4xf32> to vector<128x4xf32>
    %c9_140 = arith.constant 9 : index
    %c7_141 = arith.constant 7 : index
    %c0_142 = arith.constant 0 : index
    %89 = vector.load %arg13[%c9_140, %c7_141, %c0_142] : memref<18x25x4xf32, #tpu.memory_space<vmem>>, vector<8x16x4xf32>
    %90 = vector.shape_cast %89 : vector<8x16x4xf32> to vector<128x4xf32>
    %c9_143 = arith.constant 9 : index
    %c8_144 = arith.constant 8 : index
    %c0_145 = arith.constant 0 : index
    %91 = vector.load %arg13[%c9_143, %c8_144, %c0_145] : memref<18x25x4xf32, #tpu.memory_space<vmem>>, vector<8x16x4xf32>
    %92 = vector.shape_cast %91 : vector<8x16x4xf32> to vector<128x4xf32>
    %c9_146 = arith.constant 9 : index
    %c9_147 = arith.constant 9 : index
    %c0_148 = arith.constant 0 : index
    %93 = vector.load %arg13[%c9_146, %c9_147, %c0_148] : memref<18x25x4xf32, #tpu.memory_space<vmem>>, vector<8x16x4xf32>
    %94 = vector.shape_cast %93 : vector<8x16x4xf32> to vector<128x4xf32>
    %c10 = arith.constant 10 : index
    %c7_149 = arith.constant 7 : index
    %c0_150 = arith.constant 0 : index
    %95 = vector.load %arg13[%c10, %c7_149, %c0_150] : memref<18x25x4xf32, #tpu.memory_space<vmem>>, vector<8x16x4xf32>
    %96 = vector.shape_cast %95 : vector<8x16x4xf32> to vector<128x4xf32>
    %c10_151 = arith.constant 10 : index
    %c8_152 = arith.constant 8 : index
    %c0_153 = arith.constant 0 : index
    %97 = vector.load %arg13[%c10_151, %c8_152, %c0_153] : memref<18x25x4xf32, #tpu.memory_space<vmem>>, vector<8x16x4xf32>
    %98 = vector.shape_cast %97 : vector<8x16x4xf32> to vector<128x4xf32>
    %c10_154 = arith.constant 10 : index
    %c9_155 = arith.constant 9 : index
    %c0_156 = arith.constant 0 : index
    %99 = vector.load %arg13[%c10_154, %c9_155, %c0_156] : memref<18x25x4xf32, #tpu.memory_space<vmem>>, vector<8x16x4xf32>
    %100 = vector.shape_cast %99 : vector<8x16x4xf32> to vector<128x4xf32>
    %101 = tpu.concatenate %84, %86, %88, %90, %92, %94, %96, %98, %100 in 1 : vector<128x4xf32>, vector<128x4xf32>, vector<128x4xf32>, vector<128x4xf32>, vector<128x4xf32>, vector<128x4xf32>, vector<128x4xf32>, vector<128x4xf32>, vector<128x4xf32> -> vector<128x36xf32>
    %102 = arith.truncf %101 : vector<128x36xf32> to vector<128x36xbf16>
    %cst_157 = arith.constant dense<0.000000e+00> : vector<128x8xf32>
    %103 = tpu.matmul %102, %51, %cst_157 {dimension_numbers = #tpu.dot_dimension_numbers<[1], [0], [0], [1], [0, 0, 1, 1], [], []>} : vector<128x36xbf16>, vector<36x8xbf16>, vector<128x8xf32> -> vector<128x8xf32>
    %104 = vector.broadcast %52 : vector<1x8xf32> to vector<128x8xf32>
    %105 = arith.mulf %103, %104 : vector<128x8xf32>
    %106 = vector.broadcast %53 : vector<1x8xf32> to vector<128x8xf32>
    %107 = arith.addf %105, %106 : vector<128x8xf32>
    %cst_158 = arith.constant 0.000000e+00 : f32
    %108 = vector.broadcast %cst_158 : f32 to vector<128x8xf32>
    %109 = arith.maximumf %107, %108 : vector<128x8xf32>
    %110 = vector.shape_cast %109 : vector<128x8xf32> to vector<8x16x8xf32>
    %c9_159 = arith.constant 9 : index
    %c8_160 = arith.constant 8 : index
    %c0_161 = arith.constant 0 : index
    %111 = vector.load %arg14[%c9_159, %c8_160, %c0_161] : memref<18x25x8xf32, #tpu.memory_space<vmem>>, vector<8x16x8xf32>
    tpu.vector_store %arg14[%c9_159, %c8_160, %c0_161], %110 {strides = array<i32>} : memref<18x25x8xf32, #tpu.memory_space<vmem>>, vector<8x16x8xf32>,
    %c0_162 = arith.constant 0 : index
    %c0_163 = arith.constant 0 : index
    %112 = vector.load %arg4[%c0_162, %c0_163] : memref<72x8xbf16, #tpu.memory_space<vmem>>, vector<72x8xbf16>
    %c0_164 = arith.constant 0 : index
    %c0_165 = arith.constant 0 : index
    %113 = vector.load %arg5[%c0_164, %c0_165] : memref<2x8xf32, #tpu.memory_space<vmem>>, vector<1x8xf32>
    %c1_166 = arith.constant 1 : index
    %c0_167 = arith.constant 0 : index
    %114 = vector.load %arg5[%c1_166, %c0_167] : memref<2x8xf32, #tpu.memory_space<vmem>>, vector<1x8xf32>
    %c0_168 = arith.constant 0 : index
    %c7_169 = arith.constant 7 : index
    %c0_170 = arith.constant 0 : index
    %115 = vector.load %arg14[%c0_168, %c7_169, %c0_170] : memref<18x25x8xf32, #tpu.memory_space<vmem>>, vector<8x16x8xf32>
    %116 = vector.shape_cast %115 : vector<8x16x8xf32> to vector<128x8xf32>
    %c0_171 = arith.constant 0 : index
    %c8_172 = arith.constant 8 : index
    %c0_173 = arith.constant 0 : index
    %117 = vector.load %arg14[%c0_171, %c8_172, %c0_173] : memref<18x25x8xf32, #tpu.memory_space<vmem>>, vector<8x16x8xf32>
    %118 = vector.shape_cast %117 : vector<8x16x8xf32> to vector<128x8xf32>
    %c0_174 = arith.constant 0 : index
    %c9_175 = arith.constant 9 : index
    %c0_176 = arith.constant 0 : index
    %119 = vector.load %arg14[%c0_174, %c9_175, %c0_176] : memref<18x25x8xf32, #tpu.memory_space<vmem>>, vector<8x16x8xf32>
    %120 = vector.shape_cast %119 : vector<8x16x8xf32> to vector<128x8xf32>
    %c1_177 = arith.constant 1 : index
    %c7_178 = arith.constant 7 : index
    %c0_179 = arith.constant 0 : index
    %121 = vector.load %arg14[%c1_177, %c7_178, %c0_179] : memref<18x25x8xf32, #tpu.memory_space<vmem>>, vector<8x16x8xf32>
    %122 = vector.shape_cast %121 : vector<8x16x8xf32> to vector<128x8xf32>
    %c1_180 = arith.constant 1 : index
    %c8_181 = arith.constant 8 : index
    %c0_182 = arith.constant 0 : index
    %123 = vector.load %arg14[%c1_180, %c8_181, %c0_182] : memref<18x25x8xf32, #tpu.memory_space<vmem>>, vector<8x16x8xf32>
    %124 = vector.shape_cast %123 : vector<8x16x8xf32> to vector<128x8xf32>
    %c1_183 = arith.constant 1 : index
    %c9_184 = arith.constant 9 : index
    %c0_185 = arith.constant 0 : index
    %125 = vector.load %arg14[%c1_183, %c9_184, %c0_185] : memref<18x25x8xf32, #tpu.memory_space<vmem>>, vector<8x16x8xf32>
    %126 = vector.shape_cast %125 : vector<8x16x8xf32> to vector<128x8xf32>
    %c2_186 = arith.constant 2 : index
    %c7_187 = arith.constant 7 : index
    %c0_188 = arith.constant 0 : index
    %127 = vector.load %arg14[%c2_186, %c7_187, %c0_188] : memref<18x25x8xf32, #tpu.memory_space<vmem>>, vector<8x16x8xf32>
    %128 = vector.shape_cast %127 : vector<8x16x8xf32> to vector<128x8xf32>
    %c2_189 = arith.constant 2 : index
    %c8_190 = arith.constant 8 : index
    %c0_191 = arith.constant 0 : index
    %129 = vector.load %arg14[%c2_189, %c8_190, %c0_191] : memref<18x25x8xf32, #tpu.memory_space<vmem>>, vector<8x16x8xf32>
    %130 = vector.shape_cast %129 : vector<8x16x8xf32> to vector<128x8xf32>
    %c2_192 = arith.constant 2 : index
    %c9_193 = arith.constant 9 : index
    %c0_194 = arith.constant 0 : index
    %131 = vector.load %arg14[%c2_192, %c9_193, %c0_194] : memref<18x25x8xf32, #tpu.memory_space<vmem>>, vector<8x16x8xf32>
    %132 = vector.shape_cast %131 : vector<8x16x8xf32> to vector<128x8xf32>
    %133 = tpu.concatenate %116, %118, %120, %122, %124, %126, %128, %130, %132 in 1 : vector<128x8xf32>, vector<128x8xf32>, vector<128x8xf32>, vector<128x8xf32>, vector<128x8xf32>, vector<128x8xf32>, vector<128x8xf32>, vector<128x8xf32>, vector<128x8xf32> -> vector<128x72xf32>
    %134 = arith.truncf %133 : vector<128x72xf32> to vector<128x72xbf16>
    %cst_195 = arith.constant dense<0.000000e+00> : vector<128x8xf32>
    %135 = tpu.matmul %134, %112, %cst_195 {dimension_numbers = #tpu.dot_dimension_numbers<[1], [0], [0], [1], [0, 0, 1, 1], [], []>} : vector<128x72xbf16>, vector<72x8xbf16>, vector<128x8xf32> -> vector<128x8xf32>
    %136 = vector.broadcast %113 : vector<1x8xf32> to vector<128x8xf32>
    %137 = arith.mulf %135, %136 : vector<128x8xf32>
    %138 = vector.broadcast %114 : vector<1x8xf32> to vector<128x8xf32>
    %139 = arith.addf %137, %138 : vector<128x8xf32>
    %cst_196 = arith.constant 0.000000e+00 : f32
    %140 = vector.broadcast %cst_196 : f32 to vector<128x8xf32>
    %141 = arith.maximumf %139, %140 : vector<128x8xf32>
    %142 = vector.shape_cast %141 : vector<128x8xf32> to vector<8x16x8xf32>
    %c1_197 = arith.constant 1 : index
    %c8_198 = arith.constant 8 : index
    %c0_199 = arith.constant 0 : index
    %143 = vector.load %arg15[%c1_197, %c8_198, %c0_199] : memref<18x25x8xf32, #tpu.memory_space<vmem>>, vector<8x16x8xf32>
    tpu.vector_store %arg15[%c1_197, %c8_198, %c0_199], %142 {strides = array<i32>} : memref<18x25x8xf32, #tpu.memory_space<vmem>>, vector<8x16x8xf32>,
    %c8_200 = arith.constant 8 : index
    %c7_201 = arith.constant 7 : index
    %c0_202 = arith.constant 0 : index
    %144 = vector.load %arg14[%c8_200, %c7_201, %c0_202] : memref<18x25x8xf32, #tpu.memory_space<vmem>>, vector<8x16x8xf32>
    %145 = vector.shape_cast %144 : vector<8x16x8xf32> to vector<128x8xf32>
    %c8_203 = arith.constant 8 : index
    %c8_204 = arith.constant 8 : index
    %c0_205 = arith.constant 0 : index
    %146 = vector.load %arg14[%c8_203, %c8_204, %c0_205] : memref<18x25x8xf32, #tpu.memory_space<vmem>>, vector<8x16x8xf32>
    %147 = vector.shape_cast %146 : vector<8x16x8xf32> to vector<128x8xf32>
    %c8_206 = arith.constant 8 : index
    %c9_207 = arith.constant 9 : index
    %c0_208 = arith.constant 0 : index
    %148 = vector.load %arg14[%c8_206, %c9_207, %c0_208] : memref<18x25x8xf32, #tpu.memory_space<vmem>>, vector<8x16x8xf32>
    %149 = vector.shape_cast %148 : vector<8x16x8xf32> to vector<128x8xf32>
    %c9_209 = arith.constant 9 : index
    %c7_210 = arith.constant 7 : index
    %c0_211 = arith.constant 0 : index
    %150 = vector.load %arg14[%c9_209, %c7_210, %c0_211] : memref<18x25x8xf32, #tpu.memory_space<vmem>>, vector<8x16x8xf32>
    %151 = vector.shape_cast %150 : vector<8x16x8xf32> to vector<128x8xf32>
    %c9_212 = arith.constant 9 : index
    %c8_213 = arith.constant 8 : index
    %c0_214 = arith.constant 0 : index
    %152 = vector.load %arg14[%c9_212, %c8_213, %c0_214] : memref<18x25x8xf32, #tpu.memory_space<vmem>>, vector<8x16x8xf32>
    %153 = vector.shape_cast %152 : vector<8x16x8xf32> to vector<128x8xf32>
    %c9_215 = arith.constant 9 : index
    %c9_216 = arith.constant 9 : index
    %c0_217 = arith.constant 0 : index
    %154 = vector.load %arg14[%c9_215, %c9_216, %c0_217] : memref<18x25x8xf32, #tpu.memory_space<vmem>>, vector<8x16x8xf32>
    %155 = vector.shape_cast %154 : vector<8x16x8xf32> to vector<128x8xf32>
    %c10_218 = arith.constant 10 : index
    %c7_219 = arith.constant 7 : index
    %c0_220 = arith.constant 0 : index
    %156 = vector.load %arg14[%c10_218, %c7_219, %c0_220] : memref<18x25x8xf32, #tpu.memory_space<vmem>>, vector<8x16x8xf32>
    %157 = vector.shape_cast %156 : vector<8x16x8xf32> to vector<128x8xf32>
    %c10_221 = arith.constant 10 : index
    %c8_222 = arith.constant 8 : index
    %c0_223 = arith.constant 0 : index
    %158 = vector.load %arg14[%c10_221, %c8_222, %c0_223] : memref<18x25x8xf32, #tpu.memory_space<vmem>>, vector<8x16x8xf32>
    %159 = vector.shape_cast %158 : vector<8x16x8xf32> to vector<128x8xf32>
    %c10_224 = arith.constant 10 : index
    %c9_225 = arith.constant 9 : index
    %c0_226 = arith.constant 0 : index
    %160 = vector.load %arg14[%c10_224, %c9_225, %c0_226] : memref<18x25x8xf32, #tpu.memory_space<vmem>>, vector<8x16x8xf32>
    %161 = vector.shape_cast %160 : vector<8x16x8xf32> to vector<128x8xf32>
    %162 = tpu.concatenate %145, %147, %149, %151, %153, %155, %157, %159, %161 in 1 : vector<128x8xf32>, vector<128x8xf32>, vector<128x8xf32>, vector<128x8xf32>, vector<128x8xf32>, vector<128x8xf32>, vector<128x8xf32>, vector<128x8xf32>, vector<128x8xf32> -> vector<128x72xf32>
    %163 = arith.truncf %162 : vector<128x72xf32> to vector<128x72xbf16>
    %cst_227 = arith.constant dense<0.000000e+00> : vector<128x8xf32>
    %164 = tpu.matmul %163, %112, %cst_227 {dimension_numbers = #tpu.dot_dimension_numbers<[1], [0], [0], [1], [0, 0, 1, 1], [], []>} : vector<128x72xbf16>, vector<72x8xbf16>, vector<128x8xf32> -> vector<128x8xf32>
    %165 = vector.broadcast %113 : vector<1x8xf32> to vector<128x8xf32>
    %166 = arith.mulf %164, %165 : vector<128x8xf32>
    %167 = vector.broadcast %114 : vector<1x8xf32> to vector<128x8xf32>
    %168 = arith.addf %166, %167 : vector<128x8xf32>
    %cst_228 = arith.constant 0.000000e+00 : f32
    %169 = vector.broadcast %cst_228 : f32 to vector<128x8xf32>
    %170 = arith.maximumf %168, %169 : vector<128x8xf32>
    %171 = vector.shape_cast %170 : vector<128x8xf32> to vector<8x16x8xf32>
    %c9_229 = arith.constant 9 : index
    %c8_230 = arith.constant 8 : index
    %c0_231 = arith.constant 0 : index
    %172 = vector.load %arg15[%c9_229, %c8_230, %c0_231] : memref<18x25x8xf32, #tpu.memory_space<vmem>>, vector<8x16x8xf32>
    tpu.vector_store %arg15[%c9_229, %c8_230, %c0_231], %171 {strides = array<i32>} : memref<18x25x8xf32, #tpu.memory_space<vmem>>, vector<8x16x8xf32>,
    %cst_232 = arith.constant 0.000000e+00 : f32
    %173 = vector.broadcast %cst_232 : f32 to vector<8x8x8xf32>
    %c0_233 = arith.constant 0 : index
    %c7_234 = arith.constant 7 : index
    %c0_235 = arith.constant 0 : index
    %174 = tpu.strided_load %arg15[%c0_233, %c7_234, %c0_235] {strides = array<i32: 2, 2, 1>} : memref<18x25x8xf32, #tpu.memory_space<vmem>>, vector<8x8x8xf32>
    %175 = arith.addf %173, %174 : vector<8x8x8xf32>
    %c0_236 = arith.constant 0 : index
    %c8_237 = arith.constant 8 : index
    %c0_238 = arith.constant 0 : index
    %176 = tpu.strided_load %arg15[%c0_236, %c8_237, %c0_238] {strides = array<i32: 2, 2, 1>} : memref<18x25x8xf32, #tpu.memory_space<vmem>>, vector<8x8x8xf32>
    %177 = arith.addf %175, %176 : vector<8x8x8xf32>
    %c0_239 = arith.constant 0 : index
    %c9_240 = arith.constant 9 : index
    %c0_241 = arith.constant 0 : index
    %178 = tpu.strided_load %arg15[%c0_239, %c9_240, %c0_241] {strides = array<i32: 2, 2, 1>} : memref<18x25x8xf32, #tpu.memory_space<vmem>>, vector<8x8x8xf32>
    %179 = arith.addf %177, %178 : vector<8x8x8xf32>
    %c1_242 = arith.constant 1 : index
    %c7_243 = arith.constant 7 : index
    %c0_244 = arith.constant 0 : index
    %180 = tpu.strided_load %arg15[%c1_242, %c7_243, %c0_244] {strides = array<i32: 2, 2, 1>} : memref<18x25x8xf32, #tpu.memory_space<vmem>>, vector<8x8x8xf32>
    %181 = arith.addf %179, %180 : vector<8x8x8xf32>
    %c1_245 = arith.constant 1 : index
    %c8_246 = arith.constant 8 : index
    %c0_247 = arith.constant 0 : index
    %182 = tpu.strided_load %arg15[%c1_245, %c8_246, %c0_247] {strides = array<i32: 2, 2, 1>} : memref<18x25x8xf32, #tpu.memory_space<vmem>>, vector<8x8x8xf32>
    %183 = arith.addf %181, %182 : vector<8x8x8xf32>
    %c1_248 = arith.constant 1 : index
    %c9_249 = arith.constant 9 : index
    %c0_250 = arith.constant 0 : index
    %184 = tpu.strided_load %arg15[%c1_248, %c9_249, %c0_250] {strides = array<i32: 2, 2, 1>} : memref<18x25x8xf32, #tpu.memory_space<vmem>>, vector<8x8x8xf32>
    %185 = arith.addf %183, %184 : vector<8x8x8xf32>
    %c2_251 = arith.constant 2 : index
    %c7_252 = arith.constant 7 : index
    %c0_253 = arith.constant 0 : index
    %186 = tpu.strided_load %arg15[%c2_251, %c7_252, %c0_253] {strides = array<i32: 2, 2, 1>} : memref<18x25x8xf32, #tpu.memory_space<vmem>>, vector<8x8x8xf32>
    %187 = arith.addf %185, %186 : vector<8x8x8xf32>
    %c2_254 = arith.constant 2 : index
    %c8_255 = arith.constant 8 : index
    %c0_256 = arith.constant 0 : index
    %188 = tpu.strided_load %arg15[%c2_254, %c8_255, %c0_256] {strides = array<i32: 2, 2, 1>} : memref<18x25x8xf32, #tpu.memory_space<vmem>>, vector<8x8x8xf32>
    %189 = arith.addf %187, %188 : vector<8x8x8xf32>
    %c2_257 = arith.constant 2 : index
    %c9_258 = arith.constant 9 : index
    %c0_259 = arith.constant 0 : index
    %190 = tpu.strided_load %arg15[%c2_257, %c9_258, %c0_259] {strides = array<i32: 2, 2, 1>} : memref<18x25x8xf32, #tpu.memory_space<vmem>>, vector<8x8x8xf32>
    %191 = arith.addf %189, %190 : vector<8x8x8xf32>
    %cst_260 = arith.constant 0.111111112 : f32
    %192 = vector.broadcast %cst_260 : f32 to vector<8x8x8xf32>
    %193 = arith.mulf %191, %192 : vector<8x8x8xf32>
    %c1_261 = arith.constant 1 : index
    %c8_262 = arith.constant 8 : index
    %c0_263 = arith.constant 0 : index
    %194 = vector.load %arg16[%c1_261, %c8_262, %c0_263] : memref<10x17x8xf32, #tpu.memory_space<vmem>>, vector<8x8x8xf32>
    tpu.vector_store %arg16[%c1_261, %c8_262, %c0_263], %193 {strides = array<i32>} : memref<10x17x8xf32, #tpu.memory_space<vmem>>, vector<8x8x8xf32>,
    %c0_264 = arith.constant 0 : index
    %c0_265 = arith.constant 0 : index
    %195 = vector.load %arg6[%c0_264, %c0_265] : memref<72x16xbf16, #tpu.memory_space<vmem>>, vector<72x16xbf16>
    %c0_266 = arith.constant 0 : index
    %c0_267 = arith.constant 0 : index
    %196 = vector.load %arg7[%c0_266, %c0_267] : memref<2x16xf32, #tpu.memory_space<vmem>>, vector<1x16xf32>
    %c1_268 = arith.constant 1 : index
    %c0_269 = arith.constant 0 : index
    %197 = vector.load %arg7[%c1_268, %c0_269] : memref<2x16xf32, #tpu.memory_space<vmem>>, vector<1x16xf32>
    %c0_270 = arith.constant 0 : index
    %c7_271 = arith.constant 7 : index
    %c0_272 = arith.constant 0 : index
    %198 = vector.load %arg16[%c0_270, %c7_271, %c0_272] : memref<10x17x8xf32, #tpu.memory_space<vmem>>, vector<8x8x8xf32>
    %199 = vector.shape_cast %198 : vector<8x8x8xf32> to vector<64x8xf32>
    %c0_273 = arith.constant 0 : index
    %c8_274 = arith.constant 8 : index
    %c0_275 = arith.constant 0 : index
    %200 = vector.load %arg16[%c0_273, %c8_274, %c0_275] : memref<10x17x8xf32, #tpu.memory_space<vmem>>, vector<8x8x8xf32>
    %201 = vector.shape_cast %200 : vector<8x8x8xf32> to vector<64x8xf32>
    %c0_276 = arith.constant 0 : index
    %c9_277 = arith.constant 9 : index
    %c0_278 = arith.constant 0 : index
    %202 = vector.load %arg16[%c0_276, %c9_277, %c0_278] : memref<10x17x8xf32, #tpu.memory_space<vmem>>, vector<8x8x8xf32>
    %203 = vector.shape_cast %202 : vector<8x8x8xf32> to vector<64x8xf32>
    %c1_279 = arith.constant 1 : index
    %c7_280 = arith.constant 7 : index
    %c0_281 = arith.constant 0 : index
    %204 = vector.load %arg16[%c1_279, %c7_280, %c0_281] : memref<10x17x8xf32, #tpu.memory_space<vmem>>, vector<8x8x8xf32>
    %205 = vector.shape_cast %204 : vector<8x8x8xf32> to vector<64x8xf32>
    %c1_282 = arith.constant 1 : index
    %c8_283 = arith.constant 8 : index
    %c0_284 = arith.constant 0 : index
    %206 = vector.load %arg16[%c1_282, %c8_283, %c0_284] : memref<10x17x8xf32, #tpu.memory_space<vmem>>, vector<8x8x8xf32>
    %207 = vector.shape_cast %206 : vector<8x8x8xf32> to vector<64x8xf32>
    %c1_285 = arith.constant 1 : index
    %c9_286 = arith.constant 9 : index
    %c0_287 = arith.constant 0 : index
    %208 = vector.load %arg16[%c1_285, %c9_286, %c0_287] : memref<10x17x8xf32, #tpu.memory_space<vmem>>, vector<8x8x8xf32>
    %209 = vector.shape_cast %208 : vector<8x8x8xf32> to vector<64x8xf32>
    %c2_288 = arith.constant 2 : index
    %c7_289 = arith.constant 7 : index
    %c0_290 = arith.constant 0 : index
    %210 = vector.load %arg16[%c2_288, %c7_289, %c0_290] : memref<10x17x8xf32, #tpu.memory_space<vmem>>, vector<8x8x8xf32>
    %211 = vector.shape_cast %210 : vector<8x8x8xf32> to vector<64x8xf32>
    %c2_291 = arith.constant 2 : index
    %c8_292 = arith.constant 8 : index
    %c0_293 = arith.constant 0 : index
    %212 = vector.load %arg16[%c2_291, %c8_292, %c0_293] : memref<10x17x8xf32, #tpu.memory_space<vmem>>, vector<8x8x8xf32>
    %213 = vector.shape_cast %212 : vector<8x8x8xf32> to vector<64x8xf32>
    %c2_294 = arith.constant 2 : index
    %c9_295 = arith.constant 9 : index
    %c0_296 = arith.constant 0 : index
    %214 = vector.load %arg16[%c2_294, %c9_295, %c0_296] : memref<10x17x8xf32, #tpu.memory_space<vmem>>, vector<8x8x8xf32>
    %215 = vector.shape_cast %214 : vector<8x8x8xf32> to vector<64x8xf32>
    %216 = tpu.concatenate %199, %201, %203, %205, %207, %209, %211, %213, %215 in 1 : vector<64x8xf32>, vector<64x8xf32>, vector<64x8xf32>, vector<64x8xf32>, vector<64x8xf32>, vector<64x8xf32>, vector<64x8xf32>, vector<64x8xf32>, vector<64x8xf32> -> vector<64x72xf32>
    %217 = arith.truncf %216 : vector<64x72xf32> to vector<64x72xbf16>
    %cst_297 = arith.constant dense<0.000000e+00> : vector<64x16xf32>
    %218 = tpu.matmul %217, %195, %cst_297 {dimension_numbers = #tpu.dot_dimension_numbers<[1], [0], [0], [1], [0, 0, 1, 1], [], []>} : vector<64x72xbf16>, vector<72x16xbf16>, vector<64x16xf32> -> vector<64x16xf32>
    %219 = vector.broadcast %196 : vector<1x16xf32> to vector<64x16xf32>
    %220 = arith.mulf %218, %219 : vector<64x16xf32>
    %221 = vector.broadcast %197 : vector<1x16xf32> to vector<64x16xf32>
    %222 = arith.addf %220, %221 : vector<64x16xf32>
    %cst_298 = arith.constant 0.000000e+00 : f32
    %223 = vector.broadcast %cst_298 : f32 to vector<64x16xf32>
    %224 = arith.maximumf %222, %223 : vector<64x16xf32>
    %225 = vector.shape_cast %224 : vector<64x16xf32> to vector<8x8x16xf32>
    %c1_299 = arith.constant 1 : index
    %c8_300 = arith.constant 8 : index
    %c0_301 = arith.constant 0 : index
    %226 = vector.load %arg17[%c1_299, %c8_300, %c0_301] : memref<10x17x16xf32, #tpu.memory_space<vmem>>, vector<8x8x16xf32>
    tpu.vector_store %arg17[%c1_299, %c8_300, %c0_301], %225 {strides = array<i32>} : memref<10x17x16xf32, #tpu.memory_space<vmem>>, vector<8x8x16xf32>,
    %c0_302 = arith.constant 0 : index
    %c0_303 = arith.constant 0 : index
    %227 = vector.load %arg8[%c0_302, %c0_303] : memref<144x16xbf16, #tpu.memory_space<vmem>>, vector<144x16xbf16>
    %c0_304 = arith.constant 0 : index
    %c0_305 = arith.constant 0 : index
    %228 = vector.load %arg9[%c0_304, %c0_305] : memref<2x16xf32, #tpu.memory_space<vmem>>, vector<1x16xf32>
    %c1_306 = arith.constant 1 : index
    %c0_307 = arith.constant 0 : index
    %229 = vector.load %arg9[%c1_306, %c0_307] : memref<2x16xf32, #tpu.memory_space<vmem>>, vector<1x16xf32>
    %c0_308 = arith.constant 0 : index
    %c7_309 = arith.constant 7 : index
    %c0_310 = arith.constant 0 : index
    %230 = vector.load %arg17[%c0_308, %c7_309, %c0_310] : memref<10x17x16xf32, #tpu.memory_space<vmem>>, vector<8x8x16xf32>
    %231 = vector.shape_cast %230 : vector<8x8x16xf32> to vector<64x16xf32>
    %c0_311 = arith.constant 0 : index
    %c8_312 = arith.constant 8 : index
    %c0_313 = arith.constant 0 : index
    %232 = vector.load %arg17[%c0_311, %c8_312, %c0_313] : memref<10x17x16xf32, #tpu.memory_space<vmem>>, vector<8x8x16xf32>
    %233 = vector.shape_cast %232 : vector<8x8x16xf32> to vector<64x16xf32>
    %c0_314 = arith.constant 0 : index
    %c9_315 = arith.constant 9 : index
    %c0_316 = arith.constant 0 : index
    %234 = vector.load %arg17[%c0_314, %c9_315, %c0_316] : memref<10x17x16xf32, #tpu.memory_space<vmem>>, vector<8x8x16xf32>
    %235 = vector.shape_cast %234 : vector<8x8x16xf32> to vector<64x16xf32>
    %c1_317 = arith.constant 1 : index
    %c7_318 = arith.constant 7 : index
    %c0_319 = arith.constant 0 : index
    %236 = vector.load %arg17[%c1_317, %c7_318, %c0_319] : memref<10x17x16xf32, #tpu.memory_space<vmem>>, vector<8x8x16xf32>
    %237 = vector.shape_cast %236 : vector<8x8x16xf32> to vector<64x16xf32>
    %c1_320 = arith.constant 1 : index
    %c8_321 = arith.constant 8 : index
    %c0_322 = arith.constant 0 : index
    %238 = vector.load %arg17[%c1_320, %c8_321, %c0_322] : memref<10x17x16xf32, #tpu.memory_space<vmem>>, vector<8x8x16xf32>
    %239 = vector.shape_cast %238 : vector<8x8x16xf32> to vector<64x16xf32>
    %c1_323 = arith.constant 1 : index
    %c9_324 = arith.constant 9 : index
    %c0_325 = arith.constant 0 : index
    %240 = vector.load %arg17[%c1_323, %c9_324, %c0_325] : memref<10x17x16xf32, #tpu.memory_space<vmem>>, vector<8x8x16xf32>
    %241 = vector.shape_cast %240 : vector<8x8x16xf32> to vector<64x16xf32>
    %c2_326 = arith.constant 2 : index
    %c7_327 = arith.constant 7 : index
    %c0_328 = arith.constant 0 : index
    %242 = vector.load %arg17[%c2_326, %c7_327, %c0_328] : memref<10x17x16xf32, #tpu.memory_space<vmem>>, vector<8x8x16xf32>
    %243 = vector.shape_cast %242 : vector<8x8x16xf32> to vector<64x16xf32>
    %c2_329 = arith.constant 2 : index
    %c8_330 = arith.constant 8 : index
    %c0_331 = arith.constant 0 : index
    %244 = vector.load %arg17[%c2_329, %c8_330, %c0_331] : memref<10x17x16xf32, #tpu.memory_space<vmem>>, vector<8x8x16xf32>
    %245 = vector.shape_cast %244 : vector<8x8x16xf32> to vector<64x16xf32>
    %c2_332 = arith.constant 2 : index
    %c9_333 = arith.constant 9 : index
    %c0_334 = arith.constant 0 : index
    %246 = vector.load %arg17[%c2_332, %c9_333, %c0_334] : memref<10x17x16xf32, #tpu.memory_space<vmem>>, vector<8x8x16xf32>
    %247 = vector.shape_cast %246 : vector<8x8x16xf32> to vector<64x16xf32>
    %248 = tpu.concatenate %231, %233, %235, %237, %239, %241, %243, %245, %247 in 1 : vector<64x16xf32>, vector<64x16xf32>, vector<64x16xf32>, vector<64x16xf32>, vector<64x16xf32>, vector<64x16xf32>, vector<64x16xf32>, vector<64x16xf32>, vector<64x16xf32> -> vector<64x144xf32>
    %249 = arith.truncf %248 : vector<64x144xf32> to vector<64x144xbf16>
    %cst_335 = arith.constant dense<0.000000e+00> : vector<64x16xf32>
    %250 = tpu.matmul %249, %227, %cst_335 {dimension_numbers = #tpu.dot_dimension_numbers<[1], [0], [0], [1], [0, 0, 1, 1], [], []>} : vector<64x144xbf16>, vector<144x16xbf16>, vector<64x16xf32> -> vector<64x16xf32>
    %251 = vector.broadcast %228 : vector<1x16xf32> to vector<64x16xf32>
    %252 = arith.mulf %250, %251 : vector<64x16xf32>
    %253 = vector.broadcast %229 : vector<1x16xf32> to vector<64x16xf32>
    %254 = arith.addf %252, %253 : vector<64x16xf32>
    %cst_336 = arith.constant 0.000000e+00 : f32
    %255 = vector.broadcast %cst_336 : f32 to vector<64x16xf32>
    %256 = arith.maximumf %254, %255 : vector<64x16xf32>
    %257 = vector.shape_cast %256 : vector<64x16xf32> to vector<8x8x16xf32>
    %c1_337 = arith.constant 1 : index
    %c8_338 = arith.constant 8 : index
    %c0_339 = arith.constant 0 : index
    %258 = vector.load %arg18[%c1_337, %c8_338, %c0_339] : memref<10x17x16xf32, #tpu.memory_space<vmem>>, vector<8x8x16xf32>
    tpu.vector_store %arg18[%c1_337, %c8_338, %c0_339], %257 {strides = array<i32>} : memref<10x17x16xf32, #tpu.memory_space<vmem>>, vector<8x8x16xf32>,
    %cst_340 = arith.constant 0.000000e+00 : f32
    %259 = vector.broadcast %cst_340 : f32 to vector<4x4x16xf32>
    %c0_341 = arith.constant 0 : index
    %c7_342 = arith.constant 7 : index
    %c0_343 = arith.constant 0 : index
    %260 = tpu.strided_load %arg18[%c0_341, %c7_342, %c0_343] {strides = array<i32: 2, 2, 1>} : memref<10x17x16xf32, #tpu.memory_space<vmem>>, vector<4x4x16xf32>
    %261 = arith.addf %259, %260 : vector<4x4x16xf32>
    %c0_344 = arith.constant 0 : index
    %c8_345 = arith.constant 8 : index
    %c0_346 = arith.constant 0 : index
    %262 = tpu.strided_load %arg18[%c0_344, %c8_345, %c0_346] {strides = array<i32: 2, 2, 1>} : memref<10x17x16xf32, #tpu.memory_space<vmem>>, vector<4x4x16xf32>
    %263 = arith.addf %261, %262 : vector<4x4x16xf32>
    %c0_347 = arith.constant 0 : index
    %c9_348 = arith.constant 9 : index
    %c0_349 = arith.constant 0 : index
    %264 = tpu.strided_load %arg18[%c0_347, %c9_348, %c0_349] {strides = array<i32: 2, 2, 1>} : memref<10x17x16xf32, #tpu.memory_space<vmem>>, vector<4x4x16xf32>
    %265 = arith.addf %263, %264 : vector<4x4x16xf32>
    %c1_350 = arith.constant 1 : index
    %c7_351 = arith.constant 7 : index
    %c0_352 = arith.constant 0 : index
    %266 = tpu.strided_load %arg18[%c1_350, %c7_351, %c0_352] {strides = array<i32: 2, 2, 1>} : memref<10x17x16xf32, #tpu.memory_space<vmem>>, vector<4x4x16xf32>
    %267 = arith.addf %265, %266 : vector<4x4x16xf32>
    %c1_353 = arith.constant 1 : index
    %c8_354 = arith.constant 8 : index
    %c0_355 = arith.constant 0 : index
    %268 = tpu.strided_load %arg18[%c1_353, %c8_354, %c0_355] {strides = array<i32: 2, 2, 1>} : memref<10x17x16xf32, #tpu.memory_space<vmem>>, vector<4x4x16xf32>
    %269 = arith.addf %267, %268 : vector<4x4x16xf32>
    %c1_356 = arith.constant 1 : index
    %c9_357 = arith.constant 9 : index
    %c0_358 = arith.constant 0 : index
    %270 = tpu.strided_load %arg18[%c1_356, %c9_357, %c0_358] {strides = array<i32: 2, 2, 1>} : memref<10x17x16xf32, #tpu.memory_space<vmem>>, vector<4x4x16xf32>
    %271 = arith.addf %269, %270 : vector<4x4x16xf32>
    %c2_359 = arith.constant 2 : index
    %c7_360 = arith.constant 7 : index
    %c0_361 = arith.constant 0 : index
    %272 = tpu.strided_load %arg18[%c2_359, %c7_360, %c0_361] {strides = array<i32: 2, 2, 1>} : memref<10x17x16xf32, #tpu.memory_space<vmem>>, vector<4x4x16xf32>
    %273 = arith.addf %271, %272 : vector<4x4x16xf32>
    %c2_362 = arith.constant 2 : index
    %c8_363 = arith.constant 8 : index
    %c0_364 = arith.constant 0 : index
    %274 = tpu.strided_load %arg18[%c2_362, %c8_363, %c0_364] {strides = array<i32: 2, 2, 1>} : memref<10x17x16xf32, #tpu.memory_space<vmem>>, vector<4x4x16xf32>
    %275 = arith.addf %273, %274 : vector<4x4x16xf32>
    %c2_365 = arith.constant 2 : index
    %c9_366 = arith.constant 9 : index
    %c0_367 = arith.constant 0 : index
    %276 = tpu.strided_load %arg18[%c2_365, %c9_366, %c0_367] {strides = array<i32: 2, 2, 1>} : memref<10x17x16xf32, #tpu.memory_space<vmem>>, vector<4x4x16xf32>
    %277 = arith.addf %275, %276 : vector<4x4x16xf32>
    %cst_368 = arith.constant 0.111111112 : f32
    %278 = vector.broadcast %cst_368 : f32 to vector<4x4x16xf32>
    %279 = arith.mulf %277, %278 : vector<4x4x16xf32>
    %280 = vector.shape_cast %279 : vector<4x4x16xf32> to vector<16x16xf32>
    %281 = vector.extract_strided_slice %280 {offsets = [0, 0], sizes = [1, 16], strides = [1, 1]} : vector<16x16xf32> to vector<1x16xf32>
    %282 = vector.extract_strided_slice %280 {offsets = [1, 0], sizes = [1, 16], strides = [1, 1]} : vector<16x16xf32> to vector<1x16xf32>
    %283 = vector.extract_strided_slice %280 {offsets = [2, 0], sizes = [1, 16], strides = [1, 1]} : vector<16x16xf32> to vector<1x16xf32>
    %284 = vector.extract_strided_slice %280 {offsets = [3, 0], sizes = [1, 16], strides = [1, 1]} : vector<16x16xf32> to vector<1x16xf32>
    %285 = vector.extract_strided_slice %280 {offsets = [4, 0], sizes = [1, 16], strides = [1, 1]} : vector<16x16xf32> to vector<1x16xf32>
    %286 = vector.extract_strided_slice %280 {offsets = [5, 0], sizes = [1, 16], strides = [1, 1]} : vector<16x16xf32> to vector<1x16xf32>
    %287 = vector.extract_strided_slice %280 {offsets = [6, 0], sizes = [1, 16], strides = [1, 1]} : vector<16x16xf32> to vector<1x16xf32>
    %288 = vector.extract_strided_slice %280 {offsets = [7, 0], sizes = [1, 16], strides = [1, 1]} : vector<16x16xf32> to vector<1x16xf32>
    %289 = vector.extract_strided_slice %280 {offsets = [8, 0], sizes = [1, 16], strides = [1, 1]} : vector<16x16xf32> to vector<1x16xf32>
    %290 = vector.extract_strided_slice %280 {offsets = [9, 0], sizes = [1, 16], strides = [1, 1]} : vector<16x16xf32> to vector<1x16xf32>
    %291 = vector.extract_strided_slice %280 {offsets = [10, 0], sizes = [1, 16], strides = [1, 1]} : vector<16x16xf32> to vector<1x16xf32>
    %292 = vector.extract_strided_slice %280 {offsets = [11, 0], sizes = [1, 16], strides = [1, 1]} : vector<16x16xf32> to vector<1x16xf32>
    %293 = vector.extract_strided_slice %280 {offsets = [12, 0], sizes = [1, 16], strides = [1, 1]} : vector<16x16xf32> to vector<1x16xf32>
    %294 = vector.extract_strided_slice %280 {offsets = [13, 0], sizes = [1, 16], strides = [1, 1]} : vector<16x16xf32> to vector<1x16xf32>
    %295 = vector.extract_strided_slice %280 {offsets = [14, 0], sizes = [1, 16], strides = [1, 1]} : vector<16x16xf32> to vector<1x16xf32>
    %296 = vector.extract_strided_slice %280 {offsets = [15, 0], sizes = [1, 16], strides = [1, 1]} : vector<16x16xf32> to vector<1x16xf32>
    %297 = tpu.concatenate %281, %282, %283, %284, %285, %286, %287, %288, %289, %290, %291, %292, %293, %294, %295, %296 in 1 : vector<1x16xf32>, vector<1x16xf32>, vector<1x16xf32>, vector<1x16xf32>, vector<1x16xf32>, vector<1x16xf32>, vector<1x16xf32>, vector<1x16xf32>, vector<1x16xf32>, vector<1x16xf32>, vector<1x16xf32>, vector<1x16xf32>, vector<1x16xf32>, vector<1x16xf32>, vector<1x16xf32>, vector<1x16xf32> -> vector<1x256xf32>
    %298 = arith.truncf %297 : vector<1x256xf32> to vector<1x256xbf16>
    %c0_369 = arith.constant 0 : index
    %c0_370 = arith.constant 0 : index
    %299 = vector.load %arg10[%c0_369, %c0_370] : memref<256x16xbf16, #tpu.memory_space<vmem>>, vector<256x16xbf16>
    %cst_371 = arith.constant dense<0.000000e+00> : vector<1x16xf32>
    %300 = tpu.matmul %298, %299, %cst_371 {dimension_numbers = #tpu.dot_dimension_numbers<[1], [0], [0], [1], [0, 0, 1, 1], [], []>} : vector<1x256xbf16>, vector<256x16xbf16>, vector<1x16xf32> -> vector<1x16xf32>
    %c0_372 = arith.constant 0 : index
    %c0_373 = arith.constant 0 : index
    %301 = vector.load %arg11[%c0_372, %c0_373] : memref<1x16xf32, #tpu.memory_space<vmem>>, vector<1x16xf32>
    %302 = arith.addf %300, %301 : vector<1x16xf32>
    %303 = vector.shape_cast %302 : vector<1x16xf32> to vector<1x1x16xf32>
    %c0_374 = arith.constant 0 : index
    %c0_375 = arith.constant 0 : index
    %c0_376 = arith.constant 0 : index
    %304 = vector.load %arg12[%c0_374, %c0_375, %c0_376] : memref<1x1x16xf32, #tpu.memory_space<vmem>>, vector<1x1x16xf32>
    tpu.vector_store %arg12[%c0_374, %c0_375, %c0_376], %303 {strides = array<i32>} : memref<1x1x16xf32, #tpu.memory_space<vmem>>, vector<1x1x16xf32>,
    return
  }
  func.func @transform_0(%arg0: i32) -> (i32, i32, i32, i32) {
    %c0_i32 = arith.constant 0 : i32
    %c0_i32_0 = arith.constant 0 : i32
    %c0_i32_1 = arith.constant 0 : i32
    %c0_i32_2 = arith.constant 0 : i32
    return %arg0, %c0_i32, %c0_i32_0, %c0_i32_1 : i32, i32, i32, i32
  }
  func.func @transform_1(%arg0: i32) -> (i32, i32) {
    %c0_i32 = arith.constant 0 : i32
    %c0_i32_0 = arith.constant 0 : i32
    %c0_i32_1 = arith.constant 0 : i32
    return %c0_i32, %c0_i32_0 : i32, i32
  }
  func.func @transform_2(%arg0: i32) -> (i32, i32) {
    %c0_i32 = arith.constant 0 : i32
    %c0_i32_0 = arith.constant 0 : i32
    %c0_i32_1 = arith.constant 0 : i32
    return %c0_i32, %c0_i32_0 : i32, i32
  }
  func.func @transform_3(%arg0: i32) -> (i32, i32) {
    %c0_i32 = arith.constant 0 : i32
    %c0_i32_0 = arith.constant 0 : i32
    %c0_i32_1 = arith.constant 0 : i32
    return %c0_i32, %c0_i32_0 : i32, i32
  }
  func.func @transform_4(%arg0: i32) -> (i32, i32) {
    %c0_i32 = arith.constant 0 : i32
    %c0_i32_0 = arith.constant 0 : i32
    %c0_i32_1 = arith.constant 0 : i32
    return %c0_i32, %c0_i32_0 : i32, i32
  }
  func.func @transform_5(%arg0: i32) -> (i32, i32) {
    %c0_i32 = arith.constant 0 : i32
    %c0_i32_0 = arith.constant 0 : i32
    %c0_i32_1 = arith.constant 0 : i32
    return %c0_i32, %c0_i32_0 : i32, i32
  }
  func.func @transform_6(%arg0: i32) -> (i32, i32) {
    %c0_i32 = arith.constant 0 : i32
    %c0_i32_0 = arith.constant 0 : i32
    %c0_i32_1 = arith.constant 0 : i32
    return %c0_i32, %c0_i32_0 : i32, i32
  }
  func.func @transform_7(%arg0: i32) -> (i32, i32) {
    %c0_i32 = arith.constant 0 : i32
    %c0_i32_0 = arith.constant 0 : i32
    %c0_i32_1 = arith.constant 0 : i32
    return %c0_i32, %c0_i32_0 : i32, i32
  }
  func.func @transform_8(%arg0: i32) -> (i32, i32) {
    %c0_i32 = arith.constant 0 : i32
    %c0_i32_0 = arith.constant 0 : i32
    %c0_i32_1 = arith.constant 0 : i32
    return %c0_i32, %c0_i32_0 : i32, i32
  }
  func.func @transform_9(%arg0: i32) -> (i32, i32) {
    %c0_i32 = arith.constant 0 : i32
    %c0_i32_0 = arith.constant 0 : i32
    %c0_i32_1 = arith.constant 0 : i32
    return %c0_i32, %c0_i32_0 : i32, i32
  }
  func.func @transform_10(%arg0: i32) -> (i32, i32) {
    %c0_i32 = arith.constant 0 : i32
    %c0_i32_0 = arith.constant 0 : i32
    %c0_i32_1 = arith.constant 0 : i32
    return %c0_i32, %c0_i32_0 : i32, i32
  }
  func.func @transform_11(%arg0: i32) -> (i32, i32, i32) {
    %c0_i32 = arith.constant 0 : i32
    %c0_i32_0 = arith.constant 0 : i32
    %c0_i32_1 = arith.constant 0 : i32
    return %arg0, %c0_i32, %c0_i32_0 : i32, i32, i32
  }
}

</mosaic_0001>

<bundles_post_ra>
// kernel: tpu_custom_call.1
= control target key start
LH: loop header
LB: loop body
LE: loop exit
PB: predicated region body
PF: predicated region fallthrough
CT: control target
= control target key end

     0   :  { %s11615_s0 = inlined_call_operand.vmem [shape: f32[2,16,16,4], index: 0, kind: input, shape index: {}]   ;;  %s11616_s1 = inlined_call_operand.vmem [shape: bf16[36,8], index: 1, kind: input, shape index: {}]   ;;  %s11617_s2 = inlined_call_operand.vmem [shape: f32[2,8], index: 2, kind: input, shape index: {}]   ;;  %s11618_s3 = inlined_call_operand.vmem [shape: bf16[72,8], index: 3, kind: input, shape index: {}]   ;;  %s11619_s4 = inlined_call_operand.vmem [shape: f32[2,8], index: 4, kind: input, shape index: {}]   ;;  %s11620_s5 = inlined_call_operand.vmem [shape: bf16[72,16], index: 5, kind: input, shape index: {}]   ;;  %s11621_s6 = inlined_call_operand.vmem [shape: f32[2,16], index: 6, kind: input, shape index: {}]   ;;  %s11622_s7 = inlined_call_operand.vmem [shape: bf16[144,16], index: 7, kind: input, shape index: {}]   ;;  %s11623_s8 = inlined_call_operand.vmem [shape: f32[2,16], index: 8, kind: input, shape index: {}]   ;;  %s11624_s9 = inlined_call_operand.vmem [shape: bf16[256,16], index: 9, kind: input, shape index: {}]   ;;  %s11625_s10 = inlined_call_operand.vmem [shape: f32[1,16], index: 10, kind: input, shape index: {}]   ;;  %s11626_s11 = inlined_call_operand.hbm [shape: f32[2,1,16], index: 11, kind: output, shape index: {}]  }
   0x1   :  { %11652 = sst [smem:[#allocation11_spill]] %s11615_s0 }
   0x2   :  { %11653 = sst [smem:[#allocation12_spill]] %s11616_s1 }
   0x3   :  { %11654 = sst [smem:[#allocation13_spill]] %s11617_s2 }
   0x4   :  { %11655 = sst [smem:[#allocation14_spill]] %s11618_s3 }
   0x5   :  { %16 = vsyncpa [#allocation9], 0 }
   0x6   :  { %18 = vsyncpa [#allocation9 + $0x1], 0  ;;  %s8691_s17 = smov 0   ;;  %s8693_s18 = smov 0  }
   0x7   :  { %s8695_s19 = smov 0   ;;  %s8697_s20 = smov 0  }
   0x8 LB: > { %s8712_s21 = sadd.s32 4294967295, %s8611_s20   ;;  %s6529_s22 = sadd.s32 4294967294, %s8611_s20   ;;  %s8611_s20 = sphi %s8697_s20, %s11689_s20   ;;  %s8607_s19 = sphi %s8695_s19, %s11688_s19   ;;  %s8603_s18 = sphi %s8693_s18, %s11687_s18   ;;  %s8599_s17 = sphi %s8691_s17, %s11686_s17  }
   0x9   : > { %s8716_s23 = sadd.s32 1, %s8611_s20   ;;  %s267_s24 = sadd.s32 1, %s8607_s19 }
   0xa   : > { %s264_s25 = ssub.s32 %s8611_s20, %s8716_s23  ;;  %p277_p0 = scmp.ne.s32.totalorder %s8607_s19, %s8603_s18 }
   0xb   : > { %p265_p1 = scmp.eq.s32.totalorder %s264_s25, 0  ;;  %p278_p2 = scmp.eq.s32.totalorder %s8712_s21, 1 }
   0xc   : > { %p283_p3 = scmp.ne.s32.totalorder %s8603_s18, %s8599_s17  ;;  %p284_p4 = scmp.eq.s32.totalorder %s6529_s22, 1 }
   0xd   : > { %s8727_s26 = scalar_select %p265_p1, %s8607_s19, %s267_s24  }
   0xe   : > { %p8729_p5 = por %p278_p2, %p277_p0  ;;  %p8733_p6 = por %p284_p4, %p283_p3 }
   0xf   : > { %p6532_p7 = scmp.ge.s32.totalorder %s8611_s20, 1  ;;  %p340_p8 = scmp.lt.s32.totalorder %s8611_s20, 3 }
  0x11   : > { %p341_p9 = pnand %p6532_p7, %p340_p8 }
  0x12   : > { %vm385_vm0 = vcmask (!%p341_p9), 31744   ;;  %vm389_vm1 = vcmask (!%p341_p9), 24576   ;;  %vm432_vm2 = vcmask (!%p341_p9), 64512   ;;  %v11641_v0 = vmov (!%p341_p9), 0.0   ;;  %p379_p10 = scmp.lt.s32.totalorder (!%p341_p9), %s8712_s21, 1  ;;  %s11658_s0 = sld [smem:[#allocation11_spill]] (!%p341_p9) }
  0x13   : > { %344 = sbr.rel (%p341_p9) target bundleno = 2274 (0x8e2), region = 64  ;;  %387 = vst.msk [vmem:[#allocation2 + $0x8] sm:$0xff] (!%p341_p9), %vm385_vm0, %v11641_v0  ;;  %388 = vst.msk [vmem:[#allocation2 + $0x10] sm:$0xff] (!%p341_p9), %vm385_vm0, %v11641_v0  ;;  %s8614_s15 = smov (!%p341_p9), 4   ;;  %vm551_vm3 = vcmask (!%p341_p9), 130048   ;;  %vm1517_vm4 = vcmask (!%p341_p9), 1041408  }
  0x14   : > { %386 = vst.msk [vmem:[#allocation2] sm:$0xff] (!%p341_p9), %vm385_vm0, %v11641_v0  ;;  %392 = vst.msk [vmem:[#allocation2 + $0x220] sm:$0xff] (!%p341_p9), %vm385_vm0, %v11641_v0  ;;  %s11635_s16 = smov (!%p341_p9), 8   ;;  %s11633_s22 = smov (!%p341_p9), 12   ;;  %vm1368_vm5 = vcmask (!%p341_p9), 97280   ;;  %vm1401_vm6 = vcmask (!%p341_p9), 162816  }
  0x15   : > { %393 = vst.msk [vmem:[#allocation2 + $0x228] sm:$0xff] (!%p341_p9), %vm385_vm0, %v11641_v0  ;;  %394 = vst.msk [vmem:[#allocation2 + $0x230] sm:$0xff] (!%p341_p9), %vm385_vm0, %v11641_v0  ;;  %s11627_s24 = smov (!%p341_p9), 16   ;;  %s11629_s25 = smov (!%p341_p9), 20   ;;  %vm1418_vm7 = vcmask (!%p341_p9), 195584   ;;  %vm1435_vm8 = vcmask (!%p341_p9), 228352  }
  0x16   : > { %390 = vst.msk [vmem:[#allocation2 + $0x18] sm:$0x1] (!%p341_p9), %vm389_vm1, %v11641_v0  ;;  %395 = vst.msk [vmem:[#allocation2 + $0x238] sm:$0x1] (!%p341_p9), %vm389_vm1, %v11641_v0  ;;  %s11659_s1 = sld [smem:[#allocation12_spill]] (!%p341_p9)  ;;  %s11663_s12 = smov (!%p341_p9), 24  }
  0x17   : > { %397 = vst.msk [vmem:[#allocation2 + $0x27] sm:$0x1] (!%p341_p9), %vm389_vm1, %v11641_v0  ;;  %398 = vst.msk [vmem:[#allocation2 + $0x47] sm:$0x1] (!%p341_p9), %vm389_vm1, %v11641_v0  ;;  %vm1452_vm9 = vcmask (!%p341_p9), 261120   ;;  %vm1492_vm10 = vcmask (!%p341_p9), 293888  }
  0x18   : > { %399 = vst.msk [vmem:[#allocation2 + $0x67] sm:$0x1] (!%p341_p9), %vm389_vm1, %v11641_v0  ;;  %400 = vst.msk [vmem:[#allocation2 + $0x87] sm:$0x1] (!%p341_p9), %vm389_vm1, %v11641_v0  ;;  %vm436_vm11 = vcmask (!%p341_p9), 57344   ;;  %s11664_s2 = sld [smem:[#allocation13_spill]] (!%p341_p9) }
  0x19   : > { %401 = vst.msk [vmem:[#allocation2 + $0xa7] sm:$0x1] (!%p341_p9), %vm389_vm1, %v11641_v0  ;;  %402 = vst.msk [vmem:[#allocation2 + $0xc7] sm:$0x1] (!%p341_p9), %vm389_vm1, %v11641_v0  ;;  %vm3404_vm12 = vcmask (!%p341_p9), 326656   ;;  %vm3421_vm13 = vcmask (!%p341_p9), 392192  }
  0x1a   : > { %403 = vst.msk [vmem:[#allocation2 + $0xe7] sm:$0x1] %vm389_vm1, %v11641_v0  ;;  %404 = vst.msk [vmem:[#allocation2 + $0x107] sm:$0x1] %vm389_vm1, %v11641_v0  ;;  %s380_s29 = scalar_select %p379_p10, %s8712_s21, 1  ;;  %v695_v4 = vld [vmem:[#allocation2 + $0x8] sm:$0xff] }
  0x1b   : > { %405 = vst.msk [vmem:[#allocation2 + $0x127] sm:$0x1] %vm389_vm1, %v11641_v0  ;;  %406 = vst.msk [vmem:[#allocation2 + $0x147] sm:$0x1] %vm389_vm1, %v11641_v0  ;;  %v696_v5 = vld [vmem:[#allocation2 + $0x10] sm:$0xff]  ;;  %vm3438_vm14 = vcmask 457728  }
  0x1c   : > { %407 = vst.msk [vmem:[#allocation2 + $0x167] sm:$0x1] %vm389_vm1, %v11641_v0  ;;  %408 = vst.msk [vmem:[#allocation2 + $0x187] sm:$0x1] %vm389_vm1, %v11641_v0  ;;  %s6624_s30 = sshll.u32 %s380_s29, 8  ;;  %v711_v6 = vld [vmem:[#allocation2 + $0x9] sm:$0xff]  ;;  %v6879_v7 = vpack.i.bf16 %v696_v5, %v695_v4 }
  0x1d   : > { %409 = vst.msk [vmem:[#allocation2 + $0x1a7] sm:$0x1] %vm389_vm1, %v11641_v0  ;;  %410 = vst.msk [vmem:[#allocation2 + $0x1c7] sm:$0x1] %vm389_vm1, %v11641_v0  ;;  %s8860_s14 = scalar_lea.vmem %s11658_s0, %s6624_s30  ;;  %s11631_s29 = smov 24   ;;  %v8494_v53 = vld [vmem:[%s11659_s1] sm:$0xff]  }
  0x1e   : > { %411 = vst.msk [vmem:[#allocation2 + $0x1e7] sm:$0x1] %vm389_vm1, %v11641_v0  ;;  %412 = vst.msk [vmem:[#allocation2 + $0x207] sm:$0x1] %vm389_vm1, %v11641_v0  ;;  %v607_v1 = vld [vmem:[%s8860_s14] sm:$0xff]  ;;  %v608_v2 = vld [vmem:[%s8860_s14 + $0x8] sm:$0xff]  ;;  %6880 = vrot.lane.b32.xlu0 %v6879_v7, %s8614_s15  ;;  %6704 = vmatprep.subr.bf16.mxu0 %v8494_v53 }
  0x1f   : > { %415 = vst.msk [vmem:[#allocation2 + $0x38] sm:$0x1] %vm389_vm1, %v11641_v0  ;;  %416 = vst.msk [vmem:[#allocation2 + $0x58] sm:$0x1] %vm389_vm1, %v11641_v0  ;;  %v609_v3 = vld [vmem:[%s8860_s14 + $0x10] sm:$0xff]  ;;  %v610_v9 = vld [vmem:[%s8860_s14 + $0x18] sm:$0xff]  ;;  %6705 = vmatpush3.bf16.msra.mxu0 %v8494_v53  ;;  %6726 = vmatprep.subr.bf16.mxu1 %v8494_v53 }
  0x20   : > { %417 = vst.msk [vmem:[#allocation2 + $0x78] sm:$0x1] %vm389_vm1, %v11641_v0  ;;  %418 = vst.msk [vmem:[#allocation2 + $0x98] sm:$0x1] %vm389_vm1, %v11641_v0  ;;  %v611_v10 = vld [vmem:[%s8860_s14 + $0x20] sm:$0xff]  ;;  %v612_v12 = vld [vmem:[%s8860_s14 + $0x28] sm:$0xff]  ;;  %6727 = vmatpush3.bf16.msra.mxu1 %v8494_v53 }
  0x21   : > { %419 = vst.msk [vmem:[#allocation2 + $0xb8] sm:$0x1] %vm389_vm1, %v11641_v0  ;;  %420 = vst.msk [vmem:[#allocation2 + $0xd8] sm:$0x1] %vm389_vm1, %v11641_v0  ;;  %v613_v13 = vld [vmem:[%s8860_s14 + $0x30] sm:$0xff]  ;;  %v614_v14 = vld [vmem:[%s8860_s14 + $0x38] sm:$0xff] }
  0x22   : > { %421 = vst.msk [vmem:[#allocation2 + $0xf8] sm:$0x1] %vm389_vm1, %v11641_v0  ;;  %422 = vst.msk [vmem:[#allocation2 + $0x118] sm:$0x1] %vm389_vm1, %v11641_v0  ;;  %v615_v15 = vld [vmem:[%s8860_s14 + $0x40] sm:$0xff]  ;;  %v616_v16 = vld [vmem:[%s8860_s14 + $0x48] sm:$0xff] }
  0x23   : > { %423 = vst.msk [vmem:[#allocation2 + $0x138] sm:$0x1] %vm389_vm1, %v11641_v0  ;;  %424 = vst.msk [vmem:[#allocation2 + $0x158] sm:$0x1] %vm389_vm1, %v11641_v0  ;;  %v617_v17 = vld [vmem:[%s8860_s14 + $0x50] sm:$0xff]  ;;  %v618_v18 = vld [vmem:[%s8860_s14 + $0x58] sm:$0xff] }
  0x24   : > { %425 = vst.msk [vmem:[#allocation2 + $0x178] sm:$0x1] %vm389_vm1, %v11641_v0  ;;  %426 = vst.msk [vmem:[#allocation2 + $0x198] sm:$0x1] %vm389_vm1, %v11641_v0  ;;  %v621_v19 = vld [vmem:[%s8860_s14 + $0x70] sm:$0xff]  ;;  %v622_v20 = vld [vmem:[%s8860_s14 + $0x78] sm:$0xff] }
  0x25   : > { %427 = vst.msk [vmem:[#allocation2 + $0x1b8] sm:$0x1] %vm389_vm1, %v11641_v0  ;;  %428 = vst.msk [vmem:[#allocation2 + $0x1d8] sm:$0x1] %vm389_vm1, %v11641_v0  ;;  %v619_v21 = vld [vmem:[%s8860_s14 + $0x60] sm:$0xff]  ;;  %v620_v22 = vld [vmem:[%s8860_s14 + $0x68] sm:$0xff] }
  0x26   : > { %429 = vst.msk [vmem:[#allocation2 + $0x1f8] sm:$0x1] %vm389_vm1, %v11641_v0  ;;  %430 = vst.msk [vmem:[#allocation2 + $0x218] sm:$0x1] %vm389_vm1, %v11641_v0  ;;  %v623_v23 = vld [vmem:[%s8860_s14 + $0x80] sm:$0xff]  ;;  %v624_v24 = vld [vmem:[%s8860_s14 + $0x88] sm:$0xff] }
  0x27   : > { %433 = vst.msk [vmem:[#allocation3] sm:$0xff] %vm432_vm2, %v11641_v0  ;;  %434 = vst.msk [vmem:[#allocation3 + $0x8] sm:$0xff] %vm432_vm2, %v11641_v0  ;;  %v625_v25 = vld [vmem:[%s8860_s14 + $0x90] sm:$0xff]  ;;  %v626_v26 = vld [vmem:[%s8860_s14 + $0x98] sm:$0xff]  ;;  %s11662_s30 = smov 20   ;;  %vm3455_vm15 = vcmask 523264  }
  0x28   : > { %435 = vst.msk [vmem:[#allocation3 + $0x10] sm:$0xff] %vm432_vm2, %v11641_v0  ;;  %439 = vst.msk [vmem:[#allocation3 + $0x220] sm:$0xff] %vm432_vm2, %v11641_v0  ;;  %v627_v51 = vld [vmem:[%s8860_s14 + $0xa0] sm:$0xff]  ;;  %v628_v52 = vld [vmem:[%s8860_s14 + $0xa8] sm:$0xff]  ;;  %s11665_s3 = sld [smem:[#allocation14_spill]]  ;;  %s11668_s13 = smov 32  }
  0x29   : > { %440 = vst.msk [vmem:[#allocation3 + $0x228] sm:$0xff] %vm432_vm2, %v11641_v0  ;;  %441 = vst.msk [vmem:[#allocation3 + $0x230] sm:$0xff] %vm432_vm2, %v11641_v0  ;;  %v8495_v54 = vld [vmem:[%s11659_s1 + $0x8] sm:$0xff]   ;;  %v8496_v56 = vld [vmem:[%s11659_s1 + $0x10] ss:$0 sps:$4 sm:$0x33]  }
  0x2a   : > { %479 = vst.msk [vmem:[#allocation4] sm:$0xff] %vm432_vm2, %v11641_v0  ;;  %480 = vst.msk [vmem:[#allocation4 + $0x8] sm:$0xff] %vm432_vm2, %v11641_v0  ;;  %6706 = vmatprep.subr.bf16.mxu0 %v8495_v54  ;;  %6728 = vmatprep.subr.bf16.mxu1 %v8495_v54  ;;  %v1519_v59 = vsel %vm1517_vm4, %v8496_v56, 0  ;;  %v629_v62 = vld [vmem:[%s8860_s14 + $0xb0] sm:$0xff]  ;;  %v630_v63 = vld [vmem:[%s8860_s14 + $0xb8] sm:$0xff]  ;;  %s11649_s0 = smov 112  }
  0x2b   : > { %481 = vst.msk [vmem:[#allocation4 + $0x10] sm:$0xff] %vm432_vm2, %v11641_v0  ;;  %524 = vst.msk [vmem:[#allocation5] sm:$0xff] %vm432_vm2, %v11641_v0  ;;  %6707 = vmatpush3.bf16.msra.mxu0 %v8495_v54  ;;  %6729 = vmatpush3.bf16.msra.mxu1 %v8495_v54  ;;  %v631_v7 = vld [vmem:[%s8860_s14 + $0xc0] sm:$0xff]  ;;  %s11685_s1 = smov 112  }
  0x2c   : > { %525 = vst.msk [vmem:[#allocation5 + $0x8] sm:$0xff] %vm432_vm2, %v11641_v0  ;;  %528 = vst.msk [vmem:[#allocation5 + $0xd8] sm:$0xff] %vm432_vm2, %v11641_v0  ;;  %6818 = vmatprep.subr.msk.bf16.mxu0 %vm1517_vm4, %v8496_v56  ;;  %6819 = vmatprep.subr.msk.bf16.mxu1 %vm1517_vm4, %v8496_v56  ;;  %vm5825_vm4 = vcmask 654336  }
  0x2d   : > { %529 = vst.msk [vmem:[#allocation5 + $0xe0] sm:$0xff] %vm432_vm2, %v11641_v0 }
  0x2e   : > { %414 = vst.msk [vmem:[#allocation2 + $0x18] sm:$0x1] %vm389_vm1, %v11641_v0  ;;  %396 = vst.msk [vmem:[#allocation2 + $0x7] sm:$0x1] %vm389_vm1, %v11641_v0 }
  0x2f   : > { %413 = vst.msk [vmem:[#allocation2 + $0x227] sm:$0x1] %vm389_vm1, %v11641_v0  ;;  %431 = vst.msk [vmem:[#allocation2 + $0x238] sm:$0x1] %vm389_vm1, %v11641_v0  ;;  %6709 = vmatpush3.bf16.msra.mxu0 %v1519_v59  ;;  %6731 = vmatpush3.bf16.msra.mxu1 %v1519_v59  ;;  %vm3532_vm1 = vcmask 1043456  }
  0x30   : > { %640 = vst.msk [vmem:[#allocation2 + $0x28] sm:$0xff] %vm385_vm0, %v607_v1  ;;  %641 = vst.msk [vmem:[#allocation2 + $0x30] sm:$0xff] %vm385_vm0, %v608_v2 }
  0x31   : > { %642 = vst.msk [vmem:[#allocation2 + $0x48] sm:$0xff] %vm385_vm0, %v609_v3  ;;  %643 = vst.msk [vmem:[#allocation2 + $0x50] sm:$0xff] %vm385_vm0, %v610_v9 }
  0x32   : > { %644 = vst.msk [vmem:[#allocation2 + $0x68] sm:$0xff] %vm385_vm0, %v611_v10  ;;  %645 = vst.msk [vmem:[#allocation2 + $0x70] sm:$0xff] %vm385_vm0, %v612_v12  ;;  %v632_v10 = vld [vmem:[%s8860_s14 + $0xc8] sm:$0xff] }
  0x33   : > { %646 = vst.msk [vmem:[#allocation2 + $0x88] sm:$0xff] %vm385_vm0, %v613_v13  ;;  %647 = vst.msk [vmem:[#allocation2 + $0x90] sm:$0xff] %vm385_vm0, %v614_v14 }
  0x34   : > { %648 = vst.msk [vmem:[#allocation2 + $0xa8] sm:$0xff] %vm385_vm0, %v615_v15  ;;  %649 = vst.msk [vmem:[#allocation2 + $0xb0] sm:$0xff] %vm385_vm0, %v616_v16 }
  0x35   : > { %v712_v8 = vld [vmem:[#allocation2 + $0x11] sm:$0xff]  ;;  %650 = vst.msk [vmem:[#allocation2 + $0xc8] sm:$0xff] %vm385_vm0, %v617_v17  ;;  %651 = vst.msk [vmem:[#allocation2 + $0xd0] sm:$0xff] %vm385_vm0, %v618_v18 }
  0x36   : > { %v6884_v11 = vpack.i.bf16 %v712_v8, %v711_v6  ;;  %654 = vst.msk [vmem:[#allocation2 + $0x108] sm:$0xff] %vm385_vm0, %v621_v19  ;;  %655 = vst.msk [vmem:[#allocation2 + $0x110] sm:$0xff] %vm385_vm0, %v622_v20 }
  0x37   : > { %552 = vst.msk [vmem:[#allocation6] sm:$0xff] %vm551_vm3, %v11641_v0  ;;  %553 = vst.msk [vmem:[#allocation6 + $0x8] sm:$0xff] %vm551_vm3, %v11641_v0  ;;  %v713_v27 = vld [vmem:[#allocation2 + $0x29] sm:$0xff]  ;;  %v714_v28 = vld [vmem:[#allocation2 + $0x31] sm:$0xff] }
  0x38   : > { %6885 = vrot.lane.b32.xlu1 %v6884_v11, %s11635_s16  ;;  %557 = vst.msk [vmem:[#allocation6 + $0xd8] sm:$0xff] %vm551_vm3, %v11641_v0  ;;  %558 = vst.msk [vmem:[#allocation6 + $0xe0] sm:$0xff] %vm551_vm3, %v11641_v0  ;;  %v697_v29 = vld [vmem:[#allocation2 + $0x28] sm:$0xff]  ;;  %v6894_v30 = vpack.i.bf16 %v714_v28, %v713_v27  ;;  %v698_v31 = vld [vmem:[#allocation2 + $0x30] sm:$0xff] }
  0x39   : > { %580 = vst.msk [vmem:[#allocation7] sm:$0xff] %vm551_vm3, %v11641_v0  ;;  %581 = vst.msk [vmem:[#allocation7 + $0x8] sm:$0xff] %vm551_vm3, %v11641_v0  ;;  %v8916_v32 = vld [vmem:[#allocation2 + $0x47] sm:$0xff]  ;;  %v6889_v34 = vpack.i.bf16 %v698_v31, %v697_v29  ;;  %v8920_v35 = vld [vmem:[#allocation2 + $0x4f] sm:$0xff] }
  0x3a   : > { %652 = vst.msk [vmem:[#allocation2 + $0xe8] sm:$0xff] %vm385_vm0, %v619_v21  ;;  %653 = vst.msk [vmem:[#allocation2 + $0xf0] sm:$0xff] %vm385_vm0, %v620_v22  ;;  %v8918_v33 = vld [vmem:[#allocation2 + $0x27] sm:$0xff]  ;;  %v8922_v36 = vld [vmem:[#allocation2 + $0x2f] sm:$0xff]  ;;  %v6904_v37 = vpack.i.bf16 %v8920_v35, %v8916_v32 }
  0x3b   : > { %656 = vst.msk [vmem:[#allocation2 + $0x128] sm:$0xff] %vm385_vm0, %v623_v23  ;;  %657 = vst.msk [vmem:[#allocation2 + $0x130] sm:$0xff] %vm385_vm0, %v624_v24  ;;  %6890 = vrot.lane.b32.xlu0 %v6889_v34, %s8614_s15  ;;  %v6899_v38 = vpack.i.bf16 %v8922_v36, %v8918_v33  ;;  %v745_v39 = vld [vmem:[#allocation2 + $0x48] sm:$0xff]  ;;  %v746_v40 = vld [vmem:[#allocation2 + $0x50] sm:$0xff] }
  0x3c   : > { %658 = vst.msk [vmem:[#allocation2 + $0x148] sm:$0xff] %vm385_vm0, %v625_v25  ;;  %659 = vst.msk [vmem:[#allocation2 + $0x150] sm:$0xff] %vm385_vm0, %v626_v26  ;;  %6895 = vrot.lane.b32.xlu1 %v6894_v30, %s11635_s16  ;;  %v6914_v41 = vpack.i.bf16 %v746_v40, %v745_v39  ;;  %v761_v42 = vld [vmem:[#allocation2 + $0x49] sm:$0xff]  ;;  %v762_v43 = vld [vmem:[#allocation2 + $0x51] sm:$0xff] }
  0x3d   : > { %v6924_v44 = vpack.i.bf16 %v762_v43, %v761_v42  ;;  %v8934_v45 = vld [vmem:[#allocation2 + $0x67] sm:$0xff]  ;;  %v8936_v46 = vld [vmem:[#allocation2 + $0x6f] sm:$0xff]  ;;  %660 = vst.msk [vmem:[#allocation2 + $0x168] sm:$0xff] %vm385_vm0, %v627_v51  ;;  %661 = vst.msk [vmem:[#allocation2 + $0x170] sm:$0xff] %vm385_vm0, %v628_v52 }
  0x3e   : > { %v6934_v47 = vpack.i.bf16 %v8936_v46, %v8934_v45  ;;  %v794_v48 = vld [vmem:[#allocation2 + $0x68] sm:$0xff]  ;;  %v795_v49 = vld [vmem:[#allocation2 + $0x70] sm:$0xff]  ;;  %662 = vst.msk [vmem:[#allocation2 + $0x188] sm:$0xff] %vm385_vm0, %v629_v62  ;;  %663 = vst.msk [vmem:[#allocation2 + $0x190] sm:$0xff] %vm385_vm0, %v630_v63 }
  0x3f   : > { %6900 = vrot.lane.b32.xlu0 %v6899_v38, %s11633_s22  ;;  %v6944_v50 = vpack.i.bf16 %v795_v49, %v794_v48  ;;  %v810_v55 = vld [vmem:[#allocation2 + $0x69] sm:$0xff]  ;;  %v811_v57 = vld [vmem:[#allocation2 + $0x71] sm:$0xff]  ;;  %664 = vst.msk [vmem:[#allocation2 + $0x1a8] sm:$0xff] %vm385_vm0, %v631_v7  ;;  %665 = vst.msk [vmem:[#allocation2 + $0x1b0] sm:$0xff] %vm385_vm0, %v632_v10 }
  0x40   : > { %6905 = vrot.lane.b32.xlu1 %v6904_v37, %s11633_s22  ;;  %v6959_v58 = vpack.i.bf16 %v811_v57, %v810_v55  ;;  %v733_v60 = vld [vmem:[#allocation2 + $0x87] sm:$0xff]  ;;  %v734_v61 = vld [vmem:[#allocation2 + $0x8f] sm:$0xff]  ;;  %s11660_s22 = smov 12   ;;  %437 = vst.msk [vmem:[#allocation3 + $0x18] sm:$0x1] %vm436_vm11, %v11641_v0 }
  0x41   : > { %v749_v1 = vld [vmem:[#allocation2 + $0x88] sm:$0xff]  ;;  %v750_v2 = vld [vmem:[#allocation2 + $0x90] sm:$0xff]  ;;  %v6984_v3 = vpack.i.bf16 %v734_v61, %v733_v60  ;;  %442 = vst.msk [vmem:[#allocation3 + $0x238] sm:$0x1] %vm436_vm11, %v11641_v0  ;;  %443 = vst.msk [vmem:[#allocation3 + $0x7] sm:$0x1] %vm436_vm11, %v11641_v0 }
  0x42   : > { %v765_v4 = vld [vmem:[#allocation2 + $0x89] sm:$0xff]  ;;  %v766_v5 = vld [vmem:[#allocation2 + $0x91] sm:$0xff]  ;;  %v6994_v6 = vpack.i.bf16 %v750_v2, %v749_v1  ;;  %444 = vst.msk [vmem:[#allocation3 + $0x27] sm:$0x1] %vm436_vm11, %v11641_v0  ;;  %445 = vst.msk [vmem:[#allocation3 + $0x47] sm:$0x1] %vm436_vm11, %v11641_v0 }
  0x43   : > { %6910 = vrot.lane.b32.xlu0 %v6889_v34, %s11627_s24  ;;  %v8975_v8 = vld [vmem:[#allocation2 + $0xa7] sm:$0xff]  ;;  %v8977_v9 = vld [vmem:[#allocation2 + $0xaf] sm:$0xff]  ;;  %v7004_v11 = vpack.i.bf16 %v766_v5, %v765_v4  ;;  %v634_v1 = vld [vmem:[%s8860_s14 + $0xd8] sm:$0xff]  ;;  %446 = vst.msk [vmem:[#allocation3 + $0x67] sm:$0x1] %vm436_vm11, %v11641_v0 }
  0x44   : > { %6915 = vrot.lane.b32.xlu1 %v6914_v41, %s11627_s24  ;;  %s11639_s24 = smov 32   ;;  %v798_v12 = vld [vmem:[#allocation2 + $0xa8] sm:$0xff]  ;;  %v799_v13 = vld [vmem:[#allocation2 + $0xb0] sm:$0xff]  ;;  %v7014_v14 = vpack.i.bf16 %v8977_v9, %v8975_v8  ;;  %667 = vst.msk [vmem:[#allocation2 + $0x1d0] sm:$0xff] %vm385_vm0, %v634_v1 }
  0x45   : > { %v7024_v15 = vpack.i.bf16 %v799_v13, %v798_v12  ;;  %v814_v16 = vld [vmem:[#allocation2 + $0xa9] sm:$0xff]  ;;  %v815_v17 = vld [vmem:[#allocation2 + $0xb1] sm:$0xff]  ;;  %447 = vst.msk [vmem:[#allocation3 + $0x87] sm:$0x1] %vm436_vm11, %v11641_v0  ;;  %448 = vst.msk [vmem:[#allocation3 + $0xa7] sm:$0x1] %vm436_vm11, %v11641_v0 }
  0x46   : > { %v7039_v18 = vpack.i.bf16 %v815_v17, %v814_v16  ;;  %v737_v19 = vld [vmem:[#allocation2 + $0xc7] sm:$0xff]  ;;  %v738_v20 = vld [vmem:[#allocation2 + $0xcf] sm:$0xff]  ;;  %449 = vst.msk [vmem:[#allocation3 + $0xc7] sm:$0x1] %vm436_vm11, %v11641_v0  ;;  %450 = vst.msk [vmem:[#allocation3 + $0xe7] sm:$0x1] %vm436_vm11, %v11641_v0 }
  0x47   : > { %6920 = vrot.lane.b32.xlu0 %v6894_v30, %s11629_s25  ;;  %v7064_v21 = vpack.i.bf16 %v738_v20, %v737_v19  ;;  %v753_v22 = vld [vmem:[#allocation2 + $0xc8] sm:$0xff]  ;;  %v754_v23 = vld [vmem:[#allocation2 + $0xd0] sm:$0xff]  ;;  %451 = vst.msk [vmem:[#allocation3 + $0x107] sm:$0x1] %vm436_vm11, %v11641_v0  ;;  %452 = vst.msk [vmem:[#allocation3 + $0x127] sm:$0x1] %vm436_vm11, %v11641_v0 }
  0x48   : > { %6925 = vrot.lane.b32.xlu1 %v6924_v44, %s11629_s25  ;;  %s8620_s25 = smov 28   ;;  %v7074_v24 = vpack.i.bf16 %v754_v23, %v753_v22  ;;  %v769_v25 = vld [vmem:[#allocation2 + $0xc9] sm:$0xff]  ;;  %v770_v26 = vld [vmem:[#allocation2 + $0xd1] sm:$0xff]  ;;  %453 = vst.msk [vmem:[#allocation3 + $0x147] sm:$0x1] %vm436_vm11, %v11641_v0 }
  0x49   : > { %v7084_v27 = vpack.i.bf16 %v770_v26, %v769_v25  ;;  %v1708_v28 = vld [vmem:[#allocation2 + $0x108] sm:$0xff]  ;;  %v1709_v29 = vld [vmem:[#allocation2 + $0x110] sm:$0xff]  ;;  %454 = vst.msk [vmem:[#allocation3 + $0x167] sm:$0x1] %vm436_vm11, %v11641_v0  ;;  %455 = vst.msk [vmem:[#allocation3 + $0x187] sm:$0x1] %vm436_vm11, %v11641_v0 }
  0x4a   : > { %v9003_v30 = vpack.i.bf16 %v1709_v29, %v1708_v28  ;;  %v786_v31 = vld [vmem:[#allocation2 + $0xe7] sm:$0xff]  ;;  %v787_v34 = vld [vmem:[#allocation2 + $0xef] sm:$0xff]  ;;  %456 = vst.msk [vmem:[#allocation3 + $0x1a7] sm:$0x1] %vm436_vm11, %v11641_v0  ;;  %457 = vst.msk [vmem:[#allocation3 + $0x1c7] sm:$0x1] %vm436_vm11, %v11641_v0 }
  0x4b   : > { %6930 = vrot.lane.b32.xlu0 %v6904_v37, %s11631_s29  ;;  %v7099_v37 = vpack.i.bf16 %v787_v34, %v786_v31  ;;  %v1724_v38 = vld [vmem:[#allocation2 + $0x109] sm:$0xff]  ;;  %v1725_v39 = vld [vmem:[#allocation2 + $0x111] sm:$0xff]  ;;  %458 = vst.msk [vmem:[#allocation3 + $0x1e7] sm:$0x1] %vm436_vm11, %v11641_v0  ;;  %459 = vst.msk [vmem:[#allocation3 + $0x207] sm:$0x1] %vm436_vm11, %v11641_v0 }
  0x4c   : > { %6935 = vrot.lane.b32.xlu1 %v6934_v47, %s11631_s29  ;;  %s11661_s29 = smov 16   ;;  %v1710_v40 = vld [vmem:[#allocation2 + $0x128] sm:$0xff]  ;;  %v9010_v42 = vpack.i.bf16 %v1725_v39, %v1724_v38  ;;  %v1727_v52 = vld [vmem:[#allocation2 + $0x131] sm:$0xff]  ;;  %460 = vst.msk [vmem:[#allocation3 + $0x227] sm:$0x1] %vm436_vm11, %v11641_v0 }
  0x4d   : > { %v1741_v49 = vld [vmem:[#allocation2 + $0x127] sm:$0xff]  ;;  %v819_v56 = vld [vmem:[#allocation2 + $0xf1] sm:$0xff]  ;;  %462 = vst.msk [vmem:[#allocation3 + $0x38] sm:$0x1] %vm436_vm11, %v11641_v0  ;;  %463 = vst.msk [vmem:[#allocation3 + $0x58] sm:$0x1] %vm436_vm11, %v11641_v0 }
  0x4e   : > { %v1726_v51 = vld [vmem:[#allocation2 + $0x129] sm:$0xff]  ;;  %v1776_v7 = vld [vmem:[#allocation2 + $0x151] sm:$0xff]  ;;  %464 = vst.msk [vmem:[#allocation3 + $0x78] sm:$0x1] %vm436_vm11, %v11641_v0  ;;  %465 = vst.msk [vmem:[#allocation3 + $0x98] sm:$0x1] %vm436_vm11, %v11641_v0 }
  0x4f   : > { %6940 = vrot.lane.b32.xlu0 %v6914_v41, %s8620_s25  ;;  %v9023_v54 = vpack.i.bf16 %v1727_v52, %v1726_v51  ;;  %v818_v55 = vld [vmem:[#allocation2 + $0xe9] sm:$0xff]  ;;  %v1825_v51 = vld [vmem:[#allocation2 + $0x171] sm:$0xff]  ;;  %466 = vst.msk [vmem:[#allocation3 + $0xb8] sm:$0x1] %vm436_vm11, %v11641_v0  ;;  %467 = vst.msk [vmem:[#allocation3 + $0xd8] sm:$0x1] %vm436_vm11, %v11641_v0 }
  0x50   : > { %6945 = vrot.lane.b32.xlu1 %v6944_v50, %s8620_s25  ;;  %v9027_v57 = vpack.i.bf16 %v819_v56, %v818_v55  ;;  %v1744_v59 = vld [vmem:[#allocation2 + $0x14f] sm:$0xff]  ;;  %v741_v13 = vld [vmem:[#allocation2 + $0x107] sm:$0xff]  ;;  %468 = vst.msk [vmem:[#allocation3 + $0xf8] sm:$0x1] %vm436_vm11, %v11641_v0  ;;  %469 = vst.msk [vmem:[#allocation3 + $0x118] sm:$0x1] %vm436_vm11, %v11641_v0 }
  0x51   : > { %v1759_v61 = vld [vmem:[#allocation2 + $0x148] sm:$0xff]  ;;  %v1760_v62 = vld [vmem:[#allocation2 + $0x150] sm:$0xff]  ;;  %470 = vst.msk [vmem:[#allocation3 + $0x138] sm:$0x1] %vm436_vm11, %v11641_v0  ;;  %471 = vst.msk [vmem:[#allocation3 + $0x158] sm:$0x1] %vm436_vm11, %v11641_v0 }
  0x52   : > { %v633_v63 = vld [vmem:[%s8860_s14 + $0xd0] sm:$0xff]  ;;  %v9045_v4 = vpack.i.bf16 %v1760_v62, %v1759_v61  ;;  %v636_v17 = vld [vmem:[%s8860_s14 + $0xe8] sm:$0xff]  ;;  %472 = vst.msk [vmem:[#allocation3 + $0x178] sm:$0x1] %vm436_vm11, %v11641_v0  ;;  %473 = vst.msk [vmem:[#allocation3 + $0x198] sm:$0x1] %vm436_vm11, %v11641_v0 }
  0x53   : > { %6950 = vrot.lane.b32.xlu0 %v6924_v44, %s11639_s24  ;;  %666 = vst.msk [vmem:[#allocation2 + $0x1c8] sm:$0xff] %vm385_vm0, %v633_v63  ;;  %669 = vst.msk [vmem:[#allocation2 + $0x1f0] sm:$0xff] %vm385_vm0, %v636_v17  ;;  %v1792_v20 = vld [vmem:[#allocation2 + $0x167] sm:$0xff]  ;;  %v680_v28 = vld [vmem:[#allocation2 + $0xf] sm:$0xff] }
  0x54   : > { %6955 = vrot.lane.b32.xlu1 %v6914_v41, %s8614_s15  ;;  %v1711_v41 = vld [vmem:[#allocation2 + $0x130] sm:$0xff]  ;;  %v1808_v39 = vld [vmem:[#allocation2 + $0x168] sm:$0xff]  ;;  %474 = vst.msk [vmem:[#allocation3 + $0x1b8] sm:$0x1] %vm436_vm11, %v11641_v0  ;;  %475 = vst.msk [vmem:[#allocation3 + $0x1d8] sm:$0x1] %vm436_vm11, %v11641_v0 }
  0x55   : > { %v9013_v43 = vpack.i.bf16 %v1711_v41, %v1710_v40  ;;  %476 = vst.msk [vmem:[#allocation3 + $0x1f8] sm:$0x1] %vm436_vm11, %v11641_v0  ;;  %477 = vst.msk [vmem:[#allocation3 + $0x218] sm:$0x1] %vm436_vm11, %v11641_v0 }
  0x56   : > { %488 = vst.msk [vmem:[#allocation4 + $0x7] sm:$0x1] %vm436_vm11, %v11641_v0  ;;  %489 = vst.msk [vmem:[#allocation4 + $0x27] sm:$0x1] %vm436_vm11, %v11641_v0 }
  0x57   : > { %6960 = vrot.lane.b32.xlu0 %v6959_v58, %s11639_s24  ;;  %490 = vst.msk [vmem:[#allocation4 + $0x47] sm:$0x1] %vm436_vm11, %v11641_v0  ;;  %491 = vst.msk [vmem:[#allocation4 + $0x67] sm:$0x1] %vm436_vm11, %v11641_v0 }
  0x58   : > { %6965 = vrot.lane.b32.xlu1 %v6944_v50, %s8614_s15  ;;  %492 = vst.msk [vmem:[#allocation4 + $0x87] sm:$0x1] %vm436_vm11, %v11641_v0  ;;  %493 = vst.msk [vmem:[#allocation4 + $0xa7] sm:$0x1] %vm436_vm11, %v11641_v0 }
  0x59   : > { %494 = vst.msk [vmem:[#allocation4 + $0xc7] sm:$0x1] %vm436_vm11, %v11641_v0  ;;  %495 = vst.msk [vmem:[#allocation4 + $0xe7] sm:$0x1] %vm436_vm11, %v11641_v0 }
  0x5a   : > { %496 = vst.msk [vmem:[#allocation4 + $0x107] sm:$0x1] %vm436_vm11, %v11641_v0  ;;  %497 = vst.msk [vmem:[#allocation4 + $0x127] sm:$0x1] %vm436_vm11, %v11641_v0 }
  0x5b   : > { %6970 = vrot.lane.b32.xlu0 %v6924_v44, %s11635_s16  ;;  %v802_v44 = vld [vmem:[#allocation2 + $0xe8] sm:$0xff]  ;;  %498 = vst.msk [vmem:[#allocation4 + $0x147] sm:$0x1] %vm436_vm11, %v11641_v0  ;;  %499 = vst.msk [vmem:[#allocation4 + $0x167] sm:$0x1] %vm436_vm11, %v11641_v0 }
  0x5c   : > { %6975 = vrot.lane.b32.xlu1 %v6959_v58, %s11635_s16  ;;  %500 = vst.msk [vmem:[#allocation4 + $0x187] sm:$0x1] %vm436_vm11, %v11641_v0  ;;  %501 = vst.msk [vmem:[#allocation4 + $0x1a7] sm:$0x1] %vm436_vm11, %v11641_v0 }
  0x5d   : > { %502 = vst.msk [vmem:[#allocation4 + $0x1c7] sm:$0x1] %vm436_vm11, %v11641_v0  ;;  %503 = vst.msk [vmem:[#allocation4 + $0x1e7] sm:$0x1] %vm436_vm11, %v11641_v0 }
  0x5e   : > { %504 = vst.msk [vmem:[#allocation4 + $0x207] sm:$0x1] %vm436_vm11, %v11641_v0  ;;  %526 = vst.msk [vmem:[#allocation5 + $0x10] sm:$0x1] %vm436_vm11, %v11641_v0 }
  0x5f   : > { %6980 = vrot.lane.b32.xlu0 %v6934_v47, %s11660_s22  ;;  %v803_v47 = vld [vmem:[#allocation2 + $0xf0] sm:$0xff]  ;;  %530 = vst.msk [vmem:[#allocation5 + $0xe8] sm:$0x1] %vm436_vm11, %v11641_v0  ;;  %531 = vst.msk [vmem:[#allocation5 + $0x7] sm:$0x1] %vm436_vm11, %v11641_v0 }
  0x60   : > { %6985 = vrot.lane.b32.xlu1 %v6984_v3, %s11660_s22  ;;  %v7119_v48 = vpack.i.bf16 %v803_v47, %v802_v44  ;;  %532 = vst.msk [vmem:[#allocation5 + $0x1f] sm:$0x1] %vm436_vm11, %v11641_v0  ;;  %533 = vst.msk [vmem:[#allocation5 + $0x37] sm:$0x1] %vm436_vm11, %v11641_v0 }
  0x61   : > { %534 = vst.msk [vmem:[#allocation5 + $0x4f] sm:$0x1] %vm436_vm11, %v11641_v0  ;;  %535 = vst.msk [vmem:[#allocation5 + $0x67] sm:$0x1] %vm436_vm11, %v11641_v0 }
  0x62   : > { %536 = vst.msk [vmem:[#allocation5 + $0x7f] sm:$0x1] %vm436_vm11, %v11641_v0  ;;  %537 = vst.msk [vmem:[#allocation5 + $0x97] sm:$0x1] %vm436_vm11, %v11641_v0 }
  0x63   : > { %6990 = vrot.lane.b32.xlu0 %v6944_v50, %s11661_s29  ;;  %v1742_v50 = vld [vmem:[#allocation2 + $0x12f] sm:$0xff]  ;;  %538 = vst.msk [vmem:[#allocation5 + $0xaf] sm:$0x1] %vm436_vm11, %v11641_v0  ;;  %539 = vst.msk [vmem:[#allocation5 + $0xc7] sm:$0x1] %vm436_vm11, %v11641_v0 }
  0x64   : > { %6995 = vrot.lane.b32.xlu1 %v6994_v6, %s11661_s29  ;;  %v9020_v53 = vpack.i.bf16 %v1742_v50, %v1741_v49  ;;  %v1809_v49 = vld [vmem:[#allocation2 + $0x170] sm:$0xff]  ;;  %540 = vst.msk [vmem:[#allocation5 + $0xdf] sm:$0x1] %vm436_vm11, %v11641_v0  ;;  %542 = vst.msk [vmem:[#allocation5 + $0x28] sm:$0x1] %vm436_vm11, %v11641_v0 }
  0x65   : > { %v1824_v50 = vld [vmem:[#allocation2 + $0x169] sm:$0xff]  ;;  %543 = vst.msk [vmem:[#allocation5 + $0x40] sm:$0x1] %vm436_vm11, %v11641_v0  ;;  %544 = vst.msk [vmem:[#allocation5 + $0x58] sm:$0x1] %vm436_vm11, %v11641_v0 }
  0x66   : > { %v9110_v63 = vpack.i.bf16 %v1825_v51, %v1824_v50  ;;  %545 = vst.msk [vmem:[#allocation5 + $0x70] sm:$0x1] %vm436_vm11, %v11641_v0  ;;  %546 = vst.msk [vmem:[#allocation5 + $0x88] sm:$0x1] %vm436_vm11, %v11641_v0 }
  0x67   : > { %7000 = vrot.lane.b32.xlu0 %v6959_v58, %s11662_s30  ;;  %v1743_v58 = vld [vmem:[#allocation2 + $0x147] sm:$0xff]  ;;  %547 = vst.msk [vmem:[#allocation5 + $0xa0] sm:$0x1] %vm436_vm11, %v11641_v0  ;;  %548 = vst.msk [vmem:[#allocation5 + $0xb8] sm:$0x1] %vm436_vm11, %v11641_v0 }
  0x68   : > { %7005 = vrot.lane.b32.xlu1 %v7004_v11, %s11662_s30  ;;  %v7149_v60 = vpack.i.bf16 %v1744_v59, %v1743_v58  ;;  %549 = vst.msk [vmem:[#allocation5 + $0xd0] sm:$0x1] %vm436_vm11, %v11641_v0  ;;  %461 = vst.msk [vmem:[#allocation3 + $0x18] sm:$0x1] %vm436_vm11, %v11641_v0 }
  0x69   : > { %478 = vst.msk [vmem:[#allocation3 + $0x238] sm:$0x1] %vm436_vm11, %v11641_v0  ;;  %541 = vst.msk [vmem:[#allocation5 + $0x10] sm:$0x1] %vm436_vm11, %v11641_v0 }
  0x6a   : > { %550 = vst.msk [vmem:[#allocation5 + $0xe8] sm:$0x1] %vm436_vm11, %v11641_v0 }
  0x6b   : > { %7010 = vrot.lane.b32.xlu0 %v6984_v3, %s11663_s12 }
  0x6c   : > { %7015 = vrot.lane.b32.xlu1 %v7014_v14, %s11663_s12 }
  0x6f   : > { %7020 = vrot.lane.b32.xlu0 %v6994_v6, %s8620_s25 }
  0x70   : > { %7025 = vrot.lane.b32.xlu1 %v7024_v15, %s8620_s25 }
  0x73   : > { %7030 = vrot.lane.b32.xlu0 %v7004_v11, %s11639_s24 }
  0x74   : > { %7035 = vrot.lane.b32.xlu1 %v6994_v6, %s8614_s15  ;;  %v1775_v6 = vld [vmem:[#allocation2 + $0x149] sm:$0xff] }
  0x77   : > { %7040 = vrot.lane.b32.xlu0 %v7039_v18, %s11639_s24 }
  0x78   : > { %7045 = vrot.lane.b32.xlu1 %v7024_v15, %s8614_s15 }
  0x7b   : > { %7050 = vrot.lane.b32.xlu0 %v7004_v11, %s11635_s16  ;;  %v9056_v11 = vpack.i.bf16 %v1776_v7, %v1775_v6 }
  0x7c   : > { %7055 = vrot.lane.b32.xlu1 %v7039_v18, %s11635_s16 }
  0x7f   : > { %7060 = vrot.lane.b32.xlu0 %v7014_v14, %s11660_s22  ;;  %v742_v14 = vld [vmem:[#allocation2 + $0x10f] sm:$0xff] }
  0x80   : > { %7065 = vrot.lane.b32.xlu1 %v7064_v21, %s11660_s22 }
  0x83   : > { %7070 = vrot.lane.b32.xlu0 %v7024_v15, %s11661_s29  ;;  %v635_v15 = vld [vmem:[%s8860_s14 + $0xe0] sm:$0xff] }
  0x84   : > { %7075 = vrot.lane.b32.xlu1 %v7074_v24, %s11661_s29  ;;  %668 = vst.msk [vmem:[#allocation2 + $0x1e8] sm:$0xff] %vm385_vm0, %v635_v15 }
  0x87   : > { %7080 = vrot.lane.b32.xlu0 %v7039_v18, %s11662_s30  ;;  %v9069_v18 = vpack.i.bf16 %v742_v14, %v741_v13 }
  0x88   : > { %7085 = vrot.lane.b32.xlu1 %v7084_v27, %s11662_s30 }
  0x8b   : > { %7090 = vrot.lane.b32.xlu0 %v7064_v21, %s11663_s12  ;;  %v1793_v21 = vld [vmem:[#allocation2 + $0x16f] sm:$0xff] }
  0x8c   : > { %7095 = vrot.lane.b32.xlu1 %v9003_v30, %s8614_s15  ;;  %v9078_v23 = vpack.i.bf16 %v1793_v21, %v1792_v20 }
  0x8f   : > { %7100 = vrot.lane.b32.xlu0 %v7099_v37, %s11663_s12 }
  0x90   : > { %7105 = vrot.lane.b32.xlu1 %v7074_v24, %s8620_s25  ;;  %v6881_v3 = vpop.permute.xlu0 %6880 }
  0x91   : > { %v6882_v25 = vunpack.i.l.bf16 %v6881_v3 }
  0x93   : > { %7110 = vrot.lane.b32.xlu0 %v9013_v43, %s8614_s15 }
  0x94   : > { %7115 = vrot.lane.b32.xlu1 %v9010_v42, %s11635_s16 }
  0x97   : > { %7120 = vrot.lane.b32.xlu0 %v7119_v48, %s8620_s25 }
  0x98   : > { %7125 = vrot.lane.b32.xlu1 %v7084_v27, %s11639_s24 }
  0x9b   : > { %7130 = vrot.lane.b32.xlu0 %v9023_v54, %s11635_s16 }
  0x9c   : > { %7135 = vrot.lane.b32.xlu1 %v9020_v53, %s11660_s22 }
  0x9f   : > { %7140 = vrot.lane.b32.xlu0 %v7074_v24, %s8614_s15  ;;  %v6883_v24 = vunpack.i.h.bf16 %v6881_v3 }
  0xa0   : > { %7145 = vrot.lane.b32.xlu1 %v9027_v57, %s11639_s24 }
  0xa1   : > { %v1337_v41 = vsel %vm385_vm0, %v680_v28, %v6883_v24 }
  0xa3   : > { %7150 = vrot.lane.b32.xlu0 %v7149_v60, %s11660_s22 }
  0xa4   : > { %7155 = vrot.lane.b32.xlu1 %v9013_v43, %s11661_s29 }
  0xa7   : > { %7160 = vrot.lane.b32.xlu0 %v7119_v48, %s8614_s15 }
  0xa8   : > { %7165 = vrot.lane.b32.xlu1 %v7084_v27, %s11635_s16  ;;  %v679_v27 = vld [vmem:[#allocation2 + $0x7] sm:$0xff] }
  0xa9   : > { %v1336_v40 = vsel %vm385_vm0, %v679_v27, %v6882_v25 }
  0xaa   : > { %v9042_v2 = vpop.permute.xlu1 %6885 }
  0xab   : > { %7170 = vrot.lane.b32.xlu0 %v9045_v4, %s11661_s29  ;;  %v6887_v38 = vunpack.i.l.bf16 %v9042_v2 }
  0xac   : > { %7175 = vrot.lane.b32.xlu1 %v9023_v54, %s11662_s30 }
  0xad   : > { %v6891_v10 = vpop.permute.xlu0 %6890  ;;  %v1352_v62 = vsel %vm432_vm2, %v1336_v40, %v6887_v38 }
  0xae   : > { %v9051_v5 = vpop.permute.xlu1 %6895  ;;  %v6893_v29 = vunpack.i.h.bf16 %v6891_v10  ;;  %v6892_v31 = vunpack.i.l.bf16 %v6891_v10 }
  0xaf   : > { %7180 = vrot.lane.b32.xlu0 %v9027_v57, %s11635_s16  ;;  %v6898_v44 = vunpack.i.h.bf16 %v9051_v5  ;;  %v6897_v47 = vunpack.i.l.bf16 %v9051_v5 }
  0xb0   : > { %7185 = vrot.lane.b32.xlu1 %v7099_v37, %s11660_s22  ;;  %v6888_v37 = vunpack.i.h.bf16 %v9042_v2  ;;  %v1338_v52 = vsel %vm385_vm0, %v8918_v33, %v6892_v31  ;;  %v1339_v55 = vsel %vm385_vm0, %v8922_v36, %v6893_v29  ;;  %v9108_v36 = vpack.i.bf16 %v1809_v49, %v1808_v39 }
  0xb1   : > { %v9061_v16 = vpop.permute.xlu0 %6900  ;;  %v1354_v1 = vsel %vm432_vm2, %v1338_v52, %v6897_v47  ;;  %v1355_v2 = vsel %vm432_vm2, %v1339_v55, %v6898_v44 }
  0xb2   : > { %v9058_v12 = vpop.permute.xlu1 %6905  ;;  %v6902_v61 = vunpack.i.l.bf16 %v9061_v16  ;;  %v1353_v33 = vsel %vm432_vm2, %v1337_v41, %v6888_v37 }
  0xb3   : > { %7190 = vrot.lane.b32.xlu0 %v9056_v11, %s11662_s30  ;;  %v6908_v56 = vunpack.i.h.bf16 %v9058_v12  ;;  %v6907_v58 = vunpack.i.l.bf16 %v9058_v12 }
  0xb4   : > { %7195 = vrot.lane.b32.xlu1 %v7149_v60, %s11663_s12  ;;  %v6903_v60 = vunpack.i.h.bf16 %v9061_v16  ;;  %v1369_v15 = vsel %vm1368_vm5, %v1352_v62, %v6902_v61 }
  0xb5   : > { %v9073_v22 = vpop.permute.xlu0 %6910  ;;  %v1371_v6 = vsel %vm1368_vm5, %v1354_v1, %v6907_v58  ;;  %v1372_v7 = vsel %vm1368_vm5, %v1355_v2, %v6908_v56 }
  0xb6   : > { %v9071_v19 = vpop.permute.xlu1 %6915  ;;  %v6913_v3 = vunpack.i.h.bf16 %v9073_v22  ;;  %v1370_v14 = vsel %vm1368_vm5, %v1353_v33, %v6903_v60 }
  0xb7   : > { %7200 = vrot.lane.b32.xlu0 %v9069_v18, %s11660_s22  ;;  %v6918_v20 = vunpack.i.h.bf16 %v9071_v19  ;;  %v6917_v21 = vunpack.i.l.bf16 %v9071_v19 }
  0xb8   : > { %7205 = vrot.lane.b32.xlu1 %v7119_v48, %s11661_s29  ;;  %v1386_v27 = vsel %vm551_vm3, %v1370_v14, %v6913_v3  ;;  %v638_v14 = vld [vmem:[%s8860_s14 + $0xf8] sm:$0xff] }
  0xb9   : > { %v6921_v34 = vpop.permute.xlu0 %6920  ;;  %v1388_v52 = vsel %vm551_vm3, %v1372_v7, %v6918_v20  ;;  %671 = vst.msk [vmem:[#allocation2 + $0x210] sm:$0xff] %vm385_vm0, %v638_v14 }
  0xba   : > { %v9080_v26 = vpop.permute.xlu1 %6925  ;;  %v6923_v10 = vunpack.i.h.bf16 %v6921_v34  ;;  %v6922_v12 = vunpack.i.l.bf16 %v6921_v34 }
  0xbb   : > { %7210 = vrot.lane.b32.xlu0 %v9078_v23, %s11663_s12  ;;  %v6928_v28 = vunpack.i.h.bf16 %v9080_v26  ;;  %v6927_v29 = vunpack.i.l.bf16 %v9080_v26 }
  0xbc   : > { %7215 = vrot.lane.b32.xlu1 %v9045_v4, %s8620_s25  ;;  %v1403_v37 = vsel %vm1401_vm6, %v1386_v27, %v6923_v10 }
  0xbd   : > { %v6931_v59 = vpop.permute.xlu0 %6930 }
  0xbe   : > { %v9092_v48 = vpop.permute.xlu1 %6935  ;;  %v6933_v16 = vunpack.i.h.bf16 %v6931_v59  ;;  %v6932_v17 = vunpack.i.l.bf16 %v6931_v59  ;;  %v1405_v59 = vsel %vm1401_vm6, %v1388_v52, %v6928_v28  ;;  %v1780_v28 = vld [vmem:[#allocation2 + $0x191] sm:$0xff] }
  0xbf   : > { %7220 = vrot.lane.b32.xlu0 %v9003_v30, %s11661_s29  ;;  %v6938_v19 = vunpack.i.h.bf16 %v9092_v48  ;;  %v6937_v38 = vunpack.i.l.bf16 %v9092_v48  ;;  %v1387_v48 = vsel %vm551_vm3, %v1371_v6, %v6917_v21 }
  0xc0   : > { %7225 = vrot.lane.b32.xlu1 %v9027_v57, %s11662_s30  ;;  %v6912_v57 = vunpack.i.l.bf16 %v9073_v22  ;;  %v1420_v26 = vsel %vm1418_vm7, %v1403_v37, %v6933_v16  ;;  %v1404_v58 = vsel %vm1401_vm6, %v1387_v48, %v6927_v29  ;;  %v1797_v29 = vld [vmem:[#allocation2 + $0x1af] sm:$0xff] }
  0xc1   : > { %v6941_v13 = vpop.permute.xlu0 %6940  ;;  %v1421_v62 = vsel %vm1418_vm7, %v1404_v58, %v6937_v38  ;;  %v1422_v33 = vsel %vm1418_vm7, %v1405_v59, %v6938_v19 }
  0xc2   : > { %v6946_v5 = vpop.permute.xlu1 %6945  ;;  %v6943_v22 = vunpack.i.h.bf16 %v6941_v13  ;;  %v6942_v24 = vunpack.i.l.bf16 %v6941_v13  ;;  %v1385_v25 = vsel %vm551_vm3, %v1369_v15, %v6912_v57  ;;  %v637_v13 = vld [vmem:[%s8860_s14 + $0xf0] sm:$0xff]  ;;  %s11643_s14 = smov 64  }
  0xc3   : > { %7230 = vrot.lane.b32.xlu0 %v9108_v36, %s8620_s25  ;;  %v1402_v34 = vsel %vm1401_vm6, %v1385_v25, %v6922_v12  ;;  %v6948_v47 = vunpack.i.h.bf16 %v6946_v5  ;;  %v6947_v49 = vunpack.i.l.bf16 %v6946_v5  ;;  %670 = vst.msk [vmem:[#allocation2 + $0x208] sm:$0xff] %vm385_vm0, %v637_v13 }
  0xc4   : > { %7235 = vrot.lane.b32.xlu1 %v9056_v11, %s11639_s24  ;;  %v1419_v44 = vsel %vm1418_vm7, %v1402_v34, %v6932_v17  ;;  %v1437_v51 = vsel %vm1435_vm8, %v1420_v26, %v6943_v22  ;;  %v1748_v17 = vld [vmem:[#allocation2 + $0x18f] sm:$0xff] }
  0xc5   : > { %v6951_v39 = vpop.permute.xlu0 %6950  ;;  %v1436_v50 = vsel %vm1435_vm8, %v1419_v44, %v6942_v24  ;;  %v1438_v3 = vsel %vm1435_vm8, %v1421_v62, %v6947_v49  ;;  %v1439_v57 = vsel %vm1435_vm8, %v1422_v33, %v6948_v47  ;;  %v1764_v22 = vld [vmem:[#allocation2 + $0x190] sm:$0xff] }
  0xc6   : > { %v9130_v31 = vpop.permute.xlu1 %6955  ;;  %v6953_v40 = vunpack.i.h.bf16 %v6951_v39  ;;  %v6952_v41 = vunpack.i.l.bf16 %v6951_v39  ;;  %v1779_v24 = vld [vmem:[#allocation2 + $0x189] sm:$0xff] }
  0xc7   : > { %7240 = vrot.lane.b32.xlu0 %v9010_v42, %s11662_s30  ;;  %v6958_v34 = vunpack.i.h.bf16 %v9130_v31  ;;  %v6957_v37 = vunpack.i.l.bf16 %v9130_v31  ;;  %v9202_v49 = vpack.i.bf16 %v1780_v28, %v1779_v24 }
  0xc8   : > { %7245 = vrot.lane.b32.xlu1 %v9069_v18, %s11663_s12  ;;  %v1453_v18 = vsel %vm1452_vm9, %v1436_v50, %v6952_v41  ;;  %v1454_v56 = vsel %vm1452_vm9, %v1437_v51, %v6953_v40 }
  0xc9   : > { %v6961_v60 = vpop.permute.xlu0 %6960  ;;  %v1469_v61 = vpack.c.bf16 %v1454_v56, %v1453_v18  ;;  %v1340_v18 = vsel %vm385_vm0, %v8916_v32, %v6957_v37 }
  0xca   : > { %v9146_v55 = vpop.permute.xlu1 %6965  ;;  %v6963_v1 = vunpack.i.h.bf16 %v6961_v60  ;;  %v6962_v2 = vunpack.i.l.bf16 %v6961_v60 }
  0xcb   : > { %7250 = vrot.lane.b32.xlu0 %v9045_v4, %s8614_s15  ;;  %6710 = vmatprep.mubr.msk.bf16.mxu0 %vm1492_vm10, %v1469_v61  ;;  %v6968_v25 = vunpack.i.h.bf16 %v9146_v55  ;;  %v6967_v27 = vunpack.i.l.bf16 %v9146_v55  ;;  %v1341_v55 = vsel %vm385_vm0, %v8920_v35, %v6958_v34 }
  0xcc   : > { %7255 = vrot.lane.b32.xlu1 %v9110_v63, %s11639_s24  ;;  %v1455_v5 = vsel %vm1452_vm9, %v1438_v3, %v6962_v2  ;;  %v1456_v6 = vsel %vm1452_vm9, %v1439_v57, %v6963_v1 }
  0xcd   : > { %v6971_v10 = vpop.permute.xlu0 %6970  ;;  %v1470_v12 = vpack.c.bf16 %v1456_v6, %v1455_v5  ;;  %v1343_v31 = vsel %vm385_vm0, %v8936_v46, %v6968_v25  ;;  %v1342_v51 = vsel %vm385_vm0, %v8934_v45, %v6967_v27  ;;  %v1813_v25 = vld [vmem:[#allocation2 + $0x1b0] sm:$0xff] }
  0xce   : > { %v6976_v7 = vpop.permute.xlu1 %6975  ;;  %v6973_v39 = vunpack.i.h.bf16 %v6971_v10  ;;  %v6972_v40 = vunpack.i.l.bf16 %v6971_v10 }
  0xcf   : > { %7260 = vrot.lane.b32.xlu0 %v9020_v53, %s11663_s12  ;;  %6711 = vmatmul.mubr.msk.bf16.vlgmr.msra.gmra.mrb[0].mxu0 %vm1492_vm10, %v1470_v12  ;;  %v1747_v53 = vld [vmem:[#allocation2 + $0x187] sm:$0xff]  ;;  %v6978_v19 = vunpack.i.h.bf16 %v6976_v7  ;;  %v6977_v38 = vunpack.i.l.bf16 %v6976_v7 }
  0xd0   : > { %7265 = vrot.lane.b32.xlu1 %v9003_v30, %s8620_s25  ;;  %v1357_v45 = vsel %vm432_vm2, %v1341_v55, %v6973_v39  ;;  %v1356_v46 = vsel %vm432_vm2, %v1340_v18, %v6972_v40 }
  0xd1   : > { %v6981_v15 = vpop.permute.xlu0 %6980  ;;  %v1358_v56 = vsel %vm432_vm2, %v1342_v51, %v6977_v38  ;;  %v1359_v58 = vsel %vm432_vm2, %v1343_v31, %v6978_v19 }
  0xd2   : > { %v6986_v4 = vpop.permute.xlu1 %6985  ;;  %v6983_v48 = vunpack.i.h.bf16 %v6981_v15  ;;  %v6982_v52 = vunpack.i.l.bf16 %v6981_v15 }
  0xd3   : > { %7270 = vrot.lane.b32.xlu0 %v9108_v36, %s8614_s15  ;;  %v6987_v26 = vunpack.i.l.bf16 %v6986_v4 }
  0xd4   : > { %7275 = vrot.lane.b32.xlu1 %v9056_v11, %s11635_s16  ;;  %v1763_v11 = vld [vmem:[#allocation2 + $0x188] sm:$0xff]  ;;  %v1374_v2 = vsel %vm1368_vm5, %v1357_v45, %v6983_v48 }
  0xd5   : > { %v9178_v16 = vpop.permute.xlu0 %6990  ;;  %v9200_v44 = vpack.i.bf16 %v1764_v22, %v1763_v11  ;;  %v1375_v35 = vsel %vm1368_vm5, %v1358_v56, %v6987_v26 }
  0xd6   : > { %v9176_v30 = vpop.permute.xlu1 %6995  ;;  %v6993_v59 = vunpack.i.h.bf16 %v9178_v16  ;;  %v6992_v60 = vunpack.i.l.bf16 %v9178_v16 }
  0xd7   : > { %7280 = vrot.lane.b32.xlu0 %v9013_v43, %s8620_s25  ;;  %v1796_v43 = vld [vmem:[#allocation2 + $0x1a7] sm:$0xff]  ;;  %v6998_v5 = vunpack.i.h.bf16 %v9176_v30  ;;  %v6997_v6 = vunpack.i.l.bf16 %v9176_v30 }
  0xd8   : > { %7285 = vrot.lane.b32.xlu1 %v9010_v42, %s11639_s24  ;;  %v9192_v42 = vpack.i.bf16 %v1748_v17, %v1747_v53  ;;  %v9204_v50 = vpack.i.bf16 %v1797_v29, %v1796_v43  ;;  %v1390_v13 = vsel %vm551_vm3, %v1374_v2, %v6993_v59 }
  0xd9   : > { %v9186_v21 = vpop.permute.xlu0 %7000  ;;  %v1391_v34 = vsel %vm551_vm3, %v1375_v35, %v6997_v6 }
  0xda   : > { %v9184_v20 = vpop.permute.xlu1 %7005  ;;  %v7003_v62 = vunpack.i.h.bf16 %v9186_v21  ;;  %v7002_v33 = vunpack.i.l.bf16 %v9186_v21 }
  0xdb   : > { %7290 = vrot.lane.b32.xlu0 %v9110_v63, %s11635_s16  ;;  %v7008_v14 = vunpack.i.h.bf16 %v9184_v20 }
  0xdc   : > { %7295 = vrot.lane.b32.xlu1 %v9078_v23, %s11660_s22  ;;  %v6988_v23 = vunpack.i.h.bf16 %v6986_v4  ;;  %v7007_v4 = vunpack.i.l.bf16 %v9184_v20  ;;  %v1407_v53 = vsel %vm1401_vm6, %v1390_v13, %v7003_v62  ;;  %v1812_v20 = vld [vmem:[#allocation2 + $0x1a8] sm:$0xff] }
  0xdd   : > { %v7011_v47 = vpop.permute.xlu0 %7010  ;;  %v1800_v13 = vld [vmem:[#allocation2 + $0x1e7] sm:$0xff] }
  0xde   : > { %v9198_v41 = vpop.permute.xlu1 %7015  ;;  %v1376_v32 = vsel %vm1368_vm5, %v1359_v58, %v6988_v23  ;;  %v7013_v3 = vunpack.i.h.bf16 %v7011_v47  ;;  %v7012_v57 = vunpack.i.l.bf16 %v7011_v47  ;;  %v1408_v40 = vsel %vm1401_vm6, %v1391_v34, %v7007_v4 }
  0xdf   : > { %7300 = vrot.lane.b32.xlu0 %v9023_v54, %s11639_s24  ;;  %v1373_v54 = vsel %vm1368_vm5, %v1356_v46, %v6982_v52  ;;  %v7018_v30 = vunpack.i.h.bf16 %v9198_v41  ;;  %v7017_v17 = vunpack.i.l.bf16 %v9198_v41  ;;  %v1392_v37 = vsel %vm551_vm3, %v1376_v32, %v6998_v5 }
  0xe0   : > { %7305 = vrot.lane.b32.xlu1 %v9192_v42, %s11660_s22  ;;  %v1389_v12 = vsel %vm551_vm3, %v1373_v54, %v6992_v60  ;;  %v1424_v11 = vsel %vm1418_vm7, %v1407_v53, %v7013_v3  ;;  %v1409_v41 = vsel %vm1401_vm6, %v1392_v37, %v7008_v14  ;;  %v9262_v47 = vpack.i.bf16 %v1813_v25, %v1812_v20  ;;  %v1829_v60 = vld [vmem:[#allocation2 + $0x1b1] sm:$0xff]  ;;  %v1767_v3 = vld [vmem:[#allocation2 + $0x1c8] sm:$0xff] }
  0xe1   : > { %v7021_v1 = vpop.permute.xlu0 %7020  ;;  %v1406_v16 = vsel %vm1401_vm6, %v1389_v12, %v7002_v33  ;;  %v1426_v31 = vsel %vm1418_vm7, %v1409_v41, %v7018_v30  ;;  %v1751_v33 = vld [vmem:[#allocation2 + $0x1c7] sm:$0xff]  ;;  %v1784_v12 = vld [vmem:[#allocation2 + $0x1d1] sm:$0xff] }
  0xe2   : > { %v7026_v61 = vpop.permute.xlu1 %7025  ;;  %v7023_v7 = vunpack.i.h.bf16 %v7021_v1  ;;  %v7022_v10 = vunpack.i.l.bf16 %v7021_v1  ;;  %v1752_v1 = vld [vmem:[#allocation2 + $0x1cf] sm:$0xff] }
  0xe3   : > { %7310 = vrot.lane.b32.xlu0 %v9108_v36, %s11661_s29  ;;  %v1423_v36 = vsel %vm1418_vm7, %v1406_v16, %v7012_v57  ;;  %v7028_v27 = vunpack.i.h.bf16 %v7026_v61  ;;  %v7027_v28 = vunpack.i.l.bf16 %v7026_v61  ;;  %v1768_v57 = vld [vmem:[#allocation2 + $0x1d0] sm:$0xff]  ;;  %v1816_v53 = vld [vmem:[#allocation2 + $0x1e8] sm:$0xff] }
  0xe4   : > { %7315 = vrot.lane.b32.xlu1 %v9200_v44, %s11661_s29  ;;  %v1440_v43 = vsel %vm1435_vm8, %v1423_v36, %v7022_v10  ;;  %v1441_v29 = vsel %vm1435_vm8, %v1424_v11, %v7023_v7  ;;  %v9308_v7 = vpack.i.bf16 %v1768_v57, %v1767_v3  ;;  %v1783_v10 = vld [vmem:[#allocation2 + $0x1c9] sm:$0xff] }
  0xe5   : > { %v7031_v21 = vpop.permute.xlu0 %7030  ;;  %v1443_v55 = vsel %vm1435_vm8, %v1426_v31, %v7028_v27  ;;  %v1801_v14 = vld [vmem:[#allocation2 + $0x1ef] sm:$0xff] }
  0xe6   : > { %v9240_v15 = vpop.permute.xlu1 %7035  ;;  %v7033_v22 = vunpack.i.h.bf16 %v7031_v21  ;;  %v7032_v24 = vunpack.i.l.bf16 %v7031_v21  ;;  %v1817_v30 = vld [vmem:[#allocation2 + $0x1f0] sm:$0xff]  ;;  %v9320_v25 = vpack.i.bf16 %v1801_v14, %v1800_v13 }
  0xe7   : > { %7320 = vrot.lane.b32.xlu0 %v9110_v63, %s11662_s30  ;;  %v1425_v63 = vsel %vm1418_vm7, %v1408_v40, %v7017_v17  ;;  %v7038_v4 = vunpack.i.h.bf16 %v9240_v15  ;;  %v687_v17 = vld [vmem:[#allocation2 + $0x87] sm:$0xff]  ;;  %v688_v21 = vld [vmem:[#allocation2 + $0x8f] sm:$0xff] }
  0xe8   : > { %7325 = vrot.lane.b32.xlu1 %v9202_v49, %s11662_s30  ;;  %v1457_v19 = vsel %vm1452_vm9, %v1440_v43, %v7032_v24  ;;  %v1458_v38 = vsel %vm1452_vm9, %v1441_v29, %v7033_v22  ;;  %v1442_v52 = vsel %vm1435_vm8, %v1425_v63, %v7027_v28  ;;  %v9325_v43 = vpack.i.bf16 %v1817_v30, %v1816_v53 }
  0xe9   : > { %v7041_v23 = vpop.permute.xlu0 %7040  ;;  %v1471_v26 = vpack.c.bf16 %v1458_v38, %v1457_v19  ;;  %v1345_v29 = vsel %vm385_vm0, %v688_v21, %v7038_v4 }
  0xea   : > { %v9258_v39 = vpop.permute.xlu1 %7045  ;;  %v7043_v51 = vunpack.i.h.bf16 %v7041_v23  ;;  %v7042_v48 = vunpack.i.l.bf16 %v7041_v23 }
  0xeb   : > { %7330 = vrot.lane.b32.xlu0 %v9192_v42, %s11663_s12  ;;  %6714 = vmatprep.mubr.msk.bf16.mxu0 %vm1492_vm10, %v1471_v26  ;;  %v1828_v42 = vld [vmem:[#allocation2 + $0x1a9] sm:$0xff] }
  0xec   : > { %7335 = vrot.lane.b32.xlu1 %v9204_v50, %s11663_s12  ;;  %v1460_v18 = vsel %vm1452_vm9, %v1443_v55, %v7043_v51  ;;  %v1459_v56 = vsel %vm1452_vm9, %v1442_v52, %v7042_v48  ;;  %v9288_v35 = vpack.i.bf16 %v1829_v60, %v1828_v42  ;;  %v7047_v55 = vunpack.i.l.bf16 %v9258_v39 }
  0xed   : > { %v7051_v45 = vpop.permute.xlu0 %7050  ;;  %v1472_v46 = vpack.c.bf16 %v1460_v18, %v1459_v56 }
  0xee   : > { %v9275_v58 = vpop.permute.xlu1 %7055  ;;  %v7053_v36 = vunpack.i.h.bf16 %v7051_v45  ;;  %v7052_v11 = vunpack.i.l.bf16 %v7051_v45 }
  0xef   : > { %7340 = vrot.lane.b32.xlu0 %v9200_v44, %s8620_s25  ;;  %6715 = vmatmul.mubr.msk.bf16.gmra.mrb[4].mxu0 %vm1492_vm10, %v1472_v46  ;;  %v7058_v45 = vunpack.i.h.bf16 %v9275_v58  ;;  %v7057_v46 = vunpack.i.l.bf16 %v9275_v58 }
  0xf0   : > { %7345 = vrot.lane.b32.xlu1 %v9262_v47, %s8620_s25  ;;  %v1361_v40 = vsel %vm432_vm2, %v1345_v29, %v7053_v36 }
  0xf1   : > { %v7061_v61 = vpop.permute.xlu0 %7060 }
  0xf2   : > { %v9282_v59 = vpop.permute.xlu1 %7065  ;;  %v7063_v24 = vunpack.i.h.bf16 %v7061_v61  ;;  %v7062_v20 = vunpack.i.l.bf16 %v7061_v61 }
  0xf3   : > { %7350 = vrot.lane.b32.xlu0 %v9202_v49, %s11639_s24 }
  0xf4   : > { %7355 = vrot.lane.b32.xlu1 %v9200_v44, %s8614_s15  ;;  %v9300_v44 = vpack.i.bf16 %v1752_v1, %v1751_v33  ;;  %v1378_v31 = vsel %vm1368_vm5, %v1361_v40, %v7063_v24 }
  0xf5   : > { %v7071_v62 = vpop.permute.xlu0 %7070 }
  0xf6   : > { %v9290_v32 = vpop.permute.xlu1 %7075  ;;  %v7073_v27 = vunpack.i.h.bf16 %v7071_v62  ;;  %v7072_v28 = vunpack.i.l.bf16 %v7071_v62 }
  0xf7   : > { %7360 = vrot.lane.b32.xlu0 %v9288_v35, %s11639_s24  ;;  %v7078_v57 = vunpack.i.h.bf16 %v9290_v32 }
  0xf8   : > { %7365 = vrot.lane.b32.xlu1 %v9262_v47, %s8614_s15  ;;  %v1394_v56 = vsel %vm551_vm3, %v1378_v31, %v7073_v27  ;;  %v1833_v27 = vld [vmem:[#allocation2 + $0x1f1] sm:$0xff] }
  0xf9   : > { %v7081_v2 = vpop.permute.xlu0 %7080 }
  0xfa   : > { %v9296_v54 = vpop.permute.xlu1 %7085  ;;  %v7083_v37 = vunpack.i.h.bf16 %v7081_v2  ;;  %v7082_v19 = vunpack.i.l.bf16 %v7081_v2  ;;  %v7068_v2 = vunpack.i.h.bf16 %v9282_v59 }
  0xfb   : > { %7370 = vrot.lane.b32.xlu0 %v9202_v49, %s11635_s16  ;;  %v7037_v49 = vunpack.i.l.bf16 %v9240_v15  ;;  %v7048_v15 = vunpack.i.h.bf16 %v9258_v39  ;;  %v7088_v13 = vunpack.i.h.bf16 %v9296_v54  ;;  %v7087_v14 = vunpack.i.l.bf16 %v9296_v54 }
  0xfc   : > { %7375 = vrot.lane.b32.xlu1 %v9288_v35, %s11635_s16  ;;  %v1411_v60 = vsel %vm1401_vm6, %v1394_v56, %v7083_v37 }
  0xfd   : > { %v7091_v6 = vpop.permute.xlu0 %7090  ;;  %v1344_v34 = vsel %vm385_vm0, %v687_v17, %v7037_v49  ;;  %v1347_v52 = vsel %vm385_vm0, %v8977_v9, %v7048_v15  ;;  %v1832_v15 = vld [vmem:[#allocation2 + $0x1e9] sm:$0xff] }
  0xfe   : > { %v9304_v5 = vpop.permute.xlu1 %7095  ;;  %v1360_v41 = vsel %vm432_vm2, %v1344_v34, %v7052_v11  ;;  %v7093_v23 = vunpack.i.h.bf16 %v7091_v6  ;;  %v7092_v26 = vunpack.i.l.bf16 %v7091_v6  ;;  %v7077_v6 = vunpack.i.l.bf16 %v9290_v32 }
  0xff   : > { %7380 = vrot.lane.b32.xlu0 %v9204_v50, %s11660_s22  ;;  %v9318_v50 = vpack.i.bf16 %v1784_v12, %v1783_v10  ;;  %v1363_v32 = vsel %vm432_vm2, %v1347_v52, %v7058_v45  ;;  %v1756_v52 = vld [vmem:[#allocation2 + $0x20f] sm:$0xff] }
 0x100   : > { %7385 = vrot.lane.b32.xlu1 %v9300_v44, %s11660_s22  ;;  %v1428_v39 = vsel %vm1418_vm7, %v1411_v60, %v7093_v23  ;;  %v1771_v45 = vld [vmem:[#allocation2 + $0x208] sm:$0xff] }
 0x101   : > { %v9314_v22 = vpop.permute.xlu0 %7100 }
 0x102   : > { %v7106_v16 = vpop.permute.xlu1 %7105  ;;  %v7103_v53 = vunpack.i.h.bf16 %v9314_v22  ;;  %v7102_v30 = vunpack.i.l.bf16 %v9314_v22 }
 0x103   : > { %7390 = vrot.lane.b32.xlu0 %v9262_v47, %s11661_s29  ;;  %v1377_v47 = vsel %vm1368_vm5, %v1360_v41, %v7062_v20  ;;  %v7108_v51 = vunpack.i.h.bf16 %v7106_v16  ;;  %v7107_v48 = vunpack.i.l.bf16 %v7106_v16 }
 0x104   : > { %7395 = vrot.lane.b32.xlu1 %v9308_v7, %s11661_s29  ;;  %v1393_v18 = vsel %vm551_vm3, %v1377_v47, %v7072_v28  ;;  %v9399_v47 = vpack.i.bf16 %v1833_v27, %v1832_v15 }
 0x105   : > { %v9333_v63 = vpop.permute.xlu0 %7110  ;;  %v1410_v42 = vsel %vm1401_vm6, %v1393_v18, %v7082_v19  ;;  %v1445_v58 = vsel %vm1435_vm8, %v1428_v39, %v7108_v51  ;;  %v1788_v39 = vld [vmem:[#allocation2 + $0x211] sm:$0xff] }
 0x106   : > { %v9329_v38 = vpop.permute.xlu1 %7115  ;;  %v1427_v9 = vsel %vm1418_vm7, %v1410_v42, %v7092_v26 }
 0x107   : > { %7400 = vrot.lane.b32.xlu0 %v9288_v35, %s11662_s30  ;;  %v7067_v35 = vunpack.i.l.bf16 %v9282_v59  ;;  %v1444_v3 = vsel %vm1435_vm8, %v1427_v9, %v7107_v48  ;;  %v1346_v59 = vsel %vm385_vm0, %v8975_v8, %v7047_v55  ;;  %v1380_v8 = vsel %vm1368_vm5, %v1363_v32, %v7068_v2  ;;  %v1787_v9 = vld [vmem:[#allocation2 + $0x209] sm:$0xff] }
 0x108   : > { %7405 = vrot.lane.b32.xlu1 %v9318_v50, %s11662_s30  ;;  %v1362_v16 = vsel %vm432_vm2, %v1346_v59, %v7057_v46  ;;  %v1396_v11 = vsel %vm551_vm3, %v1380_v8, %v7078_v57  ;;  %v1772_v46 = vld [vmem:[#allocation2 + $0x210] sm:$0xff]  ;;  %v7097_v59 = vunpack.i.l.bf16 %v9304_v5 }
 0x109   : > { %v7121_v1 = vpop.permute.xlu0 %7120  ;;  %v1413_v24 = vsel %vm1401_vm6, %v1396_v11, %v7088_v13  ;;  %v9442_v2 = vld [vmem:[#allocation2 + $0x22f] sm:$0xff]  ;;  %v8533_v11 = vld [vmem:[#allocation2 + $0x107] sm:$0xff] }
 0x10a   : > { %v7126_v61 = vpop.permute.xlu1 %7125  ;;  %v7123_v21 = vunpack.i.h.bf16 %v7121_v1  ;;  %v7122_v36 = vunpack.i.l.bf16 %v7121_v1  ;;  %v1430_v28 = vsel %vm1418_vm7, %v1413_v24, %v7103_v53  ;;  %v9440_v1 = vld [vmem:[#allocation2 + $0x227] sm:$0xff]  ;;  %v7113_v53 = vunpack.i.h.bf16 %v9333_v63 }
 0x10b   : > { %v7128_v62 = vunpack.i.h.bf16 %v7126_v61  ;;  %v7127_v33 = vunpack.i.l.bf16 %v7126_v61  ;;  %7410 = vrot.lane.b32.xlu0 %v9300_v44, %s11663_s12  ;;  %v1379_v44 = vsel %vm1368_vm5, %v1362_v16, %v7067_v35  ;;  %v9426_v61 = vpack.i.bf16 %v1772_v46, %v1771_v45  ;;  %v1836_v13 = vld [vmem:[#allocation2 + $0x229] sm:$0xff] }
 0x10c   : > { %7415 = vrot.lane.b32.xlu1 %v9320_v25, %s11663_s12  ;;  %v1395_v54 = vsel %vm551_vm3, %v1379_v44, %v7077_v6  ;;  %v1447_v41 = vsel %vm1435_vm8, %v1430_v28, %v7123_v21  ;;  %v7117_v16 = vunpack.i.l.bf16 %v9329_v38  ;;  %v2699_v28 = vld [vmem:[#allocation3 + $0x8] sm:$0xff] }
 0x10d   : > { %v1461_v10 = vsel %vm1452_vm9, %v1444_v3, %v7127_v33  ;;  %v1462_v12 = vsel %vm1452_vm9, %v1445_v58, %v7128_v62  ;;  %v9374_v17 = vpop.permute.xlu0 %7130  ;;  %v1412_v22 = vsel %vm1401_vm6, %v1395_v54, %v7087_v14  ;;  %v7494_v3 = vpack.i.bf16 %v9442_v2, %v9440_v1  ;;  %v1821_v58 = vld [vmem:[#allocation2 + $0x230] sm:$0xff] }
 0x10e   : > { %v9368_v4 = vpop.permute.xlu1 %7135  ;;  %v1473_v49 = vpack.c.bf16 %v1462_v12, %v1461_v10  ;;  %v1429_v29 = vsel %vm1418_vm7, %v1412_v22, %v7102_v30  ;;  %v7098_v12 = vunpack.i.h.bf16 %v9304_v5  ;;  %v1837_v14 = vld [vmem:[#allocation2 + $0x231] sm:$0xff]  ;;  %v7112_v30 = vunpack.i.l.bf16 %v9333_v63 }
 0x10f   : > { %7420 = vrot.lane.b32.xlu0 %v9308_v7, %s8620_s25  ;;  %v1446_v40 = vsel %vm1435_vm8, %v1429_v29, %v7122_v36  ;;  %v7138_v8 = vunpack.i.h.bf16 %v9368_v4  ;;  %v7137_v5 = vunpack.i.l.bf16 %v9368_v4  ;;  %v7514_v21 = vpack.i.bf16 %v1837_v14, %v1836_v13  ;;  %v8532_v36 = vld [vmem:[#allocation2 + $0x10f] sm:$0xff] }
 0x110   : > { %6718 = vmatprep.mubr.msk.bf16.mxu0 %vm1492_vm10, %v1473_v49  ;;  %7425 = vrot.lane.b32.xlu1 %v9325_v43, %s8620_s25  ;;  %v7118_v49 = vunpack.i.h.bf16 %v9329_v38  ;;  %v2351_v54 = vsel %vm385_vm0, %v8532_v36, %v7098_v12  ;;  %v2350_v38 = vsel %vm385_vm0, %v8533_v11, %v7097_v59  ;;  %v2700_v29 = vld [vmem:[#allocation3 + $0x10] sm:$0xff] }
 0x111   : > { %v9389_v19 = vpop.permute.xlu0 %7140  ;;  %v2366_v63 = vsel %vm432_vm2, %v2350_v38, %v7117_v16 }
 0x112   : > { %v7146_v20 = vpop.permute.xlu1 %7145  ;;  %v2367_v4 = vsel %vm432_vm2, %v2351_v54, %v7118_v49 }
 0x113   : > { %v7148_v34 = vunpack.i.h.bf16 %v7146_v20  ;;  %v7147_v37 = vunpack.i.l.bf16 %v7146_v20  ;;  %7430 = vrot.lane.b32.xlu0 %v9318_v50, %s11639_s24 }
 0x114   : > { %7435 = vrot.lane.b32.xlu1 %v9308_v7, %s8614_s15  ;;  %v1755_v7 = vld [vmem:[#allocation2 + $0x207] sm:$0xff] }
 0x115   : > { %v1463_v23 = vsel %vm1452_vm9, %v1446_v40, %v7147_v37  ;;  %v1464_v26 = vsel %vm1452_vm9, %v1447_v41, %v7148_v34  ;;  %v9403_v48 = vpop.permute.xlu0 %7150  ;;  %v9416_v56 = vpack.i.bf16 %v1756_v52, %v1755_v7  ;;  %v8534_v34 = vld [vmem:[#allocation2 + $0x12f] sm:$0xff]  ;;  %v8535_v40 = vld [vmem:[#allocation2 + $0x127] sm:$0xff] }
 0x116   : > { %v9401_v31 = vpop.permute.xlu1 %7155  ;;  %v1474_v51 = vpack.c.bf16 %v1464_v26, %v1463_v23  ;;  %v2353_v37 = vsel %vm385_vm0, %v8534_v34, %v7113_v53  ;;  %v2352_v41 = vsel %vm385_vm0, %v8535_v40, %v7112_v30 }
 0x117   : > { %7440 = vrot.lane.b32.xlu0 %v9399_v47, %s11639_s24  ;;  %v7158_v22 = vunpack.i.h.bf16 %v9401_v31  ;;  %v7157_v24 = vunpack.i.l.bf16 %v9401_v31  ;;  %v2382_v31 = vsel %vm1368_vm5, %v2366_v63, %v7137_v5 }
 0x118   : > { %6719 = vmatmul.mubr.msk.bf16.gmra.mrb[8].mxu0 %vm1492_vm10, %v1474_v51  ;;  %7445 = vrot.lane.b32.xlu1 %v9325_v43, %s8614_s15  ;;  %v2383_v51 = vsel %vm1368_vm5, %v2367_v4, %v7138_v8  ;;  %s11647_s15 = smov 40  }
 0x119   : > { %v9412_v18 = vpop.permute.xlu0 %7160  ;;  %v2398_v45 = vsel %vm551_vm3, %v2382_v31, %v7157_v24  ;;  %v2399_v46 = vsel %vm551_vm3, %v2383_v51, %v7158_v22  ;;  %v691_v51 = vld [vmem:[#allocation2 + $0xc7] sm:$0xff] }
 0x11a   : > { %v9410_v55 = vpop.permute.xlu1 %7165 }
 0x11b   : > { %7450 = vrot.lane.b32.xlu0 %v9318_v50, %s11635_s16  ;;  %v9436_v50 = vpack.i.bf16 %v1788_v39, %v1787_v9  ;;  %v7153_v9 = vunpack.i.h.bf16 %v9403_v48 }
 0x11c   : > { %7455 = vrot.lane.b32.xlu1 %v9399_v47, %s11635_s16 }
 0x11d   : > { %v9422_v60 = vpop.permute.xlu0 %7170 }
 0x11e   : > { %v9420_v42 = vpop.permute.xlu1 %7175  ;;  %v7172_v49 = vunpack.i.l.bf16 %v9422_v60 }
 0x11f   : > { %7460 = vrot.lane.b32.xlu0 %v9320_v25, %s11660_s22  ;;  %v7178_v20 = vunpack.i.h.bf16 %v9420_v42  ;;  %v7177_v15 = vunpack.i.l.bf16 %v9420_v42  ;;  %v7519_v42 = vpack.i.bf16 %v2700_v29, %v2699_v28 }
 0x120   : > { %7465 = vrot.lane.b32.xlu1 %v9416_v56, %s11660_s22  ;;  %s11637_s22 = smov 48  }
 0x121   : > { %v9432_v33 = vpop.permute.xlu0 %7180  ;;  %v2414_v39 = vsel %vm1401_vm6, %v2398_v45, %v7177_v15  ;;  %v2415_v1 = vsel %vm1401_vm6, %v2399_v46, %v7178_v20 }
 0x122   : > { %v9430_v62 = vpop.permute.xlu1 %7185 }
 0x123   : > { %7470 = vrot.lane.b32.xlu0 %v9325_v43, %s11661_s29  ;;  %v1820_v43 = vld [vmem:[#allocation2 + $0x228] sm:$0xff] }
 0x124   : > { %7475 = vrot.lane.b32.xlu1 %v9426_v61, %s11661_s29  ;;  %v7504_v10 = vpack.i.bf16 %v1821_v58, %v1820_v43 }
 0x125   : > { %v9446_v25 = vpop.permute.xlu0 %7190 }
 0x126   : > { %v9444_v35 = vpop.permute.xlu1 %7195  ;;  %v7193_v30 = vunpack.i.h.bf16 %v9446_v25  ;;  %v7192_v8 = vunpack.i.l.bf16 %v9446_v25 }
 0x127   : > { %7480 = vrot.lane.b32.xlu0 %v9399_v47, %s11662_s30  ;;  %v7198_v23 = vunpack.i.h.bf16 %v9444_v35  ;;  %v7197_v26 = vunpack.i.l.bf16 %v9444_v35  ;;  %v2715_v35 = vld [vmem:[#allocation3 + $0x9] sm:$0xff] }
 0x128   : > { %7485 = vrot.lane.b32.xlu1 %v9436_v50, %s11662_s30  ;;  %s11645_s30 = smov 56  }
 0x129   : > { %v9610_v6 = vpop.permute.xlu0 %7200  ;;  %v2430_v12 = vsel %vm1418_vm7, %v2414_v39, %v7197_v26  ;;  %v2431_v59 = vsel %vm1418_vm7, %v2415_v1, %v7198_v23  ;;  %v7142_v23 = vunpack.i.l.bf16 %v9389_v19  ;;  %v7188_v1 = vunpack.i.h.bf16 %v9430_v62 }
 0x12a   : > { %v9608_v57 = vpop.permute.xlu1 %7205 }
 0x12b   : > { %7490 = vrot.lane.b32.xlu0 %v9416_v56, %s11663_s12  ;;  %v7133_v56 = vunpack.i.h.bf16 %v9374_v17  ;;  %v1348_v39 = vsel %vm385_vm0, %v691_v51, %v7142_v23 }
 0x12c   : > { %7495 = vrot.lane.b32.xlu1 %v7494_v3, %s11663_s12  ;;  %v2716_v3 = vld [vmem:[#allocation3 + $0x11] sm:$0xff] }
 0x12d   : > { %v9624_v44 = vpop.permute.xlu0 %7210  ;;  %v7524_v53 = vpack.i.bf16 %v2716_v3, %v2715_v35  ;;  %v2369_v36 = vsel %vm432_vm2, %v2353_v37, %v7133_v56  ;;  %v7208_v35 = vunpack.i.h.bf16 %v9608_v57  ;;  %v7207_v3 = vunpack.i.l.bf16 %v9608_v57 }
 0x12e   : > { %v7216_v32 = vpop.permute.xlu1 %7215  ;;  %v7212_v54 = vunpack.i.l.bf16 %v9624_v44  ;;  %v2385_v22 = vsel %vm1368_vm5, %v2369_v36, %v7153_v9 }
 0x12f   : > { %7500 = vrot.lane.b32.xlu0 %v9426_v61, %s8620_s25  ;;  %v7218_v7 = vunpack.i.h.bf16 %v7216_v32  ;;  %v7217_v52 = vunpack.i.l.bf16 %v7216_v32  ;;  %v7132_v61 = vunpack.i.l.bf16 %v9374_v17  ;;  %v7173_v17 = vunpack.i.h.bf16 %v9422_v60 }
 0x130   : > { %7505 = vrot.lane.b32.xlu1 %v7504_v10, %s8620_s25  ;;  %v7213_v60 = vunpack.i.h.bf16 %v9624_v44  ;;  %s11667_s25 = smov 8  }
 0x131   : > { %v9645_v47 = vpop.permute.xlu0 %7220  ;;  %v2446_v13 = vsel %vm1435_vm8, %v2430_v12, %v7217_v52  ;;  %v2447_v14 = vsel %vm1435_vm8, %v2431_v59, %v7218_v7  ;;  %v2401_v4 = vsel %vm551_vm3, %v2385_v22, %v7173_v17  ;;  %v692_v7 = vld [vmem:[#allocation2 + $0xcf] sm:$0xff] }
 0x132   : > { %v9639_v27 = vpop.permute.xlu1 %7225  ;;  %v2417_v44 = vsel %vm1401_vm6, %v2401_v4, %v7193_v30  ;;  %v694_v17 = vld [vmem:[#allocation2 + $0xef] sm:$0xff] }
 0x133   : > { %7510 = vrot.lane.b32.xlu0 %v9436_v50, %s11639_s24  ;;  %v7152_v50 = vunpack.i.l.bf16 %v9403_v48  ;;  %v2433_v29 = vsel %vm1418_vm7, %v2417_v44, %v7213_v60  ;;  %v7202_v44 = vunpack.i.l.bf16 %v9610_v6 }
 0x134   : > { %7515 = vrot.lane.b32.xlu1 %v7514_v21, %s11639_s24  ;;  %v2368_v21 = vsel %vm432_vm2, %v2352_v41, %v7132_v61  ;;  %v7143_v41 = vunpack.i.h.bf16 %v9389_v19  ;;  %v7167_v61 = vunpack.i.l.bf16 %v9410_v55 }
 0x135   : > { %v7231_v10 = vpop.permute.xlu0 %7230  ;;  %v2384_v38 = vsel %vm1368_vm5, %v2368_v21, %v7152_v50  ;;  %v693_v50 = vld [vmem:[#allocation2 + $0xe7] sm:$0xff] }
 0x136   : > { %v7236_v2 = vpop.permute.xlu1 %7235  ;;  %v7233_v24 = vunpack.i.h.bf16 %v7231_v10  ;;  %v7232_v63 = vunpack.i.l.bf16 %v7231_v10  ;;  %v2400_v25 = vsel %vm551_vm3, %v2384_v38, %v7172_v49  ;;  %v1349_v19 = vsel %vm385_vm0, %v692_v7, %v7143_v41 }
 0x137   : > { %v7238_v43 = vunpack.i.h.bf16 %v7236_v2  ;;  %v7237_v58 = vunpack.i.l.bf16 %v7236_v2  ;;  %7520 = vrot.lane.b32.xlu0 %v7519_v42, %s11635_s16  ;;  %v2416_v20 = vsel %vm1401_vm6, %v2400_v25, %v7192_v8  ;;  %v7168_v42 = vunpack.i.h.bf16 %v9410_v55 }
 0x138   : > { %v2432_v28 = vsel %vm1418_vm7, %v2416_v20, %v7212_v54  ;;  %v2449_v31 = vsel %vm1435_vm8, %v2433_v29, %v7233_v24  ;;  %v7187_v2 = vunpack.i.l.bf16 %v9430_v62  ;;  %v7162_v55 = vunpack.i.l.bf16 %v9412_v18 }
 0x139   : > { %v2462_v16 = vsel %vm1452_vm9, %v2446_v13, %v7237_v58  ;;  %v2463_v32 = vsel %vm1452_vm9, %v2447_v14, %v7238_v43  ;;  %v9677_v11 = vpop.permute.xlu0 %7240  ;;  %v2448_v26 = vsel %vm1435_vm8, %v2432_v28, %v7232_v63  ;;  %v7163_v43 = vunpack.i.h.bf16 %v9412_v18 }
 0x13a   : > { %v9671_v48 = vpop.permute.xlu1 %7245  ;;  %v2478_v5 = vpack.c.bf16 %v2463_v32, %v2462_v16  ;;  %v7228_v58 = vunpack.i.h.bf16 %v9639_v27  ;;  %v7227_v10 = vunpack.i.l.bf16 %v9639_v27  ;;  %v1364_v59 = vsel %vm432_vm2, %v1348_v39, %v7167_v61 }
 0x13b   : > { %7525 = vrot.lane.b32.xlu0 %v7524_v53, %s11661_s29  ;;  %v1365_v62 = vsel %vm432_vm2, %v1349_v19, %v7168_v42  ;;  %v7248_v13 = vunpack.i.h.bf16 %v9671_v48  ;;  %v7247_v57 = vunpack.i.l.bf16 %v9671_v48  ;;  %v1381_v18 = vsel %vm1368_vm5, %v1364_v59, %v7187_v2 }
 0x13c   : > { %6732 = vmatprep.mubr.msk.bf16.mxu1 %vm1492_vm10, %v2478_v5  ;;  %v1382_v49 = vsel %vm1368_vm5, %v1365_v62, %v7188_v1  ;;  %v1397_v32 = vsel %vm551_vm3, %v1381_v18, %v7207_v3  ;;  %v1351_v30 = vsel %vm385_vm0, %v694_v17, %v7163_v43  ;;  %v1350_v8 = vsel %vm385_vm0, %v693_v50, %v7162_v55 }
 0x13d   : > { %v9689_v40 = vpop.permute.xlu0 %7250  ;;  %v1398_v53 = vsel %vm551_vm3, %v1382_v49, %v7208_v35  ;;  %v1414_v5 = vsel %vm1401_vm6, %v1397_v32, %v7227_v10  ;;  %v7183_v24 = vunpack.i.h.bf16 %v9432_v33  ;;  %v7182_v63 = vunpack.i.l.bf16 %v9432_v33  ;;  %v1699_v32 = vld [vmem:[#allocation2 + $0x16f] sm:$0xff] }
 0x13e   : > { %v7256_v15 = vpop.permute.xlu1 %7255  ;;  %v1415_v48 = vsel %vm1401_vm6, %v1398_v53, %v7228_v58  ;;  %v1431_v36 = vsel %vm1418_vm7, %v1414_v5, %v7247_v57  ;;  %v7203_v20 = vunpack.i.h.bf16 %v9610_v6  ;;  %v7223_v29 = vunpack.i.h.bf16 %v9645_v47  ;;  %v1697_v57 = vld [vmem:[#allocation2 + $0x14f] sm:$0xff] }
 0x13f   : > { %v7258_v34 = vunpack.i.h.bf16 %v7256_v15  ;;  %v7257_v37 = vunpack.i.l.bf16 %v7256_v15  ;;  %v1432_v60 = vsel %vm1418_vm7, %v1415_v48, %v7248_v13  ;;  %v7243_v33 = vunpack.i.h.bf16 %v9677_v11  ;;  %v1696_v13 = vld [vmem:[#allocation2 + $0x147] sm:$0xff] }
 0x140   : > { %v7242_v23 = vunpack.i.l.bf16 %v9677_v11  ;;  %v1367_v6 = vsel %vm432_vm2, %v1351_v30, %v7183_v24  ;;  %v7253_v50 = vunpack.i.h.bf16 %v9689_v40  ;;  %v7252_v17 = vunpack.i.l.bf16 %v9689_v40 }
 0x141   : > { %v2464_v52 = vsel %vm1452_vm9, %v2448_v26, %v7257_v37  ;;  %v2465_v56 = vsel %vm1452_vm9, %v2449_v31, %v7258_v34  ;;  %v9699_v9 = vpop.permute.xlu0 %7260  ;;  %v7222_v34 = vunpack.i.l.bf16 %v9645_v47  ;;  %v1366_v31 = vsel %vm432_vm2, %v1350_v8, %v7182_v63 }
 0x142   : > { %v7266_v45 = vpop.permute.xlu1 %7265  ;;  %v2479_v46 = vpack.c.bf16 %v2465_v56, %v2464_v52  ;;  %v7263_v51 = vunpack.i.h.bf16 %v9699_v9  ;;  %v7262_v7 = vunpack.i.l.bf16 %v9699_v9  ;;  %v1383_v47 = vsel %vm1368_vm5, %v1366_v31, %v7202_v44 }
 0x143   : > { %v7268_v16 = vunpack.i.h.bf16 %v7266_v45  ;;  %v7267_v27 = vunpack.i.l.bf16 %v7266_v45  ;;  %v1384_v52 = vsel %vm1368_vm5, %v1367_v6, %v7203_v20  ;;  %v2355_v5 = vsel %vm385_vm0, %v1697_v57, %v7253_v50 }
 0x144   : > { %6733 = vmatmul.mubr.msk.bf16.vlgmr.msra.gmra.mrb[0].mxu1 %vm1492_vm10, %v2479_v46  ;;  %v1399_v46 = vsel %vm551_vm3, %v1383_v47, %v7222_v34  ;;  %v1400_v11 = vsel %vm551_vm3, %v1384_v52, %v7223_v29  ;;  %v2354_v40 = vsel %vm385_vm0, %v1696_v13, %v7252_v17 }
 0x145   : > { %v9718_v14 = vpop.permute.xlu0 %7270  ;;  %v1448_v25 = vsel %vm1435_vm8, %v1431_v36, %v7267_v27  ;;  %v1449_v4 = vsel %vm1435_vm8, %v1432_v60, %v7268_v16  ;;  %v1416_v61 = vsel %vm1401_vm6, %v1399_v46, %v7242_v23  ;;  %v1417_v19 = vsel %vm1401_vm6, %v1400_v11, %v7243_v33  ;;  %v1698_v27 = vld [vmem:[#allocation2 + $0x167] sm:$0xff] }
 0x146   : > { %v9712_v12 = vpop.permute.xlu1 %7275  ;;  %v1433_v9 = vsel %vm1418_vm7, %v1416_v61, %v7262_v7  ;;  %v1434_v1 = vsel %vm1418_vm7, %v1417_v19, %v7263_v51  ;;  %v7273_v18 = vunpack.i.h.bf16 %v9718_v14  ;;  %v7272_v49 = vunpack.i.l.bf16 %v9718_v14 }
 0x147   : > { %v7278_v30 = vunpack.i.h.bf16 %v9712_v12  ;;  %v7277_v8 = vunpack.i.l.bf16 %v9712_v12 }
 0x148   : > { %v2357_v36 = vsel %vm385_vm0, %v1699_v32, %v7273_v18  ;;  %v2356_v60 = vsel %vm385_vm0, %v1698_v27, %v7272_v49 }
 0x149   : > { %v7281_v22 = vpop.permute.xlu0 %7280  ;;  %v2370_v24 = vsel %vm432_vm2, %v2354_v40, %v7277_v8  ;;  %v2371_v12 = vsel %vm432_vm2, %v2355_v5, %v7278_v30 }
 0x14a   : > { %v7286_v21 = vpop.permute.xlu1 %7285  ;;  %v7283_v56 = vunpack.i.h.bf16 %v7281_v22  ;;  %v7282_v45 = vunpack.i.l.bf16 %v7281_v22 }
 0x14b   : > { %v7288_v54 = vunpack.i.h.bf16 %v7286_v21  ;;  %v7287_v38 = vunpack.i.l.bf16 %v7286_v21 }
 0x14c   : > { %v1450_v3 = vsel %vm1435_vm8, %v1433_v9, %v7282_v45  ;;  %v1451_v43 = vsel %vm1435_vm8, %v1434_v1, %v7283_v56 }
 0x14d   : > { %v1465_v15 = vsel %vm1452_vm9, %v1448_v25, %v7287_v38  ;;  %v1466_v28 = vsel %vm1452_vm9, %v1449_v4, %v7288_v54  ;;  %v7291_v26 = vpop.permute.xlu0 %7290 }
 0x14e   : > { %v9740_v37 = vpop.permute.xlu1 %7295  ;;  %v1475_v41 = vpack.c.bf16 %v1466_v28, %v1465_v15  ;;  %v7293_v48 = vunpack.i.h.bf16 %v7291_v26  ;;  %v7292_v21 = vunpack.i.l.bf16 %v7291_v26 }
 0x14f   : > { %v7298_v54 = vunpack.i.h.bf16 %v9740_v37  ;;  %v7297_v38 = vunpack.i.l.bf16 %v9740_v37 }
 0x150   : > { %6722 = vmatprep.mubr.msk.bf16.mxu0 %vm1492_vm10, %v1475_v41  ;;  %v2372_v4 = vsel %vm432_vm2, %v2356_v60, %v7292_v21  ;;  %v2373_v20 = vsel %vm432_vm2, %v2357_v36, %v7293_v48 }
 0x151   : > { %v7301_v39 = vpop.permute.xlu0 %7300  ;;  %v2386_v29 = vsel %vm1368_vm5, %v2370_v24, %v7297_v38  ;;  %v2387_v34 = vsel %vm1368_vm5, %v2371_v12, %v7298_v54  ;;  %v1701_v24 = vld [vmem:[#allocation2 + $0x18f] sm:$0xff] }
 0x152   : > { %v7306_v42 = vpop.permute.xlu1 %7305  ;;  %v7303_v2 = vunpack.i.h.bf16 %v7301_v39  ;;  %v7302_v35 = vunpack.i.l.bf16 %v7301_v39 }
 0x153   : > { %v7308_v63 = vunpack.i.h.bf16 %v7306_v42  ;;  %v7307_v25 = vunpack.i.l.bf16 %v7306_v42 }
 0x154   : > { %v1467_v55 = vsel %vm1452_vm9, %v1450_v3, %v7302_v35  ;;  %v1468_v58 = vsel %vm1452_vm9, %v1451_v43, %v7303_v2 }
 0x155   : > { %v7311_v59 = vpop.permute.xlu0 %7310  ;;  %v1476_v62 = vpack.c.bf16 %v1468_v58, %v1467_v55  ;;  %v2388_v23 = vsel %vm1368_vm5, %v2372_v4, %v7307_v25  ;;  %v2389_v26 = vsel %vm1368_vm5, %v2373_v20, %v7308_v63 }
 0x156   : > { %v9761_v10 = vpop.permute.xlu1 %7315  ;;  %v7313_v44 = vunpack.i.h.bf16 %v7311_v59  ;;  %v7312_v15 = vunpack.i.l.bf16 %v7311_v59 }
 0x157   : > { %6723 = vmatmul.mubr.msk.bf16.gmra.mrb[12].mxu0 %vm1492_vm10, %v1476_v62  ;;  %v7318_v51 = vunpack.i.h.bf16 %v9761_v10  ;;  %v7317_v7 = vunpack.i.l.bf16 %v9761_v10 }
 0x158   : > { %v2402_v56 = vsel %vm551_vm3, %v2386_v29, %v7312_v15  ;;  %v2403_v45 = vsel %vm551_vm3, %v2387_v34, %v7313_v44  ;;  %v1702_v29 = vld [vmem:[#allocation2 + $0x1a7] sm:$0xff]  ;;  %v1703_v34 = vld [vmem:[#allocation2 + $0x1af] sm:$0xff] }
 0x159   : > { %v7321_v53 = vpop.permute.xlu0 %7320  ;;  %v2404_v62 = vsel %vm551_vm3, %v2388_v23, %v7317_v7  ;;  %v2405_v50 = vsel %vm551_vm3, %v2389_v26, %v7318_v51 }
 0x15a   : > { %v9768_v16 = vpop.permute.xlu1 %7325  ;;  %v7323_v41 = vunpack.i.h.bf16 %v7321_v53  ;;  %v7322_v37 = vunpack.i.l.bf16 %v7321_v53 }
 0x15b   : > { %v7328_v46 = vunpack.i.h.bf16 %v9768_v16  ;;  %v7327_v11 = vunpack.i.l.bf16 %v9768_v16 }
 0x15c   : > { %v2418_v61 = vsel %vm1401_vm6, %v2402_v56, %v7322_v37  ;;  %v2419_v19 = vsel %vm1401_vm6, %v2403_v45, %v7323_v41 }
 0x15d   : > { %v7331_v22 = vpop.permute.xlu0 %7330  ;;  %v2420_v18 = vsel %vm1401_vm6, %v2404_v62, %v7327_v11  ;;  %v2421_v49 = vsel %vm1401_vm6, %v2405_v50, %v7328_v46 }
 0x15e   : > { %v7336_v14 = vpop.permute.xlu1 %7335  ;;  %v7333_v31 = vunpack.i.h.bf16 %v7331_v22  ;;  %v7332_v6 = vunpack.i.l.bf16 %v7331_v22  ;;  %v1700_v22 = vld [vmem:[#allocation2 + $0x187] sm:$0xff] }
 0x15f   : > { %v7338_v39 = vunpack.i.h.bf16 %v7336_v14  ;;  %v7337_v9 = vunpack.i.l.bf16 %v7336_v14 }
 0x160   : > { %v2434_v2 = vsel %vm1418_vm7, %v2418_v61, %v7332_v6  ;;  %v2435_v35 = vsel %vm1418_vm7, %v2419_v19, %v7333_v31 }
 0x161   : > { %v7341_v33 = vpop.permute.xlu0 %7340  ;;  %v2436_v32 = vsel %vm1418_vm7, %v2420_v18, %v7337_v9  ;;  %v2437_v53 = vsel %vm1418_vm7, %v2421_v49, %v7338_v39 }
 0x162   : > { %v7346_v28 = vpop.permute.xlu1 %7345  ;;  %v7343_v47 = vunpack.i.h.bf16 %v7341_v33  ;;  %v7342_v52 = vunpack.i.l.bf16 %v7341_v33 }
 0x163   : > { %v7348_v55 = vunpack.i.h.bf16 %v7346_v28  ;;  %v7347_v58 = vunpack.i.l.bf16 %v7346_v28 }
 0x164   : > { %v2450_v10 = vsel %vm1435_vm8, %v2434_v2, %v7342_v52  ;;  %v2451_v59 = vsel %vm1435_vm8, %v2435_v35, %v7343_v47 }
 0x165   : > { %v7351_v1 = vpop.permute.xlu0 %7350  ;;  %v2452_v5 = vsel %vm1435_vm8, %v2436_v32, %v7347_v58  ;;  %v2453_v40 = vsel %vm1435_vm8, %v2437_v53, %v7348_v55 }
 0x166   : > { %v7356_v42 = vpop.permute.xlu1 %7355  ;;  %v7353_v3 = vunpack.i.h.bf16 %v7351_v1  ;;  %v7352_v43 = vunpack.i.l.bf16 %v7351_v1 }
 0x167   : > { %v7358_v54 = vunpack.i.h.bf16 %v7356_v42  ;;  %v7357_v38 = vunpack.i.l.bf16 %v7356_v42 }
 0x168   : > { %v2466_v17 = vsel %vm1452_vm9, %v2450_v10, %v7352_v43  ;;  %v2467_v13 = vsel %vm1452_vm9, %v2451_v59, %v7353_v3 }
 0x169   : > { %v7361_v16 = vpop.permute.xlu0 %7360  ;;  %v2480_v27 = vpack.c.bf16 %v2467_v13, %v2466_v17  ;;  %v2359_v20 = vsel %vm385_vm0, %v1701_v24, %v7358_v54  ;;  %v2358_v44 = vsel %vm385_vm0, %v1700_v22, %v7357_v38 }
 0x16a   : > { %v7366_v57 = vpop.permute.xlu1 %7365  ;;  %v7363_v30 = vunpack.i.h.bf16 %v7361_v16  ;;  %v7362_v8 = vunpack.i.l.bf16 %v7361_v16 }
 0x16b   : > { %6736 = vmatprep.mubr.msk.bf16.mxu1 %vm1492_vm10, %v2480_v27  ;;  %v7368_v15 = vunpack.i.h.bf16 %v7366_v57  ;;  %v7367_v28 = vunpack.i.l.bf16 %v7366_v57 }
 0x16c   : > { %v2468_v48 = vsel %vm1452_vm9, %v2452_v5, %v7362_v8  ;;  %v2469_v21 = vsel %vm1452_vm9, %v2453_v40, %v7363_v30 }
 0x16d   : > { %v2481_v60 = vpack.c.bf16 %v2469_v21, %v2468_v48  ;;  %v7371_v14 = vpop.permute.xlu0 %7370  ;;  %v2361_v7 = vsel %vm385_vm0, %v1703_v34, %v7368_v15  ;;  %v2360_v47 = vsel %vm385_vm0, %v1702_v29, %v7367_v28 }
 0x16e   : > { %v7376_v36 = vpop.permute.xlu1 %7375  ;;  %v7373_v25 = vunpack.i.h.bf16 %v7371_v14  ;;  %v7372_v4 = vunpack.i.l.bf16 %v7371_v14 }
 0x16f   : > { %6737 = vmatmul.mubr.msk.bf16.gmra.mrb[4].mxu1 %vm1492_vm10, %v2481_v60  ;;  %v7378_v6 = vunpack.i.h.bf16 %v7376_v36  ;;  %v7377_v51 = vunpack.i.l.bf16 %v7376_v36 }
 0x170   : > { %v2375_v26 = vsel %vm432_vm2, %v2359_v20, %v7373_v25  ;;  %v2374_v31 = vsel %vm432_vm2, %v2358_v44, %v7372_v4 }
 0x171   : > { %v7381_v63 = vpop.permute.xlu0 %7380  ;;  %v2376_v39 = vsel %vm432_vm2, %v2360_v47, %v7377_v51  ;;  %v2377_v9 = vsel %vm432_vm2, %v2361_v7, %v7378_v6 }
 0x172   : > { %v7386_v12 = vpop.permute.xlu1 %7385  ;;  %v7383_v37 = vunpack.i.h.bf16 %v7381_v63  ;;  %v7382_v33 = vunpack.i.l.bf16 %v7381_v63 }
 0x173   : > { %v7388_v42 = vunpack.i.h.bf16 %v7386_v12  ;;  %v7387_v61 = vunpack.i.l.bf16 %v7386_v12 }
 0x174   : > { %v2390_v46 = vsel %vm1368_vm5, %v2374_v31, %v7382_v33  ;;  %v2391_v11 = vsel %vm1368_vm5, %v2375_v26, %v7383_v37 }
 0x175   : > { %v7391_v23 = vpop.permute.xlu0 %7390  ;;  %v2392_v10 = vsel %vm1368_vm5, %v2376_v39, %v7387_v61  ;;  %v2393_v59 = vsel %vm1368_vm5, %v2377_v9, %v7388_v42  ;;  %v8536_v39 = vld [vmem:[#allocation2 + $0x1ef] sm:$0xff] }
 0x176   : > { %v7396_v41 = vpop.permute.xlu1 %7395  ;;  %v7393_v52 = vunpack.i.h.bf16 %v7391_v23  ;;  %v7392_v56 = vunpack.i.l.bf16 %v7391_v23 }
 0x177   : > { %v7398_v43 = vunpack.i.h.bf16 %v7396_v41  ;;  %v7397_v55 = vunpack.i.l.bf16 %v7396_v41 }
 0x178   : > { %v2406_v35 = vsel %vm551_vm3, %v2390_v46, %v7392_v56  ;;  %v2407_v3 = vsel %vm551_vm3, %v2391_v11, %v7393_v52  ;;  %v1704_v46 = vld [vmem:[#allocation2 + $0x1c7] sm:$0xff]  ;;  %v1705_v11 = vld [vmem:[#allocation2 + $0x1cf] sm:$0xff] }
 0x179   : > { %v7401_v19 = vpop.permute.xlu0 %7400  ;;  %v2408_v16 = vsel %vm551_vm3, %v2392_v10, %v7397_v55  ;;  %v2409_v27 = vsel %vm551_vm3, %v2393_v59, %v7398_v43 }
 0x17a   : > { %v7406_v45 = vpop.permute.xlu1 %7405  ;;  %v7403_v1 = vunpack.i.h.bf16 %v7401_v19  ;;  %v7402_v2 = vunpack.i.l.bf16 %v7401_v19 }
 0x17b   : > { %v7408_v18 = vunpack.i.h.bf16 %v7406_v45  ;;  %v7407_v49 = vunpack.i.l.bf16 %v7406_v45 }
 0x17c   : > { %v2422_v13 = vsel %vm1401_vm6, %v2406_v35, %v7402_v2  ;;  %v2423_v57 = vsel %vm1401_vm6, %v2407_v3, %v7403_v1  ;;  %v8537_v1 = vld [vmem:[#allocation2 + $0x1e7] sm:$0xff] }
 0x17d   : > { %v7411_v62 = vpop.permute.xlu0 %7410  ;;  %v2424_v36 = vsel %vm1401_vm6, %v2408_v16, %v7407_v49  ;;  %v2425_v60 = vsel %vm1401_vm6, %v2409_v27, %v7408_v18 }
 0x17e   : > { %v7416_v58 = vpop.permute.xlu1 %7415  ;;  %v7413_v50 = vunpack.i.h.bf16 %v7411_v62  ;;  %v7412_v17 = vunpack.i.l.bf16 %v7411_v62 }
 0x17f   : > { %v7418_v30 = vunpack.i.h.bf16 %v7416_v58  ;;  %v7417_v8 = vunpack.i.l.bf16 %v7416_v58 }
 0x180   : > { %v2438_v5 = vsel %vm1418_vm7, %v2422_v13, %v7412_v17  ;;  %v2439_v40 = vsel %vm1418_vm7, %v2423_v57, %v7413_v50 }
 0x181   : > { %v7421_v53 = vpop.permute.xlu0 %7420  ;;  %v2440_v63 = vsel %vm1418_vm7, %v2424_v36, %v7417_v8  ;;  %v2441_v25 = vsel %vm1418_vm7, %v2425_v60, %v7418_v30 }
 0x182   : > { %v7426_v32 = vpop.permute.xlu1 %7425  ;;  %v7423_v48 = vunpack.i.h.bf16 %v7421_v53  ;;  %v7422_v21 = vunpack.i.l.bf16 %v7421_v53 }
 0x183   : > { %v7428_v24 = vunpack.i.h.bf16 %v7426_v32  ;;  %v7427_v12 = vunpack.i.l.bf16 %v7426_v32 }
 0x184   : > { %v2454_v54 = vsel %vm1435_vm8, %v2438_v5, %v7422_v21  ;;  %v2455_v38 = vsel %vm1435_vm8, %v2439_v40, %v7423_v48 }
 0x185   : > { %v7431_v22 = vpop.permute.xlu0 %7430  ;;  %v2456_v29 = vsel %vm1435_vm8, %v2440_v63, %v7427_v12  ;;  %v2457_v34 = vsel %vm1435_vm8, %v2441_v25, %v7428_v24 }
 0x186   : > { %v7436_v14 = vpop.permute.xlu1 %7435  ;;  %v7433_v4 = vunpack.i.h.bf16 %v7431_v22  ;;  %v7432_v20 = vunpack.i.l.bf16 %v7431_v22 }
 0x187   : > { %v7438_v56 = vunpack.i.h.bf16 %v7436_v14  ;;  %v7437_v45 = vunpack.i.l.bf16 %v7436_v14 }
 0x188   : > { %v2470_v44 = vsel %vm1452_vm9, %v2454_v54, %v7432_v20  ;;  %v2471_v15 = vsel %vm1452_vm9, %v2455_v38, %v7433_v4 }
 0x189   : > { %v7441_v41 = vpop.permute.xlu0 %7440  ;;  %v2482_v37 = vpack.c.bf16 %v2471_v15, %v2470_v44  ;;  %v2363_v55 = vsel %vm385_vm0, %v1705_v11, %v7438_v56  ;;  %v2362_v58 = vsel %vm385_vm0, %v1704_v46, %v7437_v45  ;;  %v9878_v56 = vld [vmem:[%s11664_s2 + $0x1] ss:$0 sm:$0xff] }
 0x18a   : > { %v7446_v28 = vpop.permute.xlu1 %7445  ;;  %v7443_v33 = vunpack.i.h.bf16 %v7441_v41  ;;  %v7442_v23 = vunpack.i.l.bf16 %v7441_v41 }
 0x18b   : > { %6740 = vmatprep.mubr.msk.bf16.mxu1 %vm1492_vm10, %v2482_v37  ;;  %v7448_v7 = vunpack.i.h.bf16 %v7446_v28  ;;  %v7447_v47 = vunpack.i.l.bf16 %v7446_v28 }
 0x18c   : > { %v2473_v26 = vsel %vm1452_vm9, %v2457_v34, %v7443_v33  ;;  %v2472_v31 = vsel %vm1452_vm9, %v2456_v29, %v7442_v23  ;;  %v9869_v33 = vld [vmem:[%s11664_s2] ss:$0 sm:$0xff] }
 0x18d   : > { %v2483_v51 = vpack.c.bf16 %v2473_v26, %v2472_v31  ;;  %v7451_v52 = vpop.permute.xlu0 %7450  ;;  %v2365_v9 = vsel %vm385_vm0, %v8536_v39, %v7448_v7  ;;  %v2364_v2 = vsel %vm385_vm0, %v8537_v1, %v7447_v47  ;;  %vm3507_vm0 = vcmask 588800  }
 0x18e   : > { %v7456_v6 = vpop.permute.xlu1 %7455  ;;  %v7453_v35 = vunpack.i.h.bf16 %v7451_v52  ;;  %v7452_v3 = vunpack.i.l.bf16 %v7451_v52 }
 0x18f   : > { %6741 = vmatmul.mubr.msk.bf16.gmra.mrb[8].mxu1 %vm1492_vm10, %v2483_v51  ;;  %v7458_v42 = vunpack.i.h.bf16 %v7456_v6  ;;  %v7457_v61 = vunpack.i.l.bf16 %v7456_v6 }
 0x190   : > { %v2379_v18 = vsel %vm432_vm2, %v2363_v55, %v7453_v35  ;;  %v2378_v49 = vsel %vm432_vm2, %v2362_v58, %v7452_v3 }
 0x191   : > { %v7461_v43 = vpop.permute.xlu0 %7460  ;;  %v2380_v62 = vsel %vm432_vm2, %v2364_v2, %v7457_v61  ;;  %v2381_v50 = vsel %vm432_vm2, %v2365_v9, %v7458_v42 }
 0x192   : > { %v7466_v19 = vpop.permute.xlu1 %7465  ;;  %v7463_v17 = vunpack.i.h.bf16 %v7461_v43  ;;  %v7462_v13 = vunpack.i.l.bf16 %v7461_v43 }
 0x193   : > { %v7468_v10 = vunpack.i.h.bf16 %v7466_v19  ;;  %v7467_v59 = vunpack.i.l.bf16 %v7466_v19 }
 0x194   : > { %v2394_v40 = vsel %vm1368_vm5, %v2378_v49, %v7462_v13  ;;  %v2395_v48 = vsel %vm1368_vm5, %v2379_v18, %v7463_v17 }
 0x195   : > { %v7471_v16 = vpop.permute.xlu0 %7470  ;;  %v2396_v53 = vsel %vm1368_vm5, %v2380_v62, %v7467_v59  ;;  %v2397_v30 = vsel %vm1368_vm5, %v2381_v50, %v7468_v10  ;;  %vm5834_vm5 = vcmask 785408  }
 0x196   : > { %v7476_v57 = vpop.permute.xlu1 %7475  ;;  %v7473_v8 = vunpack.i.h.bf16 %v7471_v16  ;;  %v7472_v5 = vunpack.i.l.bf16 %v7471_v16 }
 0x197   : > { %v7478_v27 = vunpack.i.h.bf16 %v7476_v57  ;;  %v7477_v32 = vunpack.i.l.bf16 %v7476_v57 }
 0x198   : > { %v2410_v12 = vsel %vm551_vm3, %v2394_v40, %v7472_v5  ;;  %v2411_v63 = vsel %vm551_vm3, %v2395_v48, %v7473_v8 }
 0x199   : > { %v7481_v36 = vpop.permute.xlu0 %7480  ;;  %v2412_v54 = vsel %vm551_vm3, %v2396_v53, %v7477_v32  ;;  %v2413_v38 = vsel %vm551_vm3, %v2397_v30, %v7478_v27 }
 0x19a   : > { %v7486_v21 = vpop.permute.xlu1 %7485  ;;  %v7483_v22 = vunpack.i.h.bf16 %v7481_v36  ;;  %v7482_v24 = vunpack.i.l.bf16 %v7481_v36 }
 0x19b   : > { %v7488_v60 = vunpack.i.h.bf16 %v7486_v21  ;;  %v7487_v14 = vunpack.i.l.bf16 %v7486_v21 }
 0x19c   : > { %v2426_v29 = vsel %vm1401_vm6, %v2410_v12, %v7482_v24  ;;  %v2427_v34 = vsel %vm1401_vm6, %v2411_v63, %v7483_v22 }
 0x19d   : > { %v2428_v4 = vsel %vm1401_vm6, %v2412_v54, %v7487_v14  ;;  %v2429_v20 = vsel %vm1401_vm6, %v2413_v38, %v7488_v60  ;;  %v7491_v44 = vpop.permute.xlu0 %7490  ;;  %vm5843_vm6 = vcmask 916480  }
 0x19e   : > { %v7496_v25 = vpop.permute.xlu1 %7495  ;;  %v7493_v41 = vunpack.i.h.bf16 %v7491_v44  ;;  %v7492_v37 = vunpack.i.l.bf16 %v7491_v44 }
 0x19f   : > { %v7498_v15 = vunpack.i.h.bf16 %v7496_v25  ;;  %v7497_v28 = vunpack.i.l.bf16 %v7496_v25 }
 0x1a0   : > { %v2442_v6 = vsel %vm1418_vm7, %v2426_v29, %v7492_v37  ;;  %v2443_v51 = vsel %vm1418_vm7, %v2427_v34, %v7493_v41 }
 0x1a1   : > { %v2444_v23 = vsel %vm1418_vm7, %v2428_v4, %v7497_v28  ;;  %v2445_v26 = vsel %vm1418_vm7, %v2429_v20, %v7498_v15  ;;  %v7501_v7 = vpop.permute.xlu0 %7500 }
 0x1a2   : > { %v7506_v31 = vpop.permute.xlu1 %7505  ;;  %v6712_v45 = vpop.f32.mrb[0].mxu0  ;;  %v7503_v46 = vunpack.i.h.bf16 %v7501_v7  ;;  %v7502_v11 = vunpack.i.l.bf16 %v7501_v7 }
 0x1a3   : > { %v7508_v47 = vunpack.i.h.bf16 %v7506_v31  ;;  %v7507_v52 = vunpack.i.l.bf16 %v7506_v31  ;;  %v1624_v42 = vmul.f32 %v6712_v45, %v9869_v33  ;;  %v1555_v61 = vpop.f32.mrb[1].mxu0 }
 0x1a4   : > { %v1622_v39 = vmul.f32 %v9869_v33, %v1555_v61  ;;  %v6713_v9 = vpop.f32.mrb[2].mxu0  ;;  %v2458_v1 = vsel %vm1435_vm8, %v2442_v6, %v7502_v11  ;;  %v2459_v2 = vsel %vm1435_vm8, %v2443_v51, %v7503_v46 }
 0x1a5   : > { %v2460_v19 = vsel %vm1435_vm8, %v2444_v23, %v7507_v52  ;;  %v2461_v35 = vsel %vm1435_vm8, %v2445_v26, %v7508_v47  ;;  %v1644_v43 = vadd.f32 %v9878_v56, %v1624_v42  ;;  %v1625_v55 = vmul.f32 %v6713_v9, %v9869_v33  ;;  %v1558_v58 = vpop.f32.mrb[3].mxu0  ;;  %v7511_v10 = vpop.permute.xlu0 %7510 }
 0x1a6   : > { %v7516_v3 = vpop.permute.xlu1 %7515  ;;  %v1642_v50 = vadd.f32 %v9878_v56, %v1622_v39  ;;  %v1623_v17 = vmul.f32 %v9869_v33, %v1558_v58  ;;  %v7513_v13 = vunpack.i.h.bf16 %v7511_v10  ;;  %v7512_v57 = vunpack.i.l.bf16 %v7511_v10 }
 0x1a7   : > { %v7518_v59 = vunpack.i.h.bf16 %v7516_v3  ;;  %v7517_v62 = vunpack.i.l.bf16 %v7516_v3  ;;  %v1660_v18 = vmax.f32 %v1644_v43, 0.0  ;;  %v1645_v49 = vadd.f32 %v9878_v56, %v1625_v55 }
 0x1a8   : > { %v1658_v32 = vmax.f32 %v1642_v50, 0.0  ;;  %v1643_v53 = vadd.f32 %v9878_v56, %v1623_v17  ;;  %v2474_v30 = vsel %vm1452_vm9, %v2458_v1, %v7512_v57  ;;  %v2475_v8 = vsel %vm1452_vm9, %v2459_v2, %v7513_v13 }
 0x1a9   : > { %v2476_v16 = vsel %vm1452_vm9, %v2460_v19, %v7517_v62  ;;  %v2477_v27 = vsel %vm1452_vm9, %v2461_v35, %v7518_v59  ;;  %1677 = vst.msk [vmem:[#allocation3 + $0x48] sm:$0xff] %vm432_vm2, %v1660_v18  ;;  %v1661_v5 = vmax.f32 %v1645_v49, 0.0  ;;  %v2484_v40 = vpack.c.bf16 %v2475_v8, %v2474_v30 }
 0x1aa   : > { %v2485_v48 = vpack.c.bf16 %v2477_v27, %v2476_v16  ;;  %1675 = vst.msk [vmem:[#allocation3 + $0x28] sm:$0xff] %vm432_vm2, %v1658_v32  ;;  %v1659_v21 = vmax.f32 %v1643_v53, 0.0 }
 0x1ab   : > { %1678 = vst.msk [vmem:[#allocation3 + $0x50] sm:$0xff] %vm432_vm2, %v1661_v5  ;;  %6744 = vmatprep.mubr.msk.bf16.mxu1 %vm1492_vm10, %v2484_v40 }
 0x1ac   : > { %1676 = vst.msk [vmem:[#allocation3 + $0x30] sm:$0xff] %vm432_vm2, %v1659_v21  ;;  %6745 = vmatmul.mubr.msk.bf16.gmra.mrb[12].mxu1 %vm1492_vm10, %v2485_v48 }
 0x1b0   : > { %v9902_v36 = vld [vmem:[#allocation3 + $0x47] sm:$0xff] }
 0x1b1   : > { %v2796_v38 = vld [vmem:[#allocation3 + $0x48] sm:$0xff] }
 0x1b2   : > { %v9904_v60 = vld [vmem:[#allocation3 + $0x4f] sm:$0xff]  ;;  %v9918_v44 = vld [vmem:[#allocation3 + $0x27] sm:$0xff] }
 0x1b3   : > { %v7544_v14 = vpack.i.bf16 %v9904_v60, %v9902_v36  ;;  %v2797_v54 = vld [vmem:[#allocation3 + $0x50] sm:$0xff]  ;;  %v2701_v15 = vld [vmem:[#allocation3 + $0x28] sm:$0xff] }
 0x1b4   : > { %v7549_v22 = vpack.i.bf16 %v2797_v54, %v2796_v38  ;;  %v2812_v24 = vld [vmem:[#allocation3 + $0x49] sm:$0xff]  ;;  %v2813_v12 = vld [vmem:[#allocation3 + $0x51] sm:$0xff] }
 0x1b5   : > { %7545 = vrot.lane.b32.xlu0 %v7544_v14, %s11637_s22  ;;  %7530 = vrot.lane.b32.xlu1 %v7544_v14, %s11663_s12  ;;  %v7554_v63 = vpack.i.bf16 %v2813_v12, %v2812_v24  ;;  %v9914_v25 = vld [vmem:[#allocation3 + $0x2f] sm:$0xff] }
 0x1b6   : > { %v2702_v4 = vld [vmem:[#allocation3 + $0x30] sm:$0xff]  ;;  %v7579_v34 = vpack.i.bf16 %v9914_v25, %v9918_v44 }
 0x1b7   : > { %v7569_v41 = vpack.i.bf16 %v2702_v4, %v2701_v15  ;;  %v2717_v26 = vld [vmem:[#allocation3 + $0x29] sm:$0xff]  ;;  %v2718_v31 = vld [vmem:[#allocation3 + $0x31] sm:$0xff] }
 0x1b8   : > { %v7574_v11 = vpack.i.bf16 %v2718_v31, %v2717_v26 }
 0x1b9   : > { %7550 = vrot.lane.b32.xlu0 %v7549_v22, %s11645_s30  ;;  %7535 = vrot.lane.b32.xlu1 %v7549_v22, %s11639_s24 }
 0x1bd   : > { %7555 = vrot.lane.b32.xlu0 %v7554_v63, %s11643_s14  ;;  %7540 = vrot.lane.b32.xlu1 %v7554_v63, %s11647_s15 }
 0x1c1   : > { %7565 = vrot.lane.b32.xlu0 %v7554_v63, %s11661_s29  ;;  %7560 = vrot.lane.b32.xlu1 %v7549_v22, %s11635_s16  ;;  %v9959_v22 = vpop.permute.xlu0 %7520 }
 0x1c2   : > { %v6716_v20 = vpop.f32.mrb[4].mxu0 }
 0x1c3   : > { %v1628_v28 = vmul.f32 %v6716_v20, %v9869_v33  ;;  %v1571_v29 = vpop.f32.mrb[5].mxu0 }
 0x1c4   : > { %v1626_v37 = vmul.f32 %v9869_v33, %v1571_v29  ;;  %v6717_v23 = vpop.f32.mrb[6].mxu0 }
 0x1c5   : > { %v1648_v6 = vadd.f32 %v9878_v56, %v1628_v28  ;;  %v1629_v51 = vmul.f32 %v6717_v23, %v9869_v33  ;;  %7580 = vrot.lane.b32.xlu0 %v7579_v34, %s11663_s12  ;;  %7570 = vrot.lane.b32.xlu1 %v7569_v41, %s11635_s16  ;;  %v1574_v7 = vpop.f32.mrb[7].mxu0  ;;  %v9965_v63 = vpop.permute.xlu0 %7525 }
 0x1c6   : > { %v1646_v47 = vadd.f32 %v9878_v56, %v1626_v37  ;;  %v1627_v52 = vmul.f32 %v9869_v33, %v1574_v7 }
 0x1c7   : > { %v1664_v45 = vmax.f32 %v1648_v6, 0.0  ;;  %v1649_v46 = vadd.f32 %v9878_v56, %v1629_v51 }
 0x1c8   : > { %v1662_v42 = vmax.f32 %v1646_v47, 0.0  ;;  %v1647_v61 = vadd.f32 %v9878_v56, %v1627_v52 }
 0x1c9   : > { %1681 = vst.msk [vmem:[#allocation3 + $0x88] sm:$0xff] %vm432_vm2, %v1664_v45  ;;  %v1665_v19 = vmax.f32 %v1649_v46, 0.0  ;;  %7585 = vrot.lane.b32.xlu0 %v7569_v41, %s11639_s24  ;;  %7575 = vrot.lane.b32.xlu1 %v7574_v11, %s11661_s29 }
 0x1ca   : > { %1679 = vst.msk [vmem:[#allocation3 + $0x68] sm:$0xff] %vm432_vm2, %v1662_v42  ;;  %v1663_v39 = vmax.f32 %v1647_v61, 0.0 }
 0x1cb   : > { %1682 = vst.msk [vmem:[#allocation3 + $0x90] sm:$0xff] %vm432_vm2, %v1665_v19 }
 0x1cc   : > { %1680 = vst.msk [vmem:[#allocation3 + $0x70] sm:$0xff] %vm432_vm2, %v1663_v39 }
 0x1cd   : > { %7590 = vrot.lane.b32.xlu0 %v7574_v11, %s11647_s15 }
 0x1eb   : > { %v6720_v9 = vpop.f32.mrb[8].mxu0 }
 0x1ec   : > { %v1632_v1 = vmul.f32 %v6720_v9, %v9869_v33  ;;  %v1587_v2 = vpop.f32.mrb[9].mxu0 }
 0x1ed   : > { %v1630_v35 = vmul.f32 %v9869_v33, %v1587_v2  ;;  %v6721_v3 = vpop.f32.mrb[10].mxu0 }
 0x1ee   : > { %v1652_v43 = vadd.f32 %v9878_v56, %v1632_v1  ;;  %v1633_v55 = vmul.f32 %v6721_v3, %v9869_v33  ;;  %v1590_v58 = vpop.f32.mrb[11].mxu0 }
 0x1ef   : > { %v1650_v10 = vadd.f32 %v9878_v56, %v1630_v35  ;;  %v1631_v59 = vmul.f32 %v9869_v33, %v1590_v58 }
 0x1f0   : > { %v1668_v62 = vmax.f32 %v1652_v43, 0.0  ;;  %v1653_v50 = vadd.f32 %v9878_v56, %v1633_v55 }
 0x1f1   : > { %v1666_v17 = vmax.f32 %v1650_v10, 0.0  ;;  %v1651_v13 = vadd.f32 %v9878_v56, %v1631_v59 }
 0x1f2   : > { %1685 = vst.msk [vmem:[#allocation3 + $0xc8] sm:$0xff] %vm432_vm2, %v1668_v62  ;;  %v1669_v57 = vmax.f32 %v1653_v50, 0.0  ;;  %v2683_v62 = vld [vmem:[#allocation3 + $0x7] sm:$0xff]  ;;  %v7523_v50 = vunpack.i.h.bf16 %v9959_v22 }
 0x1f3   : > { %1683 = vst.msk [vmem:[#allocation3 + $0xa8] sm:$0xff] %vm432_vm2, %v1666_v17  ;;  %v1667_v18 = vmax.f32 %v1651_v13, 0.0  ;;  %v7522_v17 = vunpack.i.l.bf16 %v9959_v22 }
 0x1f4   : > { %1686 = vst.msk [vmem:[#allocation3 + $0xd0] sm:$0xff] %vm432_vm2, %v1669_v57 }
 0x1f5   : > { %1684 = vst.msk [vmem:[#allocation3 + $0xb0] sm:$0xff] %vm432_vm2, %v1667_v18  ;;  %v2684_v18 = vld [vmem:[#allocation3 + $0xf] sm:$0xff] }
 0x217   : > { %v6734_v49 = vpop.f32.mrb[0].mxu1 }
 0x218   : > { %v2609_v16 = vmul.f32 %v6734_v49, %v9869_v33  ;;  %v2544_v27 = vpop.f32.mrb[1].mxu1 }
 0x219   : > { %v2607_v32 = vmul.f32 %v9869_v33, %v2544_v27  ;;  %v6735_v53 = vpop.f32.mrb[2].mxu1 }
 0x21a   : > { %v2625_v30 = vadd.f32 %v9878_v56, %v2609_v16  ;;  %v2610_v8 = vmul.f32 %v6735_v53, %v9869_v33  ;;  %v2547_v5 = vpop.f32.mrb[3].mxu1  ;;  %v7527_v53 = vunpack.i.l.bf16 %v9965_v63 }
 0x21b   : > { %v2623_v40 = vadd.f32 %v9878_v56, %v2607_v32  ;;  %v2608_v48 = vmul.f32 %v9869_v33, %v2547_v5  ;;  %v7528_v32 = vunpack.i.h.bf16 %v9965_v63  ;;  %v2784_v63 = vld [vmem:[#allocation3 + $0x87] sm:$0xff] }
 0x21c   : > { %v2641_v21 = vmax.f32 %v2625_v30, 0.0  ;;  %v2626_v14 = vadd.f32 %v9878_v56, %v2610_v8  ;;  %v3341_v30 = vsel %vm432_vm2, %v2684_v18, %v7523_v50  ;;  %v3340_v8 = vsel %vm432_vm2, %v2683_v62, %v7522_v17 }
 0x21d   : > { %v2639_v54 = vmax.f32 %v2623_v40, 0.0  ;;  %v2624_v38 = vadd.f32 %v9878_v56, %v2608_v48  ;;  %v2785_v48 = vld [vmem:[#allocation3 + $0x8f] sm:$0xff]  ;;  %v3357_v22 = vsel %vm551_vm3, %v3341_v30, %v7528_v32  ;;  %v8497_v32 = vld [vmem:[%s11665_s3] sm:$0xff]  }
 0x21e   : > { %2658 = vst.msk [vmem:[#allocation3 + $0x148] sm:$0xff] %vm432_vm2, %v2641_v21  ;;  %v2642_v24 = vmax.f32 %v2626_v14, 0.0  ;;  %6748 = vmatprep.subr.bf16.mxu0 %v8497_v32  ;;  %6774 = vmatprep.subr.bf16.mxu1 %v8497_v32 }
 0x21f   : > { %2656 = vst.msk [vmem:[#allocation3 + $0x128] sm:$0xff] %vm432_vm2, %v2639_v54  ;;  %v2640_v12 = vmax.f32 %v2624_v38, 0.0  ;;  %v2708_v54 = vld [vmem:[#allocation3 + $0x90] sm:$0xff]  ;;  %v3356_v38 = vsel %vm551_vm3, %v3340_v8, %v7527_v53  ;;  %6749 = vmatpush3.bf16.msra.mxu0 %v8497_v32  ;;  %6775 = vmatpush3.bf16.msra.mxu1 %v8497_v32 }
 0x220   : > { %2659 = vst.msk [vmem:[#allocation3 + $0x150] sm:$0xff] %vm432_vm2, %v2642_v24 }
 0x221   : > { %2657 = vst.msk [vmem:[#allocation3 + $0x130] sm:$0xff] %vm432_vm2, %v2640_v12 }
 0x225   : > { %v3757_v4 = vld [vmem:[#allocation3 + $0x147] sm:$0xff] }
 0x226   : > { %v3773_v34 = vld [vmem:[#allocation3 + $0x148] sm:$0xff] }
 0x227   : > { %v3758_v20 = vld [vmem:[#allocation3 + $0x14f] sm:$0xff]  ;;  %v9967_v28 = vpop.permute.xlu0 %7545  ;;  %v9997_v59 = vld [vmem:[#allocation3 + $0x127] sm:$0xff] }
 0x228   : > { %v7594_v15 = vpack.i.bf16 %v3758_v20, %v3757_v4  ;;  %v3774_v29 = vld [vmem:[#allocation3 + $0x150] sm:$0xff]  ;;  %v3725_v10 = vld [vmem:[#allocation3 + $0x128] sm:$0xff]  ;;  %v7674_v4 = vpack.i.bf16 %v2785_v48, %v2784_v63 }
 0x229   : > { %v7599_v37 = vpack.i.bf16 %v3774_v29, %v3773_v34  ;;  %v3789_v31 = vld [vmem:[#allocation3 + $0x149] sm:$0xff]  ;;  %v3790_v6 = vld [vmem:[#allocation3 + $0x151] sm:$0xff] }
 0x22a   : > { %7595 = vrot.lane.b32.xlu0 %v7594_v15, %s11663_s12  ;;  %7610 = vrot.lane.b32.xlu1 %v7594_v15, %s11637_s22  ;;  %v6724_v41 = vpop.f32.mrb[12].mxu0  ;;  %v7604_v11 = vpack.i.bf16 %v3790_v6, %v3789_v31  ;;  %v3726_v55 = vld [vmem:[#allocation3 + $0x130] sm:$0xff]  ;;  %v2707_v20 = vld [vmem:[#allocation3 + $0x88] sm:$0xff]  ;;  %v7548_v15 = vunpack.i.h.bf16 %v9967_v28  ;;  %v7547_v6 = vunpack.i.l.bf16 %v9967_v28 }
 0x22b   : > { %v1636_v23 = vmul.f32 %v6724_v41, %v9869_v33  ;;  %v9972_v26 = vpop.permute.xlu0 %7550  ;;  %v1603_v51 = vpop.f32.mrb[13].mxu0  ;;  %v9991_v58 = vld [vmem:[#allocation3 + $0x12f] sm:$0xff]  ;;  %v10001_v13 = vpack.i.bf16 %v3726_v55, %v3725_v10  ;;  %v10024_v34 = vpack.i.bf16 %v2708_v54, %v2707_v20 }
 0x22c   : > { %v1634_v47 = vmul.f32 %v9869_v33, %v1603_v51  ;;  %v6725_v52 = vpop.f32.mrb[14].mxu0  ;;  %v10005_v57 = vpack.i.bf16 %v9991_v58, %v9997_v59  ;;  %v3741_v16 = vld [vmem:[#allocation3 + $0x129] sm:$0xff]  ;;  %v3742_v27 = vld [vmem:[#allocation3 + $0x131] sm:$0xff]  ;;  %v7553_v51 = vunpack.i.h.bf16 %v9972_v26 }
 0x22d   : > { %v1656_v7 = vadd.f32 %v9878_v56, %v1636_v23  ;;  %v1637_v45 = vmul.f32 %v6725_v52, %v9869_v33  ;;  %v1606_v46 = vpop.f32.mrb[15].mxu0  ;;  %v10015_v5 = vpack.i.bf16 %v3742_v27, %v3741_v16  ;;  %v7552_v52 = vunpack.i.l.bf16 %v9972_v26  ;;  %v2815_v55 = vld [vmem:[#allocation3 + $0x71] sm:$0xff] }
 0x22e   : > { %7600 = vrot.lane.b32.xlu0 %v7599_v37, %s11639_s24  ;;  %7615 = vrot.lane.b32.xlu1 %v7599_v37, %s11645_s30  ;;  %v1654_v61 = vadd.f32 %v9878_v56, %v1634_v47  ;;  %v1635_v19 = vmul.f32 %v9869_v33, %v1606_v46  ;;  %v2770_v48 = vld [vmem:[#allocation3 + $0x91] sm:$0xff] }
 0x22f   : > { %v1672_v42 = vmax.f32 %v1656_v7, 0.0  ;;  %v9981_v39 = vpop.permute.xlu0 %7555  ;;  %v1657_v9 = vadd.f32 %v9878_v56, %v1637_v45  ;;  %v10065_v54 = vld [vmem:[#allocation3 + $0x6f] sm:$0xff] }
 0x230   : > { %v1670_v1 = vmax.f32 %v1654_v61, 0.0  ;;  %v1655_v2 = vadd.f32 %v9878_v56, %v1635_v19  ;;  %v7558_v45 = vunpack.i.h.bf16 %v9981_v39  ;;  %v7557_v61 = vunpack.i.l.bf16 %v9981_v39  ;;  %v2814_v39 = vld [vmem:[#allocation3 + $0x69] sm:$0xff] }
 0x231   : > { %1689 = vst.msk [vmem:[#allocation3 + $0x108] sm:$0xff] %vm432_vm2, %v1672_v42  ;;  %v1673_v35 = vmax.f32 %v1657_v9, 0.0  ;;  %v10059_v8 = vpack.i.bf16 %v2815_v55, %v2814_v39  ;;  %v2752_v20 = vld [vmem:[#allocation3 + $0x70] sm:$0xff] }
 0x232   : > { %7605 = vrot.lane.b32.xlu0 %v7604_v11, %s11647_s15  ;;  %7620 = vrot.lane.b32.xlu1 %v7604_v11, %s11643_s14  ;;  %1687 = vst.msk [vmem:[#allocation3 + $0xe8] sm:$0xff] %vm432_vm2, %v1670_v1  ;;  %v1671_v3 = vmax.f32 %v1655_v2, 0.0 }
 0x233   : > { %v9989_v43 = vpop.permute.xlu0 %7565  ;;  %1690 = vst.msk [vmem:[#allocation3 + $0x110] sm:$0xff] %vm432_vm2, %v1673_v35 }
 0x234   : > { %1688 = vst.msk [vmem:[#allocation3 + $0xf0] sm:$0xff] %vm432_vm2, %v1671_v3 }
 0x236   : > { %7625 = vrot.lane.b32.xlu0 %v7599_v37, %s11635_s16  ;;  %7630 = vrot.lane.b32.xlu1 %v7604_v11, %s11661_s29 }
 0x237   : > { %v7581_v49 = vpop.permute.xlu0 %7580 }
 0x238   : > { %v7583_v21 = vunpack.i.h.bf16 %v7581_v49  ;;  %v7582_v14 = vunpack.i.l.bf16 %v7581_v49 }
 0x23a   : > { %7635 = vrot.lane.b32.xlu0 %v10001_v13, %s11635_s16  ;;  %7645 = vrot.lane.b32.xlu1 %v10005_v57, %s11663_s12  ;;  %v3373_v41 = vsel %vm1418_vm7, %v3357_v22, %v7583_v21  ;;  %v3372_v37 = vsel %vm1418_vm7, %v3356_v38, %v7582_v14 }
 0x23b   : > { %v7586_v40 = vpop.permute.xlu0 %7585 }
 0x23c   : > { %v7588_v24 = vunpack.i.h.bf16 %v7586_v40  ;;  %v7587_v12 = vunpack.i.l.bf16 %v7586_v40  ;;  %v2769_v40 = vld [vmem:[#allocation3 + $0x89] sm:$0xff] }
 0x23e   : > { %7640 = vrot.lane.b32.xlu0 %v10015_v5, %s11661_s29  ;;  %7650 = vrot.lane.b32.xlu1 %v10001_v13, %s11639_s24  ;;  %v3388_v7 = vsel %vm1452_vm9, %v3372_v37, %v7587_v12  ;;  %v3389_v47 = vsel %vm1452_vm9, %v3373_v41, %v7588_v24  ;;  %v7669_v24 = vpack.i.bf16 %v2770_v48, %v2769_v40  ;;  %v10071_v12 = vld [vmem:[#allocation3 + $0x67] sm:$0xff]  ;;  %v2787_v48 = vld [vmem:[#allocation3 + $0xaf] sm:$0xff] }
 0x23f   : > { %v7591_v29 = vpop.permute.xlu0 %7590  ;;  %v7724_v63 = vpack.i.bf16 %v10065_v54, %v10071_v12 }
 0x240   : > { %v7593_v23 = vunpack.i.h.bf16 %v7591_v29  ;;  %v7592_v31 = vunpack.i.l.bf16 %v7591_v29  ;;  %v8499_v29 = vld [vmem:[%s11665_s3 + $0x10] sm:$0xff]  }
 0x242   : > { %7655 = vrot.lane.b32.xlu1 %v10015_v5, %s11647_s15  ;;  %7675 = vrot.lane.b32.xlu0 %v7674_v4, %s11637_s22  ;;  %v3405_v46 = vsel %vm3404_vm12, %v3388_v7, %v7592_v31  ;;  %v3406_v11 = vsel %vm3404_vm12, %v3389_v47, %v7593_v23  ;;  %v6738_v42 = vpop.f32.mrb[4].mxu1  ;;  %v8500_v23 = vld [vmem:[%s11665_s3 + $0x18] sm:$0xff]  }
 0x243   : > { %v3422_v19 = vsel %vm3421_vm13, %v3405_v46, %v7547_v6  ;;  %v3423_v28 = vsel %vm3421_vm13, %v3406_v11, %v7548_v15  ;;  %v2613_v9 = vmul.f32 %v6738_v42, %v9869_v33  ;;  %v2560_v1 = vpop.f32.mrb[5].mxu1  ;;  %v2751_v15 = vld [vmem:[#allocation3 + $0x68] sm:$0xff]  ;;  %v8501_v6 = vld [vmem:[%s11665_s3 + $0x20] ss:$0 sps:$4 sm:$0xff]  }
 0x244   : > { %v2611_v2 = vmul.f32 %v9869_v33, %v2560_v1  ;;  %v6739_v35 = vpop.f32.mrb[6].mxu1  ;;  %v3439_v26 = vsel %vm3438_vm14, %v3422_v19, %v7552_v52  ;;  %v3440_v3 = vsel %vm3438_vm14, %v3423_v28, %v7553_v51  ;;  %v7729_v41 = vpack.i.bf16 %v2752_v20, %v2751_v15  ;;  %v2742_v28 = vld [vmem:[#allocation3 + $0xcf] sm:$0xff] }
 0x245   : > { %v2629_v10 = vadd.f32 %v9878_v56, %v2613_v9  ;;  %v2614_v62 = vmul.f32 %v6739_v35, %v9869_v33  ;;  %v2563_v50 = vpop.f32.mrb[7].mxu1  ;;  %v3456_v17 = vsel %vm3455_vm15, %v3439_v26, %v7557_v61  ;;  %v3457_v18 = vsel %vm3455_vm15, %v3440_v3, %v7558_v45  ;;  %v2741_v3 = vld [vmem:[#allocation3 + $0xc7] sm:$0xff]  ;;  %v2819_v20 = vld [vmem:[#allocation3 + $0xb1] sm:$0xff] }
 0x246   : > { %7660 = vrot.lane.b32.xlu1 %v7674_v4, %s11663_s12  ;;  %7690 = vrot.lane.b32.xlu0 %v10024_v34, %s11635_s16  ;;  %v2627_v49 = vadd.f32 %v9878_v56, %v2611_v2  ;;  %v2612_v16 = vmul.f32 %v9869_v33, %v2563_v50  ;;  %v3472_v27 = vpack.c.bf16 %v3457_v18, %v3456_v17  ;;  %v8498_v4 = vld [vmem:[%s11665_s3 + $0x8] sm:$0xff]   ;;  %v3534_v7 = vsel %vm3532_vm1, %v8501_v6, 0  ;;  %v2758_v17 = vld [vmem:[#allocation3 + $0xd0] sm:$0xff]  ;;  %s6621_s3 = sshll.u32 %s8712_s21, 4 }
 0x247   : > { %v2645_v53 = vmax.f32 %v2629_v10, 0.0  ;;  %v2630_v30 = vadd.f32 %v9878_v56, %v2614_v62  ;;  %6750 = vmatprep.subr.bf16.mxu0 %v8498_v4  ;;  %6776 = vmatprep.subr.bf16.mxu1 %v8498_v4  ;;  %v7769_v10 = vpack.i.bf16 %v2742_v28, %v2741_v3 }
 0x248   : > { %v2643_v21 = vmax.f32 %v2627_v49, 0.0  ;;  %v2628_v14 = vadd.f32 %v9878_v56, %v2612_v16  ;;  %6758 = vmatprep.mubr.msk.bf16.mxu0 %vm3507_vm0, %v3472_v27  ;;  %6751 = vmatpush3.bf16.msra.mxu0 %v8498_v4  ;;  %v2757_v27 = vld [vmem:[#allocation3 + $0xc8] sm:$0xff] }
 0x249   : > { %2662 = vst.msk [vmem:[#allocation3 + $0x188] sm:$0xff] %vm432_vm2, %v2645_v53  ;;  %v2646_v38 = vmax.f32 %v2630_v30, 0.0  ;;  %6777 = vmatpush3.bf16.msra.mxu1 %v8498_v4  ;;  %6752 = vmatprep.subr.bf16.mxu0 %v8499_v29  ;;  %v7774_v53 = vpack.i.bf16 %v2758_v17, %v2757_v27  ;;  %v2773_v30 = vld [vmem:[#allocation3 + $0xc9] sm:$0xff] }
 0x24a   : > { %7665 = vrot.lane.b32.xlu1 %v10024_v34, %s11639_s24  ;;  %7710 = vrot.lane.b32.xlu0 %v10059_v8, %s11643_s14  ;;  %2660 = vst.msk [vmem:[#allocation3 + $0x168] sm:$0xff] %vm432_vm2, %v2643_v21  ;;  %v2644_v22 = vmax.f32 %v2628_v14, 0.0  ;;  %v2786_v21 = vld [vmem:[#allocation3 + $0xa7] sm:$0xff] }
 0x24b   : > { %2663 = vst.msk [vmem:[#allocation3 + $0x190] sm:$0xff] %vm432_vm2, %v2646_v38  ;;  %6778 = vmatprep.subr.bf16.mxu1 %v8499_v29  ;;  %v7804_v14 = vpack.i.bf16 %v2787_v48, %v2786_v21  ;;  %v10140_v38 = vpop.permute.xlu1 %7530  ;;  %v2818_v4 = vld [vmem:[#allocation3 + $0xa9] sm:$0xff] }
 0x24c   : > { %2661 = vst.msk [vmem:[#allocation3 + $0x170] sm:$0xff] %vm432_vm2, %v2644_v22  ;;  %6753 = vmatpush3.bf16.msra.mxu0 %v8499_v29  ;;  %v2803_v22 = vld [vmem:[#allocation3 + $0xb0] sm:$0xff] }
 0x24d   : > { %6779 = vmatpush3.bf16.msra.mxu1 %v8499_v29  ;;  %6754 = vmatprep.subr.bf16.mxu0 %v8500_v23  ;;  %v7814_v29 = vpack.i.bf16 %v2819_v20, %v2818_v4 }
 0x24e   : > { %7670 = vrot.lane.b32.xlu1 %v7669_v24, %s11647_s15  ;;  %7725 = vrot.lane.b32.xlu0 %v7724_v63, %s11663_s12 }
 0x24f   : > { %6780 = vmatprep.subr.bf16.mxu1 %v8500_v23  ;;  %v10147_v15 = vpop.permute.xlu1 %7535 }
 0x250   : > { %6755 = vmatpush3.bf16.msra.mxu0 %v8500_v23  ;;  %v3761_v17 = vld [vmem:[#allocation3 + $0x187] sm:$0xff] }
 0x251   : > { %v3806_v31 = vld [vmem:[#allocation3 + $0x167] sm:$0xff]  ;;  %6781 = vmatpush3.bf16.msra.mxu1 %v8500_v23  ;;  %6820 = vmatprep.subr.msk.bf16.mxu0 %vm3532_vm1, %v8501_v6 }
 0x252   : > { %7680 = vrot.lane.b32.xlu1 %v10024_v34, %s11645_s30  ;;  %7730 = vrot.lane.b32.xlu0 %v7729_v41, %s11639_s24  ;;  %s11666_s24 = smov 48   ;;  %v3822_v47 = vld [vmem:[#allocation3 + $0x168] sm:$0xff]  ;;  %v3794_v20 = vld [vmem:[#allocation3 + $0x191] sm:$0xff] }
 0x253   : > { %v3807_v37 = vld [vmem:[#allocation3 + $0x16f] sm:$0xff]  ;;  %6821 = vmatprep.subr.msk.bf16.mxu1 %vm3532_vm1, %v8501_v6 }
 0x254   : > { %v7739_v34 = vpack.i.bf16 %v3807_v37, %v3806_v31  ;;  %v3823_v51 = vld [vmem:[#allocation3 + $0x170] sm:$0xff]  ;;  %6757 = vmatpush3.bf16.msra.mxu0 %v3534_v7 }
 0x255   : > { %v10102_v52 = vpack.i.bf16 %v3823_v51, %v3822_v47  ;;  %6783 = vmatpush3.bf16.msra.mxu1 %v3534_v7  ;;  %v3745_v45 = vld [vmem:[#allocation3 + $0x169] sm:$0xff]  ;;  %v3746_v46 = vld [vmem:[#allocation3 + $0x171] sm:$0xff] }
 0x256   : > { %7685 = vrot.lane.b32.xlu1 %v7669_v24, %s11643_s14  ;;  %7735 = vrot.lane.b32.xlu0 %v10059_v8, %s11647_s15  ;;  %v10110_v42 = vpack.i.bf16 %v3746_v46, %v3745_v45  ;;  %v10157_v46 = vpop.permute.xlu1 %7540  ;;  %v3793_v4 = vld [vmem:[#allocation3 + $0x189] sm:$0xff] }
 0x25a   : > { %7695 = vrot.lane.b32.xlu1 %v7669_v24, %s11661_s29  ;;  %7740 = vrot.lane.b32.xlu0 %v7739_v34, %s11666_s24  ;;  %v2802_v24 = vld [vmem:[#allocation3 + $0xa8] sm:$0xff]  ;;  %v10169_v3 = vpop.permute.xlu1 %7560 }
 0x25e   : > { %7700 = vrot.lane.b32.xlu1 %v7724_v63, %s11666_s24  ;;  %7745 = vrot.lane.b32.xlu0 %v10102_v52, %s11645_s30  ;;  %v7809_v63 = vpack.i.bf16 %v2803_v22, %v2802_v24  ;;  %v10175_v27 = vpop.permute.xlu1 %7570 }
 0x262   : > { %7705 = vrot.lane.b32.xlu1 %v7729_v41, %s11645_s30  ;;  %7755 = vrot.lane.b32.xlu0 %v10102_v52, %s11667_s25  ;;  %v6742_v11 = vpop.f32.mrb[8].mxu1  ;;  %v10185_v48 = vpop.permute.xlu1 %7575 }
 0x263   : > { %v2617_v61 = vmul.f32 %v6742_v11, %v9869_v33  ;;  %v2576_v19 = vpop.f32.mrb[9].mxu1  ;;  %v2791_v11 = vld [vmem:[#allocation3 + $0xef] sm:$0xff] }
 0x264   : > { %v2615_v9 = vmul.f32 %v9869_v33, %v2576_v19  ;;  %v6743_v1 = vpop.f32.mrb[10].mxu1 }
 0x265   : > { %v2633_v2 = vadd.f32 %v9878_v56, %v2617_v61  ;;  %v2618_v35 = vmul.f32 %v6743_v1, %v9869_v33  ;;  %v2579_v26 = vpop.f32.mrb[11].mxu1  ;;  %v2790_v1 = vld [vmem:[#allocation3 + $0xe7] sm:$0xff] }
 0x266   : > { %7715 = vrot.lane.b32.xlu1 %v7729_v41, %s11667_s25  ;;  %7760 = vrot.lane.b32.xlu0 %v10110_v42, %s11661_s29  ;;  %v2631_v39 = vadd.f32 %v9878_v56, %v2615_v9  ;;  %v2616_v55 = vmul.f32 %v9869_v33, %v2579_v26  ;;  %v2807_v26 = vld [vmem:[#allocation3 + $0xf0] sm:$0xff] }
 0x267   : > { %v2649_v62 = vmax.f32 %v2633_v2, 0.0  ;;  %v2634_v50 = vadd.f32 %v9878_v56, %v2618_v35  ;;  %v7854_v35 = vpack.i.bf16 %v2791_v11, %v2790_v1 }
 0x268   : > { %v2647_v18 = vmax.f32 %v2631_v39, 0.0  ;;  %v2632_v49 = vadd.f32 %v9878_v56, %v2616_v55  ;;  %v3724_v55 = vld [vmem:[#allocation3 + $0x110] sm:$0xff] }
 0x269   : > { %2666 = vst.msk [vmem:[#allocation3 + $0x1c8] sm:$0xff] %vm432_vm2, %v2649_v62  ;;  %v2650_v16 = vmax.f32 %v2634_v50, 0.0  ;;  %v3723_v62 = vld [vmem:[#allocation3 + $0x108] sm:$0xff] }
 0x26a   : > { %7720 = vrot.lane.b32.xlu1 %v10059_v8, %s11661_s29  ;;  %7770 = vrot.lane.b32.xlu0 %v7769_v10, %s11663_s12  ;;  %2664 = vst.msk [vmem:[#allocation3 + $0x1a8] sm:$0xff] %vm432_vm2, %v2647_v18  ;;  %v2648_v32 = vmax.f32 %v2632_v49, 0.0  ;;  %v2774_v8 = vld [vmem:[#allocation3 + $0xd1] sm:$0xff]  ;;  %v10173_v50 = vpack.i.bf16 %v3724_v55, %v3723_v62  ;;  %v3739_v49 = vld [vmem:[#allocation3 + $0x109] sm:$0xff] }
 0x26b   : > { %2667 = vst.msk [vmem:[#allocation3 + $0x1d0] sm:$0xff] %vm432_vm2, %v2650_v16  ;;  %v10133_v40 = vpack.i.bf16 %v2774_v8, %v2773_v30  ;;  %v3740_v16 = vld [vmem:[#allocation3 + $0x111] sm:$0xff] }
 0x26c   : > { %2665 = vst.msk [vmem:[#allocation3 + $0x1b0] sm:$0xff] %vm432_vm2, %v2648_v32  ;;  %v10180_v32 = vpack.i.bf16 %v3740_v16, %v3739_v49  ;;  %v2823_v30 = vld [vmem:[#allocation3 + $0xf1] sm:$0xff]  ;;  %v7562_v49 = vunpack.i.l.bf16 %v10169_v3 }
 0x26d   : > { %v3778_v8 = vld [vmem:[#allocation3 + $0x190] sm:$0xff] }
 0x26e   : > { %7750 = vrot.lane.b32.xlu1 %v10110_v42, %s11643_s14  ;;  %7775 = vrot.lane.b32.xlu0 %v7774_v53, %s11668_s13 }
 0x272   : > { %7765 = vrot.lane.b32.xlu1 %v7739_v34, %s11663_s12  ;;  %7780 = vrot.lane.b32.xlu0 %v10133_v40, %s11647_s15 }
 0x273   : > { %v3842_v62 = vld [vmem:[#allocation3 + $0x1a9] sm:$0xff] }
 0x276   : > { %7785 = vrot.lane.b32.xlu1 %v7769_v10, %s11666_s24  ;;  %7800 = vrot.lane.b32.xlu0 %v7774_v53, %s11667_s25  ;;  %v3762_v10 = vld [vmem:[#allocation3 + $0x18f] sm:$0xff] }
 0x277   : > { %v7864_v18 = vpack.i.bf16 %v3762_v10, %v3761_v17  ;;  %v3843_v17 = vld [vmem:[#allocation3 + $0x1b1] sm:$0xff] }
 0x27a   : > { %7790 = vrot.lane.b32.xlu1 %v7774_v53, %s11645_s30  ;;  %7805 = vrot.lane.b32.xlu0 %v7804_v14, %s11666_s24  ;;  %v2822_v53 = vld [vmem:[#allocation3 + $0xe9] sm:$0xff] }
 0x27b   : > { %v7869_v21 = vpack.i.bf16 %v2823_v30, %v2822_v53  ;;  %v10274_v53 = vpack.i.bf16 %v3843_v17, %v3842_v62 }
 0x27e   : > { %7795 = vrot.lane.b32.xlu1 %v10133_v40, %s11643_s14  ;;  %7810 = vrot.lane.b32.xlu0 %v7809_v63, %s11645_s30 }
 0x27f   : > { %v6746_v41 = vpop.f32.mrb[12].mxu1 }
 0x280   : > { %v2621_v37 = vmul.f32 %v6746_v41, %v9869_v33  ;;  %v2592_v23 = vpop.f32.mrb[13].mxu1 }
 0x281   : > { %v2619_v31 = vmul.f32 %v9869_v33, %v2592_v23  ;;  %v6747_v34 = vpop.f32.mrb[14].mxu1  ;;  %v10204_v23 = vld [vmem:[#allocation3 + $0x10f] sm:$0xff] }
 0x282   : > { %7815 = vrot.lane.b32.xlu1 %v7814_v29, %s11643_s14  ;;  %7820 = vrot.lane.b32.xlu0 %v7809_v63, %s11667_s25  ;;  %v2637_v6 = vadd.f32 %v9878_v56, %v2621_v37  ;;  %v2622_v51 = vmul.f32 %v6747_v34, %v9869_v33  ;;  %v2595_v7 = vpop.f32.mrb[15].mxu1  ;;  %v10200_v37 = vpack.i.bf16 %v3794_v20, %v3793_v4  ;;  %v10212_v34 = vld [vmem:[#allocation3 + $0x107] sm:$0xff] }
 0x283   : > { %v2635_v47 = vadd.f32 %v9878_v56, %v2619_v31  ;;  %v2620_v45 = vmul.f32 %v9869_v33, %v2595_v7  ;;  %v3811_v7 = vld [vmem:[#allocation3 + $0x1af] sm:$0xff]  ;;  %v3344_v4 = vsel %vm432_vm2, %v9902_v36, %v7562_v49 }
 0x284   : > { %v2653_v61 = vmax.f32 %v2637_v6, 0.0  ;;  %v2638_v19 = vadd.f32 %v9878_v56, %v2622_v51  ;;  %v7919_v6 = vpack.i.bf16 %v10204_v23, %v10212_v34  ;;  %v3810_v51 = vld [vmem:[#allocation3 + $0x1a7] sm:$0xff] }
 0x285   : > { %v2651_v28 = vmax.f32 %v2635_v47, 0.0  ;;  %v2636_v9 = vadd.f32 %v9878_v56, %v2620_v45  ;;  %v2806_v56 = vld [vmem:[#allocation3 + $0xe8] sm:$0xff]  ;;  %v10223_v45 = vpack.i.bf16 %v3811_v7, %v3810_v51 }
 0x286   : > { %7830 = vrot.lane.b32.xlu1 %v7804_v14, %s11663_s12  ;;  %7825 = vrot.lane.b32.xlu0 %v7814_v29, %s11661_s29  ;;  %2670 = vst.msk [vmem:[#allocation3 + $0x208] sm:$0xff] %vm432_vm2, %v2653_v61  ;;  %v2654_v2 = vmax.f32 %v2638_v19, 0.0  ;;  %v7859_v39 = vpack.i.bf16 %v2807_v26, %v2806_v56  ;;  %v3777_v14 = vld [vmem:[#allocation3 + $0x188] sm:$0xff]  ;;  %v3827_v19 = vld [vmem:[#allocation3 + $0x1b0] sm:$0xff] }
 0x287   : > { %2668 = vst.msk [vmem:[#allocation3 + $0x1e8] sm:$0xff] %vm432_vm2, %v2651_v28  ;;  %v2652_v33 = vmax.f32 %v2636_v9, 0.0  ;;  %v7889_v22 = vpack.i.bf16 %v3778_v8, %v3777_v14  ;;  %v7572_v8 = vunpack.i.l.bf16 %v10175_v27  ;;  %v7567_v14 = vunpack.i.l.bf16 %v9989_v43 }
 0x288   : > { %2671 = vst.msk [vmem:[#allocation3 + $0x210] sm:$0xff] %vm432_vm2, %v2654_v2 }
 0x289   : > { %2669 = vst.msk [vmem:[#allocation3 + $0x1f0] sm:$0xff] %vm432_vm2, %v2652_v33 }
 0x28a   : > { %7835 = vrot.lane.b32.xlu1 %v7809_v63, %s11668_s13  ;;  %7855 = vrot.lane.b32.xlu0 %v7854_v35, %s11666_s24 }
 0x28e   : > { %7840 = vrot.lane.b32.xlu1 %v7814_v29, %s11647_s15  ;;  %7860 = vrot.lane.b32.xlu0 %v7859_v39, %s11645_s30 }
 0x292   : > { %7845 = vrot.lane.b32.xlu1 %v10173_v50, %s11667_s25  ;;  %7865 = vrot.lane.b32.xlu0 %v7864_v18, %s11663_s12 }
 0x296   : > { %7850 = vrot.lane.b32.xlu1 %v10180_v32, %s11661_s29  ;;  %7880 = vrot.lane.b32.xlu0 %v7859_v39, %s11667_s25 }
 0x29a   : > { %7870 = vrot.lane.b32.xlu1 %v7869_v21, %s11643_s14  ;;  %7890 = vrot.lane.b32.xlu0 %v7889_v22, %s11668_s13 }
 0x29c   : > { %v10189_v24 = vpop.permute.xlu0 %7595  ;;  %v10191_v63 = vpop.permute.xlu1 %7610 }
 0x29e   : > { %7875 = vrot.lane.b32.xlu1 %v10102_v52, %s11668_s13  ;;  %7900 = vrot.lane.b32.xlu0 %v7869_v21, %s11661_s29 }
 0x2a0   : > { %v10196_v29 = vpop.permute.xlu0 %7600  ;;  %v10198_v41 = vpop.permute.xlu1 %7615 }
 0x2a2   : > { %7885 = vrot.lane.b32.xlu1 %v10133_v40, %s11661_s29  ;;  %7910 = vrot.lane.b32.xlu0 %v10200_v37, %s11647_s15 }
 0x2a4   : > { %v10208_v31 = vpop.permute.xlu0 %7605  ;;  %v10210_v52 = vpop.permute.xlu1 %7620 }
 0x2a6   : > { %7895 = vrot.lane.b32.xlu1 %v10110_v42, %s11647_s15  ;;  %7920 = vrot.lane.b32.xlu0 %v7919_v6, %s11663_s12  ;;  %v3826_v42 = vld [vmem:[#allocation3 + $0x1a8] sm:$0xff] }
 0x2a7   : > { %v10239_v1 = vpack.i.bf16 %v3827_v19, %v3826_v42  ;;  %v3342_v19 = vsel %vm432_vm2, %v9918_v44, %v7572_v8  ;;  %v7533_v44 = vunpack.i.h.bf16 %v10140_v38 }
 0x2a8   : > { %v10219_v40 = vpop.permute.xlu0 %7625  ;;  %v10221_v47 = vpop.permute.xlu1 %7630 }
 0x2aa   : > { %7905 = vrot.lane.b32.xlu1 %v7854_v35, %s11663_s12  ;;  %7930 = vrot.lane.b32.xlu0 %v10223_v45, %s11666_s24 }
 0x2ac   : > { %v10228_v11 = vpop.permute.xlu0 %7635  ;;  %v10230_v61 = vpop.permute.xlu1 %7645 }
 0x2ae   : > { %7915 = vrot.lane.b32.xlu1 %v7864_v18, %s11666_s24  ;;  %7940 = vrot.lane.b32.xlu0 %v10173_v50, %s11668_s13  ;;  %v7563_v18 = vunpack.i.h.bf16 %v10169_v3  ;;  %v7577_v3 = vunpack.i.l.bf16 %v10185_v48 }
 0x2b0   : > { %v10235_v28 = vpop.permute.xlu0 %7640  ;;  %v10237_v9 = vpop.permute.xlu1 %7650  ;;  %v3358_v36 = vsel %vm551_vm3, %v3342_v19, %v7577_v3  ;;  %v7538_v3 = vunpack.i.h.bf16 %v10147_v15 }
 0x2b2   : > { %7925 = vrot.lane.b32.xlu1 %v7859_v39, %s11668_s13  ;;  %7950 = vrot.lane.b32.xlu0 %v10239_v1, %s11645_s30 }
 0x2b4   : > { %v10244_v2 = vpop.permute.xlu1 %7655  ;;  %v10246_v35 = vpop.permute.xlu0 %7675 }
 0x2b6   : > { %7935 = vrot.lane.b32.xlu1 %v7889_v22, %s11645_s30  ;;  %7960 = vrot.lane.b32.xlu0 %v10180_v32, %s11647_s15 }
 0x2b8   : > { %v10251_v33 = vpop.permute.xlu1 %7660  ;;  %v10253_v26 = vpop.permute.xlu0 %7690 }
 0x2ba   : > { %7945 = vrot.lane.b32.xlu1 %v7869_v21, %s11647_s15  ;;  %7970 = vrot.lane.b32.xlu0 %v7889_v22, %s11667_s25  ;;  %v7568_v21 = vunpack.i.h.bf16 %v9989_v43  ;;  %v7578_v22 = vunpack.i.h.bf16 %v10185_v48 }
 0x2bc   : > { %v10257_v56 = vpop.permute.xlu1 %7665  ;;  %v10259_v39 = vpop.permute.xlu0 %7710 }
 0x2be   : > { %7955 = vrot.lane.b32.xlu1 %v10200_v37, %s11643_s14  ;;  %7980 = vrot.lane.b32.xlu0 %v10005_v57, %s11666_s24  ;;  %v7573_v57 = vunpack.i.h.bf16 %v10175_v27  ;;  %v3345_v27 = vsel %vm432_vm2, %v9904_v60, %v7563_v18 }
 0x2bf   : > { %v3361_v17 = vsel %vm551_vm3, %v3345_v27, %v7568_v21  ;;  %v7678_v27 = vunpack.i.h.bf16 %v10246_v35 }
 0x2c0   : > { %v10265_v55 = vpop.permute.xlu1 %7670  ;;  %v7726_v10 = vpop.permute.xlu0 %7725  ;;  %v3343_v48 = vsel %vm432_vm2, %v9914_v25, %v7573_v57  ;;  %v7532_v25 = vunpack.i.l.bf16 %v10140_v38 }
 0x2c1   : > { %v7728_v20 = vunpack.i.h.bf16 %v7726_v10  ;;  %v3359_v60 = vsel %vm551_vm3, %v3343_v48, %v7578_v22 }
 0x2c2   : > { %7965 = vrot.lane.b32.xlu1 %v7919_v6, %s11666_s24  ;;  %7990 = vrot.lane.b32.xlu0 %v10239_v1, %s11667_s25  ;;  %v7727_v6 = vunpack.i.l.bf16 %v7726_v10  ;;  %v3360_v10 = vsel %vm551_vm3, %v3344_v4, %v7567_v14  ;;  %v3374_v21 = vsel %vm1418_vm7, %v3358_v36, %v7532_v25  ;;  %v3375_v14 = vsel %vm1418_vm7, %v3359_v60, %v7533_v44 }
 0x2c3   : > { %v3377_v18 = vsel %vm1418_vm7, %v3361_v17, %v7728_v20  ;;  %v7537_v4 = vunpack.i.l.bf16 %v10147_v15  ;;  %v7677_v20 = vunpack.i.l.bf16 %v10246_v35  ;;  %v3391_v15 = vsel %vm1452_vm9, %v3375_v14, %v7538_v3 }
 0x2c4   : > { %v10272_v16 = vpop.permute.xlu1 %7680  ;;  %v7731_v30 = vpop.permute.xlu0 %7730  ;;  %v3376_v49 = vsel %vm1418_vm7, %v3360_v10, %v7727_v6  ;;  %v7543_v6 = vunpack.i.h.bf16 %v10157_v46 }
 0x2c5   : > { %v7733_v7 = vunpack.i.h.bf16 %v7731_v30  ;;  %v7732_v42 = vunpack.i.l.bf16 %v7731_v30  ;;  %v3390_v19 = vsel %vm1452_vm9, %v3374_v21, %v7537_v4  ;;  %v7683_v35 = vunpack.i.h.bf16 %v10272_v16 }
 0x2c6   : > { %7975 = vrot.lane.b32.xlu1 %v10274_v53, %s11643_s14  ;;  %8000 = vrot.lane.b32.xlu0 %v10001_v13, %s11645_s30  ;;  %v3408_v36 = vsel %vm3404_vm12, %v3391_v15, %v7543_v6  ;;  %v3797_v15 = vld [vmem:[#allocation3 + $0x1c9] sm:$0xff] }
 0x2c7   : > { %v3392_v30 = vsel %vm1452_vm9, %v3376_v49, %v7732_v42  ;;  %v3393_v57 = vsel %vm1452_vm9, %v3377_v18, %v7733_v7  ;;  %v7542_v7 = vunpack.i.l.bf16 %v10157_v46 }
 0x2c8   : > { %v10290_v51 = vpop.permute.xlu1 %7685  ;;  %v7736_v43 = vpop.permute.xlu0 %7735 }
 0x2c9   : > { %v7738_v13 = vunpack.i.h.bf16 %v7736_v43  ;;  %v7737_v62 = vunpack.i.l.bf16 %v7736_v43  ;;  %v3407_v46 = vsel %vm3404_vm12, %v3390_v19, %v7542_v7  ;;  %v7688_v44 = vunpack.i.h.bf16 %v10290_v51 }
 0x2ca   : > { %7985 = vrot.lane.b32.xlu1 %v10173_v50, %s11645_s30  ;;  %8010 = vrot.lane.b32.xlu0 %v10274_v53, %s11661_s29 }
 0x2cb   : > { %v3409_v22 = vsel %vm3404_vm12, %v3392_v30, %v7737_v62  ;;  %v3410_v38 = vsel %vm3404_vm12, %v3393_v57, %v7738_v13  ;;  %v7682_v13 = vunpack.i.l.bf16 %v10272_v16  ;;  %v7687_v16 = vunpack.i.l.bf16 %v10290_v51  ;;  %v3766_v30 = vld [vmem:[#allocation3 + $0x1cf] sm:$0xff] }
 0x2cc   : > { %v10308_v50 = vpop.permute.xlu1 %7695  ;;  %v10312_v8 = vpop.permute.xlu0 %7740  ;;  %v3426_v43 = vsel %vm3421_vm13, %v3409_v22, %v7677_v20  ;;  %v7712_v57 = vunpack.i.l.bf16 %v10259_v39 }
 0x2cd   : > { %v3443_v10 = vsel %vm3438_vm14, %v3426_v43, %v7682_v13 }
 0x2ce   : > { %7995 = vrot.lane.b32.xlu1 %v10200_v37, %s11661_s29  ;;  %8020 = vrot.lane.b32.xlu0 %v10015_v5, %s11643_s14  ;;  %v3427_v37 = vsel %vm3421_vm13, %v3410_v38, %v7678_v27  ;;  %v3460_v38 = vsel %vm3455_vm15, %v3443_v10, %v7687_v16  ;;  %v3847_v10 = vld [vmem:[#allocation3 + $0x1f1] sm:$0xff]  ;;  %v3769_v16 = vld [vmem:[#allocation3 + $0x207] sm:$0xff] }
 0x2cf   : > { %v3444_v17 = vsel %vm3438_vm14, %v3427_v37, %v7683_v35  ;;  %v3798_v35 = vld [vmem:[#allocation3 + $0x1d1] sm:$0xff] }
 0x2d0   : > { %v7701_v42 = vpop.permute.xlu1 %7700  ;;  %v10332_v48 = vpop.permute.xlu0 %7745  ;;  %v3461_v3 = vsel %vm3455_vm15, %v3444_v17, %v7688_v44 }
 0x2d1   : > { %v7703_v5 = vunpack.i.h.bf16 %v7701_v42  ;;  %v7702_v62 = vunpack.i.l.bf16 %v7701_v42  ;;  %v3782_v42 = vld [vmem:[#allocation3 + $0x1d0] sm:$0xff]  ;;  %v3474_v43 = vpack.c.bf16 %v3461_v3, %v3460_v38 }
 0x2d2   : > { %8005 = vrot.lane.b32.xlu1 %v10180_v32, %s11643_s14  ;;  %8030 = vrot.lane.b32.xlu0 %v10239_v1, %s11668_s13  ;;  %v3765_v32 = vld [vmem:[#allocation3 + $0x1c7] sm:$0xff]  ;;  %v7713_v1 = vunpack.i.h.bf16 %v10259_v39  ;;  %v3770_v3 = vld [vmem:[#allocation3 + $0x20f] sm:$0xff] }
 0x2d3   : > { %v3425_v21 = vsel %vm3421_vm13, %v3408_v36, %v7703_v5  ;;  %v3424_v14 = vsel %vm3421_vm13, %v3407_v46, %v7702_v62  ;;  %v8024_v20 = vpack.i.bf16 %v3766_v30, %v3765_v32  ;;  %v8044_v5 = vpack.i.bf16 %v3798_v35, %v3797_v15  ;;  %v3814_v46 = vld [vmem:[#allocation3 + $0x1e7] sm:$0xff]  ;;  %v3815_v36 = vld [vmem:[#allocation3 + $0x1ef] sm:$0xff] }
 0x2d4   : > { %v7706_v60 = vpop.permute.xlu1 %7705  ;;  %v10346_v49 = vpop.permute.xlu0 %7755  ;;  %v8054_v44 = vpack.i.bf16 %v3815_v36, %v3814_v46  ;;  %v10388_v32 = vld [vmem:[#allocation3 + $0x228] sm:$0xff]  ;;  %v10390_v30 = vld [vmem:[#allocation3 + $0x230] sm:$0xff] }
 0x2d5   : > { %v7708_v25 = vunpack.i.h.bf16 %v7706_v60  ;;  %v7707_v18 = vunpack.i.l.bf16 %v7706_v60  ;;  %v3846_v60 = vld [vmem:[#allocation3 + $0x1e9] sm:$0xff] }
 0x2d6   : > { %8015 = vrot.lane.b32.xlu1 %v10223_v45, %s11663_s12  ;;  %8040 = vrot.lane.b32.xlu0 %v10274_v53, %s11647_s15  ;;  %v3781_v45 = vld [vmem:[#allocation3 + $0x1c8] sm:$0xff] }
 0x2d7   : > { %v3441_v22 = vsel %vm3438_vm14, %v3424_v14, %v7707_v18  ;;  %v3442_v51 = vsel %vm3438_vm14, %v3425_v21, %v7708_v25  ;;  %v10368_v37 = vpack.i.bf16 %v3782_v42, %v3781_v45  ;;  %v10384_v25 = vld [vmem:[#allocation3 + $0x227] sm:$0xff]  ;;  %v10386_v18 = vld [vmem:[#allocation3 + $0x22f] sm:$0xff] }
 0x2d8   : > { %v3458_v39 = vsel %vm3455_vm15, %v3441_v22, %v7712_v57  ;;  %v3459_v4 = vsel %vm3455_vm15, %v3442_v51, %v7713_v1  ;;  %v7716_v27 = vpop.permute.xlu1 %7715  ;;  %v10362_v7 = vpop.permute.xlu0 %7760  ;;  %v10394_v57 = vpack.i.bf16 %v3847_v10, %v3846_v60  ;;  %v3830_v21 = vld [vmem:[#allocation3 + $0x1e8] sm:$0xff]  ;;  %v3831_v14 = vld [vmem:[#allocation3 + $0x1f0] sm:$0xff] }
 0x2d9   : > { %v3473_v6 = vpack.c.bf16 %v3459_v4, %v3458_v39  ;;  %v3785_v22 = vld [vmem:[#allocation3 + $0x208] sm:$0xff]  ;;  %v7718_v51 = vunpack.i.h.bf16 %v7716_v27  ;;  %v7717_v38 = vunpack.i.l.bf16 %v7716_v27  ;;  %v3786_v39 = vld [vmem:[#allocation3 + $0x210] sm:$0xff]  ;;  %v8064_v35 = vpack.i.bf16 %v3831_v14, %v3830_v21 }
 0x2da   : > { %8025 = vrot.lane.b32.xlu1 %v8024_v20, %s11663_s12  ;;  %8050 = vrot.lane.b32.xlu0 %v8024_v20, %s11666_s24  ;;  %v10397_v4 = vld [vmem:[#allocation3 + $0x229] sm:$0xff]  ;;  %v3802_v42 = vld [vmem:[#allocation3 + $0x211] sm:$0xff]  ;;  %v10407_v27 = vpack.i.bf16 %v3770_v3, %v3769_v16  ;;  %v10409_v36 = vpack.i.bf16 %v3786_v39, %v3785_v22  ;;  %v7598_v14 = vunpack.i.h.bf16 %v10189_v24  ;;  %v7637_v22 = vunpack.i.l.bf16 %v10228_v11 }
 0x2db   : > { %6759 = vmatmul.mubr.msk.bf16.vlgmr.msra.gmra.mrb[16].mxu0 %vm3507_vm0, %v3473_v6  ;;  %v3801_v45 = vld [vmem:[#allocation3 + $0x209] sm:$0xff]  ;;  %v3346_v10 = vsel %vm432_vm2, %v10071_v12, %v7717_v38  ;;  %v3347_v0 = vsel %vm432_vm2, %v10065_v54, %v7718_v51  ;;  %v7638_v12 = vunpack.i.h.bf16 %v10228_v11  ;;  %v7642_v54 = vunpack.i.l.bf16 %v10235_v28 }
 0x2dc   : > { %6762 = vmatprep.mubr.msk.bf16.mxu0 %vm3507_vm0, %v3474_v43  ;;  %v7721_v53 = vpop.permute.xlu1 %7720  ;;  %v10370_v19 = vpop.permute.xlu0 %7770  ;;  %v10401_v43 = vld [vmem:[#allocation3 + $0x231] sm:$0xff]  ;;  %v10420_v21 = vpack.i.bf16 %v3802_v42, %v3801_v45  ;;  %v7663_v51 = vunpack.i.h.bf16 %v10251_v33  ;;  %v7662_v38 = vunpack.i.l.bf16 %v10251_v33  ;;  %v7597_v42 = vunpack.i.l.bf16 %v10189_v24 }
 0x2dd   : > { %v7723_v20 = vunpack.i.h.bf16 %v7721_v53  ;;  %v7722_v6 = vunpack.i.l.bf16 %v7721_v53  ;;  %v4366_v24 = vsel %vm432_vm2, %v9997_v59, %v7637_v22  ;;  %v7643_v33 = vunpack.i.h.bf16 %v10235_v28 }
 0x2de   : > { %8035 = vrot.lane.b32.xlu1 %v10368_v37, %s11668_s13  ;;  %8060 = vrot.lane.b32.xlu0 %v10368_v37, %s11645_s30  ;;  %v7668_v16 = vunpack.i.h.bf16 %v10257_v56  ;;  %v7672_v11 = vunpack.i.l.bf16 %v10265_v55 }
 0x2df   : > { %v3362_v3 = vsel %vm551_vm3, %v3346_v10, %v7722_v6  ;;  %v3363_v39 = vsel %vm551_vm3, %v3347_v0, %v7723_v20  ;;  %v7603_v0 = vunpack.i.h.bf16 %v10196_v29  ;;  %v7667_v6 = vunpack.i.l.bf16 %v10257_v56 }
 0x2e0   : > { %v10376_v13 = vpop.permute.xlu1 %7750  ;;  %v10378_v62 = vpop.permute.xlu0 %7775  ;;  %v3378_v10 = vsel %vm1418_vm7, %v3362_v3, %v7662_v38  ;;  %v3379_v53 = vsel %vm1418_vm7, %v3363_v39, %v7663_v51  ;;  %v4367_v39 = vsel %vm432_vm2, %v9991_v58, %v7638_v12  ;;  %v7607_v58 = vunpack.i.l.bf16 %v10208_v31 }
 0x2e1   : > { %v3394_v59 = vsel %vm1452_vm9, %v3378_v10, %v7667_v6  ;;  %v3395_v28 = vsel %vm1452_vm9, %v3379_v53, %v7668_v16  ;;  %v4383_v6 = vsel %vm551_vm3, %v4367_v39, %v7643_v33  ;;  %v7648_v53 = vunpack.i.h.bf16 %v10230_v61 }
 0x2e2   : > { %8045 = vrot.lane.b32.xlu1 %v8044_v5, %s11647_s15  ;;  %8070 = vrot.lane.b32.xlu0 %v8044_v5, %s11643_s14  ;;  %v7647_v33 = vunpack.i.l.bf16 %v10230_v61 }
 0x2e4   : > { %v10382_v17 = vpop.permute.xlu1 %7765  ;;  %v10392_v1 = vpop.permute.xlu0 %7780 }
 0x2e6   : > { %8055 = vrot.lane.b32.xlu1 %v8054_v44, %s11666_s24  ;;  %8080 = vrot.lane.b32.xlu0 %v10394_v57, %s11643_s14 }
 0x2e8   : > { %v10403_v15 = vpop.permute.xlu1 %7785  ;;  %v10405_v46 = vpop.permute.xlu0 %7800 }
 0x2ea   : > { %8065 = vrot.lane.b32.xlu1 %v8064_v35, %s11645_s30  ;;  %8090 = vrot.lane.b32.xlu0 %v8044_v5, %s11661_s29  ;;  %v7602_v5 = vunpack.i.l.bf16 %v10196_v29 }
 0x2ec   : > { %v10433_v45 = vpop.permute.xlu1 %7790  ;;  %v7806_v20 = vpop.permute.xlu0 %7805 }
 0x2ed   : > { %v7808_v22 = vunpack.i.h.bf16 %v7806_v20  ;;  %v7807_v38 = vunpack.i.l.bf16 %v7806_v20 }
 0x2ee   : > { %8075 = vrot.lane.b32.xlu1 %v10368_v37, %s11667_s25  ;;  %8100 = vrot.lane.b32.xlu0 %v8054_v44, %s11663_s12  ;;  %v4382_v37 = vsel %vm551_vm3, %v4366_v24, %v7642_v54  ;;  %v7673_v44 = vunpack.i.h.bf16 %v10265_v55  ;;  %v3411_v55 = vsel %vm3404_vm12, %v3394_v59, %v7672_v11  ;;  %v7653_v11 = vunpack.i.h.bf16 %v10237_v9 }
 0x2ef   : > { %v4398_v16 = vsel %vm1418_vm7, %v4382_v37, %v7597_v42  ;;  %v7692_v37 = vunpack.i.l.bf16 %v10253_v26 }
 0x2f0   : > { %v10456_v51 = vpop.permute.xlu1 %7795  ;;  %v7811_v56 = vpop.permute.xlu0 %7810  ;;  %v3412_v20 = vsel %vm3404_vm12, %v3395_v28, %v7673_v44  ;;  %v7652_v44 = vunpack.i.l.bf16 %v10237_v9  ;;  %v11672_v9 = vpack.i.bf16 %v10401_v43, %v10397_v4  ;;  %v11675_v43 = vunpack.i.l.bf16 %v10198_v41 }
 0x2f1   : > { %v7813_v29 = vunpack.i.h.bf16 %v7811_v56  ;;  %v7812_v60 = vunpack.i.l.bf16 %v7811_v56  ;;  %v3429_v24 = vsel %vm3421_vm13, %v3412_v20, %v7808_v22  ;;  %v3428_v56 = vsel %vm3421_vm13, %v3411_v55, %v7807_v38 }
 0x2f2   : > { %8085 = vrot.lane.b32.xlu1 %v8064_v35, %s11667_s25  ;;  %8110 = vrot.lane.b32.xlu0 %v8064_v35, %s11668_s13  ;;  %v4399_v35 = vsel %vm1418_vm7, %v4383_v6, %v7598_v14  ;;  %v7693_v14 = vunpack.i.h.bf16 %v10253_v26  ;;  %v7698_v6 = vunpack.i.h.bf16 %v10308_v50  ;;  %v7658_v20 = vunpack.i.h.bf16 %v10244_v2 }
 0x2f3   : > { %v3445_v39 = vsel %vm3438_vm14, %v3428_v56, %v7812_v60  ;;  %v3446_v42 = vsel %vm3438_vm14, %v3429_v24, %v7813_v29  ;;  %v7697_v60 = vunpack.i.l.bf16 %v10308_v50  ;;  %v4414_v29 = vsel %vm1452_vm9, %v4398_v16, %v7602_v5  ;;  %v8538_v5 = vld [vmem:[#allocation3 + $0x87] sm:$0xff]  ;;  %v8539_v56 = vld [vmem:[#allocation3 + $0x8f] sm:$0xff] }
 0x2f4   : > { %v7816_v10 = vpop.permute.xlu1 %7815  ;;  %v7821_v54 = vpop.permute.xlu0 %7820  ;;  %v4415_v55 = vsel %vm1452_vm9, %v4399_v35, %v7603_v0  ;;  %v3348_v16 = vsel %vm432_vm2, %v8538_v5, %v7692_v37  ;;  %v10500_v50 = vsel %vm3404_vm12, %v4414_v29, %v7607_v58  ;;  %v3349_v35 = vsel %vm432_vm2, %v8539_v56, %v7693_v14  ;;  %v2693_v29 = vld [vmem:[#allocation3 + $0xa7] sm:$0xff] }
 0x2f5   : > { %v7818_v12 = vunpack.i.h.bf16 %v7816_v10  ;;  %v7817_v3 = vunpack.i.l.bf16 %v7816_v10  ;;  %v7823_v26 = vunpack.i.h.bf16 %v7821_v54  ;;  %v7822_v10 = vunpack.i.l.bf16 %v7821_v54 }
 0x2f6   : > { %8095 = vrot.lane.b32.xlu1 %v10394_v57, %s11661_s29  ;;  %8120 = vrot.lane.b32.xlu0 %v10394_v57, %s11647_s15  ;;  %v7657_v57 = vunpack.i.l.bf16 %v10244_v2  ;;  %v3364_v54 = vsel %vm551_vm3, %v3348_v16, %v7697_v60  ;;  %v3365_v58 = vsel %vm551_vm3, %v3349_v35, %v7698_v6  ;;  %v7772_v6 = vunpack.i.l.bf16 %v10370_v19 }
 0x2f7   : > { %v3462_v59 = vsel %vm3455_vm15, %v3445_v39, %v7817_v3  ;;  %v3463_v28 = vsel %vm3455_vm15, %v3446_v42, %v7818_v12  ;;  %v7743_v3 = vunpack.i.h.bf16 %v10312_v8  ;;  %v11669_v39 = vunpack.i.h.bf16 %v10208_v31 }
 0x2f8   : > { %v7831_v22 = vpop.permute.xlu1 %7830  ;;  %v3475_v38 = vpack.c.bf16 %v3463_v28, %v3462_v59  ;;  %v7826_v12 = vpop.permute.xlu0 %7825  ;;  %v7742_v59 = vunpack.i.l.bf16 %v10312_v8  ;;  %v3350_v14 = vsel %vm432_vm2, %v2693_v29, %v7822_v10  ;;  %v7773_v8 = vunpack.i.h.bf16 %v10370_v19 }
 0x2f9   : > { %v7828_v0 = vunpack.i.h.bf16 %v7826_v12  ;;  %v7827_v24 = vunpack.i.l.bf16 %v7826_v12  ;;  %v4431_v42 = vsel %vm3404_vm12, %v4415_v55, %v11669_v39  ;;  %v7832_v12 = vunpack.i.l.bf16 %v7831_v22 }
 0x2fa   : > { %6763 = vmatmul.mubr.msk.bf16.gmra.mrb[20].mxu0 %vm3507_vm0, %v3475_v38  ;;  %8105 = vrot.lane.b32.xlu1 %v10407_v27, %s11663_s12  ;;  %v10512_v28 = vsel %vm3421_vm13, %v4431_v42, %v7743_v3  ;;  %v2694_v38 = vld [vmem:[#allocation3 + $0xaf] sm:$0xff]  ;;  %v7788_v10 = vunpack.i.h.bf16 %v10403_v15  ;;  %v7787_v56 = vunpack.i.l.bf16 %v10403_v15  ;;  %v7793_v15 = vunpack.i.h.bf16 %v10433_v45 }
 0x2fb   : > { %8130 = vrot.lane.b32.xlu0 %v10407_v27, %s11666_s24  ;;  %v7833_v27 = vunpack.i.h.bf16 %v7831_v22  ;;  %v3351_v31 = vsel %vm432_vm2, %v2694_v38, %v7823_v26  ;;  %v3366_v3 = vsel %vm551_vm3, %v3350_v14, %v7827_v24  ;;  %v7778_v22 = vunpack.i.h.bf16 %v10378_v62 }
 0x2fc   : > { %v7836_v37 = vpop.permute.xlu1 %7835  ;;  %v10514_v5 = vpop.permute.xlu0 %7855  ;;  %v3367_v16 = vsel %vm551_vm3, %v3351_v31, %v7828_v0  ;;  %v7777_v26 = vunpack.i.l.bf16 %v10378_v62  ;;  %v3380_v19 = vsel %vm1418_vm7, %v3364_v54, %v7832_v12  ;;  %v3382_v0 = vsel %vm1418_vm7, %v3366_v3, %v7772_v6 }
 0x2fd   : > { %v7838_v60 = vunpack.i.h.bf16 %v7836_v37  ;;  %v7837_v55 = vunpack.i.l.bf16 %v7836_v37  ;;  %v3381_v39 = vsel %vm1418_vm7, %v3365_v58, %v7833_v27  ;;  %v7792_v58 = vunpack.i.l.bf16 %v10433_v45 }
 0x2fe   : > { %8115 = vrot.lane.b32.xlu1 %v10409_v36, %s11668_s13  ;;  %v7798_v27 = vunpack.i.h.bf16 %v10456_v51  ;;  %v7797_v12 = vunpack.i.l.bf16 %v10456_v51  ;;  %v11670_v51 = vpack.i.bf16 %v10386_v18, %v10384_v25  ;;  %v7857_v25 = vunpack.i.l.bf16 %v10514_v5 }
 0x2ff   : > { %8140 = vrot.lane.b32.xlu0 %v10409_v36, %s11645_s30  ;;  %v3383_v36 = vsel %vm1418_vm7, %v3367_v16, %v7773_v8  ;;  %v3396_v29 = vsel %vm1452_vm9, %v3380_v19, %v7837_v55  ;;  %v3397_v62 = vsel %vm1452_vm9, %v3381_v39, %v7838_v60  ;;  %v3398_v55 = vsel %vm1452_vm9, %v3382_v0, %v7777_v26 }
 0x300   : > { %v7841_v35 = vpop.permute.xlu1 %7840  ;;  %v10532_v37 = vpop.permute.xlu0 %7860  ;;  %v3399_v45 = vsel %vm1452_vm9, %v3383_v36, %v7778_v22  ;;  %v4446_v22 = vsel %vm3421_vm13, %v10500_v50, %v7742_v59  ;;  %v7783_v26 = vunpack.i.h.bf16 %v10392_v1  ;;  %v7748_v19 = vunpack.i.h.bf16 %v10332_v48 }
 0x301   : > { %v7843_v42 = vunpack.i.h.bf16 %v7841_v35  ;;  %v7842_v24 = vunpack.i.l.bf16 %v7841_v35  ;;  %v7782_v35 = vunpack.i.l.bf16 %v10392_v1  ;;  %v7863_v1 = vunpack.i.h.bf16 %v10532_v37 }
 0x302   : > { %8125 = vrot.lane.b32.xlu1 %v10420_v21, %s11647_s15  ;;  %v3416_v36 = vsel %vm3404_vm12, %v3399_v45, %v7783_v26  ;;  %v11673_v45 = vunpack.i.l.bf16 %v10191_v63  ;;  %v11677_v26 = vunpack.i.l.bf16 %v10210_v52 }
 0x303   : > { %v3413_v54 = vsel %vm3404_vm12, %v3396_v29, %v7842_v24  ;;  %v3414_v38 = vsel %vm3404_vm12, %v3397_v62, %v7843_v42  ;;  %8150 = vrot.lane.b32.xlu0 %v10420_v21, %s11643_s14  ;;  %v7747_v42 = vunpack.i.l.bf16 %v10332_v48  ;;  %v7858_v24 = vunpack.i.h.bf16 %v10514_v5 }
 0x304   : > { %v3430_v14 = vsel %vm3421_vm13, %v3413_v54, %v7787_v56  ;;  %v3431_v31 = vsel %vm3421_vm13, %v3414_v38, %v7788_v10  ;;  %v7846_v60 = vpop.permute.xlu1 %7845  ;;  %v10552_v8 = vpop.permute.xlu0 %7865  ;;  %v3415_v0 = vsel %vm3404_vm12, %v3398_v55, %v7782_v35  ;;  %v7862_v62 = vunpack.i.l.bf16 %v10532_v37 }
 0x305   : > { %v3447_v6 = vsel %vm3438_vm14, %v3430_v14, %v7792_v58  ;;  %v3448_v3 = vsel %vm3438_vm14, %v3431_v31, %v7793_v15  ;;  %v7848_v21 = vunpack.i.h.bf16 %v7846_v60  ;;  %v7847_v16 = vunpack.i.l.bf16 %v7846_v60 }
 0x306   : > { %8135 = vrot.lane.b32.xlu1 %v11670_v51, %s11666_s24  ;;  %v3464_v10 = vsel %vm3455_vm15, %v3447_v6, %v7797_v12  ;;  %v3465_v56 = vsel %vm3455_vm15, %v3448_v3, %v7798_v27  ;;  %v11671_v15 = vpack.i.bf16 %v10390_v30, %v10388_v32  ;;  %v7753_v58 = vunpack.i.h.bf16 %v10376_v13 }
 0x307   : > { %v3476_v39 = vpack.c.bf16 %v3465_v56, %v3464_v10  ;;  %v4364_v48 = vsel %vm432_vm2, %v10212_v34, %v7847_v16  ;;  %v4365_v5 = vsel %vm432_vm2, %v10204_v23, %v7848_v21  ;;  %v7752_v54 = vunpack.i.l.bf16 %v10376_v13 }
 0x308   : > { %v7851_v18 = vpop.permute.xlu1 %7850  ;;  %v10572_v59 = vpop.permute.xlu0 %7880  ;;  %v3433_v37 = vsel %vm3421_vm13, %v3416_v36, %v7858_v24  ;;  %v3432_v34 = vsel %vm3421_vm13, %v3415_v0, %v7857_v25  ;;  %v11674_v3 = vunpack.i.h.bf16 %v10191_v63  ;;  %v4462_v2 = vsel %vm3438_vm14, %v4446_v22, %v7747_v42 }
 0x309   : > { %v7853_v29 = vunpack.i.h.bf16 %v7851_v18  ;;  %v7852_v50 = vunpack.i.l.bf16 %v7851_v18  ;;  %6766 = vmatprep.mubr.msk.bf16.mxu0 %vm3507_vm0, %v3476_v39  ;;  %v3449_v55 = vsel %vm3438_vm14, %v3432_v34, %v7862_v62  ;;  %v4478_v10 = vsel %vm3455_vm15, %v4462_v2, %v7752_v54  ;;  %v8540_v54 = vld [vmem:[#allocation3 + $0x14f] sm:$0xff] }
 0x30a   : > { %8145 = vrot.lane.b32.xlu1 %v11671_v15, %s11645_s30  ;;  %v11676_v63 = vunpack.i.h.bf16 %v10198_v41  ;;  %v11678_v35 = vunpack.i.h.bf16 %v10210_v52  ;;  %v7632_v15 = vunpack.i.l.bf16 %v10221_v47  ;;  %v7758_v34 = vunpack.i.h.bf16 %v10346_v49  ;;  %s11679_s30 = smov 56  }
 0x30b   : > { %v4380_v38 = vsel %vm551_vm3, %v4364_v48, %v7852_v50  ;;  %v4381_v27 = vsel %vm551_vm3, %v4365_v5, %v7853_v29  ;;  %v7628_v50 = vunpack.i.h.bf16 %v10219_v40  ;;  %v7633_v5 = vunpack.i.h.bf16 %v10221_v47 }
 0x30c   : > { %v4396_v23 = vsel %vm1418_vm7, %v4380_v38, %v7647_v33  ;;  %v4397_v32 = vsel %vm1418_vm7, %v4381_v27, %v7648_v53  ;;  %v7871_v30 = vpop.permute.xlu1 %7870  ;;  %v10603_v60 = vpop.permute.xlu0 %7890  ;;  %v3450_v33 = vsel %vm3438_vm14, %v3433_v37, %v7863_v1  ;;  %v7627_v1 = vunpack.i.l.bf16 %v10219_v40  ;;  %v8541_v27 = vld [vmem:[#allocation3 + $0x147] sm:$0xff] }
 0x30d   : > { %v4412_v13 = vsel %vm1452_vm9, %v4396_v23, %v7652_v44  ;;  %v4413_v12 = vsel %vm1452_vm9, %v4397_v32, %v7653_v11  ;;  %v7873_v14 = vunpack.i.h.bf16 %v7871_v30  ;;  %v7872_v31 = vunpack.i.l.bf16 %v7871_v30 }
 0x30e   : > { %v4428_v61 = vsel %vm3404_vm12, %v4412_v13, %v7657_v57  ;;  %v4429_v53 = vsel %vm3404_vm12, %v4413_v12, %v7658_v20  ;;  %8155 = vrot.lane.b32.xlu1 %v11672_v9, %s11643_s14  ;;  %v4463_v20 = vsel %vm3438_vm14, %v10512_v28, %v7748_v19  ;;  %v4369_v38 = vsel %vm432_vm2, %v8540_v54, %v7628_v50  ;;  %s11680_s14 = smov 64  }
 0x30f   : > { %v3466_v11 = vsel %vm3455_vm15, %v3449_v55, %v7872_v31  ;;  %v3467_v44 = vsel %vm3455_vm15, %v3450_v33, %v7873_v14  ;;  %v4444_v6 = vsel %vm3421_vm13, %v4428_v61, %v11673_v45  ;;  %v4445_v57 = vsel %vm3421_vm13, %v4429_v53, %v11674_v3  ;;  %v8542_v31 = vld [vmem:[#allocation3 + $0x167] sm:$0xff]  ;;  %v8543_v33 = vld [vmem:[#allocation3 + $0x16f] sm:$0xff] }
 0x310   : > { %v10628_v21 = vpop.permute.xlu1 %7875  ;;  %v3477_v4 = vpack.c.bf16 %v3467_v44, %v3466_v11  ;;  %v4460_v16 = vsel %vm3438_vm14, %v4444_v6, %v11675_v43  ;;  %v4479_v51 = vsel %vm3455_vm15, %v4463_v20, %v7753_v58  ;;  %v10635_v56 = vpop.permute.xlu0 %7900  ;;  %v4461_v22 = vsel %vm3438_vm14, %v4445_v57, %v11676_v63  ;;  %v8544_v43 = vld [vmem:[#allocation3 + $0xc7] sm:$0xff] }
 0x311   : > { %v4476_v28 = vsel %vm3455_vm15, %v4460_v16, %v11677_v26  ;;  %v4477_v39 = vsel %vm3455_vm15, %v4461_v22, %v11678_v35  ;;  %v4493_v42 = vpack.c.bf16 %v4479_v51, %v4478_v10  ;;  %v7757_v58 = vunpack.i.l.bf16 %v10346_v49 }
 0x312   : > { %6767 = vmatmul.mubr.msk.bf16.gmra.mrb[24].mxu0 %vm3507_vm0, %v3477_v4  ;;  %v4492_v19 = vpack.c.bf16 %v4477_v39, %v4476_v28  ;;  %v4368_v37 = vsel %vm432_vm2, %v8541_v27, %v7627_v1  ;;  %v7762_v40 = vunpack.i.l.bf16 %v10362_v7  ;;  %v7763_v23 = vunpack.i.h.bf16 %v10362_v7 }
 0x313   : > { %v7768_v32 = vunpack.i.h.bf16 %v10382_v17  ;;  %v7767_v13 = vunpack.i.l.bf16 %v10382_v17  ;;  %v4385_v12 = vsel %vm551_vm3, %v4369_v38, %v7633_v5  ;;  %v4384_v14 = vsel %vm551_vm3, %v4368_v37, %v7632_v15  ;;  %v2697_v38 = vld [vmem:[#allocation3 + $0xe7] sm:$0xff] }
 0x314   : > { %v10647_v24 = vpop.permute.xlu1 %7885  ;;  %6784 = vmatprep.mubr.msk.bf16.mxu1 %vm3507_vm0, %v4492_v19  ;;  %v10650_v25 = vpop.permute.xlu0 %7910  ;;  %v4370_v55 = vsel %vm432_vm2, %v8542_v31, %v7757_v58  ;;  %v7802_v49 = vunpack.i.l.bf16 %v10405_v46  ;;  %v4371_v61 = vsel %vm432_vm2, %v8543_v33, %v7758_v34  ;;  %v7878_v53 = vunpack.i.h.bf16 %v10628_v21 }
 0x315   : > { %6785 = vmatmul.mubr.msk.bf16.vlgmr.msra.gmra.mrb[16].mxu1 %vm3507_vm0, %v4493_v42  ;;  %v4386_v7 = vsel %vm551_vm3, %v4370_v55, %v7762_v40  ;;  %v7877_v17 = vunpack.i.l.bf16 %v10628_v21  ;;  %v4387_v9 = vsel %vm551_vm3, %v4371_v61, %v7763_v23  ;;  %v4401_v11 = vsel %vm1418_vm7, %v4385_v12, %v7768_v32 }
 0x316   : > { %v4400_v3 = vsel %vm1418_vm7, %v4384_v14, %v7767_v13  ;;  %v7803_v57 = vunpack.i.h.bf16 %v10405_v46  ;;  %v10696_v16 = vsel %vm432_vm2, %v8544_v43, %v7802_v49  ;;  %v7868_v21 = vunpack.i.h.bf16 %v10552_v8  ;;  %v2698_v43 = vld [vmem:[#allocation3 + $0xef] sm:$0xff] }
 0x317   : > { %v7867_v63 = vunpack.i.l.bf16 %v10552_v8  ;;  %v7882_v22 = vunpack.i.l.bf16 %v10572_v59  ;;  %v4417_v26 = vsel %vm1452_vm9, %v4401_v11, %v7878_v53  ;;  %v4416_v46 = vsel %vm1452_vm9, %v4400_v3, %v7877_v17 }
 0x318   : > { %v7896_v41 = vpop.permute.xlu1 %7895  ;;  %v10653_v18 = vpop.permute.xlu0 %7920  ;;  %v7893_v28 = vunpack.i.h.bf16 %v10603_v60  ;;  %v7892_v35 = vunpack.i.l.bf16 %v10603_v60  ;;  %v4403_v58 = vsel %vm1418_vm7, %v4387_v9, %v7868_v21  ;;  %v7913_v27 = vunpack.i.h.bf16 %v10650_v25 }
 0x319   : > { %v7898_v44 = vunpack.i.h.bf16 %v7896_v41  ;;  %v7897_v45 = vunpack.i.l.bf16 %v7896_v41  ;;  %v2696_v41 = vld [vmem:[#allocation3 + $0xcf] sm:$0xff]  ;;  %v7912_v37 = vunpack.i.l.bf16 %v10650_v25  ;;  %v4402_v23 = vsel %vm1418_vm7, %v4386_v7, %v7867_v63 }
 0x31a   : > { %v3353_v15 = vsel %vm432_vm2, %v2696_v41, %v7803_v57  ;;  %v7883_v32 = vunpack.i.h.bf16 %v10572_v59  ;;  %v4419_v14 = vsel %vm1452_vm9, %v4403_v58, %v7893_v28  ;;  %v4418_v31 = vsel %vm1452_vm9, %v4402_v23, %v7892_v35 }
 0x31b   : > { %v4432_v39 = vsel %vm3404_vm12, %v4416_v46, %v7897_v45  ;;  %v4433_v19 = vsel %vm3404_vm12, %v4417_v26, %v7898_v44  ;;  %v7903_v33 = vunpack.i.h.bf16 %v10635_v56  ;;  %v7902_v61 = vunpack.i.l.bf16 %v10635_v56 }
 0x31c   : > { %v10655_v0 = vpop.permute.xlu1 %7905  ;;  %v10657_v36 = vpop.permute.xlu0 %7930  ;;  %v7888_v53 = vunpack.i.h.bf16 %v10647_v24  ;;  %v7887_v17 = vunpack.i.l.bf16 %v10647_v24  ;;  %v4434_v9 = vsel %vm3404_vm12, %v4418_v31, %v7912_v37  ;;  %v7923_v11 = vunpack.i.h.bf16 %v10653_v18 }
 0x31d   : > { %v7933_v55 = vunpack.i.h.bf16 %v10657_v36  ;;  %v7932_v25 = vunpack.i.l.bf16 %v10657_v36  ;;  %v4435_v36 = vsel %vm3404_vm12, %v4419_v14, %v7913_v27  ;;  %v7922_v44 = vunpack.i.l.bf16 %v10653_v18 }
 0x31e   : > { %v7908_v56 = vunpack.i.h.bf16 %v10655_v0  ;;  %v7907_v45 = vunpack.i.l.bf16 %v10655_v0  ;;  %v3355_v63 = vsel %vm432_vm2, %v2698_v43, %v7883_v32  ;;  %v3369_v28 = vsel %vm551_vm3, %v3353_v15, %v7888_v53 }
 0x31f   : > { %v4451_v57 = vsel %vm3421_vm13, %v4435_v36, %v7933_v55  ;;  %v3371_v46 = vsel %vm551_vm3, %v3355_v63, %v7903_v33  ;;  %v3368_v35 = vsel %vm551_vm3, %v10696_v16, %v7887_v17 }
 0x320   : > { %v7916_v52 = vpop.permute.xlu1 %7915  ;;  %v10659_v29 = vpop.permute.xlu0 %7940 }
 0x321   : > { %v7918_v2 = vunpack.i.h.bf16 %v7916_v52  ;;  %v7917_v20 = vunpack.i.l.bf16 %v7916_v52  ;;  %v7943_v21 = vunpack.i.h.bf16 %v10659_v29 }
 0x323   : > { %v4449_v52 = vsel %vm3421_vm13, %v4433_v19, %v7918_v2  ;;  %v4448_v8 = vsel %vm3421_vm13, %v4432_v39, %v7917_v20 }
 0x324   : > { %v10663_v62 = vpop.permute.xlu1 %7925  ;;  %v10665_v48 = vpop.permute.xlu0 %7950 }
 0x325   : > { %v7953_v59 = vunpack.i.h.bf16 %v10665_v48  ;;  %v7952_v7 = vunpack.i.l.bf16 %v10665_v48  ;;  %v4450_v48 = vsel %vm3421_vm13, %v4434_v9, %v7932_v25  ;;  %v7928_v41 = vunpack.i.h.bf16 %v10663_v62 }
 0x327   : > { %v4467_v18 = vsel %vm3438_vm14, %v4451_v57, %v7953_v59 }
 0x328   : > { %v7936_v30 = vpop.permute.xlu1 %7935  ;;  %v10677_v47 = vpop.permute.xlu0 %7960 }
 0x329   : > { %v7938_v51 = vunpack.i.h.bf16 %v7936_v30  ;;  %v7937_v10 = vunpack.i.l.bf16 %v7936_v30  ;;  %v3354_v30 = vsel %vm432_vm2, %v2697_v38, %v7882_v22  ;;  %v7963_v58 = vunpack.i.h.bf16 %v10677_v47 }
 0x32a   : > { %v3370_v0 = vsel %vm551_vm3, %v3354_v30, %v7902_v61 }
 0x32b   : > { %v4464_v60 = vsel %vm3438_vm14, %v4448_v8, %v7937_v10  ;;  %v4465_v54 = vsel %vm3438_vm14, %v4449_v52, %v7938_v51  ;;  %v7942_v51 = vunpack.i.l.bf16 %v10659_v29  ;;  %v4466_v10 = vsel %vm3438_vm14, %v4450_v48, %v7952_v7 }
 0x32c   : > { %v10689_v6 = vpop.permute.xlu1 %7945  ;;  %v10693_v4 = vpop.permute.xlu0 %7970  ;;  %v3386_v19 = vsel %vm1418_vm7, %v3370_v0, %v7922_v44  ;;  %v7927_v52 = vunpack.i.l.bf16 %v10663_v62 }
 0x32d   : > { %v3402_v15 = vsel %vm1452_vm9, %v3386_v19, %v7942_v51  ;;  %v7947_v62 = vunpack.i.l.bf16 %v10689_v6 }
 0x330   : > { %v7956_v42 = vpop.permute.xlu1 %7955  ;;  %v10709_v5 = vpop.permute.xlu0 %7980 }
 0x331   : > { %v7958_v50 = vunpack.i.h.bf16 %v7956_v42  ;;  %v7957_v1 = vunpack.i.l.bf16 %v7956_v42  ;;  %v3387_v42 = vsel %vm1418_vm7, %v3371_v46, %v7923_v11  ;;  %v7983_v38 = vunpack.i.h.bf16 %v10709_v5  ;;  %v3715_v46 = vld [vmem:[#allocation3 + $0x187] sm:$0xff] }
 0x332   : > { %v3403_v16 = vsel %vm1452_vm9, %v3387_v42, %v7943_v21  ;;  %v7982_v27 = vunpack.i.l.bf16 %v10709_v5 }
 0x333   : > { %v4480_v34 = vsel %vm3455_vm15, %v4464_v60, %v7957_v1  ;;  %v4481_v40 = vsel %vm3455_vm15, %v4465_v54, %v7958_v50  ;;  %v3385_v50 = vsel %vm1418_vm7, %v3369_v28, %v7908_v56  ;;  %v3384_v1 = vsel %vm1418_vm7, %v3368_v35, %v7907_v45  ;;  %v3716_v28 = vld [vmem:[#allocation3 + $0x18f] sm:$0xff] }
 0x334   : > { %v10722_v13 = vpop.permute.xlu1 %7965  ;;  %v4494_v12 = vpack.c.bf16 %v4481_v40, %v4480_v34  ;;  %v10728_v49 = vpop.permute.xlu0 %7990  ;;  %v7962_v60 = vunpack.i.l.bf16 %v10677_v47  ;;  %v7948_v54 = vunpack.i.h.bf16 %v10689_v6  ;;  %v3400_v23 = vsel %vm1452_vm9, %v3384_v1, %v7927_v52 }
 0x335   : > { %v7968_v37 = vunpack.i.h.bf16 %v10722_v13  ;;  %v7967_v34 = vunpack.i.l.bf16 %v10722_v13  ;;  %v3401_v32 = vsel %vm1452_vm9, %v3385_v50, %v7928_v41  ;;  %v3420_v5 = vsel %vm3404_vm12, %v3403_v16, %v7963_v58 }
 0x336   : > { %6788 = vmatprep.mubr.msk.bf16.mxu1 %vm3507_vm0, %v4494_v12  ;;  %v3419_v25 = vsel %vm3404_vm12, %v3402_v15, %v7962_v60  ;;  %v3417_v33 = vsel %vm3404_vm12, %v3400_v23, %v7947_v62  ;;  %v3418_v13 = vsel %vm3404_vm12, %v3401_v32, %v7948_v54  ;;  %v3437_v59 = vsel %vm3421_vm13, %v3420_v5, %v7983_v38 }
 0x337   : > { %v3436_v61 = vsel %vm3421_vm13, %v3419_v25, %v7982_v27  ;;  %v3434_v7 = vsel %vm3421_vm13, %v3417_v33, %v7967_v34  ;;  %v3435_v53 = vsel %vm3421_vm13, %v3418_v13, %v7968_v37  ;;  %v7993_v60 = vunpack.i.h.bf16 %v10728_v49 }
 0x338   : > { %v7976_v3 = vpop.permute.xlu1 %7975  ;;  %v8001_v24 = vpop.permute.xlu0 %8000 }
 0x339   : > { %v7978_v2 = vunpack.i.h.bf16 %v7976_v3  ;;  %v7977_v20 = vunpack.i.l.bf16 %v7976_v3  ;;  %v8003_v30 = vunpack.i.h.bf16 %v8001_v24  ;;  %v8002_v12 = vunpack.i.l.bf16 %v8001_v24 }
 0x33b   : > { %v4482_v22 = vsel %vm3455_vm15, %v4466_v10, %v7977_v20  ;;  %v4483_v26 = vsel %vm3455_vm15, %v4467_v18, %v7978_v2  ;;  %v3453_v9 = vsel %vm3438_vm14, %v3436_v61, %v8002_v12  ;;  %v3454_v36 = vsel %vm3438_vm14, %v3437_v59, %v8003_v30  ;;  %v3718_v30 = vld [vmem:[#allocation3 + $0x1af] sm:$0xff] }
 0x33c   : > { %v7986_v29 = vpop.permute.xlu1 %7985  ;;  %v4495_v39 = vpack.c.bf16 %v4483_v26, %v4482_v22  ;;  %v10761_v8 = vpop.permute.xlu0 %8010  ;;  %v7973_v2 = vunpack.i.h.bf16 %v10693_v4  ;;  %v7972_v20 = vunpack.i.l.bf16 %v10693_v4 }
 0x33d   : > { %v7988_v14 = vunpack.i.h.bf16 %v7986_v29  ;;  %v7987_v31 = vunpack.i.l.bf16 %v7986_v29 }
 0x33e   : > { %6789 = vmatmul.mubr.msk.bf16.gmra.mrb[20].mxu1 %vm3507_vm0, %v4495_v39  ;;  %v4373_v35 = vsel %vm432_vm2, %v3716_v28, %v7973_v2  ;;  %v4372_v4 = vsel %vm432_vm2, %v3715_v46, %v7972_v20 }
 0x33f   : > { %v3451_v45 = vsel %vm3438_vm14, %v3434_v7, %v7987_v31  ;;  %v3452_v3 = vsel %vm3438_vm14, %v3435_v53, %v7988_v14  ;;  %v7992_v14 = vunpack.i.l.bf16 %v10728_v49  ;;  %v8013_v31 = vunpack.i.h.bf16 %v10761_v8 }
 0x340   : > { %v7996_v40 = vpop.permute.xlu1 %7995  ;;  %v8021_v47 = vpop.permute.xlu0 %8020 }
 0x341   : > { %v8023_v55 = vunpack.i.h.bf16 %v8021_v47  ;;  %v8022_v6 = vunpack.i.l.bf16 %v8021_v47  ;;  %v7998_v21 = vunpack.i.h.bf16 %v7996_v40  ;;  %v7997_v51 = vunpack.i.l.bf16 %v7996_v40 }
 0x342   : > { %v4375_v47 = vsel %vm432_vm2, %v3718_v30, %v7993_v60 }
 0x343   : > { %v3470_v48 = vsel %vm3455_vm15, %v3453_v9, %v8022_v6  ;;  %v3471_v57 = vsel %vm3455_vm15, %v3454_v36, %v8023_v55  ;;  %v4388_v29 = vsel %vm551_vm3, %v4372_v4, %v7997_v51  ;;  %v4389_v39 = vsel %vm551_vm3, %v4373_v35, %v7998_v21 }
 0x344   : > { %v8006_v17 = vpop.permute.xlu1 %8005  ;;  %v8031_v56 = vpop.permute.xlu0 %8030  ;;  %v3479_v63 = vpack.c.bf16 %v3471_v57, %v3470_v48  ;;  %v8012_v55 = vunpack.i.l.bf16 %v10761_v8  ;;  %v4391_v2 = vsel %vm551_vm3, %v4375_v47, %v8013_v31 }
 0x345   : > { %v8008_v11 = vunpack.i.h.bf16 %v8006_v17  ;;  %v8007_v44 = vunpack.i.l.bf16 %v8006_v17  ;;  %v8033_v50 = vunpack.i.h.bf16 %v8031_v56  ;;  %v8032_v1 = vunpack.i.l.bf16 %v8031_v56  ;;  %v3717_v17 = vld [vmem:[#allocation3 + $0x1a7] sm:$0xff] }
 0x347   : > { %v3468_v24 = vsel %vm3455_vm15, %v3451_v45, %v8007_v44  ;;  %v3469_v43 = vsel %vm3455_vm15, %v3452_v3, %v8008_v11  ;;  %v4374_v44 = vsel %vm432_vm2, %v3717_v17, %v7992_v14 }
 0x348   : > { %v3478_v10 = vpack.c.bf16 %v3469_v43, %v3468_v24  ;;  %v8016_v18 = vpop.permute.xlu1 %8015  ;;  %v8041_v26 = vpop.permute.xlu0 %8040  ;;  %v4390_v57 = vsel %vm551_vm3, %v4374_v44, %v8012_v55 }
 0x349   : > { %v8018_v0 = vunpack.i.h.bf16 %v8016_v18  ;;  %v8017_v22 = vunpack.i.l.bf16 %v8016_v18  ;;  %v8043_v54 = vunpack.i.h.bf16 %v8041_v26  ;;  %v8042_v62 = vunpack.i.l.bf16 %v8041_v26 }
 0x34a   : > { %6770 = vmatprep.mubr.msk.bf16.mxu0 %vm3507_vm0, %v3478_v10 }
 0x34b   : > { %6771 = vmatmul.mubr.msk.bf16.gmra.mrb[28].mxu0 %vm3507_vm0, %v3479_v63  ;;  %v4404_v42 = vsel %vm1418_vm7, %v4388_v29, %v8017_v22  ;;  %v4405_v41 = vsel %vm1418_vm7, %v4389_v39, %v8018_v0 }
 0x34c   : > { %v8026_v19 = vpop.permute.xlu1 %8025  ;;  %v8051_v52 = vpop.permute.xlu0 %8050  ;;  %v4420_v15 = vsel %vm1452_vm9, %v4404_v42, %v8032_v1  ;;  %v4421_v16 = vsel %vm1452_vm9, %v4405_v41, %v8033_v50 }
 0x34d   : > { %v8053_v27 = vunpack.i.h.bf16 %v8051_v52  ;;  %v8052_v37 = vunpack.i.l.bf16 %v8051_v52  ;;  %v4436_v34 = vsel %vm3404_vm12, %v4420_v15, %v8042_v62  ;;  %v4437_v40 = vsel %vm3404_vm12, %v4421_v16, %v8043_v54 }
 0x34e   : > { %v8028_v61 = vunpack.i.h.bf16 %v8026_v19  ;;  %v8027_v59 = vunpack.i.l.bf16 %v8026_v19 }
 0x34f   : > { %v4452_v25 = vsel %vm3421_vm13, %v4436_v34, %v8052_v37  ;;  %v4453_v5 = vsel %vm3421_vm13, %v4437_v40, %v8053_v27  ;;  %v8546_v37 = vld [vmem:[#allocation3 + $0x1c7] sm:$0xff] }
 0x350   : > { %v8036_v58 = vpop.permute.xlu1 %8035  ;;  %v8061_v38 = vpop.permute.xlu0 %8060  ;;  %v4406_v43 = vsel %vm1418_vm7, %v4390_v57, %v8027_v59  ;;  %v4407_v21 = vsel %vm1418_vm7, %v4391_v2, %v8028_v61 }
 0x351   : > { %v8063_v23 = vunpack.i.h.bf16 %v8061_v38  ;;  %v8062_v32 = vunpack.i.l.bf16 %v8061_v38  ;;  %v8038_v9 = vunpack.i.h.bf16 %v8036_v58  ;;  %v8037_v49 = vunpack.i.l.bf16 %v8036_v58  ;;  %v8545_v38 = vld [vmem:[#allocation3 + $0x1cf] sm:$0xff] }
 0x353   : > { %v4468_v7 = vsel %vm3438_vm14, %v4452_v25, %v8062_v32  ;;  %v4469_v53 = vsel %vm3438_vm14, %v4453_v5, %v8063_v23  ;;  %v4422_v51 = vsel %vm1452_vm9, %v4406_v43, %v8037_v49  ;;  %v4423_v10 = vsel %vm1452_vm9, %v4407_v21, %v8038_v9 }
 0x354   : > { %v8046_v12 = vpop.permute.xlu1 %8045  ;;  %v8071_v6 = vpop.permute.xlu0 %8070 }
 0x355   : > { %v8073_v33 = vunpack.i.h.bf16 %v8071_v6  ;;  %v8072_v13 = vunpack.i.l.bf16 %v8071_v6  ;;  %v8048_v56 = vunpack.i.h.bf16 %v8046_v12  ;;  %v8047_v45 = vunpack.i.l.bf16 %v8046_v12 }
 0x357   : > { %v4484_v36 = vsel %vm3455_vm15, %v4468_v7, %v8072_v13  ;;  %v4485_v8 = vsel %vm3455_vm15, %v4469_v53, %v8073_v33  ;;  %v4438_v63 = vsel %vm3404_vm12, %v4422_v51, %v8047_v45  ;;  %v4439_v0 = vsel %vm3404_vm12, %v4423_v10, %v8048_v56 }
 0x358   : > { %v8056_v11 = vpop.permute.xlu1 %8055  ;;  %v4496_v3 = vpack.c.bf16 %v4485_v8, %v4484_v36  ;;  %v8081_v48 = vpop.permute.xlu0 %8080 }
 0x359   : > { %v8058_v20 = vunpack.i.h.bf16 %v8056_v11  ;;  %v8057_v24 = vunpack.i.l.bf16 %v8056_v11  ;;  %v8083_v4 = vunpack.i.h.bf16 %v8081_v48  ;;  %v8082_v29 = vunpack.i.l.bf16 %v8081_v48 }
 0x35a   : > { %6792 = vmatprep.mubr.msk.bf16.mxu1 %vm3507_vm0, %v4496_v3 }
 0x35b   : > { %v4454_v28 = vsel %vm3421_vm13, %v4438_v63, %v8057_v24  ;;  %v4455_v35 = vsel %vm3421_vm13, %v4439_v0, %v8058_v20 }
 0x35c   : > { %v8066_v18 = vpop.permute.xlu1 %8065  ;;  %v8091_v46 = vpop.permute.xlu0 %8090 }
 0x35d   : > { %v8068_v22 = vunpack.i.h.bf16 %v8066_v18  ;;  %v8067_v26 = vunpack.i.l.bf16 %v8066_v18  ;;  %v8093_v40 = vunpack.i.h.bf16 %v8091_v46  ;;  %v8092_v23 = vunpack.i.l.bf16 %v8091_v46 }
 0x35f   : > { %v4470_v39 = vsel %vm3438_vm14, %v4454_v28, %v8067_v26  ;;  %v4471_v19 = vsel %vm3438_vm14, %v4455_v35, %v8068_v22  ;;  %v8547_v35 = vld [vmem:[#allocation3 + $0x1ef] sm:$0xff] }
 0x360   : > { %v8076_v42 = vpop.permute.xlu1 %8075  ;;  %v4486_v41 = vsel %vm3455_vm15, %v4470_v39, %v8082_v29  ;;  %v4487_v52 = vsel %vm3455_vm15, %v4471_v19, %v8083_v4  ;;  %v8101_v50 = vpop.permute.xlu0 %8100  ;;  %v8548_v29 = vld [vmem:[#allocation3 + $0x1e7] sm:$0xff] }
 0x361   : > { %v4497_v1 = vpack.c.bf16 %v4487_v52, %v4486_v41  ;;  %v8078_v58 = vunpack.i.h.bf16 %v8076_v42  ;;  %v8077_v60 = vunpack.i.l.bf16 %v8076_v42  ;;  %v8103_v14 = vunpack.i.h.bf16 %v8101_v50 }
 0x362   : > { %v8102_v31 = vunpack.i.l.bf16 %v8101_v50 }
 0x363   : > { %6793 = vmatmul.mubr.msk.bf16.gmra.mrb[24].mxu1 %vm3507_vm0, %v4497_v1  ;;  %v4377_v27 = vsel %vm432_vm2, %v8545_v38, %v8078_v58  ;;  %v4376_v34 = vsel %vm432_vm2, %v8546_v37, %v8077_v60 }
 0x364   : > { %v8086_v15 = vpop.permute.xlu1 %8085  ;;  %v8111_v16 = vpop.permute.xlu0 %8110  ;;  %v4392_v12 = vsel %vm551_vm3, %v4376_v34, %v8092_v23  ;;  %v4393_v47 = vsel %vm551_vm3, %v4377_v27, %v8093_v40 }
 0x365   : > { %v8113_v55 = vunpack.i.h.bf16 %v8111_v16  ;;  %v8112_v6 = vunpack.i.l.bf16 %v8111_v16  ;;  %v4408_v5 = vsel %vm1418_vm7, %v4392_v12, %v8102_v31  ;;  %v4409_v33 = vsel %vm1418_vm7, %v4393_v47, %v8103_v14 }
 0x366   : > { %v8088_v24 = vunpack.i.h.bf16 %v8086_v15  ;;  %v8087_v43 = vunpack.i.l.bf16 %v8086_v15 }
 0x367   : > { %v4424_v49 = vsel %vm1452_vm9, %v4408_v5, %v8112_v6  ;;  %v4425_v36 = vsel %vm1452_vm9, %v4409_v33, %v8113_v55  ;;  %v10873_v6 = vld [vmem:[%s11619_s4] ss:$0 sm:$0xff] }
 0x368   : > { %v8096_v54 = vpop.permute.xlu1 %8095  ;;  %v8121_v62 = vpop.permute.xlu0 %8120  ;;  %v4379_v4 = vsel %vm432_vm2, %v8547_v35, %v8088_v24  ;;  %v4378_v39 = vsel %vm432_vm2, %v8548_v29, %v8087_v43 }
 0x369   : > { %v8123_v13 = vunpack.i.h.bf16 %v8121_v62  ;;  %v8122_v61 = vunpack.i.l.bf16 %v8121_v62  ;;  %v8098_v18 = vunpack.i.h.bf16 %v8096_v54  ;;  %v8097_v63 = vunpack.i.l.bf16 %v8096_v54 }
 0x36b   : > { %v4440_v11 = vsel %vm3404_vm12, %v4424_v49, %v8122_v61  ;;  %v4441_v44 = vsel %vm3404_vm12, %v4425_v36, %v8123_v13  ;;  %v4394_v52 = vsel %vm551_vm3, %v4378_v39, %v8097_v63  ;;  %v4395_v50 = vsel %vm551_vm3, %v4379_v4, %v8098_v18 }
 0x36c   : > { %v8106_v32 = vpop.permute.xlu1 %8105 }
 0x36d   : > { %v8131_v30 = vpop.permute.xlu0 %8130  ;;  %v8108_v22 = vunpack.i.h.bf16 %v8106_v32  ;;  %v8107_v26 = vunpack.i.l.bf16 %v8106_v32 }
 0x36e   : > { %v8133_v7 = vunpack.i.h.bf16 %v8131_v30  ;;  %v8132_v53 = vunpack.i.l.bf16 %v8131_v30 }
 0x36f   : > { %v4410_v16 = vsel %vm1418_vm7, %v4394_v52, %v8107_v26  ;;  %v4411_v58 = vsel %vm1418_vm7, %v4395_v50, %v8108_v22 }
 0x370   : > { %v8116_v25 = vpop.permute.xlu1 %8115  ;;  %v4456_v45 = vsel %vm3421_vm13, %v4440_v11, %v8132_v53  ;;  %v4457_v3 = vsel %vm3421_vm13, %v4441_v44, %v8133_v7 }
 0x371   : > { %v8141_v59 = vpop.permute.xlu0 %8140  ;;  %v8118_v46 = vunpack.i.h.bf16 %v8116_v25  ;;  %v8117_v28 = vunpack.i.l.bf16 %v8116_v25  ;;  %v10878_v25 = vld [vmem:[%s11619_s4 + $0x1] ss:$0 sm:$0xff] }
 0x372   : > { %v8143_v17 = vunpack.i.h.bf16 %v8141_v59  ;;  %v8142_v9 = vunpack.i.l.bf16 %v8141_v59 }
 0x373   : > { %v4426_v62 = vsel %vm1452_vm9, %v4410_v16, %v8117_v28  ;;  %v4427_v38 = vsel %vm1452_vm9, %v4411_v58, %v8118_v46 }
 0x374   : > { %v8126_v8 = vpop.permute.xlu1 %8125  ;;  %v4472_v2 = vsel %vm3438_vm14, %v4456_v45, %v8142_v9  ;;  %v4473_v20 = vsel %vm3438_vm14, %v4457_v3, %v8143_v17  ;;  %v4687_v3 = vld [vmem:[#allocation4 + $0x7] ss:$2 sm:$0xff] }
 0x375   : > { %v8151_v56 = vpop.permute.xlu0 %8150  ;;  %v8128_v19 = vunpack.i.h.bf16 %v8126_v8  ;;  %v8127_v42 = vunpack.i.l.bf16 %v8126_v8 }
 0x376   : > { %v8153_v48 = vunpack.i.h.bf16 %v8151_v56  ;;  %v8152_v57 = vunpack.i.l.bf16 %v8151_v56 }
 0x377   : > { %v4442_v27 = vsel %vm3404_vm12, %v4426_v62, %v8127_v42  ;;  %v4443_v37 = vsel %vm3404_vm12, %v4427_v38, %v8128_v19  ;;  %v4939_v38 = vld [vmem:[#allocation5 + $0x8] sm:$0xff] }
 0x378   : > { %v4488_v21 = vsel %vm3455_vm15, %v4472_v2, %v8152_v57  ;;  %v4489_v51 = vsel %vm3455_vm15, %v4473_v20, %v8153_v48  ;;  %v8136_v10 = vpop.permute.xlu1 %8135  ;;  %v4711_v48 = vld [vmem:[#allocation4 + $0x8] ss:$2 sm:$0xff]  ;;  %v4735_v2 = vld [vmem:[#allocation4 + $0x9] ss:$2 sm:$0xff] }
 0x379   : > { %v4498_v0 = vpack.c.bf16 %v4489_v51, %v4488_v21  ;;  %v8138_v1 = vunpack.i.h.bf16 %v8136_v10  ;;  %v8137_v15 = vunpack.i.l.bf16 %v8136_v10  ;;  %v4726_v57 = vadd.f32 %v4711_v48, %v4687_v3 }
 0x37b   : > { %6796 = vmatprep.mubr.msk.bf16.mxu1 %vm3507_vm0, %v4498_v0  ;;  %v4458_v40 = vsel %vm3421_vm13, %v4442_v27, %v8137_v15  ;;  %v4459_v23 = vsel %vm3421_vm13, %v4443_v37, %v8138_v1  ;;  %v4750_v20 = vadd.f32 %v4735_v2, %v4726_v57 }
 0x37c   : > { %v8146_v41 = vpop.permute.xlu1 %8145 }
 0x37d   : > { %v8148_v60 = vunpack.i.h.bf16 %v8146_v41  ;;  %v8147_v54 = vunpack.i.l.bf16 %v8146_v41 }
 0x37f   : > { %v4474_v12 = vsel %vm3438_vm14, %v4458_v40, %v8147_v54  ;;  %v4475_v47 = vsel %vm3438_vm14, %v4459_v23, %v8148_v60 }
 0x380   : > { %v8156_v34 = vpop.permute.xlu1 %8155 }
 0x381   : > { %v8158_v32 = vunpack.i.h.bf16 %v8156_v34  ;;  %v8157_v30 = vunpack.i.l.bf16 %v8156_v34 }
 0x383   : > { %v4490_v14 = vsel %vm3455_vm15, %v4474_v12, %v8157_v30  ;;  %v4491_v31 = vsel %vm3455_vm15, %v4475_v47, %v8158_v32  ;;  %v4947_v32 = vld [vmem:[#allocation5 + $0x9] sm:$0xff] }
 0x384   : > { %v4499_v55 = vpack.c.bf16 %v4491_v31, %v4490_v14 }
 0x386   : > { %6797 = vmatmul.mubr.msk.bf16.gmra.mrb[28].mxu1 %vm3507_vm0, %v4499_v55 }
 0x3ae   : > { %v6760_v5 = vpop.f32.mrb[16].mxu0 }
 0x3af   : > { %v3639_v33 = vmul.f32 %v6760_v5, %v10873_v6  ;;  %v3570_v13 = vpop.f32.mrb[17].mxu0 }
 0x3b0   : > { %v3637_v61 = vmul.f32 %v10873_v6, %v3570_v13  ;;  %v6761_v59 = vpop.f32.mrb[18].mxu0 }
 0x3b1   : > { %v3659_v7 = vadd.f32 %v10878_v25, %v3639_v33  ;;  %v3640_v53 = vmul.f32 %v6761_v59, %v10873_v6  ;;  %v3573_v17 = vpop.f32.mrb[19].mxu0 }
 0x3b2   : > { %v3657_v9 = vadd.f32 %v10878_v25, %v3637_v61  ;;  %v3638_v49 = vmul.f32 %v10873_v6, %v3573_v17 }
 0x3b3   : > { %v3675_v36 = vmax.f32 %v3659_v7, 0.0  ;;  %v3660_v8 = vadd.f32 %v10878_v25, %v3640_v53 }
 0x3b4   : > { %v3673_v11 = vmax.f32 %v3657_v9, 0.0  ;;  %v3658_v44 = vadd.f32 %v10878_v25, %v3638_v49 }
 0x3b5   : > { %3692 = vst.msk [vmem:[#allocation4 + $0x48] sm:$0xff] %vm432_vm2, %v3675_v36  ;;  %v3676_v56 = vmax.f32 %v3660_v8, 0.0 }
 0x3b6   : > { %3690 = vst.msk [vmem:[#allocation4 + $0x28] sm:$0xff] %vm432_vm2, %v3673_v11  ;;  %v3674_v45 = vmax.f32 %v3658_v44, 0.0 }
 0x3b7   : > { %3693 = vst.msk [vmem:[#allocation4 + $0x50] sm:$0xff] %vm432_vm2, %v3676_v56 }
 0x3b8   : > { %3691 = vst.msk [vmem:[#allocation4 + $0x30] sm:$0xff] %vm432_vm2, %v3674_v45 }
 0x3be   : > { %v4832_v63 = vld [vmem:[#allocation4 + $0x47] ss:$2 sm:$0xff]  ;;  %v4856_v22 = vld [vmem:[#allocation4 + $0x48] ss:$2 sm:$0xff] }
 0x3bf   : > { %v4759_v24 = vld [vmem:[#allocation4 + $0x27] ss:$2 sm:$0xff]  ;;  %v4783_v21 = vld [vmem:[#allocation4 + $0x28] ss:$2 sm:$0xff] }
 0x3c0   : > { %v4774_v43 = vadd.f32 %v4759_v24, %v4750_v20  ;;  %v4807_v10 = vld [vmem:[#allocation4 + $0x29] ss:$2 sm:$0xff]  ;;  %v4713_v40 = vld [vmem:[#allocation4 + $0x48] ss:$2 sm:$0xff] }
 0x3c1   : > { %v4880_v46 = vld [vmem:[#allocation4 + $0x49] ss:$2 sm:$0xff] }
 0x3c2   : > { %v4798_v51 = vadd.f32 %v4783_v21, %v4774_v43  ;;  %v4689_v34 = vld [vmem:[#allocation4 + $0x47] ss:$2 sm:$0xff] }
 0x3c3   : > { %v4727_v12 = vadd.f32 %v4713_v40, %v4689_v34  ;;  %v4737_v14 = vld [vmem:[#allocation4 + $0x49] ss:$2 sm:$0xff] }
 0x3c4   : > { %v4822_v18 = vadd.f32 %v4807_v10, %v4798_v51 }
 0x3c5   : > { %v4751_v31 = vadd.f32 %v4737_v14, %v4727_v12 }
 0x3c6   : > { %v4847_v0 = vadd.f32 %v4832_v63, %v4822_v18 }
 0x3c8   : > { %v4871_v26 = vadd.f32 %v4856_v22, %v4847_v0 }
 0x3ca   : > { %v4895_v28 = vadd.f32 %v4880_v46, %v4871_v26 }
 0x3cc   : > { %v4903_v4 = vmul.f32 0.11111111, %v4895_v28 }
 0x3cd   : > { %v6764_v35 = vpop.f32.mrb[20].mxu0 }
 0x3ce   : > { %v3643_v29 = vmul.f32 %v6764_v35, %v10873_v6  ;;  %v3586_v39 = vpop.f32.mrb[21].mxu0  ;;  %4912 = vst.msk [vmem:[#allocation5 + $0x20] sm:$0xff] %vm432_vm2, %v4903_v4 }
 0x3cf   : > { %v3641_v19 = vmul.f32 %v10873_v6, %v3586_v39  ;;  %v6765_v42 = vpop.f32.mrb[22].mxu0 }
 0x3d0   : > { %v3663_v41 = vadd.f32 %v10878_v25, %v3643_v29  ;;  %v3644_v52 = vmul.f32 %v6765_v42, %v10873_v6  ;;  %v3589_v50 = vpop.f32.mrb[23].mxu0 }
 0x3d1   : > { %v3661_v1 = vadd.f32 %v10878_v25, %v3641_v19  ;;  %v3642_v15 = vmul.f32 %v10873_v6, %v3589_v50 }
 0x3d2   : > { %v3679_v16 = vmax.f32 %v3663_v41, 0.0  ;;  %v3664_v58 = vadd.f32 %v10878_v25, %v3644_v52 }
 0x3d3   : > { %v3677_v60 = vmax.f32 %v3661_v1, 0.0  ;;  %v3662_v54 = vadd.f32 %v10878_v25, %v3642_v15 }
 0x3d4   : > { %3696 = vst.msk [vmem:[#allocation4 + $0x88] sm:$0xff] %vm432_vm2, %v3679_v16  ;;  %v3680_v62 = vmax.f32 %v3664_v58, 0.0 }
 0x3d5   : > { %3694 = vst.msk [vmem:[#allocation4 + $0x68] sm:$0xff] %vm432_vm2, %v3677_v60  ;;  %v3678_v27 = vmax.f32 %v3662_v54, 0.0  ;;  %v10904_v37 = vld [vmem:[#allocation5 + $0x20] sm:$0xff] }
 0x3d6   : > { %3697 = vst.msk [vmem:[#allocation4 + $0x90] sm:$0xff] %vm432_vm2, %v3680_v62  ;;  %v8159_v23 = vpack.i.bf16 %v10904_v37, %v4939_v38  ;;  %v10908_v30 = vld [vmem:[#allocation5 + $0x21] sm:$0xff] }
 0x3d7   : > { %3695 = vst.msk [vmem:[#allocation4 + $0x70] sm:$0xff] %vm432_vm2, %v3678_v27  ;;  %v8164_v47 = vpack.i.bf16 %v10908_v30, %v4947_v32  ;;  %v10938_v34 = vld [vmem:[#allocation5 + $0x1f] sm:$0xff] }
 0x3d8   : > { %8160 = vrot.lane.b32.xlu0 %v8159_v23, %s11667_s25 }
 0x3dc   : > { %8165 = vrot.lane.b32.xlu0 %v8164_v47, %s11661_s29 }
 0x3dd   : > { %v4834_v7 = vld [vmem:[#allocation4 + $0x87] ss:$2 sm:$0xff]  ;;  %v4858_v36 = vld [vmem:[#allocation4 + $0x88] ss:$2 sm:$0xff] }
 0x3de   : > { %v4761_v55 = vld [vmem:[#allocation4 + $0x67] ss:$2 sm:$0xff]  ;;  %v4785_v33 = vld [vmem:[#allocation4 + $0x68] ss:$2 sm:$0xff] }
 0x3df   : > { %v4775_v5 = vadd.f32 %v4761_v55, %v4751_v31  ;;  %v4809_v61 = vld [vmem:[#allocation4 + $0x69] ss:$2 sm:$0xff]  ;;  %v4715_v50 = vld [vmem:[#allocation4 + $0x88] ss:$2 sm:$0xff] }
 0x3e0   : > { %v4882_v48 = vld [vmem:[#allocation4 + $0x89] ss:$2 sm:$0xff] }
 0x3e1   : > { %v4799_v13 = vadd.f32 %v4785_v33, %v4775_v5  ;;  %v4691_v52 = vld [vmem:[#allocation4 + $0x87] ss:$2 sm:$0xff] }
 0x3e2   : > { %v4728_v60 = vadd.f32 %v4715_v50, %v4691_v52  ;;  %v4739_v54 = vld [vmem:[#allocation4 + $0x89] ss:$2 sm:$0xff] }
 0x3e3   : > { %v4823_v59 = vadd.f32 %v4809_v61, %v4799_v13 }
 0x3e4   : > { %v4752_v62 = vadd.f32 %v4739_v54, %v4728_v60 }
 0x3e5   : > { %v6768_v53 = vpop.f32.mrb[24].mxu0  ;;  %v4848_v17 = vadd.f32 %v4834_v7, %v4823_v59 }
 0x3e6   : > { %v3647_v9 = vmul.f32 %v6768_v53, %v10873_v6  ;;  %v3602_v49 = vpop.f32.mrb[25].mxu0 }
 0x3e7   : > { %v3645_v8 = vmul.f32 %v10873_v6, %v3602_v49  ;;  %v6769_v11 = vpop.f32.mrb[26].mxu0  ;;  %v4872_v44 = vadd.f32 %v4858_v36, %v4848_v17 }
 0x3e8   : > { %v3667_v56 = vadd.f32 %v10878_v25, %v3647_v9  ;;  %v3648_v45 = vmul.f32 %v6769_v11, %v10873_v6  ;;  %v3605_v3 = vpop.f32.mrb[27].mxu0  ;;  %v6786_v20 = vpop.f32.mrb[16].mxu1 }
 0x3e9   : > { %v3665_v57 = vadd.f32 %v10878_v25, %v3645_v8  ;;  %v3646_v2 = vmul.f32 %v10873_v6, %v3605_v3  ;;  %v4623_v21 = vmul.f32 %v6786_v20, %v10873_v6  ;;  %v4558_v51 = vpop.f32.mrb[17].mxu1  ;;  %v4896_v10 = vadd.f32 %v4882_v48, %v4872_v44 }
 0x3ea   : > { %v3683_v24 = vmax.f32 %v3667_v56, 0.0  ;;  %v3668_v43 = vadd.f32 %v10878_v25, %v3648_v45  ;;  %v4621_v0 = vmul.f32 %v10873_v6, %v4558_v51  ;;  %v6787_v22 = vpop.f32.mrb[18].mxu1 }
 0x3eb   : > { %v3681_v18 = vmax.f32 %v3665_v57, 0.0  ;;  %v3666_v63 = vadd.f32 %v10878_v25, %v3646_v2  ;;  %v4639_v46 = vadd.f32 %v10878_v25, %v4623_v21  ;;  %v4624_v28 = vmul.f32 %v6787_v22, %v10873_v6  ;;  %v4561_v35 = vpop.f32.mrb[19].mxu1 }
 0x3ec   : > { %3700 = vst.msk [vmem:[#allocation4 + $0xc8] sm:$0xff] %vm432_vm2, %v3683_v24  ;;  %v3684_v26 = vmax.f32 %v3668_v43, 0.0  ;;  %v4904_v4 = vmul.f32 0.11111111, %v4896_v10  ;;  %v4637_v39 = vadd.f32 %v10878_v25, %v4621_v0  ;;  %v4622_v19 = vmul.f32 %v10873_v6, %v4561_v35 }
 0x3ed   : > { %3698 = vst.msk [vmem:[#allocation4 + $0xa8] sm:$0xff] %vm432_vm2, %v3681_v18  ;;  %v3682_v29 = vmax.f32 %v3666_v63, 0.0  ;;  %v4655_v42 = vmax.f32 %v4639_v46, 0.0  ;;  %v4640_v41 = vadd.f32 %v10878_v25, %v4624_v28 }
 0x3ee   : > { %3701 = vst.msk [vmem:[#allocation4 + $0xd0] sm:$0xff] %vm432_vm2, %v3684_v26  ;;  %4913 = vst.msk [vmem:[#allocation5 + $0x38] sm:$0xff] %vm432_vm2, %v4904_v4  ;;  %v4653_v1 = vmax.f32 %v4637_v39, 0.0  ;;  %v4638_v15 = vadd.f32 %v10878_v25, %v4622_v19 }
 0x3ef   : > { %3699 = vst.msk [vmem:[#allocation4 + $0xb0] sm:$0xff] %vm432_vm2, %v3682_v29  ;;  %4672 = vst.msk [vmem:[#allocation4 + $0x148] sm:$0xff] %vm432_vm2, %v4655_v42  ;;  %v4656_v16 = vmax.f32 %v4640_v41, 0.0 }
 0x3f0   : > { %4670 = vst.msk [vmem:[#allocation4 + $0x128] sm:$0xff] %vm432_vm2, %v4653_v1  ;;  %v4654_v58 = vmax.f32 %v4638_v15, 0.0 }
 0x3f1   : > { %4673 = vst.msk [vmem:[#allocation4 + $0x150] sm:$0xff] %vm432_vm2, %v4656_v16 }
 0x3f2   : > { %4671 = vst.msk [vmem:[#allocation4 + $0x130] sm:$0xff] %vm432_vm2, %v4654_v58 }
 0x3f5   : > { %v10940_v40 = vld [vmem:[#allocation5 + $0x37] sm:$0xff]  ;;  %v4836_v55 = vld [vmem:[#allocation4 + $0xc7] ss:$2 sm:$0xff]  ;;  %v4860_v61 = vld [vmem:[#allocation4 + $0xc8] ss:$2 sm:$0xff] }
 0x3f6   : > { %v4763_v38 = vld [vmem:[#allocation4 + $0xa7] ss:$2 sm:$0xff]  ;;  %v4787_v23 = vld [vmem:[#allocation4 + $0xa8] ss:$2 sm:$0xff]  ;;  %v8169_v32 = vpack.i.bf16 %v10940_v40, %v10938_v34  ;;  %v4964_v47 = vld [vmem:[#allocation5 + $0x38] sm:$0xff] }
 0x3f7   : > { %v4776_v27 = vadd.f32 %v4763_v38, %v4752_v62  ;;  %v4811_v14 = vld [vmem:[#allocation4 + $0xa9] ss:$2 sm:$0xff]  ;;  %v8174_v5 = vpack.i.bf16 %v4964_v47, %v10904_v37  ;;  %v4972_v13 = vld [vmem:[#allocation5 + $0x39] sm:$0xff] }
 0x3f8   : > { %8170 = vrot.lane.b32.xlu0 %v8169_v32, %s11663_s12  ;;  %v4884_v7 = vld [vmem:[#allocation4 + $0xc9] ss:$2 sm:$0xff]  ;;  %v8179_v53 = vpack.i.bf16 %v4972_v13, %v10908_v30  ;;  %v4721_v26 = vld [vmem:[#allocation4 + $0x148] ss:$2 sm:$0xff] }
 0x3f9   : > { %v4800_v12 = vadd.f32 %v4787_v23, %v4776_v27  ;;  %v4697_v22 = vld [vmem:[#allocation4 + $0x147] ss:$2 sm:$0xff] }
 0x3fa   : > { %v4731_v46 = vadd.f32 %v4721_v26, %v4697_v22  ;;  %v4745_v19 = vld [vmem:[#allocation4 + $0x149] ss:$2 sm:$0xff] }
 0x3fb   : > { %v4824_v31 = vadd.f32 %v4811_v14, %v4800_v12 }
 0x3fc   : > { %8175 = vrot.lane.b32.xlu0 %v8174_v5, %s11668_s13  ;;  %v4755_v52 = vadd.f32 %v4745_v19, %v4731_v46  ;;  %v4717_v5 = vld [vmem:[#allocation4 + $0xc8] ss:$2 sm:$0xff]  ;;  %v4840_v46 = vld [vmem:[#allocation4 + $0x147] ss:$2 sm:$0xff] }
 0x3fd   : > { %v4849_v33 = vadd.f32 %v4836_v55, %v4824_v31  ;;  %v4693_v55 = vld [vmem:[#allocation4 + $0xc7] ss:$2 sm:$0xff] }
 0x3ff   : > { %v4873_v59 = vadd.f32 %v4860_v61, %v4849_v33 }
 0x400   : > { %8180 = vrot.lane.b32.xlu0 %v8179_v53, %s11647_s15  ;;  %s11681_s15 = smov 40  }
 0x401   : > { %v4897_v17 = vadd.f32 %v4884_v7, %v4873_v59  ;;  %v4729_v59 = vadd.f32 %v4717_v5, %v4693_v55 }
 0x403   : > { %v4905_v9 = vmul.f32 0.11111111, %v4897_v17 }
 0x405   : > { %4914 = vst.msk [vmem:[#allocation5 + $0x50] sm:$0xff] %vm432_vm2, %v4905_v9 }
 0x40c   : > { %v10950_v49 = vld [vmem:[#allocation5 + $0x50] sm:$0xff] }
 0x40d   : > { %v10952_v36 = vld [vmem:[#allocation5 + $0x4f] sm:$0xff]  ;;  %v8184_v37 = vpack.i.bf16 %v10950_v49, %v4964_v47 }
 0x40e   : > { %v8194_v8 = vpack.i.bf16 %v10952_v36, %v10940_v40  ;;  %v10957_v11 = vld [vmem:[#allocation5 + $0x51] sm:$0xff] }
 0x40f   : > { %8185 = vrot.lane.b32.xlu1 %v8184_v37, %s11667_s25  ;;  %v8189_v45 = vpack.i.bf16 %v10957_v11, %v4972_v13 }
 0x410   : > { %8195 = vrot.lane.b32.xlu0 %v8194_v8, %s11666_s24  ;;  %v4741_v8 = vld [vmem:[#allocation4 + $0xc9] ss:$2 sm:$0xff] }
 0x411   : > { %v6790_v30 = vpop.f32.mrb[20].mxu1 }
 0x412   : > { %v4627_v44 = vmul.f32 %v6790_v30, %v10873_v6  ;;  %v4574_v56 = vpop.f32.mrb[21].mxu1 }
 0x413   : > { %v4625_v3 = vmul.f32 %v10873_v6, %v4574_v56  ;;  %v6791_v48 = vpop.f32.mrb[22].mxu1  ;;  %8190 = vrot.lane.b32.xlu1 %v8189_v45, %s11661_s29  ;;  %v4753_v56 = vadd.f32 %v4741_v8, %v4729_v59 }
 0x414   : > { %v4643_v57 = vadd.f32 %v10878_v25, %v4627_v44  ;;  %8200 = vrot.lane.b32.xlu0 %v8184_v37, %s11679_s30  ;;  %v4628_v2 = vmul.f32 %v6791_v48, %v10873_v6  ;;  %v4577_v20 = vpop.f32.mrb[23].mxu1 }
 0x415   : > { %v4641_v24 = vadd.f32 %v10878_v25, %v4625_v3  ;;  %v4626_v43 = vmul.f32 %v10873_v6, %v4577_v20  ;;  %v4767_v3 = vld [vmem:[#allocation4 + $0x127] ss:$2 sm:$0xff]  ;;  %v4791_v20 = vld [vmem:[#allocation4 + $0x128] ss:$2 sm:$0xff] }
 0x416   : > { %v4659_v21 = vmax.f32 %v4643_v57, 0.0  ;;  %v4644_v51 = vadd.f32 %v10878_v25, %v4628_v2 }
 0x417   : > { %v4657_v10 = vmax.f32 %v4641_v24, 0.0  ;;  %v4642_v18 = vadd.f32 %v10878_v25, %v4626_v43 }
 0x418   : > { %4676 = vst.msk [vmem:[#allocation4 + $0x188] sm:$0xff] %vm432_vm2, %v4659_v21  ;;  %v4660_v63 = vmax.f32 %v4644_v51, 0.0  ;;  %8205 = vrot.lane.b32.xlu0 %v8189_v45, %s11680_s14  ;;  %v4815_v51 = vld [vmem:[#allocation4 + $0x129] ss:$2 sm:$0xff] }
 0x419   : > { %4674 = vst.msk [vmem:[#allocation4 + $0x168] sm:$0xff] %vm432_vm2, %v4657_v10  ;;  %v4658_v0 = vmax.f32 %v4642_v18, 0.0 }
 0x41a   : > { %4677 = vst.msk [vmem:[#allocation4 + $0x190] sm:$0xff] %vm432_vm2, %v4660_v63 }
 0x41b   : > { %4675 = vst.msk [vmem:[#allocation4 + $0x170] sm:$0xff] %vm432_vm2, %v4658_v0 }
 0x41e   : > { %v6772_v28 = vpop.f32.mrb[28].mxu0 }
 0x41f   : > { %v3651_v35 = vmul.f32 %v6772_v28, %v10873_v6  ;;  %v3618_v4 = vpop.f32.mrb[29].mxu0 }
 0x420   : > { %v3649_v29 = vmul.f32 %v10873_v6, %v3618_v4  ;;  %v6773_v39 = vpop.f32.mrb[30].mxu0 }
 0x421   : > { %v3671_v42 = vadd.f32 %v10878_v25, %v3651_v35  ;;  %v3652_v41 = vmul.f32 %v6773_v39, %v10873_v6  ;;  %v3621_v54 = vpop.f32.mrb[31].mxu0  ;;  %v4842_v14 = vld [vmem:[#allocation4 + $0x187] ss:$2 sm:$0xff]  ;;  %v4866_v13 = vld [vmem:[#allocation4 + $0x188] ss:$2 sm:$0xff] }
 0x422   : > { %v3669_v50 = vadd.f32 %v10878_v25, %v3649_v29  ;;  %v4769_v1 = vld [vmem:[#allocation4 + $0x167] ss:$2 sm:$0xff]  ;;  %v4793_v62 = vld [vmem:[#allocation4 + $0x168] ss:$2 sm:$0xff]  ;;  %v3650_v27 = vmul.f32 %v10873_v6, %v3621_v54 }
 0x423   : > { %v3672_v15 = vadd.f32 %v10878_v25, %v3652_v41  ;;  %v4779_v16 = vadd.f32 %v4769_v1, %v4755_v52  ;;  %v3687_v58 = vmax.f32 %v3671_v42, 0.0  ;;  %v4817_v32 = vld [vmem:[#allocation4 + $0x169] ss:$2 sm:$0xff]  ;;  %v4864_v52 = vld [vmem:[#allocation4 + $0x148] ss:$2 sm:$0xff] }
 0x424   : > { %v3685_v60 = vmax.f32 %v3669_v50, 0.0  ;;  %v3670_v12 = vadd.f32 %v10878_v25, %v3650_v27  ;;  %v4890_v7 = vld [vmem:[#allocation4 + $0x189] ss:$2 sm:$0xff] }
 0x425   : > { %v3688_v38 = vmax.f32 %v3672_v15, 0.0  ;;  %v4803_v23 = vadd.f32 %v4793_v62, %v4779_v16  ;;  %3704 = vst.msk [vmem:[#allocation4 + $0x108] sm:$0xff] %vm432_vm2, %v3687_v58  ;;  %v4888_v62 = vld [vmem:[#allocation4 + $0x149] ss:$2 sm:$0xff] }
 0x426   : > { %3702 = vst.msk [vmem:[#allocation4 + $0xe8] sm:$0xff] %vm432_vm2, %v3685_v60  ;;  %v3686_v31 = vmax.f32 %v3670_v12, 0.0  ;;  %v4699_v5 = vld [vmem:[#allocation4 + $0x187] ss:$2 sm:$0xff] }
 0x427   : > { %3705 = vst.msk [vmem:[#allocation4 + $0x110] sm:$0xff] %vm432_vm2, %v3688_v38  ;;  %v4827_v47 = vadd.f32 %v4817_v32, %v4803_v23  ;;  %v4747_v59 = vld [vmem:[#allocation4 + $0x189] ss:$2 sm:$0xff] }
 0x428   : > { %3703 = vst.msk [vmem:[#allocation4 + $0xf0] sm:$0xff] %vm432_vm2, %v3686_v31 }
 0x429   : > { %v4852_v33 = vadd.f32 %v4842_v14, %v4827_v47 }
 0x42b   : > { %v4876_v61 = vadd.f32 %v4866_v13, %v4852_v33  ;;  %v4723_v33 = vld [vmem:[#allocation4 + $0x188] ss:$2 sm:$0xff] }
 0x42c   : > { %v4732_v13 = vadd.f32 %v4723_v33, %v4699_v5 }
 0x42d   : > { %v4900_v9 = vadd.f32 %v4890_v7, %v4876_v61  ;;  %v8502_v61 = vld [vmem:[%s11620_s5] sm:$0xff]  }
 0x42e   : > { %v4695_v53 = vld [vmem:[#allocation4 + $0x107] ss:$2 sm:$0xff]  ;;  %v4719_v17 = vld [vmem:[#allocation4 + $0x108] ss:$2 sm:$0xff]  ;;  %6800 = vmatprep.subr.bf16.mxu0 %v8502_v61  ;;  %v4756_v7 = vadd.f32 %v4747_v59, %v4732_v13 }
 0x42f   : > { %v4730_v37 = vadd.f32 %v4719_v17, %v4695_v53  ;;  %v4743_v30 = vld [vmem:[#allocation4 + $0x109] ss:$2 sm:$0xff]  ;;  %v4908_v44 = vmul.f32 0.11111111, %v4900_v9  ;;  %v4789_v24 = vld [vmem:[#allocation4 + $0xe8] ss:$2 sm:$0xff]  ;;  %6801 = vmatpush3.bf16.msra.mxu0 %v8502_v61 }
 0x430   : > { %v4765_v48 = vld [vmem:[#allocation4 + $0xe7] ss:$2 sm:$0xff]  ;;  %v4862_v50 = vld [vmem:[#allocation4 + $0x108] ss:$2 sm:$0xff] }
 0x431   : > { %v4754_v45 = vadd.f32 %v4743_v30, %v4730_v37  ;;  %4917 = vst.msk [vmem:[#allocation5 + $0x98] sm:$0xff] %vm432_vm2, %v4908_v44  ;;  %v4777_v2 = vadd.f32 %v4765_v48, %v4753_v56  ;;  %v4813_v10 = vld [vmem:[#allocation4 + $0xe9] ss:$2 sm:$0xff] }
 0x432   : > { %v4838_v28 = vld [vmem:[#allocation4 + $0x107] ss:$2 sm:$0xff] }
 0x433   : > { %v4778_v57 = vadd.f32 %v4767_v3, %v4754_v45  ;;  %v4801_v21 = vadd.f32 %v4789_v24, %v4777_v2  ;;  %v4886_v38 = vld [vmem:[#allocation4 + $0x109] ss:$2 sm:$0xff] }
 0x434   : > { %v8503_v48 = vld [vmem:[%s11620_s5 + $0x8] sm:$0xff]  }
 0x435   : > { %v4802_v43 = vadd.f32 %v4791_v20, %v4778_v57  ;;  %v4825_v0 = vadd.f32 %v4813_v10, %v4801_v21  ;;  %v8504_v57 = vld [vmem:[%s11620_s5 + $0x10] sm:$0xff]   ;;  %6802 = vmatprep.subr.bf16.mxu0 %v8503_v48 }
 0x436   : > { %v6794_v18 = vpop.f32.mrb[24].mxu1  ;;  %6803 = vmatpush3.bf16.msra.mxu0 %v8503_v48 }
 0x437   : > { %v4826_v63 = vadd.f32 %v4815_v51, %v4802_v43  ;;  %v4631_v22 = vmul.f32 %v6794_v18, %v10873_v6  ;;  %v4590_v26 = vpop.f32.mrb[25].mxu1  ;;  %v4850_v39 = vadd.f32 %v4838_v28, %v4825_v0  ;;  %6804 = vmatprep.subr.bf16.mxu0 %v8504_v57 }
 0x438   : > { %v4629_v35 = vmul.f32 %v10873_v6, %v4590_v26  ;;  %v6795_v4 = vpop.f32.mrb[26].mxu1  ;;  %v11027_v26 = vld [vmem:[#allocation5 + $0x97] sm:$0xff] }
 0x439   : > { %v4851_v29 = vadd.f32 %v4840_v46, %v4826_v63  ;;  %v4647_v19 = vadd.f32 %v10878_v25, %v4631_v22  ;;  %v4632_v42 = vmul.f32 %v6795_v4, %v10873_v6  ;;  %v4593_v41 = vpop.f32.mrb[27].mxu1  ;;  %v4874_v16 = vadd.f32 %v4862_v50, %v4850_v39  ;;  %v8505_v63 = vld [vmem:[%s11620_s5 + $0x18] sm:$0xff]   ;;  %v8506_v4 = vld [vmem:[%s11620_s5 + $0x20] ss:$0 sps:$4 sm:$0xff]  }
 0x43a   : > { %v4645_v1 = vadd.f32 %v10878_v25, %v4629_v35  ;;  %v4630_v15 = vmul.f32 %v10873_v6, %v4593_v41  ;;  %6805 = vmatpush3.bf16.msra.mxu0 %v8504_v57 }
 0x43b   : > { %v4663_v58 = vmax.f32 %v4647_v19, 0.0  ;;  %v4648_v60 = vadd.f32 %v10878_v25, %v4632_v42  ;;  %v4875_v54 = vadd.f32 %v4864_v52, %v4851_v29  ;;  %v4898_v12 = vadd.f32 %v4886_v38, %v4874_v16  ;;  %6806 = vmatprep.subr.bf16.mxu0 %v8505_v63  ;;  %v4968_v29 = vld [vmem:[#allocation5 + $0x98] sm:$0xff] }
 0x43c   : > { %v4661_v27 = vmax.f32 %v4645_v1, 0.0  ;;  %v4646_v23 = vadd.f32 %v10878_v25, %v4630_v15  ;;  %v5368_v42 = vsel %vm3532_vm1, %v8506_v4, 0  ;;  %v4976_v52 = vld [vmem:[#allocation5 + $0x99] sm:$0xff] }
 0x43d   : > { %4680 = vst.msk [vmem:[#allocation4 + $0x1c8] sm:$0xff] %vm432_vm2, %v4663_v58  ;;  %v4664_v32 = vmax.f32 %v4648_v60, 0.0  ;;  %v4899_v47 = vadd.f32 %v4888_v62, %v4875_v54  ;;  %v4906_v31 = vmul.f32 0.11111111, %v4898_v12 }
 0x43e   : > { %4678 = vst.msk [vmem:[#allocation4 + $0x1a8] sm:$0xff] %vm432_vm2, %v4661_v27  ;;  %v4662_v14 = vmax.f32 %v4646_v23, 0.0  ;;  %6807 = vmatpush3.bf16.msra.mxu0 %v8505_v63 }
 0x43f   : > { %4681 = vst.msk [vmem:[#allocation4 + $0x1d0] sm:$0xff] %vm432_vm2, %v4664_v32  ;;  %v4907_v55 = vmul.f32 0.11111111, %v4899_v47  ;;  %4915 = vst.msk [vmem:[#allocation5 + $0x68] sm:$0xff] %vm432_vm2, %v4906_v31  ;;  %6822 = vmatprep.subr.msk.bf16.mxu0 %vm3532_vm1, %v8506_v4 }
 0x440   : > { %4679 = vst.msk [vmem:[#allocation4 + $0x1b0] sm:$0xff] %vm432_vm2, %v4662_v14 }
 0x441   : > { %4916 = vst.msk [vmem:[#allocation5 + $0x80] sm:$0xff] %vm432_vm2, %v4907_v55 }
 0x442   : > { %6809 = vmatpush3.bf16.msra.mxu0 %v5368_v42 }
 0x446   : > { %v11007_v9 = vld [vmem:[#allocation5 + $0x67] sm:$0xff] }
 0x447   : > { %v4771_v53 = vld [vmem:[#allocation4 + $0x1a7] ss:$2 sm:$0xff]  ;;  %v4795_v30 = vld [vmem:[#allocation4 + $0x1a8] ss:$2 sm:$0xff]  ;;  %v8209_v44 = vpack.i.bf16 %v11007_v9, %v10952_v36 }
 0x448   : > { %v4780_v17 = vadd.f32 %v4771_v53, %v4756_v7  ;;  %v4943_v37 = vld [vmem:[#allocation5 + $0x68] sm:$0xff]  ;;  %v4944_v8 = vld [vmem:[#allocation5 + $0x80] sm:$0xff] }
 0x449   : > { %v8239_v56 = vpack.i.bf16 %v4944_v8, %v4943_v37  ;;  %v4952_v3 = vld [vmem:[#allocation5 + $0x81] sm:$0xff]  ;;  %v4819_v2 = vld [vmem:[#allocation4 + $0x1a9] ss:$2 sm:$0xff]  ;;  %8210 = vrot.lane.b32.xlu1 %v8209_v44, %s11663_s12  ;;  %v8214_v21 = vpack.i.bf16 %v4943_v37, %v10950_v49 }
 0x44a   : > { %v4804_v45 = vadd.f32 %v4795_v30, %v4780_v17  ;;  %v4951_v24 = vld [vmem:[#allocation5 + $0x69] sm:$0xff]  ;;  %v11020_v18 = vld [vmem:[#allocation5 + $0x7f] sm:$0xff]  ;;  %v8259_v15 = vpack.i.bf16 %v4976_v52, %v4952_v3  ;;  %v8161_v17 = vpop.permute.xlu0 %8160 }
 0x44b   : > { %8240 = vrot.lane.b32.xlu0 %v8239_v56, %s11667_s25  ;;  %v4844_v43 = vld [vmem:[#allocation4 + $0x1c7] ss:$2 sm:$0xff]  ;;  %v8244_v51 = vpack.i.bf16 %v4952_v3, %v4951_v24  ;;  %v4868_v0 = vld [vmem:[#allocation4 + $0x1c8] ss:$2 sm:$0xff]  ;;  %v8219_v49 = vpack.i.bf16 %v4951_v24, %v10957_v11  ;;  %v8249_v28 = vpack.i.bf16 %v11027_v26, %v11020_v18  ;;  %v8224_v19 = vpack.i.bf16 %v11020_v18, %v11007_v9 }
 0x44c   : > { %v4828_v20 = vadd.f32 %v4819_v2, %v4804_v45  ;;  %v4892_v46 = vld [vmem:[#allocation4 + $0x1c9] ss:$2 sm:$0xff]  ;;  %v8254_v11 = vpack.i.bf16 %v4968_v29, %v4944_v8  ;;  %v4725_v61 = vld [vmem:[#allocation4 + $0x1c8] ss:$2 sm:$0xff] }
 0x44d   : > { %8215 = vrot.lane.b32.xlu1 %v8214_v21, %s11668_s13  ;;  %v4701_v13 = vld [vmem:[#allocation4 + $0x1c7] ss:$2 sm:$0xff] }
 0x44e   : > { %v4853_v10 = vadd.f32 %v4844_v43, %v4828_v20  ;;  %v4733_v59 = vadd.f32 %v4725_v61, %v4701_v13  ;;  %v4749_v53 = vld [vmem:[#allocation4 + $0x1c9] ss:$2 sm:$0xff]  ;;  %v8166_v45 = vpop.permute.xlu0 %8165  ;;  %v4987_v61 = vld [vmem:[#allocation5 + $0xdf] sm:$0xff] }
 0x44f   : > { %8245 = vrot.lane.b32.xlu0 %v8244_v51, %s11661_s29 }
 0x450   : > { %v4877_v22 = vadd.f32 %v4868_v0, %v4853_v10  ;;  %v4757_v37 = vadd.f32 %v4749_v53, %v4733_v59 }
 0x451   : > { %8220 = vrot.lane.b32.xlu1 %v8219_v49, %s11681_s15  ;;  %v8163_v49 = vunpack.i.h.bf16 %v8161_v17 }
 0x452   : > { %v4901_v35 = vadd.f32 %v4892_v46, %v4877_v22 }
 0x453   : > { %8250 = vrot.lane.b32.xlu0 %v8249_v28, %s11663_s12  ;;  %v8162_v28 = vunpack.i.l.bf16 %v8161_v17 }
 0x454   : > { %v4909_v39 = vmul.f32 0.11111111, %v4901_v35 }
 0x455   : > { %8225 = vrot.lane.b32.xlu1 %v8224_v19, %s11666_s24  ;;  %v8167_v19 = vunpack.i.l.bf16 %v8166_v45 }
 0x456   : > { %4918 = vst.msk [vmem:[#allocation5 + $0xb0] sm:$0xff] %vm432_vm2, %v4909_v39  ;;  %v8168_v39 = vunpack.i.h.bf16 %v8166_v45  ;;  %v4995_v45 = vld [vmem:[#allocation5 + $0xe0] sm:$0xff] }
 0x457   : > { %8255 = vrot.lane.b32.xlu0 %v8254_v11, %s11668_s13 }
 0x459   : > { %v6798_v41 = vpop.f32.mrb[28].mxu1  ;;  %8230 = vrot.lane.b32.xlu1 %v8239_v56, %s11679_s30 }
 0x45a   : > { %v4635_v50 = vmul.f32 %v6798_v41, %v10873_v6  ;;  %v4606_v1 = vpop.f32.mrb[29].mxu1 }
 0x45b   : > { %v4633_v16 = vmul.f32 %v10873_v6, %v4606_v1  ;;  %v6799_v58 = vpop.f32.mrb[30].mxu1  ;;  %8260 = vrot.lane.b32.xlu0 %v8259_v15, %s11681_s15  ;;  %v5261_v1 = vsel %vm432_vm2, %v10938_v34, %v8163_v49 }
 0x45c   : > { %v4651_v60 = vadd.f32 %v10878_v25, %v4635_v50  ;;  %v4636_v54 = vmul.f32 %v6799_v58, %v10873_v6  ;;  %v4609_v62 = vpop.f32.mrb[31].mxu1 }
 0x45d   : > { %v4649_v38 = vadd.f32 %v10878_v25, %v4633_v16  ;;  %v4634_v27 = vmul.f32 %v10873_v6, %v4609_v62  ;;  %v11053_v12 = vld [vmem:[#allocation5 + $0xb0] sm:$0xff]  ;;  %8235 = vrot.lane.b32.xlu1 %v8244_v51, %s11680_s14 }
 0x45e   : > { %v4667_v23 = vmax.f32 %v4651_v60, 0.0  ;;  %v4652_v32 = vadd.f32 %v10878_v25, %v4636_v54  ;;  %v11055_v47 = vld [vmem:[#allocation5 + $0xaf] sm:$0xff]  ;;  %v8264_v6 = vpack.i.bf16 %v11053_v12, %v4968_v29  ;;  %v4931_v29 = vld [vmem:[#allocation5 + $0x7] sm:$0xff] }
 0x45f   : > { %v4665_v14 = vmax.f32 %v4649_v38, 0.0  ;;  %v4650_v31 = vadd.f32 %v10878_v25, %v4634_v27  ;;  %v8274_v55 = vpack.i.bf16 %v11055_v47, %v11027_v26  ;;  %v11067_v25 = vld [vmem:[#allocation5 + $0xb1] sm:$0xff]  ;;  %v5260_v15 = vsel %vm432_vm2, %v4931_v29, %v8162_v28 }
 0x460   : > { %4684 = vst.msk [vmem:[#allocation4 + $0x208] sm:$0xff] %vm432_vm2, %v4667_v23  ;;  %v4668_v5 = vmax.f32 %v4652_v32, 0.0  ;;  %v8269_v7 = vpack.i.bf16 %v11067_v25, %v4976_v52  ;;  %v5268_v62 = vsel %vm551_vm3, %v5260_v15, %v8167_v19  ;;  %v5269_v38 = vsel %vm551_vm3, %v5261_v1, %v8168_v39 }
 0x461   : > { %4682 = vst.msk [vmem:[#allocation4 + $0x1e8] sm:$0xff] %vm432_vm2, %v4665_v14  ;;  %v4666_v33 = vmax.f32 %v4650_v31, 0.0  ;;  %8275 = vrot.lane.b32.xlu0 %v8274_v55, %s11666_s24  ;;  %8265 = vrot.lane.b32.xlu1 %v8264_v6, %s11667_s25  ;;  %s11651_s25 = smov 80  }
 0x462   : > { %4685 = vst.msk [vmem:[#allocation4 + $0x210] sm:$0xff] %vm432_vm2, %v4668_v5 }
 0x463   : > { %4683 = vst.msk [vmem:[#allocation4 + $0x1f0] sm:$0xff] %vm432_vm2, %v4666_v33 }
 0x465   : > { %8280 = vrot.lane.b32.xlu0 %v8264_v6, %s11679_s30  ;;  %8270 = vrot.lane.b32.xlu1 %v8269_v7, %s11661_s29 }
 0x469   : > { %8285 = vrot.lane.b32.xlu0 %v8269_v7, %s11680_s14  ;;  %v4846_v57 = vld [vmem:[#allocation4 + $0x207] ss:$2 sm:$0xff]  ;;  %v4870_v20 = vld [vmem:[#allocation4 + $0x208] ss:$2 sm:$0xff] }
 0x46a   : > { %v4773_v8 = vld [vmem:[#allocation4 + $0x1e7] ss:$2 sm:$0xff]  ;;  %v4797_v44 = vld [vmem:[#allocation4 + $0x1e8] ss:$2 sm:$0xff]  ;;  %v8171_v24 = vpop.permute.xlu0 %8170 }
 0x46b   : > { %v4781_v30 = vadd.f32 %v4773_v8, %v4757_v37  ;;  %v4821_v3 = vld [vmem:[#allocation4 + $0x1e9] ss:$2 sm:$0xff]  ;;  %v8173_v11 = vunpack.i.h.bf16 %v8171_v24  ;;  %v8172_v42 = vunpack.i.l.bf16 %v8171_v24 }
 0x46c   : > { %v4894_v21 = vld [vmem:[#allocation4 + $0x209] ss:$2 sm:$0xff] }
 0x46d   : > { %v4805_v56 = vadd.f32 %v4797_v44, %v4781_v30  ;;  %v5276_v32 = vsel %vm1418_vm7, %v5268_v62, %v8172_v42 }
 0x46e   : > { %v8176_v63 = vpop.permute.xlu0 %8175 }
 0x46f   : > { %v4829_v48 = vadd.f32 %v4821_v3, %v4805_v56  ;;  %v8178_v41 = vunpack.i.h.bf16 %v8176_v63  ;;  %v8177_v52 = vunpack.i.l.bf16 %v8176_v63 }
 0x471   : > { %v4854_v2 = vadd.f32 %v4846_v57, %v4829_v48  ;;  %v5284_v31 = vsel %vm1452_vm9, %v5276_v32, %v8177_v52  ;;  %v5003_v48 = vld [vmem:[#allocation5 + $0xe1] sm:$0xff] }
 0x472   : > { %v8181_v0 = vpop.permute.xlu0 %8180 }
 0x473   : > { %v4878_v43 = vadd.f32 %v4870_v20, %v4854_v2  ;;  %v8183_v16 = vunpack.i.h.bf16 %v8181_v0  ;;  %v8182_v58 = vunpack.i.l.bf16 %v8181_v0 }
 0x475   : > { %v4902_v51 = vadd.f32 %v4894_v21, %v4878_v43  ;;  %v5292_v6 = vsel %vm3404_vm12, %v5284_v31, %v8182_v58 }
 0x477   : > { %v4910_v10 = vmul.f32 0.11111111, %v4902_v51 }
 0x479   : > { %4919 = vst.msk [vmem:[#allocation5 + $0xc8] sm:$0xff] %vm432_vm2, %v4910_v10 }
 0x480   : > { %v4962_v22 = vld [vmem:[#allocation5 + $0xc7] sm:$0xff] }
 0x481   : > { %v8289_v46 = vpack.i.bf16 %v4962_v22, %v11055_v47  ;;  %v4970_v4 = vld [vmem:[#allocation5 + $0xc8] sm:$0xff]  ;;  %v8304_v44 = vpack.i.bf16 %v4987_v61, %v4962_v22  ;;  %v8186_v2 = vpop.permute.xlu1 %8185 }
 0x482   : > { %v8196_v35 = vpop.permute.xlu0 %8195  ;;  %v8294_v50 = vpack.i.bf16 %v4970_v4, %v11053_v12  ;;  %v4978_v54 = vld [vmem:[#allocation5 + $0xc9] sm:$0xff]  ;;  %v5277_v12 = vsel %vm1418_vm7, %v5269_v38, %v8173_v11  ;;  %v8309_v3 = vpack.i.bf16 %v4995_v45, %v4970_v4  ;;  %v8188_v0 = vunpack.i.h.bf16 %v8186_v2 }
 0x483   : > { %8290 = vrot.lane.b32.xlu1 %v8289_v46, %s11663_s12  ;;  %v8198_v27 = vunpack.i.h.bf16 %v8196_v35  ;;  %v8197_v23 = vunpack.i.l.bf16 %v8196_v35  ;;  %v5285_v55 = vsel %vm1452_vm9, %v5277_v12, %v8178_v41  ;;  %v8299_v5 = vpack.i.bf16 %v4978_v54, %v11067_v25 }
 0x484   : > { %v5293_v33 = vsel %vm3404_vm12, %v5285_v55, %v8183_v16  ;;  %v8314_v57 = vpack.i.bf16 %v5003_v48, %v4978_v54  ;;  %v8187_v22 = vunpack.i.l.bf16 %v8186_v2  ;;  %v5263_v11 = vsel %vm432_vm2, %v10952_v36, %v8188_v0 }
 0x485   : > { %v5300_v59 = vsel %vm3421_vm13, %v5292_v6, %v8197_v23  ;;  %v5301_v7 = vsel %vm3421_vm13, %v5293_v33, %v8198_v27  ;;  %v8191_v20 = vpop.permute.xlu1 %8190 }
 0x486   : > { %v8201_v60 = vpop.permute.xlu0 %8200  ;;  %v8193_v28 = vunpack.i.h.bf16 %v8191_v20  ;;  %v8192_v35 = vunpack.i.l.bf16 %v8191_v20  ;;  %v5262_v42 = vsel %vm432_vm2, %v10940_v40, %v8187_v22 }
 0x487   : > { %8295 = vrot.lane.b32.xlu1 %v8294_v50, %s11668_s13  ;;  %v8203_v14 = vunpack.i.h.bf16 %v8201_v60  ;;  %v8202_v34 = vunpack.i.l.bf16 %v8201_v60 }
 0x488   : > { %v5270_v15 = vsel %vm551_vm3, %v5262_v42, %v8192_v35  ;;  %v5271_v16 = vsel %vm551_vm3, %v5263_v11, %v8193_v28 }
 0x489   : > { %v5308_v37 = vsel %vm3438_vm14, %v5300_v59, %v8202_v34  ;;  %v5309_v8 = vsel %vm3438_vm14, %v5301_v7, %v8203_v14 }
 0x48a   : > { %v8206_v13 = vpop.permute.xlu0 %8205 }
 0x48b   : > { %v8208_v53 = vunpack.i.h.bf16 %v8206_v13  ;;  %v8207_v17 = vunpack.i.l.bf16 %v8206_v13  ;;  %8300 = vrot.lane.b32.xlu1 %v8299_v5, %s11681_s15  ;;  %s11572_s15 = scalar_lea.hbm %s11626_s11, %s6621_s3 }
 0x48d   : > { %v5316_v25 = vsel %vm3455_vm15, %v5308_v37, %v8207_v17  ;;  %v5317_v30 = vsel %vm3455_vm15, %v5309_v8, %v8208_v53 }
 0x48e   : > { %v5324_v56 = vpack.c.bf16 %v5317_v30, %v5316_v25 }
 0x48f   : > { %8305 = vrot.lane.b32.xlu1 %v8304_v44, %s11666_s24 }
 0x490   : > { %6810 = vmatprep.mubr.msk.bf16.mxu0 %vm3507_vm0, %v5324_v56 }
 0x493   : > { %8310 = vrot.lane.b32.xlu1 %v8309_v3, %s11679_s30  ;;  %s11650_s30 = smov 96  }
 0x497   : > { %8315 = vrot.lane.b32.xlu1 %v8314_v57, %s11680_s14 }
 0x4bb   : > { %v8211_v24 = vpop.permute.xlu1 %8210 }
 0x4bc   : > { %v8213_v4 = vunpack.i.h.bf16 %v8211_v24  ;;  %v8212_v29 = vunpack.i.l.bf16 %v8211_v24 }
 0x4bd   : > { %v8241_v43 = vpop.permute.xlu0 %8240 }
 0x4be   : > { %v5279_v54 = vsel %vm1418_vm7, %v5271_v16, %v8213_v4  ;;  %v5278_v62 = vsel %vm1418_vm7, %v5270_v15, %v8212_v29  ;;  %v8243_v23 = vunpack.i.h.bf16 %v8241_v43  ;;  %v8242_v32 = vunpack.i.l.bf16 %v8241_v43 }
 0x4bf   : > { %v8216_v21 = vpop.permute.xlu1 %8215 }
 0x4c0   : > { %v8218_v39 = vunpack.i.h.bf16 %v8216_v21  ;;  %v8217_v19 = vunpack.i.l.bf16 %v8216_v21  ;;  %v5265_v56 = vsel %vm432_vm2, %v11020_v18, %v8243_v23  ;;  %v5264_v45 = vsel %vm432_vm2, %v11007_v9, %v8242_v32 }
 0x4c1   : > { %v8246_v51 = vpop.permute.xlu0 %8245 }
 0x4c2   : > { %v5286_v36 = vsel %vm1452_vm9, %v5278_v62, %v8217_v19  ;;  %v5287_v40 = vsel %vm1452_vm9, %v5279_v54, %v8218_v39  ;;  %v8248_v13 = vunpack.i.h.bf16 %v8246_v51  ;;  %v8247_v61 = vunpack.i.l.bf16 %v8246_v51 }
 0x4c3   : > { %v8221_v10 = vpop.permute.xlu1 %8220 }
 0x4c4   : > { %v8223_v41 = vunpack.i.h.bf16 %v8221_v10  ;;  %v8222_v52 = vunpack.i.l.bf16 %v8221_v10  ;;  %v5272_v2 = vsel %vm551_vm3, %v5264_v45, %v8247_v61  ;;  %v5273_v20 = vsel %vm551_vm3, %v5265_v56, %v8248_v13 }
 0x4c5   : > { %v8251_v63 = vpop.permute.xlu0 %8250 }
 0x4c6   : > { %v5294_v12 = vsel %vm3404_vm12, %v5286_v36, %v8222_v52  ;;  %v5295_v14 = vsel %vm3404_vm12, %v5287_v40, %v8223_v41  ;;  %v8253_v53 = vunpack.i.h.bf16 %v8251_v63  ;;  %v8252_v17 = vunpack.i.l.bf16 %v8251_v63 }
 0x4c7   : > { %v8226_v46 = vpop.permute.xlu1 %8225 }
 0x4c8   : > { %v8228_v58 = vunpack.i.h.bf16 %v8226_v46  ;;  %v8227_v60 = vunpack.i.l.bf16 %v8226_v46  ;;  %v5280_v21 = vsel %vm1418_vm7, %v5272_v2, %v8252_v17  ;;  %v5281_v51 = vsel %vm1418_vm7, %v5273_v20, %v8253_v53  ;;  %v8507_v2 = vld [vmem:[%s11622_s7] sm:$0xff]  }
 0x4c9   : > { %v8256_v49 = vpop.permute.xlu0 %8255  ;;  %v8626_v20 = vmov 0  }
 0x4ca   : > { %v5302_v31 = vsel %vm3421_vm13, %v5294_v12, %v8227_v60  ;;  %v5303_v55 = vsel %vm3421_vm13, %v5295_v14, %v8228_v58  ;;  %v8258_v25 = vunpack.i.h.bf16 %v8256_v49  ;;  %v8257_v30 = vunpack.i.l.bf16 %v8256_v49  ;;  %5926 = vmatprep.subr.bf16.mxu1 %v8626_v20 }
 0x4cb   : > { %v8231_v50 = vpop.permute.xlu1 %8230  ;;  %5927 = vmatpush1.bf16.msra.mxu1 %v8507_v2 }
 0x4cc   : > { %v8233_v38 = vunpack.i.h.bf16 %v8231_v50  ;;  %v8232_v27 = vunpack.i.l.bf16 %v8231_v50  ;;  %v5288_v63 = vsel %vm1452_vm9, %v5280_v21, %v8257_v30  ;;  %v5289_v9 = vsel %vm1452_vm9, %v5281_v51, %v8258_v25  ;;  %5928 = vmatprep.subr.bf16.mxu1 %v8626_v20  ;;  %v8510_v21 = vld [vmem:[%s11622_s7 + $0x18] sm:$0xff]   ;;  %v11241_v51 = vld [vmem:[%s11621_s6] ss:$0 sm:$0xff] }
 0x4cd   : > { %v8261_v1 = vpop.permute.xlu0 %8260 }
 0x4ce   : > { %v5310_v59 = vsel %vm3438_vm14, %v5302_v31, %v8232_v27  ;;  %v5311_v7 = vsel %vm3438_vm14, %v5303_v55, %v8233_v38  ;;  %v8263_v3 = vunpack.i.h.bf16 %v8261_v1  ;;  %v8262_v48 = vunpack.i.l.bf16 %v8261_v1 }
 0x4cf   : > { %v8236_v34 = vpop.permute.xlu1 %8235 }
 0x4d0   : > { %v8238_v5 = vunpack.i.h.bf16 %v8236_v34  ;;  %v8237_v6 = vunpack.i.l.bf16 %v8236_v34  ;;  %v5296_v0 = vsel %vm3404_vm12, %v5288_v63, %v8262_v48  ;;  %v5297_v22 = vsel %vm3404_vm12, %v5289_v9, %v8263_v3 }
 0x4d2   : > { %v5318_v37 = vsel %vm3455_vm15, %v5310_v59, %v8237_v6  ;;  %v5319_v8 = vsel %vm3455_vm15, %v5311_v7, %v8238_v5 }
 0x4d3   : > { %v8276_v33 = vpop.permute.xlu0 %8275  ;;  %v5325_v44 = vpack.c.bf16 %v5319_v8, %v5318_v37  ;;  %v8266_v41 = vpop.permute.xlu1 %8265 }
 0x4d4   : > { %v8278_v24 = vunpack.i.h.bf16 %v8276_v33  ;;  %v8277_v43 = vunpack.i.l.bf16 %v8276_v33  ;;  %v8268_v16 = vunpack.i.h.bf16 %v8266_v41  ;;  %v8267_v58 = vunpack.i.l.bf16 %v8266_v41  ;;  %v8511_v41 = vld [vmem:[%s11622_s7 + $0x20] sm:$0xff]  }
 0x4d5   : > { %6811 = vmatmul.mubr.msk.bf16.vlgmr.msra.gmra.mrb[32].mxu0 %vm3507_vm0, %v5325_v44 }
 0x4d6   : > { %v5304_v49 = vsel %vm3421_vm13, %v5296_v0, %v8277_v43  ;;  %v5305_v28 = vsel %vm3421_vm13, %v5297_v22, %v8278_v24  ;;  %v5267_v23 = vsel %vm432_vm2, %v11055_v47, %v8268_v16  ;;  %v5266_v32 = vsel %vm432_vm2, %v11027_v26, %v8267_v58  ;;  %v8508_v24 = vld [vmem:[%s11622_s7 + $0x8] sm:$0xff]   ;;  %v8509_v43 = vld [vmem:[%s11622_s7 + $0x10] sm:$0xff]  }
 0x4d7   : > { %v8281_v57 = vpop.permute.xlu0 %8280  ;;  %v8271_v52 = vpop.permute.xlu1 %8270  ;;  %vm554_vm2 = vcmask 122880   ;;  %5929 = vmatpush1.bf16.msra.mxu1 %v8508_v24 }
 0x4d8   : > { %v8283_v10 = vunpack.i.h.bf16 %v8281_v57  ;;  %v8282_v18 = vunpack.i.l.bf16 %v8281_v57  ;;  %v8273_v54 = vunpack.i.h.bf16 %v8271_v52  ;;  %v8272_v62 = vunpack.i.l.bf16 %v8271_v52  ;;  %5930 = vmatprep.subr.bf16.mxu1 %v8626_v20 }
 0x4d9   : > { %v11682_v57 = vmov 0.0  }
 0x4da   : > { %v5312_v29 = vsel %vm3438_vm14, %v5304_v49, %v8282_v18  ;;  %v5313_v39 = vsel %vm3438_vm14, %v5305_v28, %v8283_v10  ;;  %v5274_v31 = vsel %vm551_vm3, %v5266_v32, %v8272_v62  ;;  %v5275_v55 = vsel %vm551_vm3, %v5267_v23, %v8273_v54  ;;  %555 = vst.msk [vmem:[#allocation6 + $0x10] sm:$0x1] %vm554_vm2, %v11682_v57  ;;  %v11246_v10 = vld [vmem:[%s11621_s6 + $0x1] ss:$0 sm:$0xff]  ;;  %v8513_v23 = vld [vmem:[%s11622_s7 + $0x30] sm:$0xff]  }
 0x4db   : > { %v8286_v46 = vpop.permute.xlu0 %8285  ;;  %571 = vst.msk [vmem:[#allocation6 + $0x28] sm:$0x1] %vm554_vm2, %v11682_v57  ;;  %559 = vst.msk [vmem:[#allocation6 + $0xe8] sm:$0x1] %vm554_vm2, %v11682_v57  ;;  %5931 = vmatpush1.bf16.msra.mxu1 %v8509_v43 }
 0x4dc   : > { %v8288_v35 = vunpack.i.h.bf16 %v8286_v46  ;;  %v8287_v4 = vunpack.i.l.bf16 %v8286_v46  ;;  %560 = vst.msk [vmem:[#allocation6 + $0x7] sm:$0x1] %vm554_vm2, %v11682_v57  ;;  %561 = vst.msk [vmem:[#allocation6 + $0x1f] sm:$0x1] %vm554_vm2, %v11682_v57  ;;  %5932 = vmatprep.subr.bf16.mxu1 %v8626_v20 }
 0x4dd   : > { %562 = vst.msk [vmem:[#allocation6 + $0x37] sm:$0x1] %vm554_vm2, %v11682_v57  ;;  %563 = vst.msk [vmem:[#allocation6 + $0x4f] sm:$0x1] %vm554_vm2, %v11682_v57 }
 0x4de   : > { %v5320_v19 = vsel %vm3455_vm15, %v5312_v29, %v8287_v4  ;;  %v5321_v11 = vsel %vm3455_vm15, %v5313_v39, %v8288_v35  ;;  %564 = vst.msk [vmem:[#allocation6 + $0x67] sm:$0x1] %vm554_vm2, %v11682_v57  ;;  %565 = vst.msk [vmem:[#allocation6 + $0x7f] sm:$0x1] %vm554_vm2, %v11682_v57 }
 0x4df   : > { %v5326_v42 = vpack.c.bf16 %v5321_v11, %v5320_v19  ;;  %566 = vst.msk [vmem:[#allocation6 + $0x97] sm:$0x1] %vm554_vm2, %v11682_v57  ;;  %567 = vst.msk [vmem:[#allocation6 + $0xaf] sm:$0x1] %vm554_vm2, %v11682_v57  ;;  %5933 = vmatpush1.bf16.msra.mxu1 %v8510_v21 }
 0x4e0   : > { %568 = vst.msk [vmem:[#allocation6 + $0xc7] sm:$0x1] %vm554_vm2, %v11682_v57  ;;  %569 = vst.msk [vmem:[#allocation6 + $0xdf] sm:$0x1] %vm554_vm2, %v11682_v57  ;;  %5934 = vmatprep.subr.bf16.mxu1 %v8626_v20 }
 0x4e1   : > { %6814 = vmatprep.mubr.msk.bf16.mxu0 %vm3507_vm0, %v5326_v42  ;;  %572 = vst.msk [vmem:[#allocation6 + $0x40] sm:$0x1] %vm554_vm2, %v11682_v57  ;;  %573 = vst.msk [vmem:[#allocation6 + $0x58] sm:$0x1] %vm554_vm2, %v11682_v57 }
 0x4e2   : > { %574 = vst.msk [vmem:[#allocation6 + $0x70] sm:$0x1] %vm554_vm2, %v11682_v57  ;;  %575 = vst.msk [vmem:[#allocation6 + $0x88] sm:$0x1] %vm554_vm2, %v11682_v57 }
 0x4e3   : > { %576 = vst.msk [vmem:[#allocation6 + $0xa0] sm:$0x1] %vm554_vm2, %v11682_v57  ;;  %577 = vst.msk [vmem:[#allocation6 + $0xb8] sm:$0x1] %vm554_vm2, %v11682_v57  ;;  %5935 = vmatpush1.bf16.msra.mxu1 %v8511_v41 }
 0x4e4   : > { %578 = vst.msk [vmem:[#allocation6 + $0xd0] sm:$0x1] %vm554_vm2, %v11682_v57  ;;  %587 = vst.msk [vmem:[#allocation7 + $0x7] sm:$0x1] %vm554_vm2, %v11682_v57  ;;  %5936 = vmatprep.subr.bf16.mxu1 %v8626_v20 }
 0x4e5   : > { %588 = vst.msk [vmem:[#allocation7 + $0x1f] sm:$0x1] %vm554_vm2, %v11682_v57  ;;  %589 = vst.msk [vmem:[#allocation7 + $0x37] sm:$0x1] %vm554_vm2, %v11682_v57 }
 0x4e6   : > { %590 = vst.msk [vmem:[#allocation7 + $0x4f] sm:$0x1] %vm554_vm2, %v11682_v57  ;;  %591 = vst.msk [vmem:[#allocation7 + $0x67] sm:$0x1] %vm554_vm2, %v11682_v57 }
 0x4e7   : > { %592 = vst.msk [vmem:[#allocation7 + $0x7f] sm:$0x1] %vm554_vm2, %v11682_v57  ;;  %593 = vst.msk [vmem:[#allocation7 + $0x97] sm:$0x1] %vm554_vm2, %v11682_v57 }
 0x4e8   : > { %594 = vst.msk [vmem:[#allocation7 + $0xaf] sm:$0x1] %vm554_vm2, %v11682_v57  ;;  %595 = vst.msk [vmem:[#allocation7 + $0xc7] sm:$0x1] %vm554_vm2, %v11682_v57 }
 0x4e9   : > { %570 = vst.msk [vmem:[#allocation6 + $0x10] sm:$0x1] %vm554_vm2, %v11682_v57  ;;  %579 = vst.msk [vmem:[#allocation6 + $0xe8] sm:$0x1] %vm554_vm2, %v11682_v57 }
 0x4f5   : > { %v8291_v50 = vpop.permute.xlu1 %8290 }
 0x4f6   : > { %v8293_v38 = vunpack.i.h.bf16 %v8291_v50  ;;  %v8292_v27 = vunpack.i.l.bf16 %v8291_v50  ;;  %v8512_v50 = vld [vmem:[%s11622_s7 + $0x28] sm:$0xff]  }
 0x4f7   : > { %5937 = vmatpush1.bf16.msra.mxu1 %v8512_v50 }
 0x4f8   : > { %v5282_v33 = vsel %vm1418_vm7, %v5274_v31, %v8292_v27  ;;  %v5283_v13 = vsel %vm1418_vm7, %v5275_v55, %v8293_v38  ;;  %5938 = vmatprep.subr.bf16.mxu1 %v8626_v20  ;;  %v8514_v31 = vld [vmem:[%s11622_s7 + $0x38] sm:$0xff]  }
 0x4f9   : > { %v8296_v1 = vpop.permute.xlu1 %8295 }
 0x4fa   : > { %v8298_v36 = vunpack.i.h.bf16 %v8296_v1  ;;  %v8297_v40 = vunpack.i.l.bf16 %v8296_v1  ;;  %v5512_v1 = vld [vmem:[#allocation6 + $0x9] sm:$0xff] }
 0x4fb   : > { %5939 = vmatpush1.bf16.msra.mxu1 %v8513_v23 }
 0x4fc   : > { %v5290_v47 = vsel %vm1452_vm9, %v5282_v33, %v8297_v40  ;;  %v5291_v7 = vsel %vm1452_vm9, %v5283_v13, %v8298_v36  ;;  %5940 = vmatprep.subr.bf16.mxu1 %v8626_v20 }
 0x4fd   : > { %v8301_v15 = vpop.permute.xlu1 %8300 }
 0x4fe   : > { %v8303_v12 = vunpack.i.h.bf16 %v8301_v15  ;;  %v8302_v14 = vunpack.i.l.bf16 %v8301_v15  ;;  %v5504_v15 = vld [vmem:[#allocation6 + $0x8] sm:$0xff] }
 0x4ff   : > { %5941 = vmatpush1.bf16.msra.mxu1 %v8514_v31 }
 0x500   : > { %v5298_v26 = vsel %vm3404_vm12, %v5290_v47, %v8302_v14  ;;  %v5299_v53 = vsel %vm3404_vm12, %v5291_v7, %v8303_v12  ;;  %5942 = vmatprep.subr.bf16.mxu1 %v8626_v20 }
 0x501   : > { %v8306_v60 = vpop.permute.xlu1 %8305 }
 0x502   : > { %v8308_v5 = vunpack.i.h.bf16 %v8306_v60  ;;  %v8307_v6 = vunpack.i.l.bf16 %v8306_v60 }
 0x504   : > { %v5306_v37 = vsel %vm3421_vm13, %v5298_v26, %v8307_v6  ;;  %v5307_v8 = vsel %vm3421_vm13, %v5299_v53, %v8308_v5 }
 0x505   : > { %v8311_v34 = vpop.permute.xlu1 %8310 }
 0x506   : > { %v8313_v61 = vunpack.i.h.bf16 %v8311_v34  ;;  %v8312_v59 = vunpack.i.l.bf16 %v8311_v34 }
 0x508   : > { %v5314_v44 = vsel %vm3438_vm14, %v5306_v37, %v8312_v59  ;;  %v5315_v56 = vsel %vm3438_vm14, %v5307_v8, %v8313_v61  ;;  %v8515_v61 = vld [vmem:[%s11622_s7 + $0x40] sm:$0xff]  }
 0x509   : > { %v8316_v17 = vpop.permute.xlu1 %8315  ;;  %5943 = vmatpush1.bf16.msra.mxu1 %v8515_v61  ;;  %v5496_v61 = vld [vmem:[#allocation6 + $0x7] sm:$0xff] }
 0x50a   : > { %v8318_v25 = vunpack.i.h.bf16 %v8316_v17  ;;  %v8317_v30 = vunpack.i.l.bf16 %v8316_v17 }
 0x50c   : > { %v5322_v45 = vsel %vm3455_vm15, %v5314_v44, %v8317_v30  ;;  %v5323_v3 = vsel %vm3455_vm15, %v5315_v56, %v8318_v25 }
 0x50d   : > { %v5327_v48 = vpack.c.bf16 %v5323_v3, %v5322_v45 }
 0x50f   : > { %6815 = vmatmul.mubr.msk.bf16.gmra.mrb[36].mxu0 %vm3507_vm0, %v5327_v48 }
 0x5a8   : > { %v6812_v18 = vpop.f32.mrb[32].mxu0 }
 0x5a9   : > { %v5441_v63 = vmul.f32 %v6812_v18, %v11241_v51  ;;  %v5404_v9 = vpop.f32.mrb[33].mxu0 }
 0x5aa   : > { %v5439_v0 = vmul.f32 %v11241_v51, %v5404_v9  ;;  %v6813_v22 = vpop.f32.mrb[34].mxu0 }
 0x5ab   : > { %v5453_v46 = vadd.f32 %v11246_v10, %v5441_v63  ;;  %v5442_v49 = vmul.f32 %v6813_v22, %v11241_v51  ;;  %v5407_v28 = vpop.f32.mrb[35].mxu0 }
 0x5ac   : > { %v5451_v35 = vadd.f32 %v11246_v10, %v5439_v0  ;;  %v5440_v4 = vmul.f32 %v11241_v51, %v5407_v28 }
 0x5ad   : > { %v5461_v29 = vmax.f32 %v5453_v46, 0.0  ;;  %v5454_v39 = vadd.f32 %v11246_v10, %v5442_v49 }
 0x5ae   : > { %v5459_v19 = vmax.f32 %v5451_v35, 0.0  ;;  %v5452_v11 = vadd.f32 %v11246_v10, %v5440_v4 }
 0x5af   : > { %5470 = vst.msk [vmem:[#allocation6 + $0x50] sm:$0xff] %vm551_vm3, %v5461_v29  ;;  %v5462_v42 = vmax.f32 %v5454_v39, 0.0 }
 0x5b0   : > { %5468 = vst.msk [vmem:[#allocation6 + $0x20] sm:$0xff] %vm551_vm3, %v5459_v19  ;;  %v5460_v52 = vmax.f32 %v5452_v11, 0.0 }
 0x5b1   : > { %5471 = vst.msk [vmem:[#allocation6 + $0x68] sm:$0xff] %vm551_vm3, %v5462_v42 }
 0x5b2   : > { %5469 = vst.msk [vmem:[#allocation6 + $0x38] sm:$0xff] %vm551_vm3, %v5460_v52 }
 0x5b6   : > { %v5562_v62 = vld [vmem:[#allocation6 + $0x51] sm:$0xff] }
 0x5b7   : > { %v5513_v16 = vld [vmem:[#allocation6 + $0x21] sm:$0xff]  ;;  %v11277_v32 = vld [vmem:[#allocation6 + $0x4f] sm:$0xff] }
 0x5b8   : > { %v5505_v58 = vld [vmem:[#allocation6 + $0x20] sm:$0xff]  ;;  %v8324_v60 = vpack.i.bf16 %v5513_v16, %v5512_v1  ;;  %v11270_v36 = vld [vmem:[#allocation6 + $0x68] sm:$0xff]  ;;  %v5530_v12 = vld [vmem:[#allocation6 + $0x50] sm:$0xff] }
 0x5b9   : > { %v8319_v54 = vpack.i.bf16 %v5505_v58, %v5504_v15  ;;  %v5561_v38 = vld [vmem:[#allocation6 + $0x39] sm:$0xff]  ;;  %v11268_v27 = vld [vmem:[#allocation6 + $0x67] sm:$0xff]  ;;  %v8334_v34 = vpack.i.bf16 %v11270_v36, %v5530_v12 }
 0x5ba   : > { %8325 = vrot.lane.b32.xlu1 %v8324_v60, %s11668_s13  ;;  %v5853_v40 = vpack.c.bf16 %v5562_v62, %v5561_v38  ;;  %v8329_v14 = vpack.i.bf16 %v11268_v27, %v11277_v32  ;;  %v11286_v55 = vld [vmem:[#allocation6 + $0x69] sm:$0xff]  ;;  %v11288_v5 = vld [vmem:[#allocation6 + $0x37] sm:$0xff]  ;;  %v11293_v6 = vld [vmem:[#allocation6 + $0x1f] sm:$0xff]  ;;  %v8354_v7 = vpack.i.bf16 %v5561_v38, %v5513_v16  ;;  %v8374_v17 = vpack.i.bf16 %v5562_v62, %v5561_v38 }
 0x5bb   : > { %8320 = vrot.lane.b32.xlu0 %v8319_v54, %s11661_s29  ;;  %v8339_v33 = vpack.i.bf16 %v11286_v55, %v5562_v62  ;;  %v8344_v13 = vpack.i.bf16 %v11288_v5, %v11293_v6  ;;  %v5529_v59 = vld [vmem:[#allocation6 + $0x38] sm:$0xff]  ;;  %v8359_v26 = vpack.i.bf16 %v11277_v32, %v11288_v5 }
 0x5bc   : > { %6599 = vmatprep.mubr.msk.bf16.mxu1 %vm551_vm3, %v5853_v40  ;;  %v8349_v47 = vpack.i.bf16 %v5529_v59, %v5505_v58  ;;  %v8364_v53 = vpack.i.bf16 %v5530_v12, %v5529_v59  ;;  %v5552_v38 = vld [vmem:[#allocation6 + $0xdf] sm:$0xff] }
 0x5be   : > { %8330 = vrot.lane.b32.xlu1 %v8329_v14, %s11666_s24 }
 0x5bf   : > { %8335 = vrot.lane.b32.xlu0 %v8334_v34, %s11680_s14 }
 0x5c2   : > { %8340 = vrot.lane.b32.xlu1 %v8339_v33, %s11651_s25 }
 0x5c3   : > { %8345 = vrot.lane.b32.xlu0 %v8344_v13, %s11666_s24 }
 0x5c6   : > { %8350 = vrot.lane.b32.xlu1 %v8349_v47, %s11680_s14 }
 0x5c7   : > { %8355 = vrot.lane.b32.xlu0 %v8354_v7, %s11651_s25 }
 0x5ca   : > { %8360 = vrot.lane.b32.xlu1 %v8359_v26, %s11650_s30 }
 0x5cb   : > { %8365 = vrot.lane.b32.xlu0 %v8364_v53, %s11649_s0 }
 0x5ce   : > { %8370 = vrot.lane.b32.xlu1 %v8364_v53, %s11661_s29 }
 0x5cf   : > { %8375 = vrot.lane.b32.xlu0 %v8374_v17, %s11668_s13 }
 0x5e2   : > { %v6816_v37 = vpop.f32.mrb[36].mxu0 }
 0x5e3   : > { %v5445_v8 = vmul.f32 %v6816_v37, %v11241_v51  ;;  %v5420_v25 = vpop.f32.mrb[37].mxu0 }
 0x5e4   : > { %v5443_v30 = vmul.f32 %v11241_v51, %v5420_v25  ;;  %v6817_v44 = vpop.f32.mrb[38].mxu0 }
 0x5e5   : > { %v5457_v56 = vadd.f32 %v11246_v10, %v5445_v8  ;;  %v5446_v45 = vmul.f32 %v6817_v44, %v11241_v51  ;;  %v5423_v3 = vpop.f32.mrb[39].mxu0 }
 0x5e6   : > { %v5455_v48 = vadd.f32 %v11246_v10, %v5443_v30  ;;  %v5444_v57 = vmul.f32 %v11241_v51, %v5423_v3 }
 0x5e7   : > { %v5465_v2 = vmax.f32 %v5457_v56, 0.0  ;;  %v5458_v20 = vadd.f32 %v11246_v10, %v5446_v45 }
 0x5e8   : > { %v5463_v24 = vmax.f32 %v5455_v48, 0.0  ;;  %v5456_v43 = vadd.f32 %v11246_v10, %v5444_v57 }
 0x5e9   : > { %5474 = vst.msk [vmem:[#allocation6 + $0xb0] sm:$0xff] %vm551_vm3, %v5465_v2  ;;  %v5466_v21 = vmax.f32 %v5458_v20, 0.0 }
 0x5ea   : > { %5472 = vst.msk [vmem:[#allocation6 + $0x80] sm:$0xff] %vm551_vm3, %v5463_v24  ;;  %v5464_v18 = vmax.f32 %v5456_v43, 0.0 }
 0x5eb   : > { %5475 = vst.msk [vmem:[#allocation6 + $0xc8] sm:$0xff] %vm551_vm3, %v5466_v21 }
 0x5ec   : > { %5473 = vst.msk [vmem:[#allocation6 + $0x98] sm:$0xff] %vm551_vm3, %v5464_v18 }
 0x5f0   : > { %v11337_v49 = vld [vmem:[#allocation6 + $0xb1] sm:$0xff] }
 0x5f1   : > { %v5556_v63 = vld [vmem:[#allocation6 + $0x80] sm:$0xff]  ;;  %v5534_v39 = vld [vmem:[#allocation6 + $0xb0] sm:$0xff] }
 0x5f2   : > { %v11324_v9 = vld [vmem:[#allocation6 + $0x7f] sm:$0xff]  ;;  %v8384_v0 = vpack.i.bf16 %v5556_v63, %v11270_v36  ;;  %v5535_v4 = vld [vmem:[#allocation6 + $0xc8] sm:$0xff] }
 0x5f3   : > { %v11326_v51 = vld [vmem:[#allocation6 + $0x81] sm:$0xff]  ;;  %v8379_v10 = vpack.i.bf16 %v11324_v9, %v11268_v27  ;;  %v11333_v46 = vld [vmem:[#allocation6 + $0x99] sm:$0xff]  ;;  %v11345_v19 = vld [vmem:[#allocation6 + $0xaf] sm:$0xff]  ;;  %v8404_v11 = vpack.i.bf16 %v5535_v4, %v5534_v39 }
 0x5f4   : > { %v5855_v22 = vpack.c.bf16 %v11326_v51, %v11286_v55  ;;  %8385 = vrot.lane.b32.xlu1 %v8384_v0, %s11649_s0  ;;  %v8394_v28 = vpack.i.bf16 %v11326_v51, %v11286_v55  ;;  %v5857_v35 = vpack.c.bf16 %v11337_v49, %v11333_v46  ;;  %v5527_v29 = vld [vmem:[#allocation6 + $0xc7] sm:$0xff]  ;;  %v5533_v41 = vld [vmem:[#allocation6 + $0x98] sm:$0xff]  ;;  %v8419_v16 = vpack.i.bf16 %v11333_v46, %v11326_v51 }
 0x5f5   : > { %8380 = vrot.lane.b32.xlu0 %v8379_v10, %s11650_s30  ;;  %v8399_v42 = vpack.i.bf16 %v5527_v29, %v11345_v19  ;;  %v11348_v52 = vld [vmem:[#allocation6 + $0x97] sm:$0xff]  ;;  %v8414_v50 = vpack.i.bf16 %v5533_v41, %v5556_v63  ;;  %v8429_v58 = vpack.i.bf16 %v5534_v39, %v5533_v41  ;;  %v11362_v60 = vld [vmem:[#allocation6 + $0xc9] sm:$0xff]  ;;  %v8444_v54 = vpack.i.bf16 %v11337_v49, %v11333_v46  ;;  %v5560_v36 = vld [vmem:[#allocation6 + $0xe0] sm:$0xff] }
 0x5f6   : > { %v8409_v1 = vpack.i.bf16 %v11348_v52, %v11324_v9  ;;  %v8424_v15 = vpack.i.bf16 %v11345_v19, %v11348_v52  ;;  %v8439_v62 = vpack.i.bf16 %v11362_v60, %v11337_v49  ;;  %v8449_v40 = vpack.i.bf16 %v5552_v38, %v5527_v29 }
 0x5f7   : > { %v8454_v23 = vpack.i.bf16 %v5560_v36, %v5535_v4 }
 0x5f8   : > { %8395 = vrot.lane.b32.xlu1 %v8394_v28, %s11668_s13 }
 0x5f9   : > { %8390 = vrot.lane.b32.xlu0 %v8384_v0, %s11661_s29 }
 0x5fc   : > { %8400 = vrot.lane.b32.xlu1 %v8399_v42, %s11666_s24 }
 0x5fd   : > { %8405 = vrot.lane.b32.xlu0 %v8404_v11, %s11680_s14 }
 0x600   : > { %8415 = vrot.lane.b32.xlu1 %v8414_v50, %s11680_s14 }
 0x601   : > { %8410 = vrot.lane.b32.xlu0 %v8409_v1, %s11666_s24 }
 0x604   : > { %8425 = vrot.lane.b32.xlu1 %v8424_v15, %s11650_s30 }
 0x605   : > { %8420 = vrot.lane.b32.xlu0 %v8419_v16, %s11651_s25 }
 0x608   : > { %8435 = vrot.lane.b32.xlu1 %v8429_v58, %s11661_s29 }
 0x609   : > { %8430 = vrot.lane.b32.xlu0 %v8429_v58, %s11649_s0 }
 0x60c   : > { %8440 = vrot.lane.b32.xlu1 %v8439_v62, %s11651_s25 }
 0x60d   : > { %8445 = vrot.lane.b32.xlu0 %v8444_v54, %s11668_s13 }
 0x610   : > { %8455 = vrot.lane.b32.xlu1 %v8454_v23, %s11649_s0  ;;  %s11683_s0 = smov 80  }
 0x611   : > { %8450 = vrot.lane.b32.xlu0 %v8449_v40, %s11650_s30  ;;  %s8630_s30 = smov [#allocation8]  }
 0x62c   : > { %v8326_v12 = vpop.permute.xlu1 %8325 }
 0x62d   : > { %v8321_v14 = vpop.permute.xlu0 %8320  ;;  %v8328_v7 = vunpack.i.h.bf16 %v8326_v12  ;;  %v8327_v26 = vunpack.i.l.bf16 %v8326_v12 }
 0x62e   : > { %v8323_v33 = vunpack.i.h.bf16 %v8321_v14  ;;  %v8322_v13 = vunpack.i.l.bf16 %v8321_v14 }
 0x630   : > { %v8331_v34 = vpop.permute.xlu1 %8330  ;;  %v5794_v53 = vsel %vm551_vm3, %v11293_v6, %v8323_v33  ;;  %v5793_v17 = vsel %vm551_vm3, %v5496_v61, %v8322_v13 }
 0x631   : > { %v8336_v31 = vpop.permute.xlu0 %8335  ;;  %v5801_v44 = vsel %vm1452_vm9, %v5793_v17, %v8327_v26  ;;  %v5802_v56 = vsel %vm1452_vm9, %v5794_v53, %v8328_v7  ;;  %v8333_v23 = vunpack.i.h.bf16 %v8331_v34  ;;  %v8332_v55 = vunpack.i.l.bf16 %v8331_v34 }
 0x632   : > { %v8338_v12 = vunpack.i.h.bf16 %v8336_v31  ;;  %v8337_v14 = vunpack.i.l.bf16 %v8336_v31 }
 0x634   : > { %v11374_v59 = vpop.permute.xlu1 %8340 }
 0x635   : > { %v8346_v47 = vpop.permute.xlu0 %8345 }
 0x636   : > { %v8348_v37 = vunpack.i.h.bf16 %v8346_v47  ;;  %v8347_v8 = vunpack.i.l.bf16 %v8346_v47 }
 0x638   : > { %v8351_v25 = vpop.permute.xlu1 %8350  ;;  %v5809_v48 = vsel %vm3421_vm13, %v5801_v44, %v8347_v8  ;;  %v5810_v57 = vsel %vm3421_vm13, %v5802_v56, %v8348_v37 }
 0x639   : > { %v8356_v30 = vpop.permute.xlu0 %8355  ;;  %v8353_v45 = vunpack.i.h.bf16 %v8351_v25  ;;  %v8352_v3 = vunpack.i.l.bf16 %v8351_v25 }
 0x63a   : > { %v8358_v2 = vunpack.i.h.bf16 %v8356_v30  ;;  %v8357_v20 = vunpack.i.l.bf16 %v8356_v30 }
 0x63b   : > { %v5817_v6 = vsel %vm3455_vm15, %v5809_v48, %v8352_v3  ;;  %v5818_v24 = vsel %vm3455_vm15, %v5810_v57, %v8353_v45 }
 0x63c   : > { %v8361_v43 = vpop.permute.xlu1 %8360  ;;  %v5826_v28 = vsel %vm5825_vm4, %v5817_v6, %v8357_v20  ;;  %v5827_v4 = vsel %vm5825_vm4, %v5818_v24, %v8358_v2 }
 0x63d   : > { %v8366_v21 = vpop.permute.xlu0 %8365  ;;  %v8363_v18 = vunpack.i.h.bf16 %v8361_v43  ;;  %v8362_v63 = vunpack.i.l.bf16 %v8361_v43 }
 0x63e   : > { %v8368_v0 = vunpack.i.h.bf16 %v8366_v21  ;;  %v8367_v10 = vunpack.i.l.bf16 %v8366_v21 }
 0x63f   : > { %v5835_v29 = vsel %vm5834_vm5, %v5826_v28, %v8362_v63  ;;  %v5836_v39 = vsel %vm5834_vm5, %v5827_v4, %v8363_v18 }
 0x640   : > { %v5844_v11 = vsel %vm5843_vm6, %v5835_v29, %v8367_v10  ;;  %v5845_v42 = vsel %vm5843_vm6, %v5836_v39, %v8368_v0  ;;  %v8371_v50 = vpop.permute.xlu1 %8370 }
 0x641   : > { %v5852_v41 = vpack.c.bf16 %v5845_v42, %v5844_v11  ;;  %v8373_v1 = vunpack.i.h.bf16 %v8371_v50  ;;  %v8372_v15 = vunpack.i.l.bf16 %v8371_v50  ;;  %v8376_v16 = vpop.permute.xlu0 %8375 }
 0x642   : > { %v8378_v58 = vunpack.i.h.bf16 %v8376_v16  ;;  %v8377_v54 = vunpack.i.l.bf16 %v8376_v16 }
 0x643   : > { %5959 = vmatmul.mubr.bf16.vlgmr.msra.gmra.mrb[32].mxu1 %v5852_v41  ;;  %v5796_v62 = vsel %vm551_vm3, %v11277_v32, %v8373_v1  ;;  %v5795_v38 = vsel %vm551_vm3, %v11288_v5, %v8372_v15  ;;  %v8343_v32 = vunpack.i.h.bf16 %v11374_v59  ;;  %v8342_v5 = vunpack.i.l.bf16 %v11374_v59 }
 0x644   : > { %6600 = vmatprep.mubr.msk.bf16.mxu1 %vm551_vm3, %v5855_v22  ;;  %v5804_v36 = vsel %vm1452_vm9, %v5796_v62, %v8378_v58  ;;  %v5803_v40 = vsel %vm1452_vm9, %v5795_v38, %v8377_v54 }
 0x645   : > { %v5812_v51 = vsel %vm3421_vm13, %v5804_v36, %v8333_v23  ;;  %v5811_v22 = vsel %vm3421_vm13, %v5803_v40, %v8332_v55  ;;  %v5568_v23 = vld [vmem:[#allocation6 + $0xe1] sm:$0xff] }
 0x646   : > { %v5819_v33 = vsel %vm3455_vm15, %v5811_v22, %v8337_v14  ;;  %v5820_v13 = vsel %vm3455_vm15, %v5812_v51, %v8338_v12 }
 0x647   : > { %v5828_v17 = vsel %vm5825_vm4, %v5819_v33, %v8342_v5  ;;  %v5829_v37 = vsel %vm5825_vm4, %v5820_v13, %v8343_v32  ;;  %v5859_v32 = vpack.c.bf16 %v5568_v23, %v11362_v60  ;;  %v6033_v23 = vld [vmem:[#allocation7 + $0x7] ss:$2 sm:$0xf] }
 0x666   : > { %v8386_v61 = vpop.permute.xlu1 %8385 }
 0x667   : > { %v8381_v47 = vpop.permute.xlu0 %8380  ;;  %v8388_v7 = vunpack.i.h.bf16 %v8386_v61  ;;  %v8387_v26 = vunpack.i.l.bf16 %v8386_v61 }
 0x668   : > { %v8383_v53 = vunpack.i.h.bf16 %v8381_v47  ;;  %v8382_v34 = vunpack.i.l.bf16 %v8381_v47 }
 0x66a   : > { %v5838_v31 = vsel %vm5834_vm5, %v5829_v37, %v8383_v53  ;;  %v5837_v8 = vsel %vm5834_vm5, %v5828_v17, %v8382_v34  ;;  %v8396_v25 = vpop.permute.xlu1 %8395 }
 0x66b   : > { %v8391_v30 = vpop.permute.xlu0 %8390  ;;  %v5846_v44 = vsel %vm5843_vm6, %v5837_v8, %v8387_v26  ;;  %v5847_v59 = vsel %vm5843_vm6, %v5838_v31, %v8388_v7  ;;  %v8398_v2 = vunpack.i.h.bf16 %v8396_v25  ;;  %v8397_v20 = vunpack.i.l.bf16 %v8396_v25 }
 0x66c   : > { %v5854_v56 = vpack.c.bf16 %v5847_v59, %v5846_v44  ;;  %v8393_v45 = vunpack.i.h.bf16 %v8391_v30  ;;  %v8392_v3 = vunpack.i.l.bf16 %v8391_v30 }
 0x66e   : > { %5967 = vmatmul.mubr.bf16.gmra.mrb[36].mxu1 %v5854_v56  ;;  %v8401_v57 = vpop.permute.xlu1 %8400  ;;  %v5797_v6 = vsel %vm551_vm3, %v11268_v27, %v8392_v3  ;;  %v5798_v24 = vsel %vm551_vm3, %v11324_v9, %v8393_v45 }
 0x66f   : > { %v11413_v48 = vpop.permute.xlu0 %8405  ;;  %6601 = vmatprep.mubr.msk.bf16.mxu1 %vm551_vm3, %v5857_v35  ;;  %v5805_v28 = vsel %vm1452_vm9, %v5797_v6, %v8397_v20  ;;  %v5806_v46 = vsel %vm1452_vm9, %v5798_v24, %v8398_v2  ;;  %v8403_v5 = vunpack.i.h.bf16 %v8401_v57  ;;  %v8402_v61 = vunpack.i.l.bf16 %v8401_v57 }
 0x670   : > { %v8408_v26 = vunpack.i.h.bf16 %v11413_v48  ;;  %v8407_v53 = vunpack.i.l.bf16 %v11413_v48 }
 0x672   : > { %v8416_v43 = vpop.permute.xlu1 %8415 }
 0x673   : > { %v8411_v21 = vpop.permute.xlu0 %8410  ;;  %v8418_v0 = vunpack.i.h.bf16 %v8416_v43  ;;  %v8417_v10 = vunpack.i.l.bf16 %v8416_v43  ;;  %v8516_v43 = vld [vmem:[%s11624_s9 + $0x40] sm:$0xff]  }
 0x674   : > { %v8413_v18 = vunpack.i.h.bf16 %v8411_v21  ;;  %v8412_v63 = vunpack.i.l.bf16 %v8411_v21  ;;  %v8517_v21 = vld [vmem:[%s11624_s9] sm:$0xff]   ;;  %6682 = vmatprep.subr.bf16.mxu0 %v8516_v43 }
 0x675   : > { %6683 = vmatpush3.bf16.msra.mxu0 %v8517_v21 }
 0x676   : > { %v5814_v49 = vsel %vm3421_vm13, %v5806_v46, %v8413_v18  ;;  %v5813_v35 = vsel %vm3421_vm13, %v5805_v28, %v8412_v63  ;;  %v8426_v4 = vpop.permute.xlu1 %8425  ;;  %v8518_v18 = vld [vmem:[%s11624_s9 + $0x48] sm:$0xff]   ;;  %v8522_v28 = vld [vmem:[%s11624_s9 + $0x58] sm:$0xff]   ;;  %v11479_v46 = vld [vmem:[%s11623_s8] ss:$0 sm:$0xff] }
 0x677   : > { %v8421_v29 = vpop.permute.xlu0 %8420  ;;  %v8428_v11 = vunpack.i.h.bf16 %v8426_v4  ;;  %v8427_v9 = vunpack.i.l.bf16 %v8426_v4  ;;  %v5821_v42 = vsel %vm3455_vm15, %v5813_v35, %v8417_v10  ;;  %v5822_v41 = vsel %vm3455_vm15, %v5814_v49, %v8418_v0  ;;  %v8519_v63 = vld [vmem:[%s11624_s9 + $0x8] sm:$0xff]   ;;  %6684 = vmatprep.subr.bf16.mxu0 %v8518_v18  ;;  %v8520_v0 = vld [vmem:[%s11624_s9 + $0x50] sm:$0xff]   ;;  %v11484_v49 = vld [vmem:[%s11623_s8 + $0x1] ss:$0 sm:$0xff] }
 0x678   : > { %v8423_v27 = vunpack.i.h.bf16 %v8421_v29  ;;  %v8422_v39 = vunpack.i.l.bf16 %v8421_v29  ;;  %v8521_v10 = vld [vmem:[%s11624_s9 + $0x10] sm:$0xff]  }
 0x679   : > { %6685 = vmatpush3.bf16.msra.mxu0 %v8519_v63 }
 0x67a   : > { %v5830_v50 = vsel %vm5825_vm4, %v5821_v42, %v8422_v39  ;;  %v5831_v1 = vsel %vm5825_vm4, %v5822_v41, %v8423_v27  ;;  %v8436_v16 = vpop.permute.xlu1 %8435  ;;  %6686 = vmatprep.subr.bf16.mxu0 %v8520_v0 }
 0x67b   : > { %v8431_v15 = vpop.permute.xlu0 %8430  ;;  %v8438_v62 = vunpack.i.h.bf16 %v8436_v16  ;;  %v8437_v38 = vunpack.i.l.bf16 %v8436_v16  ;;  %v5839_v36 = vsel %vm5834_vm5, %v5830_v50, %v8427_v9  ;;  %v5840_v40 = vsel %vm5834_vm5, %v5831_v1, %v8428_v11 }
 0x67c   : > { %v8433_v58 = vunpack.i.h.bf16 %v8431_v15  ;;  %v8432_v54 = vunpack.i.l.bf16 %v8431_v15 }
 0x67d   : > { %v5800_v47 = vsel %vm551_vm3, %v11345_v19, %v8438_v62  ;;  %v5799_v7 = vsel %vm551_vm3, %v11348_v52, %v8437_v38  ;;  %6687 = vmatpush3.bf16.msra.mxu0 %v8521_v10 }
 0x67e   : > { %v5848_v55 = vsel %vm5843_vm6, %v5839_v36, %v8432_v54  ;;  %v5849_v51 = vsel %vm5843_vm6, %v5840_v40, %v8433_v58  ;;  %v8441_v12 = vpop.permute.xlu1 %8440  ;;  %6688 = vmatprep.subr.bf16.mxu0 %v8522_v28 }
 0x67f   : > { %v8446_v22 = vpop.permute.xlu0 %8445  ;;  %v5856_v14 = vpack.c.bf16 %v5849_v51, %v5848_v55  ;;  %v8443_v31 = vunpack.i.h.bf16 %v8441_v12  ;;  %v8442_v19 = vunpack.i.l.bf16 %v8441_v12  ;;  %v6045_v55 = vld [vmem:[#allocation7 + $0x8] ss:$2 sm:$0xf]  ;;  %v6057_v12 = vld [vmem:[#allocation7 + $0x9] ss:$2 sm:$0xf] }
 0x680   : > { %v8448_v33 = vunpack.i.h.bf16 %v8446_v22  ;;  %v8447_v13 = vunpack.i.l.bf16 %v8446_v22  ;;  %v6052_v22 = vadd.f32 %v6045_v55, %v6033_v23 }
 0x681   : > { %5975 = vmatmul.mubr.bf16.gmra.mrb[40].mxu1 %v5856_v14 }
 0x682   : > { %v5807_v34 = vsel %vm1452_vm9, %v5799_v7, %v8447_v13  ;;  %v5808_v17 = vsel %vm1452_vm9, %v5800_v47, %v8448_v33  ;;  %6602 = vmatprep.mubr.msk.bf16.mxu1 %vm551_vm3, %v5859_v32  ;;  %v8456_v25 = vpop.permute.xlu1 %8455  ;;  %v6064_v14 = vadd.f32 %v6057_v12, %v6052_v22 }
 0x683   : > { %v5815_v60 = vsel %vm3421_vm13, %v5807_v34, %v8402_v61  ;;  %v5816_v37 = vsel %vm3421_vm13, %v5808_v17, %v8403_v5  ;;  %v8451_v8 = vpop.permute.xlu0 %8450  ;;  %v8458_v3 = vunpack.i.h.bf16 %v8456_v25  ;;  %v8457_v48 = vunpack.i.l.bf16 %v8456_v25 }
 0x684   : > { %v5823_v52 = vsel %vm3455_vm15, %v5815_v60, %v8407_v53  ;;  %v5824_v30 = vsel %vm3455_vm15, %v5816_v37, %v8408_v26  ;;  %v8453_v44 = vunpack.i.h.bf16 %v8451_v8  ;;  %v8452_v59 = vunpack.i.l.bf16 %v8451_v8 }
 0x685   : > { %v5832_v56 = vsel %vm5825_vm4, %v5823_v52, %v8442_v19  ;;  %v5833_v45 = vsel %vm5825_vm4, %v5824_v30, %v8443_v31 }
 0x686   : > { %v5841_v57 = vsel %vm5834_vm5, %v5832_v56, %v8452_v59  ;;  %v5842_v2 = vsel %vm5834_vm5, %v5833_v45, %v8453_v44 }
 0x687   : > { %v5850_v20 = vsel %vm5843_vm6, %v5841_v57, %v8457_v48  ;;  %v5851_v6 = vsel %vm5843_vm6, %v5842_v2, %v8458_v3 }
 0x688   : > { %v5858_v24 = vpack.c.bf16 %v5851_v6, %v5850_v20 }
 0x68a   : > { %5983 = vmatmul.mubr.bf16.gmra.mrb[44].mxu1 %v5858_v24 }
 0x716   : > { %v5960_v35 = vpop.f32.mrb[32].mxu1 }
 0x717   : > { %v5995_v4 = vmul.f32 %v11479_v46, %v5960_v35  ;;  %v5962_v29 = vpop.f32.mrb[33].mxu1 }
 0x718   : > { %v5963_v27 = vpop.f32.mrb[34].mxu1 }
 0x719   : > { %v6007_v39 = vadd.f32 %v11484_v49, %v5995_v4  ;;  %v5996_v11 = vmul.f32 %v11479_v46, %v5963_v27  ;;  %v5965_v9 = vpop.f32.mrb[35].mxu1 }
 0x71b   : > { %v6015_v42 = vmax.f32 %v6007_v39, 0.0  ;;  %v6008_v41 = vadd.f32 %v11484_v49, %v5996_v11 }
 0x71d   : > { %6024 = vst.msk [vmem:[#allocation7 + $0x20] sm:$0xff] %vm551_vm3, %v6015_v42  ;;  %v6016_v50 = vmax.f32 %v6008_v41, 0.0 }
 0x71f   : > { %6025 = vst.msk [vmem:[#allocation7 + $0x38] sm:$0xff] %vm551_vm3, %v6016_v50 }
 0x724   : > { %v6069_v33 = vld [vmem:[#allocation7 + $0x1f] ss:$2 sm:$0xf]  ;;  %v6081_v53 = vld [vmem:[#allocation7 + $0x20] ss:$2 sm:$0xf] }
 0x725   : > { %v6076_v13 = vadd.f32 %v6069_v33, %v6064_v14  ;;  %v6093_v31 = vld [vmem:[#allocation7 + $0x21] ss:$2 sm:$0xf] }
 0x726   : > { %v6035_v5 = vld [vmem:[#allocation7 + $0x37] ss:$2 sm:$0xf]  ;;  %v6047_v7 = vld [vmem:[#allocation7 + $0x38] ss:$2 sm:$0xf] }
 0x727   : > { %v6088_v37 = vadd.f32 %v6081_v53, %v6076_v13  ;;  %v6053_v19 = vadd.f32 %v6047_v7, %v6035_v5  ;;  %v6059_v52 = vld [vmem:[#allocation7 + $0x39] ss:$2 sm:$0xf]  ;;  %v6118_v35 = vld [vmem:[#allocation7 + $0x38] ss:$2 sm:$0xf] }
 0x728   : > { %v6106_v6 = vld [vmem:[#allocation7 + $0x37] ss:$2 sm:$0xf]  ;;  %v8524_v7 = vld [vmem:[%s11624_s9 + $0x60] sm:$0xff]  }
 0x729   : > { %v6100_v56 = vadd.f32 %v6093_v31, %v6088_v37  ;;  %v6065_v3 = vadd.f32 %v6059_v52, %v6053_v19  ;;  %v8525_v37 = vld [vmem:[%s11624_s9 + $0x20] sm:$0xff]  }
 0x72b   : > { %v6113_v21 = vadd.f32 %v6106_v6, %v6100_v56 }
 0x72d   : > { %v6125_v42 = vadd.f32 %v6118_v35, %v6113_v21 }
 0x741   : > { %v5968_v1 = vpop.f32.mrb[36].mxu1 }
 0x742   : > { %v5997_v15 = vmul.f32 %v11479_v46, %v5968_v1  ;;  %v5970_v16 = vpop.f32.mrb[37].mxu1  ;;  %v6130_v1 = vld [vmem:[#allocation7 + $0x39] ss:$2 sm:$0xf] }
 0x743   : > { %v5971_v58 = vpop.f32.mrb[38].mxu1 }
 0x744   : > { %v6009_v54 = vadd.f32 %v11484_v49, %v5997_v15  ;;  %v5998_v62 = vmul.f32 %v11479_v46, %v5971_v58  ;;  %v5973_v38 = vpop.f32.mrb[39].mxu1 }
 0x746   : > { %v6017_v36 = vmax.f32 %v6009_v54, 0.0  ;;  %v6010_v40 = vadd.f32 %v11484_v49, %v5998_v62 }
 0x748   : > { %6026 = vst.msk [vmem:[#allocation7 + $0x50] sm:$0xff] %vm551_vm3, %v6017_v36  ;;  %v6018_v51 = vmax.f32 %v6010_v40, 0.0  ;;  %v6137_v36 = vadd.f32 %v6130_v1, %v6125_v42  ;;  %v8531_v42 = vld [vmem:[%s11624_s9 + $0x38] sm:$0xff]  }
 0x74a   : > { %6027 = vst.msk [vmem:[#allocation7 + $0x68] sm:$0xff] %vm551_vm3, %v6018_v51  ;;  %v11510_v13 = vmul.f32 0.11111111, %v6137_v36 }
 0x74c   : > { %v6154_v21 = vrot.slane %v11510_v13, 3 }
 0x74f   : > { %v6071_v45 = vld [vmem:[#allocation7 + $0x4f] ss:$2 sm:$0xf]  ;;  %v6083_v4 = vld [vmem:[#allocation7 + $0x50] ss:$2 sm:$0xf] }
 0x750   : > { %v6077_v24 = vadd.f32 %v6071_v45, %v6065_v3  ;;  %v8526_v45 = vld [vmem:[%s11624_s9 + $0x68] sm:$0xff]  }
 0x751   : > { %v6037_v30 = vld [vmem:[#allocation7 + $0x67] ss:$2 sm:$0xf]  ;;  %v6049_v44 = vld [vmem:[#allocation7 + $0x68] ss:$2 sm:$0xf] }
 0x752   : > { %v6054_v57 = vadd.f32 %v6049_v44, %v6037_v30  ;;  %v6061_v10 = vld [vmem:[#allocation7 + $0x69] ss:$2 sm:$0xf]  ;;  %v6089_v11 = vadd.f32 %v6083_v4, %v6077_v24 }
 0x753   : > { %v6108_v51 = vld [vmem:[#allocation7 + $0x67] ss:$2 sm:$0xf] }
 0x754   : > { %v5976_v32 = vpop.f32.mrb[40].mxu1  ;;  %v6066_v28 = vadd.f32 %v6061_v10, %v6054_v57  ;;  %v6132_v30 = vld [vmem:[#allocation7 + $0x69] ss:$2 sm:$0xf] }
 0x755   : > { %v5999_v61 = vmul.f32 %v11479_v46, %v5976_v32  ;;  %v5978_v47 = vpop.f32.mrb[41].mxu1  ;;  %v8527_v57 = vld [vmem:[%s11624_s9 + $0x28] sm:$0xff]  }
 0x756   : > { %v5979_v26 = vpop.f32.mrb[42].mxu1  ;;  %v8523_v47 = vld [vmem:[%s11624_s9 + $0x18] sm:$0xff]  }
 0x757   : > { %v6011_v34 = vadd.f32 %v11484_v49, %v5999_v61  ;;  %v6000_v17 = vmul.f32 %v11479_v46, %v5979_v26  ;;  %v5981_v60 = vpop.f32.mrb[43].mxu1  ;;  %6689 = vmatpush3.bf16.msra.mxu0 %v8523_v47 }
 0x758   : > { %6690 = vmatprep.subr.bf16.mxu0 %v8524_v7 }
 0x759   : > { %v6019_v8 = vmax.f32 %v6011_v34, 0.0  ;;  %v6012_v25 = vadd.f32 %v11484_v49, %v6000_v17  ;;  %v6120_v34 = vld [vmem:[#allocation7 + $0x68] ss:$2 sm:$0xf] }
 0x75b   : > { %6028 = vst.msk [vmem:[#allocation7 + $0x80] sm:$0xff] %vm551_vm3, %v6019_v8  ;;  %v6020_v59 = vmax.f32 %v6012_v25, 0.0  ;;  %v6146_v8 = vrot.slane %v11510_v13, 1  ;;  %v6150_v25 = vrot.slane %v11510_v13, 2  ;;  %6691 = vmatpush3.bf16.msra.mxu0 %v8525_v37 }
 0x75c   : > { %6692 = vmatprep.subr.bf16.mxu0 %v8526_v45 }
 0x75d   : > { %6029 = vst.msk [vmem:[#allocation7 + $0x98] sm:$0xff] %vm551_vm3, %v6020_v59  ;;  %v5984_v48 = vpop.f32.mrb[44].mxu1 }
 0x75e   : > { %v6001_v2 = vmul.f32 %v11479_v46, %v5984_v48  ;;  %v5986_v20 = vpop.f32.mrb[45].mxu1 }
 0x75f   : > { %v5987_v43 = vpop.f32.mrb[46].mxu1  ;;  %6693 = vmatpush3.bf16.msra.mxu0 %v8527_v57  ;;  %v6251_v57 = vld [vmem:[%s11625_s10] sm:$0x1] }
 0x760   : > { %v6013_v18 = vadd.f32 %v11484_v49, %v6001_v2  ;;  %v6002_v63 = vmul.f32 %v11479_v46, %v5987_v43  ;;  %v5989_v0 = vpop.f32.mrb[47].mxu1  ;;  %v6095_v46 = vld [vmem:[#allocation7 + $0x51] ss:$2 sm:$0xf] }
 0x761   : > { %v6101_v62 = vadd.f32 %v6095_v46, %v6089_v11 }
 0x762   : > { %v6021_v29 = vmax.f32 %v6013_v18, 0.0  ;;  %v6014_v27 = vadd.f32 %v11484_v49, %v6002_v63  ;;  %v6073_v39 = vld [vmem:[#allocation7 + $0x7f] ss:$2 sm:$0xf]  ;;  %v8528_v63 = vld [vmem:[%s11624_s9 + $0x70] sm:$0xff]  }
 0x763   : > { %v6078_v9 = vadd.f32 %v6073_v39, %v6066_v28  ;;  %v6085_v50 = vld [vmem:[#allocation7 + $0x80] ss:$2 sm:$0xf]  ;;  %v6097_v16 = vld [vmem:[#allocation7 + $0x81] ss:$2 sm:$0xf]  ;;  %v6114_v14 = vadd.f32 %v6108_v51, %v6101_v62  ;;  %6694 = vmatprep.subr.bf16.mxu0 %v8528_v63 }
 0x764   : > { %6030 = vst.msk [vmem:[#allocation7 + $0xb0] sm:$0xff] %vm551_vm3, %v6021_v29  ;;  %v6022_v41 = vmax.f32 %v6014_v27, 0.0  ;;  %v6039_v58 = vld [vmem:[#allocation7 + $0x97] ss:$2 sm:$0xf] }
 0x765   : > { %v6090_v15 = vadd.f32 %v6085_v50, %v6078_v9  ;;  %v6051_v54 = vld [vmem:[#allocation7 + $0x98] ss:$2 sm:$0xf]  ;;  %v6110_v40 = vld [vmem:[#allocation7 + $0x97] ss:$2 sm:$0xf]  ;;  %v6126_v60 = vadd.f32 %v6120_v34, %v6114_v14 }
 0x766   : > { %6031 = vst.msk [vmem:[#allocation7 + $0xc8] sm:$0xff] %vm551_vm3, %v6022_v41  ;;  %v6055_v49 = vadd.f32 %v6051_v54, %v6039_v58  ;;  %v6063_v55 = vld [vmem:[#allocation7 + $0x99] ss:$2 sm:$0xf]  ;;  %v8529_v28 = vld [vmem:[%s11624_s9 + $0x30] sm:$0xff]  }
 0x767   : > { %v6102_v38 = vadd.f32 %v6097_v16, %v6090_v15  ;;  %v6122_v22 = vld [vmem:[#allocation7 + $0x98] ss:$2 sm:$0xf]  ;;  %v6134_v5 = vld [vmem:[#allocation7 + $0x99] ss:$2 sm:$0xf]  ;;  %v6138_v48 = vadd.f32 %v6132_v30, %v6126_v60  ;;  %6695 = vmatpush3.bf16.msra.mxu0 %v8529_v28 }
 0x768   : > { %v6067_v12 = vadd.f32 %v6063_v55, %v6055_v49  ;;  %v8530_v29 = vld [vmem:[%s11624_s9 + $0x78] sm:$0xff]  }
 0x769   : > { %v6115_v23 = vadd.f32 %v6110_v40, %v6102_v38  ;;  %v6142_v10 = vmul.f32 0.11111111, %v6138_v48  ;;  %6696 = vmatprep.subr.bf16.mxu0 %v8530_v29 }
 0x76b   : > { %v6127_v33 = vadd.f32 %v6122_v22, %v6115_v23  ;;  %v6075_v32 = vld [vmem:[#allocation7 + $0xaf] ss:$2 sm:$0xf]  ;;  %v6087_v53 = vld [vmem:[#allocation7 + $0xb0] ss:$2 sm:$0xf]  ;;  %6697 = vmatpush3.bf16.msra.mxu0 %v8531_v42 }
 0x76c   : > { %v6079_v61 = vadd.f32 %v6075_v32, %v6067_v12  ;;  %v6099_v19 = vld [vmem:[#allocation7 + $0xb1] ss:$2 sm:$0xf]  ;;  %v6162_v39 = vrot.slane %v6142_v10, 1  ;;  %v6166_v50 = vrot.slane %v6142_v10, 2  ;;  %v6170_v16 = vrot.slane %v6142_v10, 3 }
 0x76d   : > { %v6139_v26 = vadd.f32 %v6134_v5, %v6127_v33  ;;  %v6112_v56 = vld [vmem:[#allocation7 + $0xc7] ss:$2 sm:$0xf]  ;;  %v6124_v24 = vld [vmem:[#allocation7 + $0xc8] ss:$2 sm:$0xf] }
 0x76e   : > { %v6091_v17 = vadd.f32 %v6087_v53, %v6079_v61  ;;  %v6136_v18 = vld [vmem:[#allocation7 + $0xc9] ss:$2 sm:$0xf] }
 0x76f   : > { %v6143_v31 = vmul.f32 0.11111111, %v6139_v26 }
 0x770   : > { %v6103_v52 = vadd.f32 %v6099_v19, %v6091_v17 }
 0x771   : > { %v6175_v44 = vrot.slane %v6143_v31, 1  ;;  %v6179_v59 = vrot.slane %v6143_v31, 2  ;;  %v6183_v6 = vrot.slane %v6143_v31, 3 }
 0x772   : > { %v6116_v3 = vadd.f32 %v6112_v56, %v6103_v52 }
 0x773   : > { %v8459_v2 = vpack.i.bf16 %v6146_v8, %v6175_v44  ;;  %v8464_v20 = vpack.i.bf16 %v6150_v25, %v6179_v59  ;;  %v8469_v35 = vpack.i.bf16 %v6154_v21, %v6183_v6 }
 0x774   : > { %v6128_v43 = vadd.f32 %v6124_v24, %v6116_v3 }
 0x775   : > { %8460 = vrot.lane.b32.xlu0 %v8459_v2, %s11661_s29  ;;  %8465 = vrot.lane.b32.xlu1 %v8464_v20, %s11668_s13 }
 0x776   : > { %v6140_v0 = vadd.f32 %v6136_v18, %v6128_v43 }
 0x778   : > { %v6144_v4 = vmul.f32 0.11111111, %v6140_v0 }
 0x779   : > { %8470 = vrot.lane.b32.xlu0 %v8469_v35, %s11666_s24  ;;  %s11684_s24 = smov 96  }
 0x77a   : > { %v8474_v27 = vpack.i.bf16 %v6142_v10, %v6144_v4  ;;  %v6191_v11 = vrot.slane %v6144_v4, 1  ;;  %v6195_v9 = vrot.slane %v6144_v4, 2  ;;  %v6199_v1 = vrot.slane %v6144_v4, 3 }
 0x77c   : > { %8475 = vrot.lane.b32.xlu1 %v8474_v27, %s11680_s14  ;;  %v8479_v41 = vpack.i.bf16 %v6162_v39, %v6191_v11  ;;  %v8484_v15 = vpack.i.bf16 %v6166_v50, %v6195_v9  ;;  %v8489_v46 = vpack.i.bf16 %v6170_v16, %v6199_v1  ;;  %s377_s14 = sand.u32 1, %s8603_s18  }
 0x77d   : > { %s378_s12 = scalar_lea.vmem [#allocation8], %s377_s14  ;;  %s6390_s13 = scalar_lea.sflag [#allocation9], %s377_s14 }
 0x77e   : > { %8480 = vrot.lane.b32.xlu0 %v8479_v41, %s11683_s0  ;;  %s6402_s16 = sshll.u32 %s378_s12, 4  ;;  %s8553_s0 = sshll.u32 %s8630_s30, 4  ;;  %s11574_s16 = int_to_ptr.vmem [resolvable:$true] %s6402_s16  ;;  %s8554_s0 = int_to_ptr.vmem [resolvable:$false] %s8553_s0 }
 0x77f   : > { %s8549_s21 = scalar_lea.vmem %s11574_s16, 16  ;;  %p8556_p0 = scmp.lt.s32.totalorder %s11574_s16, %s8554_s0 }
 0x780   : > { %8485 = vrot.lane.b32.xlu1 %v8484_v15, %s11684_s24  ;;  %p8550_p11 = scmp.ne.s32.totalorder %s11574_s16, %s8549_s21  ;;  %s8555_s24 = scalar_lea.vmem %s8554_s0, 32 }
 0x781   : > { %p8557_p1 = scmp.lt.s32.totalorder %s8555_s24, %s8549_s21 }
 0x782   : > { %8490 = vrot.lane.b32.xlu0 %v8489_v46, %s11685_s1  ;;  %p8551_p12 = pnand %p8550_p11, %p8729_p5 }
 0x783   : > { %p8558_p2 = por %p8557_p1, %p8556_p0 }
 0x784   : > { %p8552_p13 = pneg %p8551_p12 }
 0x786   : > { %p8559_p3 = pnand %p8558_p2, %p8552_p13 }
 0x7e7   : > { %v8461_v58 = vpop.permute.xlu0 %8460  ;;  %v8466_v38 = vpop.permute.xlu1 %8465 }
 0x7e8   : > { %v8463_v54 = vunpack.i.h.bf16 %v8461_v58  ;;  %v8462_v62 = vunpack.i.l.bf16 %v8461_v58  ;;  %v8468_v36 = vunpack.i.h.bf16 %v8466_v38  ;;  %v8467_v49 = vunpack.i.l.bf16 %v8466_v38 }
 0x7ea   : > { %v6203_v23 = vsel %vm551_vm3, %v11510_v13, %v8463_v54  ;;  %v6210_v55 = vsel %vm551_vm3, %v6143_v31, %v8462_v62 }
 0x7eb   : > { %v8471_v40 = vpop.permute.xlu0 %8470  ;;  %v6204_v14 = vsel %vm1452_vm9, %v6203_v23, %v8468_v36  ;;  %v6211_v33 = vsel %vm1452_vm9, %v6210_v55, %v8467_v49 }
 0x7ec   : > { %v8473_v51 = vunpack.i.h.bf16 %v8471_v40  ;;  %v8472_v22 = vunpack.i.l.bf16 %v8471_v40 }
 0x7ee   : > { %v8476_v12 = vpop.permute.xlu1 %8475  ;;  %v6205_v61 = vsel %vm3421_vm13, %v6204_v14, %v8473_v51  ;;  %v6212_v47 = vsel %vm3421_vm13, %v6211_v33, %v8472_v22 }
 0x7ef   : > { %v8478_v32 = vunpack.i.h.bf16 %v8476_v12  ;;  %v8477_v5 = vunpack.i.l.bf16 %v8476_v12 }
 0x7f0   : > { %v8481_v7 = vpop.permute.xlu0 %8480 }
 0x7f1   : > { %v6206_v26 = vsel %vm3455_vm15, %v6205_v61, %v8478_v32  ;;  %v6213_v13 = vsel %vm3455_vm15, %v6212_v47, %v8477_v5  ;;  %v8483_v53 = vunpack.i.h.bf16 %v8481_v7  ;;  %v8482_v34 = vunpack.i.l.bf16 %v8481_v7 }
 0x7f2   : > { %v8486_v17 = vpop.permute.xlu1 %8485 }
 0x7f3   : > { %v6207_v60 = vsel %vm5825_vm4, %v6206_v26, %v8483_v53  ;;  %v6214_v37 = vsel %vm5825_vm4, %v6213_v13, %v8482_v34  ;;  %v8488_v31 = vunpack.i.h.bf16 %v8486_v17  ;;  %v8487_v19 = vunpack.i.l.bf16 %v8486_v17 }
 0x7f4   : > { %v8491_v8 = vpop.permute.xlu0 %8490 }
 0x7f5   : > { %v6208_v25 = vsel %vm5834_vm5, %v6207_v60, %v8488_v31  ;;  %v6215_v52 = vsel %vm5834_vm5, %v6214_v37, %v8487_v19  ;;  %v8493_v30 = vunpack.i.h.bf16 %v8491_v8  ;;  %v8492_v44 = vunpack.i.l.bf16 %v8491_v8 }
 0x7f7   : > { %v6209_v59 = vsel %vm5843_vm6, %v6208_v25, %v8493_v30  ;;  %v6216_v56 = vsel %vm5843_vm6, %v6215_v52, %v8492_v44 }
 0x7f8   : > { %v6217_v45 = vpack.c.bf16 %v6209_v59, %v6209_v59  ;;  %v6218_v3 = vpack.c.bf16 %v6216_v56, %v6216_v56 }
 0x7fa   : > { %6380 = vmatprep.mubr.bf16.mxu0 %v6218_v3 }
 0x7fb   : > { %6381 = vmatmul.mubr.bf16.vlgmr.msra.gmra.mrb[40].mxu0 %v6217_v45 }
 0x8ce   : > { %v6698_v48 = vpop.f32.mrb[40].mxu0 }
 0x8cf   : > { %v6699_v2 = vpop.f32.mrb[41].mxu0 }
 0x8d0   : > { %v6700_v20 = vadd.f32 %v6699_v2, %v6698_v48  ;;  %v6701_v6 = vpop.f32.mrb[42].mxu0 }
 0x8d1   : > { %v6702_v24 = vpop.f32.mrb[43].mxu0 }
 0x8d2   : > { %v6383_v43 = vadd.f32 %v6700_v20, %v6251_v57 }
 0x8d4   : > { %6388 = vst.msk [vmem:[%s378_s12] sm:$0x1] %vm554_vm2, %v6383_v43 }
 0x8d5   : > { %8562 = shalt.err (!%p8559_p3)
}
 0x8d6   : > { %s8563_s1 = scalar_lea.hbm %s11572_s15, 16  ;;  %s8567_s2 = scalar_lea.hbm %s11626_s11, 32 }
 0x8d7   : > { %p8564_p4 = scmp.ne.s32.totalorder %s11572_s15, %s8563_s1  ;;  %p8568_p9 = scmp.lt.u32.totalorder %s11572_s15, %s11626_s11 }
 0x8d8   : > { %p8569_p10 = scmp.lt.u32.totalorder %s8567_s2, %s8563_s1  ;;  %p8571_p12 = scmp.lt.u32.totalorder %s8563_s1, %s11572_s15 }
 0x8d9   : > { %p8565_p7 = pnand %p8564_p4, %p8729_p5 }
 0x8da   : > { %p8570_p11 = por %p8569_p10, %p8568_p9 }
 0x8db   : > { %p8566_p8 = pneg %p8565_p7 }
 0x8dc   : > { %p8572_p13 = por %p8571_p12, %p8570_p11 }
 0x8de   : > { %p8573_p0 = pnand %p8572_p13, %p8566_p8 }
 0x8e0   : > { %8576 = shalt.err (!%p8573_p0)
}
 0x8e1   : > { %6823 = dma.vmem_to_hbm [thread:$0]  (%p8729_p5), %s11574_s16, 16, %s11572_s15, %s6390_s13  }
 0x8e2 PF: > { %p6829_p1 = scmp.ge.s32.totalorder %s8611_s20, 2  ;;  %s6414_s22 = sand.u32 1, %s8599_s17  }
 0x8e3   : > { %s6415_s29 = scalar_lea.sflag [#allocation9], %s6414_s22 }
 0x8e4   : > { %p6826_p2 = pnand %p6829_p1, %p8733_p6 }
 0x8e6   : > { %8594 = dma.done.wait (!%p6826_p2), %s6415_s29, 16  }
 0x8e7   : > { %8596 = vsyncadd (!%p6826_p2), %s6415_s29, 4294967280  ;;  %p21_p3 = scmp.ge.s32.totalorder %s8716_s23, 4   ;;  %s11686_s17 = smov %s8603_s18 }
 0x8e8   : > { %s11687_s18 = smov %s8607_s19  ;;  %s11688_s19 = smov %s8727_s26 }
 0x8e9   : > { %s11689_s20 = smov %s8716_s23  ;;  %23 = sbr.rel (!%p21_p3) target bundleno = 8 (0x8), region = 232 }
 0x8f0   :  { %6419 = vsyncpa [#allocation9], 1 }
 0x8f1   :  { %6421 = vsyncpa [#allocation9 + $0x1], 1 }

</bundles_post_ra>
